<compile_context>
chip_gen: v5e
topology: v5e:2x2
jax: 0.10.0
libtpu: 0.0.40
codegen_flags: <defaults>
</compile_context>

<pallas_src>
import jax
import jax.numpy as jnp
from jax.experimental import pallas as pl
from jax.experimental.pallas import tpu as pltpu

N_BLOCKS = 5          # n_blocks
N_MOD = 3             # n_modulated_blocks
OUT_PAD = 8           # narrow padded output width (>= 1 + color_dim); full-array last dim


def _round_up(x, m):
    return ((x + m - 1) // m) * m


def pick_tile_b(bs):
    """Batch-size-aware tile selection.

    - Large batches: biggest power-of-two tile <= 2048 that still yields >= 2 grid
      steps, so dimension_semantics=("parallel",) can shard across v7x's two
      TensorCores (on 1-TC v5e/v6e the extra step only costs ~0.35us).
    - The 2048-row cap keeps per-step f32 intermediates (x, zmod, dx for two
      sub-chains plus double-buffered I/O blocks) well under v7x's 64 MiB VMEM;
      v5e/v6e (128 MiB) could go larger but 2048 rows already gives ~0.8 GFLOP per
      step, far above the per-step pipeline overhead.
    - Tiny batches: a single step covering the 16-padded batch.
    """
    tile_cap = 2048
    bs16 = _round_up(max(bs, 1), 16)
    if bs16 <= 32:
        return bs16
    t = tile_cap
    while t > 16 and _round_up(bs, t) // t < 2:
        t //= 2
    return t


def resnet_kernel(p_ref, d_ref, z_ref,
                  w_p_ref, w_d_ref, b_in_ref,
                  w_zb_ref, b_zb_ref,
                  w1_ref, b1_ref, w2_ref, b2_ref,
                  w_out_ref, b_out_ref,
                  out_ref):
    f32 = jnp.float32
    bf16 = jnp.bfloat16
    hid = w1_ref.shape[-1]
    tile_b = out_ref.shape[0]
    half = tile_b // 2

    # Load the (small, constant) weights once; both sub-chains share them.
    w_p = w_p_ref[...]
    w_d = w_d_ref[...]
    b_in = b_in_ref[...]
    w_zb = w_zb_ref[...]
    b_zb = b_zb_ref[...]
    w_out = w_out_ref[...]
    b_out = b_out_ref[...]

    def chain(rows):
        # fc_in (identity activation): cat([p, d]) @ w_in  ==  p @ w_p + d @ w_d
        pb = p_ref[rows, :].astype(bf16)
        db = d_ref[rows, :].astype(bf16)
        zb = z_ref[rows, :].astype(bf16)
        x = (jnp.dot(pb, w_p, preferred_element_type=f32)
             + jnp.dot(db, w_d, preferred_element_type=f32) + b_in)
        # all three z_bias linears in one (z_dim, 3*hid) matmul; dies after block N_MOD-1
        zmod = jnp.dot(zb, w_zb, preferred_element_type=f32) + b_zb

        # residual blocks (static unroll; n_blocks is small)
        for i in range(N_BLOCKS):
            if i < N_MOD:
                x = x + zmod[:, i * hid:(i + 1) * hid]            # + z_bias[i](z)
            # relu in bf16 (identical to relu-then-cast for ReLU), feeds the MXU
            h = jnp.maximum(x.astype(bf16), 0.0)                  # fc1 in_actv
            dx = jnp.dot(h, w1_ref[i], preferred_element_type=f32) + b1_ref[i]
            dx = jnp.maximum(dx.astype(bf16), 0.0)                # fc2 in_actv
            dx = jnp.dot(dx, w2_ref[i], preferred_element_type=f32) + b2_ref[i]
            x = x + dx                                            # identity skip

        # fc_out: in_actv=True -> relu before matmul, no output activation.
        h = jnp.maximum(x.astype(bf16), 0.0)
        return jnp.dot(h, w_out, preferred_element_type=f32) + b_out

    # Two data-independent row sub-tiles: the scheduler can overlap one chain's
    # VPU epilogue with the other chain's MXU pushes (no manual reordering).
    for s in range(2):
        rows = pl.ds(s * half, half)
        out_ref[rows, :] = chain(rows).astype(out_ref.dtype)


def pack_params(params, p_dim, d_dim):
    """One-time weight repacking (outside the per-call path): split fc_in into
    p/d row blocks, fuse the z-bias layers column-wise, pad fc_out to OUT_PAD
    columns, cast matmul weights to bf16 (biases stay f32)."""
    f32, bf16 = jnp.float32, jnp.bfloat16
    hid = params["w_in"].shape[1]
    out_dim = params["w_out"].shape[1]
    assert out_dim <= OUT_PAD

    w_zb = jnp.concatenate([params["zb_w"][i] for i in range(N_MOD)], axis=-1)
    b_zb = jnp.concatenate([params["zb_b"][i] for i in range(N_MOD)], axis=-1)
    w_out = jnp.zeros((hid, OUT_PAD), f32).at[:, :out_dim].set(params["w_out"])
    b_out = jnp.zeros((1, OUT_PAD), f32).at[:, :out_dim].set(params["b_out"])

    return {
        "w_p": params["w_in"][:p_dim].astype(bf16),
        "w_d": params["w_in"][p_dim:p_dim + d_dim].astype(bf16),
        "b_in": params["b_in"],                 # (1, hid) f32
        "w_zb": w_zb.astype(bf16),              # (z_dim, N_MOD*hid)
        "b_zb": b_zb,                           # (1, N_MOD*hid) f32
        "w1": params["w1"].astype(bf16),        # (N_BLOCKS, hid, hid)
        "b1": params["b1"],                     # (N_BLOCKS, 1, hid) f32
        "w2": params["w2"].astype(bf16),
        "b2": params["b2"],
        "w_out": w_out.astype(bf16),            # (hid, OUT_PAD)
        "b_out": b_out,                         # (1, OUT_PAD) f32
        "out_dim": out_dim,                     # python int, not passed to the kernel
    }


def resnet_forward(p, d, z, packed, *, tile_b=None):
    """Pallas-backed ResNet forward.  Returns (sigma (bs,1), color (bs,color_dim))."""
    bs = p.shape[0]
    out_dim = packed["out_dim"]
    hid = packed["w1"].shape[-1]
    if tile_b is None:
        tile_b = pick_tile_b(bs)
    assert tile_b % 16 == 0, "tile_b must be a multiple of 16 (two 8-aligned sub-tiles)"

    # No host-side concat; pad the batch only when it is not a tile multiple.
    bs_pad = _round_up(bs, tile_b)
    if bs_pad != bs:
        pad = ((0, bs_pad - bs), (0, 0))
        p, d, z = jnp.pad(p, pad), jnp.pad(d, pad), jnp.pad(z, pad)
    n_steps = bs_pad // tile_b

    p_dim, d_dim, z_dim = p.shape[1], d.shape[1], z.shape[1]
    weight_names = ("w_p", "w_d", "b_in", "w_zb", "b_zb",
                    "w1", "b1", "w2", "b2", "w_out", "b_out")
    weight_args = [packed[k] for k in weight_names]

    def row_spec(dim):
        return pl.BlockSpec((tile_b, dim), lambda i: (i, 0))

    def full_spec(a):
        nd = a.ndim
        return pl.BlockSpec(a.shape, lambda i, _nd=nd: (0,) * _nd)

    flops = 2 * bs_pad * ((p_dim + d_dim) * hid + z_dim * N_MOD * hid
                          + 2 * N_BLOCKS * hid * hid + hid * OUT_PAD)
    bytes_accessed = (sum(a.size * a.dtype.itemsize for a in (p, d, z))
                      + sum(a.size * a.dtype.itemsize for a in weight_args)
                      + bs_pad * OUT_PAD * 4)

    out = pl.pallas_call(
        resnet_kernel,
        out_shape=jax.ShapeDtypeStruct((bs_pad, OUT_PAD), jnp.float32),
        grid_spec=pltpu.PrefetchScalarGridSpec(
            num_scalar_prefetch=0,
            grid=(n_steps,),
            in_specs=[row_spec(p_dim), row_spec(d_dim), row_spec(z_dim)]
                     + [full_spec(a) for a in weight_args],
            out_specs=pl.BlockSpec((tile_b, OUT_PAD), lambda i: (i, 0)),
        ),
        compiler_params=pltpu.CompilerParams(
            dimension_semantics=("parallel",),
            vmem_limit_bytes=48 * 1024 * 1024),
        cost_estimate=pl.CostEstimate(flops=flops, transcendentals=0,
                                      bytes_accessed=bytes_accessed),
    )(p, d, z, *weight_args)

    out = out[:bs]
    sigma, color = out[:, :1], out[:, 1:out_dim]
    return sigma, color


def resnet_ref(p, d, z, params):
    """Pure-JAX reference with the same bf16-operand / f32-accumulation convention
    (unfused layer structure — also verifies the in-kernel fusion/splitting)."""
    f32, bf16 = jnp.float32, jnp.bfloat16
    pd = jnp.concatenate([p, d], axis=-1).astype(bf16)
    zb = z.astype(bf16)
    x = jnp.dot(pd, params["w_in"].astype(bf16), preferred_element_type=f32) \
        + params["b_in"][0]
    for i in range(N_BLOCKS):
        if i < N_MOD:
            x = x + (jnp.dot(zb, params["zb_w"][i].astype(bf16),
                             preferred_element_type=f32) + params["zb_b"][i, 0])
        h = jnp.maximum(x, 0.0).astype(bf16)
        dx = jnp.dot(h, params["w1"][i].astype(bf16),
                     preferred_element_type=f32) + params["b1"][i, 0]
        dx = jnp.maximum(dx, 0.0).astype(bf16)
        dx = jnp.dot(dx, params["w2"][i].astype(bf16),
                     preferred_element_type=f32) + params["b2"][i, 0]
        x = x + dx
    h = jnp.maximum(x, 0.0).astype(bf16)
    out = jnp.dot(h, params["w_out"].astype(bf16),
                  preferred_element_type=f32) + params["b_out"][0]
    return out[:, :1], out[:, 1:]


def init_params(key, p_dim, d_dim, z_dim, hid_dim, color_dim):
    """Deterministic synthetic weights with the same shapes as the PyTorch module
    (pre-transposed to (in, out)); kaiming-like scaling, non-zero everywhere so the
    residual paths actually contribute."""
    in_dim = p_dim + d_dim
    out_dim = 1 + color_dim
    keys = jax.random.split(key, 12)

    def lin_w(k, fi, fo, gain=jnp.sqrt(2.0)):
        return (gain / jnp.sqrt(jnp.float32(fi))) * jax.random.normal(k, (fi, fo), jnp.float32)

    def lin_b(k, fo):
        return 0.01 * jax.random.normal(k, (1, fo), jnp.float32)

    params = {
        "w_in": lin_w(keys[0], in_dim, hid_dim, gain=1.0),
        "b_in": lin_b(keys[1], hid_dim),
        "zb_w": jnp.stack([lin_w(k, z_dim, hid_dim, gain=1.0)
                           for k in jax.random.split(keys[2], N_MOD)]),
        "zb_b": jnp.stack([lin_b(k, hid_dim)
                           for k in jax.random.split(keys[3], N_MOD)]),
        "w1": jnp.stack([lin_w(k, hid_dim, hid_dim)
                         for k in jax.random.split(keys[4], N_BLOCKS)]),
        "b1": jnp.stack([lin_b(k, hid_dim)
                         for k in jax.random.split(keys[5], N_BLOCKS)]),
        # fc2 is zero-init in the original module; use small random values here so
        # the kernel path is exercised (synthetic weights, not a checkpoint load).
        "w2": jnp.stack([0.1 * lin_w(k, hid_dim, hid_dim)
                         for k in jax.random.split(keys[6], N_BLOCKS)]),
        "b2": jnp.stack([lin_b(k, hid_dim)
                         for k in jax.random.split(keys[7], N_BLOCKS)]),
        "w_out": lin_w(keys[8], hid_dim, out_dim),
        "b_out": lin_b(keys[9], out_dim),
    }
    return params


if __name__ == "__main__":
    # Small shapes consistent with the module's forward signature.  bs=1024 gives an
    # auto-selected tile_b=512 -> 2 grid steps (both v7x TensorCores busy), no padding.
    bs, p_dim, d_dim, z_dim, hid_dim, color_dim = 1024, 16, 16, 16, 128, 3

    key = jax.random.PRNGKey(0)
    kp, kd, kz, kw = jax.random.split(key, 4)
    p = jax.random.normal(kp, (bs, p_dim), jnp.float32)
    d = jax.random.normal(kd, (bs, d_dim), jnp.float32)
    z = jax.random.normal(kz, (bs, z_dim), jnp.float32)
    params = init_params(kw, p_dim, d_dim, z_dim, hid_dim, color_dim)

    packed = pack_params(params, p_dim, d_dim)   # one-time weight repacking
    sigma, color = resnet_forward(p, d, z, packed)
    jax.block_until_ready((sigma, color))

    sigma_ref, color_ref = resnet_ref(p, d, z, params)
    assert sigma.shape == (bs, 1) and color.shape == (bs, color_dim)
    # Both paths use bf16 matmul operands with f32 accumulation; the kernel's
    # fc_in split and z-bias fusion only reassociate f32 sums, so differences are
    # occasional bf16-rounding-boundary flips on intermediates -> 1e-2 is ample.
    assert jnp.allclose(sigma, sigma_ref, rtol=1e-2, atol=1e-2), "sigma mismatch"
    assert jnp.allclose(color, color_ref, rtol=1e-2, atol=1e-2), "color mismatch"

    print("KERNEL_OK")
</pallas_src>

<mosaic_0001>
module attributes {stable_mosaic.version = 11 : i64} {
  func.func @resnet_kernel(%arg0: i32, %arg1: memref<512x16xf32, #tpu.memory_space<vmem>>, %arg2: memref<512x16xf32, #tpu.memory_space<vmem>>, %arg3: memref<512x16xf32, #tpu.memory_space<vmem>>, %arg4: memref<16x128xbf16, #tpu.memory_space<vmem>>, %arg5: memref<16x128xbf16, #tpu.memory_space<vmem>>, %arg6: memref<1x128xf32, #tpu.memory_space<vmem>>, %arg7: memref<16x384xbf16, #tpu.memory_space<vmem>>, %arg8: memref<1x384xf32, #tpu.memory_space<vmem>>, %arg9: memref<5x128x128xbf16, #tpu.memory_space<vmem>>, %arg10: memref<5x1x128xf32, #tpu.memory_space<vmem>>, %arg11: memref<5x128x128xbf16, #tpu.memory_space<vmem>>, %arg12: memref<5x1x128xf32, #tpu.memory_space<vmem>>, %arg13: memref<128x8xbf16, #tpu.memory_space<vmem>>, %arg14: memref<1x8xf32, #tpu.memory_space<vmem>>, %arg15: memref<512x8xf32, #tpu.memory_space<vmem>>) attributes {dimension_semantics = [#tpu.dimension_semantics<parallel>], iteration_bounds = array<i64: 2>, scalar_prefetch = 0 : i64, scratch_operands = 0 : i64, tpu.core_type = #tpu.core_type<tc>, window_params = [{transform_indices = @transform_0, window_bounds = array<i64: 512, 16>}, {transform_indices = @transform_1, window_bounds = array<i64: 512, 16>}, {transform_indices = @transform_2, window_bounds = array<i64: 512, 16>}, {pipeline_mode = #tpu.pipeline_mode<synchronous>, transform_indices = @transform_3, window_bounds = array<i64: 16, 128>}, {pipeline_mode = #tpu.pipeline_mode<synchronous>, transform_indices = @transform_4, window_bounds = array<i64: 16, 128>}, {pipeline_mode = #tpu.pipeline_mode<synchronous>, transform_indices = @transform_5, window_bounds = array<i64: 1, 128>}, {pipeline_mode = #tpu.pipeline_mode<synchronous>, transform_indices = @transform_6, window_bounds = array<i64: 16, 384>}, {pipeline_mode = #tpu.pipeline_mode<synchronous>, transform_indices = @transform_7, window_bounds = array<i64: 1, 384>}, {pipeline_mode = #tpu.pipeline_mode<synchronous>, transform_indices = @transform_8, window_bounds = array<i64: 5, 128, 128>}, {pipeline_mode = #tpu.pipeline_mode<synchronous>, transform_indices = @transform_9, window_bounds = array<i64: 5, 1, 128>}, {pipeline_mode = #tpu.pipeline_mode<synchronous>, transform_indices = @transform_10, window_bounds = array<i64: 5, 128, 128>}, {pipeline_mode = #tpu.pipeline_mode<synchronous>, transform_indices = @transform_11, window_bounds = array<i64: 5, 1, 128>}, {pipeline_mode = #tpu.pipeline_mode<synchronous>, transform_indices = @transform_12, window_bounds = array<i64: 128, 8>}, {pipeline_mode = #tpu.pipeline_mode<synchronous>, transform_indices = @transform_13, window_bounds = array<i64: 1, 8>}, {transform_indices = @transform_14, window_bounds = array<i64: 512, 8>}]} {
    %c0 = arith.constant 0 : index
    %c0_0 = arith.constant 0 : index
    %0 = vector.load %arg4[%c0, %c0_0] : memref<16x128xbf16, #tpu.memory_space<vmem>>, vector<16x128xbf16>
    %c0_1 = arith.constant 0 : index
    %c0_2 = arith.constant 0 : index
    %1 = vector.load %arg5[%c0_1, %c0_2] : memref<16x128xbf16, #tpu.memory_space<vmem>>, vector<16x128xbf16>
    %c0_3 = arith.constant 0 : index
    %c0_4 = arith.constant 0 : index
    %2 = vector.load %arg6[%c0_3, %c0_4] : memref<1x128xf32, #tpu.memory_space<vmem>>, vector<1x128xf32>
    %c0_5 = arith.constant 0 : index
    %c0_6 = arith.constant 0 : index
    %3 = vector.load %arg7[%c0_5, %c0_6] : memref<16x384xbf16, #tpu.memory_space<vmem>>, vector<16x384xbf16>
    %c0_7 = arith.constant 0 : index
    %c0_8 = arith.constant 0 : index
    %4 = vector.load %arg8[%c0_7, %c0_8] : memref<1x384xf32, #tpu.memory_space<vmem>>, vector<1x384xf32>
    %c0_9 = arith.constant 0 : index
    %c0_10 = arith.constant 0 : index
    %5 = vector.load %arg13[%c0_9, %c0_10] : memref<128x8xbf16, #tpu.memory_space<vmem>>, vector<128x8xbf16>
    %c0_11 = arith.constant 0 : index
    %c0_12 = arith.constant 0 : index
    %6 = vector.load %arg14[%c0_11, %c0_12] : memref<1x8xf32, #tpu.memory_space<vmem>>, vector<1x8xf32>
    %c0_13 = arith.constant 0 : index
    %c0_14 = arith.constant 0 : index
    %7 = vector.load %arg1[%c0_13, %c0_14] : memref<512x16xf32, #tpu.memory_space<vmem>>, vector<256x16xf32>
    %8 = arith.truncf %7 : vector<256x16xf32> to vector<256x16xbf16>
    %c0_15 = arith.constant 0 : index
    %c0_16 = arith.constant 0 : index
    %9 = vector.load %arg2[%c0_15, %c0_16] : memref<512x16xf32, #tpu.memory_space<vmem>>, vector<256x16xf32>
    %10 = arith.truncf %9 : vector<256x16xf32> to vector<256x16xbf16>
    %c0_17 = arith.constant 0 : index
    %c0_18 = arith.constant 0 : index
    %11 = vector.load %arg3[%c0_17, %c0_18] : memref<512x16xf32, #tpu.memory_space<vmem>>, vector<256x16xf32>
    %12 = arith.truncf %11 : vector<256x16xf32> to vector<256x16xbf16>
    %cst = arith.constant dense<0.000000e+00> : vector<256x128xf32>
    %13 = tpu.matmul %8, %0, %cst {dimension_numbers = #tpu.dot_dimension_numbers<[1], [0], [0], [1], [0, 0, 1, 1], [], []>} : vector<256x16xbf16>, vector<16x128xbf16>, vector<256x128xf32> -> vector<256x128xf32>
    %cst_19 = arith.constant dense<0.000000e+00> : vector<256x128xf32>
    %14 = tpu.matmul %10, %1, %cst_19 {dimension_numbers = #tpu.dot_dimension_numbers<[1], [0], [0], [1], [0, 0, 1, 1], [], []>} : vector<256x16xbf16>, vector<16x128xbf16>, vector<256x128xf32> -> vector<256x128xf32>
    %15 = arith.addf %13, %14 : vector<256x128xf32>
    %16 = vector.broadcast %2 : vector<1x128xf32> to vector<256x128xf32>
    %17 = arith.addf %15, %16 : vector<256x128xf32>
    %cst_20 = arith.constant dense<0.000000e+00> : vector<256x384xf32>
    %18 = tpu.matmul %12, %3, %cst_20 {dimension_numbers = #tpu.dot_dimension_numbers<[1], [0], [0], [1], [0, 0, 1, 1], [], []>} : vector<256x16xbf16>, vector<16x384xbf16>, vector<256x384xf32> -> vector<256x384xf32>
    %19 = vector.broadcast %4 : vector<1x384xf32> to vector<256x384xf32>
    %20 = arith.addf %18, %19 : vector<256x384xf32>
    %21 = vector.extract_strided_slice %20 {offsets = [0, 0], sizes = [256, 128], strides = [1, 1]} : vector<256x384xf32> to vector<256x128xf32>
    %22 = arith.addf %17, %21 : vector<256x128xf32>
    %23 = arith.truncf %22 : vector<256x128xf32> to vector<256x128xbf16>
    %cst_21 = arith.constant 0.000000e+00 : bf16
    %24 = vector.broadcast %cst_21 : bf16 to vector<256x128xbf16>
    %25 = arith.maximumf %23, %24 : vector<256x128xbf16>
    %c0_22 = arith.constant 0 : index
    %c0_23 = arith.constant 0 : index
    %c0_24 = arith.constant 0 : index
    %26 = vector.load %arg9[%c0_22, %c0_23, %c0_24] : memref<5x128x128xbf16, #tpu.memory_space<vmem>>, vector<1x128x128xbf16>
    %27 = vector.shape_cast %26 : vector<1x128x128xbf16> to vector<128x128xbf16>
    %cst_25 = arith.constant dense<0.000000e+00> : vector<256x128xf32>
    %28 = tpu.matmul %25, %27, %cst_25 {dimension_numbers = #tpu.dot_dimension_numbers<[1], [0], [0], [1], [0, 0, 1, 1], [], []>} : vector<256x128xbf16>, vector<128x128xbf16>, vector<256x128xf32> -> vector<256x128xf32>
    %c0_26 = arith.constant 0 : index
    %c0_27 = arith.constant 0 : index
    %c0_28 = arith.constant 0 : index
    %29 = vector.load %arg10[%c0_26, %c0_27, %c0_28] : memref<5x1x128xf32, #tpu.memory_space<vmem>>, vector<1x1x128xf32>
    %30 = vector.shape_cast %29 : vector<1x1x128xf32> to vector<1x128xf32>
    %31 = vector.broadcast %30 : vector<1x128xf32> to vector<256x128xf32>
    %32 = arith.addf %28, %31 : vector<256x128xf32>
    %33 = arith.truncf %32 : vector<256x128xf32> to vector<256x128xbf16>
    %cst_29 = arith.constant 0.000000e+00 : bf16
    %34 = vector.broadcast %cst_29 : bf16 to vector<256x128xbf16>
    %35 = arith.maximumf %33, %34 : vector<256x128xbf16>
    %c0_30 = arith.constant 0 : index
    %c0_31 = arith.constant 0 : index
    %c0_32 = arith.constant 0 : index
    %36 = vector.load %arg11[%c0_30, %c0_31, %c0_32] : memref<5x128x128xbf16, #tpu.memory_space<vmem>>, vector<1x128x128xbf16>
    %37 = vector.shape_cast %36 : vector<1x128x128xbf16> to vector<128x128xbf16>
    %cst_33 = arith.constant dense<0.000000e+00> : vector<256x128xf32>
    %38 = tpu.matmul %35, %37, %cst_33 {dimension_numbers = #tpu.dot_dimension_numbers<[1], [0], [0], [1], [0, 0, 1, 1], [], []>} : vector<256x128xbf16>, vector<128x128xbf16>, vector<256x128xf32> -> vector<256x128xf32>
    %c0_34 = arith.constant 0 : index
    %c0_35 = arith.constant 0 : index
    %c0_36 = arith.constant 0 : index
    %39 = vector.load %arg12[%c0_34, %c0_35, %c0_36] : memref<5x1x128xf32, #tpu.memory_space<vmem>>, vector<1x1x128xf32>
    %40 = vector.shape_cast %39 : vector<1x1x128xf32> to vector<1x128xf32>
    %41 = vector.broadcast %40 : vector<1x128xf32> to vector<256x128xf32>
    %42 = arith.addf %38, %41 : vector<256x128xf32>
    %43 = arith.addf %22, %42 : vector<256x128xf32>
    %44 = vector.extract_strided_slice %20 {offsets = [0, 128], sizes = [256, 128], strides = [1, 1]} : vector<256x384xf32> to vector<256x128xf32>
    %45 = arith.addf %43, %44 : vector<256x128xf32>
    %46 = arith.truncf %45 : vector<256x128xf32> to vector<256x128xbf16>
    %cst_37 = arith.constant 0.000000e+00 : bf16
    %47 = vector.broadcast %cst_37 : bf16 to vector<256x128xbf16>
    %48 = arith.maximumf %46, %47 : vector<256x128xbf16>
    %c1 = arith.constant 1 : index
    %c0_38 = arith.constant 0 : index
    %c0_39 = arith.constant 0 : index
    %49 = vector.load %arg9[%c1, %c0_38, %c0_39] : memref<5x128x128xbf16, #tpu.memory_space<vmem>>, vector<1x128x128xbf16>
    %50 = vector.shape_cast %49 : vector<1x128x128xbf16> to vector<128x128xbf16>
    %cst_40 = arith.constant dense<0.000000e+00> : vector<256x128xf32>
    %51 = tpu.matmul %48, %50, %cst_40 {dimension_numbers = #tpu.dot_dimension_numbers<[1], [0], [0], [1], [0, 0, 1, 1], [], []>} : vector<256x128xbf16>, vector<128x128xbf16>, vector<256x128xf32> -> vector<256x128xf32>
    %c1_41 = arith.constant 1 : index
    %c0_42 = arith.constant 0 : index
    %c0_43 = arith.constant 0 : index
    %52 = vector.load %arg10[%c1_41, %c0_42, %c0_43] : memref<5x1x128xf32, #tpu.memory_space<vmem>>, vector<1x1x128xf32>
    %53 = vector.shape_cast %52 : vector<1x1x128xf32> to vector<1x128xf32>
    %54 = vector.broadcast %53 : vector<1x128xf32> to vector<256x128xf32>
    %55 = arith.addf %51, %54 : vector<256x128xf32>
    %56 = arith.truncf %55 : vector<256x128xf32> to vector<256x128xbf16>
    %cst_44 = arith.constant 0.000000e+00 : bf16
    %57 = vector.broadcast %cst_44 : bf16 to vector<256x128xbf16>
    %58 = arith.maximumf %56, %57 : vector<256x128xbf16>
    %c1_45 = arith.constant 1 : index
    %c0_46 = arith.constant 0 : index
    %c0_47 = arith.constant 0 : index
    %59 = vector.load %arg11[%c1_45, %c0_46, %c0_47] : memref<5x128x128xbf16, #tpu.memory_space<vmem>>, vector<1x128x128xbf16>
    %60 = vector.shape_cast %59 : vector<1x128x128xbf16> to vector<128x128xbf16>
    %cst_48 = arith.constant dense<0.000000e+00> : vector<256x128xf32>
    %61 = tpu.matmul %58, %60, %cst_48 {dimension_numbers = #tpu.dot_dimension_numbers<[1], [0], [0], [1], [0, 0, 1, 1], [], []>} : vector<256x128xbf16>, vector<128x128xbf16>, vector<256x128xf32> -> vector<256x128xf32>
    %c1_49 = arith.constant 1 : index
    %c0_50 = arith.constant 0 : index
    %c0_51 = arith.constant 0 : index
    %62 = vector.load %arg12[%c1_49, %c0_50, %c0_51] : memref<5x1x128xf32, #tpu.memory_space<vmem>>, vector<1x1x128xf32>
    %63 = vector.shape_cast %62 : vector<1x1x128xf32> to vector<1x128xf32>
    %64 = vector.broadcast %63 : vector<1x128xf32> to vector<256x128xf32>
    %65 = arith.addf %61, %64 : vector<256x128xf32>
    %66 = arith.addf %45, %65 : vector<256x128xf32>
    %67 = vector.extract_strided_slice %20 {offsets = [0, 256], sizes = [256, 128], strides = [1, 1]} : vector<256x384xf32> to vector<256x128xf32>
    %68 = arith.addf %66, %67 : vector<256x128xf32>
    %69 = arith.truncf %68 : vector<256x128xf32> to vector<256x128xbf16>
    %cst_52 = arith.constant 0.000000e+00 : bf16
    %70 = vector.broadcast %cst_52 : bf16 to vector<256x128xbf16>
    %71 = arith.maximumf %69, %70 : vector<256x128xbf16>
    %c2 = arith.constant 2 : index
    %c0_53 = arith.constant 0 : index
    %c0_54 = arith.constant 0 : index
    %72 = vector.load %arg9[%c2, %c0_53, %c0_54] : memref<5x128x128xbf16, #tpu.memory_space<vmem>>, vector<1x128x128xbf16>
    %73 = vector.shape_cast %72 : vector<1x128x128xbf16> to vector<128x128xbf16>
    %cst_55 = arith.constant dense<0.000000e+00> : vector<256x128xf32>
    %74 = tpu.matmul %71, %73, %cst_55 {dimension_numbers = #tpu.dot_dimension_numbers<[1], [0], [0], [1], [0, 0, 1, 1], [], []>} : vector<256x128xbf16>, vector<128x128xbf16>, vector<256x128xf32> -> vector<256x128xf32>
    %c2_56 = arith.constant 2 : index
    %c0_57 = arith.constant 0 : index
    %c0_58 = arith.constant 0 : index
    %75 = vector.load %arg10[%c2_56, %c0_57, %c0_58] : memref<5x1x128xf32, #tpu.memory_space<vmem>>, vector<1x1x128xf32>
    %76 = vector.shape_cast %75 : vector<1x1x128xf32> to vector<1x128xf32>
    %77 = vector.broadcast %76 : vector<1x128xf32> to vector<256x128xf32>
    %78 = arith.addf %74, %77 : vector<256x128xf32>
    %79 = arith.truncf %78 : vector<256x128xf32> to vector<256x128xbf16>
    %cst_59 = arith.constant 0.000000e+00 : bf16
    %80 = vector.broadcast %cst_59 : bf16 to vector<256x128xbf16>
    %81 = arith.maximumf %79, %80 : vector<256x128xbf16>
    %c2_60 = arith.constant 2 : index
    %c0_61 = arith.constant 0 : index
    %c0_62 = arith.constant 0 : index
    %82 = vector.load %arg11[%c2_60, %c0_61, %c0_62] : memref<5x128x128xbf16, #tpu.memory_space<vmem>>, vector<1x128x128xbf16>
    %83 = vector.shape_cast %82 : vector<1x128x128xbf16> to vector<128x128xbf16>
    %cst_63 = arith.constant dense<0.000000e+00> : vector<256x128xf32>
    %84 = tpu.matmul %81, %83, %cst_63 {dimension_numbers = #tpu.dot_dimension_numbers<[1], [0], [0], [1], [0, 0, 1, 1], [], []>} : vector<256x128xbf16>, vector<128x128xbf16>, vector<256x128xf32> -> vector<256x128xf32>
    %c2_64 = arith.constant 2 : index
    %c0_65 = arith.constant 0 : index
    %c0_66 = arith.constant 0 : index
    %85 = vector.load %arg12[%c2_64, %c0_65, %c0_66] : memref<5x1x128xf32, #tpu.memory_space<vmem>>, vector<1x1x128xf32>
    %86 = vector.shape_cast %85 : vector<1x1x128xf32> to vector<1x128xf32>
    %87 = vector.broadcast %86 : vector<1x128xf32> to vector<256x128xf32>
    %88 = arith.addf %84, %87 : vector<256x128xf32>
    %89 = arith.addf %68, %88 : vector<256x128xf32>
    %90 = arith.truncf %89 : vector<256x128xf32> to vector<256x128xbf16>
    %cst_67 = arith.constant 0.000000e+00 : bf16
    %91 = vector.broadcast %cst_67 : bf16 to vector<256x128xbf16>
    %92 = arith.maximumf %90, %91 : vector<256x128xbf16>
    %c3 = arith.constant 3 : index
    %c0_68 = arith.constant 0 : index
    %c0_69 = arith.constant 0 : index
    %93 = vector.load %arg9[%c3, %c0_68, %c0_69] : memref<5x128x128xbf16, #tpu.memory_space<vmem>>, vector<1x128x128xbf16>
    %94 = vector.shape_cast %93 : vector<1x128x128xbf16> to vector<128x128xbf16>
    %cst_70 = arith.constant dense<0.000000e+00> : vector<256x128xf32>
    %95 = tpu.matmul %92, %94, %cst_70 {dimension_numbers = #tpu.dot_dimension_numbers<[1], [0], [0], [1], [0, 0, 1, 1], [], []>} : vector<256x128xbf16>, vector<128x128xbf16>, vector<256x128xf32> -> vector<256x128xf32>
    %c3_71 = arith.constant 3 : index
    %c0_72 = arith.constant 0 : index
    %c0_73 = arith.constant 0 : index
    %96 = vector.load %arg10[%c3_71, %c0_72, %c0_73] : memref<5x1x128xf32, #tpu.memory_space<vmem>>, vector<1x1x128xf32>
    %97 = vector.shape_cast %96 : vector<1x1x128xf32> to vector<1x128xf32>
    %98 = vector.broadcast %97 : vector<1x128xf32> to vector<256x128xf32>
    %99 = arith.addf %95, %98 : vector<256x128xf32>
    %100 = arith.truncf %99 : vector<256x128xf32> to vector<256x128xbf16>
    %cst_74 = arith.constant 0.000000e+00 : bf16
    %101 = vector.broadcast %cst_74 : bf16 to vector<256x128xbf16>
    %102 = arith.maximumf %100, %101 : vector<256x128xbf16>
    %c3_75 = arith.constant 3 : index
    %c0_76 = arith.constant 0 : index
    %c0_77 = arith.constant 0 : index
    %103 = vector.load %arg11[%c3_75, %c0_76, %c0_77] : memref<5x128x128xbf16, #tpu.memory_space<vmem>>, vector<1x128x128xbf16>
    %104 = vector.shape_cast %103 : vector<1x128x128xbf16> to vector<128x128xbf16>
    %cst_78 = arith.constant dense<0.000000e+00> : vector<256x128xf32>
    %105 = tpu.matmul %102, %104, %cst_78 {dimension_numbers = #tpu.dot_dimension_numbers<[1], [0], [0], [1], [0, 0, 1, 1], [], []>} : vector<256x128xbf16>, vector<128x128xbf16>, vector<256x128xf32> -> vector<256x128xf32>
    %c3_79 = arith.constant 3 : index
    %c0_80 = arith.constant 0 : index
    %c0_81 = arith.constant 0 : index
    %106 = vector.load %arg12[%c3_79, %c0_80, %c0_81] : memref<5x1x128xf32, #tpu.memory_space<vmem>>, vector<1x1x128xf32>
    %107 = vector.shape_cast %106 : vector<1x1x128xf32> to vector<1x128xf32>
    %108 = vector.broadcast %107 : vector<1x128xf32> to vector<256x128xf32>
    %109 = arith.addf %105, %108 : vector<256x128xf32>
    %110 = arith.addf %89, %109 : vector<256x128xf32>
    %111 = arith.truncf %110 : vector<256x128xf32> to vector<256x128xbf16>
    %cst_82 = arith.constant 0.000000e+00 : bf16
    %112 = vector.broadcast %cst_82 : bf16 to vector<256x128xbf16>
    %113 = arith.maximumf %111, %112 : vector<256x128xbf16>
    %c4 = arith.constant 4 : index
    %c0_83 = arith.constant 0 : index
    %c0_84 = arith.constant 0 : index
    %114 = vector.load %arg9[%c4, %c0_83, %c0_84] : memref<5x128x128xbf16, #tpu.memory_space<vmem>>, vector<1x128x128xbf16>
    %115 = vector.shape_cast %114 : vector<1x128x128xbf16> to vector<128x128xbf16>
    %cst_85 = arith.constant dense<0.000000e+00> : vector<256x128xf32>
    %116 = tpu.matmul %113, %115, %cst_85 {dimension_numbers = #tpu.dot_dimension_numbers<[1], [0], [0], [1], [0, 0, 1, 1], [], []>} : vector<256x128xbf16>, vector<128x128xbf16>, vector<256x128xf32> -> vector<256x128xf32>
    %c4_86 = arith.constant 4 : index
    %c0_87 = arith.constant 0 : index
    %c0_88 = arith.constant 0 : index
    %117 = vector.load %arg10[%c4_86, %c0_87, %c0_88] : memref<5x1x128xf32, #tpu.memory_space<vmem>>, vector<1x1x128xf32>
    %118 = vector.shape_cast %117 : vector<1x1x128xf32> to vector<1x128xf32>
    %119 = vector.broadcast %118 : vector<1x128xf32> to vector<256x128xf32>
    %120 = arith.addf %116, %119 : vector<256x128xf32>
    %121 = arith.truncf %120 : vector<256x128xf32> to vector<256x128xbf16>
    %cst_89 = arith.constant 0.000000e+00 : bf16
    %122 = vector.broadcast %cst_89 : bf16 to vector<256x128xbf16>
    %123 = arith.maximumf %121, %122 : vector<256x128xbf16>
    %c4_90 = arith.constant 4 : index
    %c0_91 = arith.constant 0 : index
    %c0_92 = arith.constant 0 : index
    %124 = vector.load %arg11[%c4_90, %c0_91, %c0_92] : memref<5x128x128xbf16, #tpu.memory_space<vmem>>, vector<1x128x128xbf16>
    %125 = vector.shape_cast %124 : vector<1x128x128xbf16> to vector<128x128xbf16>
    %cst_93 = arith.constant dense<0.000000e+00> : vector<256x128xf32>
    %126 = tpu.matmul %123, %125, %cst_93 {dimension_numbers = #tpu.dot_dimension_numbers<[1], [0], [0], [1], [0, 0, 1, 1], [], []>} : vector<256x128xbf16>, vector<128x128xbf16>, vector<256x128xf32> -> vector<256x128xf32>
    %c4_94 = arith.constant 4 : index
    %c0_95 = arith.constant 0 : index
    %c0_96 = arith.constant 0 : index
    %127 = vector.load %arg12[%c4_94, %c0_95, %c0_96] : memref<5x1x128xf32, #tpu.memory_space<vmem>>, vector<1x1x128xf32>
    %128 = vector.shape_cast %127 : vector<1x1x128xf32> to vector<1x128xf32>
    %129 = vector.broadcast %128 : vector<1x128xf32> to vector<256x128xf32>
    %130 = arith.addf %126, %129 : vector<256x128xf32>
    %131 = arith.addf %110, %130 : vector<256x128xf32>
    %132 = arith.truncf %131 : vector<256x128xf32> to vector<256x128xbf16>
    %cst_97 = arith.constant 0.000000e+00 : bf16
    %133 = vector.broadcast %cst_97 : bf16 to vector<256x128xbf16>
    %134 = arith.maximumf %132, %133 : vector<256x128xbf16>
    %cst_98 = arith.constant dense<0.000000e+00> : vector<256x8xf32>
    %135 = tpu.matmul %134, %5, %cst_98 {dimension_numbers = #tpu.dot_dimension_numbers<[1], [0], [0], [1], [0, 0, 1, 1], [], []>} : vector<256x128xbf16>, vector<128x8xbf16>, vector<256x8xf32> -> vector<256x8xf32>
    %136 = vector.broadcast %6 : vector<1x8xf32> to vector<256x8xf32>
    %137 = arith.addf %135, %136 : vector<256x8xf32>
    %c0_99 = arith.constant 0 : index
    %c0_100 = arith.constant 0 : index
    %138 = vector.load %arg15[%c0_99, %c0_100] : memref<512x8xf32, #tpu.memory_space<vmem>>, vector<256x8xf32>
    tpu.vector_store %arg15[%c0_99, %c0_100], %137 {strides = array<i32>} : memref<512x8xf32, #tpu.memory_space<vmem>>, vector<256x8xf32>,
    %c256 = arith.constant 256 : index
    %c0_101 = arith.constant 0 : index
    %139 = vector.load %arg1[%c256, %c0_101] : memref<512x16xf32, #tpu.memory_space<vmem>>, vector<256x16xf32>
    %140 = arith.truncf %139 : vector<256x16xf32> to vector<256x16xbf16>
    %c256_102 = arith.constant 256 : index
    %c0_103 = arith.constant 0 : index
    %141 = vector.load %arg2[%c256_102, %c0_103] : memref<512x16xf32, #tpu.memory_space<vmem>>, vector<256x16xf32>
    %142 = arith.truncf %141 : vector<256x16xf32> to vector<256x16xbf16>
    %c256_104 = arith.constant 256 : index
    %c0_105 = arith.constant 0 : index
    %143 = vector.load %arg3[%c256_104, %c0_105] : memref<512x16xf32, #tpu.memory_space<vmem>>, vector<256x16xf32>
    %144 = arith.truncf %143 : vector<256x16xf32> to vector<256x16xbf16>
    %cst_106 = arith.constant dense<0.000000e+00> : vector<256x128xf32>
    %145 = tpu.matmul %140, %0, %cst_106 {dimension_numbers = #tpu.dot_dimension_numbers<[1], [0], [0], [1], [0, 0, 1, 1], [], []>} : vector<256x16xbf16>, vector<16x128xbf16>, vector<256x128xf32> -> vector<256x128xf32>
    %cst_107 = arith.constant dense<0.000000e+00> : vector<256x128xf32>
    %146 = tpu.matmul %142, %1, %cst_107 {dimension_numbers = #tpu.dot_dimension_numbers<[1], [0], [0], [1], [0, 0, 1, 1], [], []>} : vector<256x16xbf16>, vector<16x128xbf16>, vector<256x128xf32> -> vector<256x128xf32>
    %147 = arith.addf %145, %146 : vector<256x128xf32>
    %148 = vector.broadcast %2 : vector<1x128xf32> to vector<256x128xf32>
    %149 = arith.addf %147, %148 : vector<256x128xf32>
    %cst_108 = arith.constant dense<0.000000e+00> : vector<256x384xf32>
    %150 = tpu.matmul %144, %3, %cst_108 {dimension_numbers = #tpu.dot_dimension_numbers<[1], [0], [0], [1], [0, 0, 1, 1], [], []>} : vector<256x16xbf16>, vector<16x384xbf16>, vector<256x384xf32> -> vector<256x384xf32>
    %151 = vector.broadcast %4 : vector<1x384xf32> to vector<256x384xf32>
    %152 = arith.addf %150, %151 : vector<256x384xf32>
    %153 = vector.extract_strided_slice %152 {offsets = [0, 0], sizes = [256, 128], strides = [1, 1]} : vector<256x384xf32> to vector<256x128xf32>
    %154 = arith.addf %149, %153 : vector<256x128xf32>
    %155 = arith.truncf %154 : vector<256x128xf32> to vector<256x128xbf16>
    %cst_109 = arith.constant 0.000000e+00 : bf16
    %156 = vector.broadcast %cst_109 : bf16 to vector<256x128xbf16>
    %157 = arith.maximumf %155, %156 : vector<256x128xbf16>
    %c0_110 = arith.constant 0 : index
    %c0_111 = arith.constant 0 : index
    %c0_112 = arith.constant 0 : index
    %158 = vector.load %arg9[%c0_110, %c0_111, %c0_112] : memref<5x128x128xbf16, #tpu.memory_space<vmem>>, vector<1x128x128xbf16>
    %159 = vector.shape_cast %158 : vector<1x128x128xbf16> to vector<128x128xbf16>
    %cst_113 = arith.constant dense<0.000000e+00> : vector<256x128xf32>
    %160 = tpu.matmul %157, %159, %cst_113 {dimension_numbers = #tpu.dot_dimension_numbers<[1], [0], [0], [1], [0, 0, 1, 1], [], []>} : vector<256x128xbf16>, vector<128x128xbf16>, vector<256x128xf32> -> vector<256x128xf32>
    %c0_114 = arith.constant 0 : index
    %c0_115 = arith.constant 0 : index
    %c0_116 = arith.constant 0 : index
    %161 = vector.load %arg10[%c0_114, %c0_115, %c0_116] : memref<5x1x128xf32, #tpu.memory_space<vmem>>, vector<1x1x128xf32>
    %162 = vector.shape_cast %161 : vector<1x1x128xf32> to vector<1x128xf32>
    %163 = vector.broadcast %162 : vector<1x128xf32> to vector<256x128xf32>
    %164 = arith.addf %160, %163 : vector<256x128xf32>
    %165 = arith.truncf %164 : vector<256x128xf32> to vector<256x128xbf16>
    %cst_117 = arith.constant 0.000000e+00 : bf16
    %166 = vector.broadcast %cst_117 : bf16 to vector<256x128xbf16>
    %167 = arith.maximumf %165, %166 : vector<256x128xbf16>
    %c0_118 = arith.constant 0 : index
    %c0_119 = arith.constant 0 : index
    %c0_120 = arith.constant 0 : index
    %168 = vector.load %arg11[%c0_118, %c0_119, %c0_120] : memref<5x128x128xbf16, #tpu.memory_space<vmem>>, vector<1x128x128xbf16>
    %169 = vector.shape_cast %168 : vector<1x128x128xbf16> to vector<128x128xbf16>
    %cst_121 = arith.constant dense<0.000000e+00> : vector<256x128xf32>
    %170 = tpu.matmul %167, %169, %cst_121 {dimension_numbers = #tpu.dot_dimension_numbers<[1], [0], [0], [1], [0, 0, 1, 1], [], []>} : vector<256x128xbf16>, vector<128x128xbf16>, vector<256x128xf32> -> vector<256x128xf32>
    %c0_122 = arith.constant 0 : index
    %c0_123 = arith.constant 0 : index
    %c0_124 = arith.constant 0 : index
    %171 = vector.load %arg12[%c0_122, %c0_123, %c0_124] : memref<5x1x128xf32, #tpu.memory_space<vmem>>, vector<1x1x128xf32>
    %172 = vector.shape_cast %171 : vector<1x1x128xf32> to vector<1x128xf32>
    %173 = vector.broadcast %172 : vector<1x128xf32> to vector<256x128xf32>
    %174 = arith.addf %170, %173 : vector<256x128xf32>
    %175 = arith.addf %154, %174 : vector<256x128xf32>
    %176 = vector.extract_strided_slice %152 {offsets = [0, 128], sizes = [256, 128], strides = [1, 1]} : vector<256x384xf32> to vector<256x128xf32>
    %177 = arith.addf %175, %176 : vector<256x128xf32>
    %178 = arith.truncf %177 : vector<256x128xf32> to vector<256x128xbf16>
    %cst_125 = arith.constant 0.000000e+00 : bf16
    %179 = vector.broadcast %cst_125 : bf16 to vector<256x128xbf16>
    %180 = arith.maximumf %178, %179 : vector<256x128xbf16>
    %c1_126 = arith.constant 1 : index
    %c0_127 = arith.constant 0 : index
    %c0_128 = arith.constant 0 : index
    %181 = vector.load %arg9[%c1_126, %c0_127, %c0_128] : memref<5x128x128xbf16, #tpu.memory_space<vmem>>, vector<1x128x128xbf16>
    %182 = vector.shape_cast %181 : vector<1x128x128xbf16> to vector<128x128xbf16>
    %cst_129 = arith.constant dense<0.000000e+00> : vector<256x128xf32>
    %183 = tpu.matmul %180, %182, %cst_129 {dimension_numbers = #tpu.dot_dimension_numbers<[1], [0], [0], [1], [0, 0, 1, 1], [], []>} : vector<256x128xbf16>, vector<128x128xbf16>, vector<256x128xf32> -> vector<256x128xf32>
    %c1_130 = arith.constant 1 : index
    %c0_131 = arith.constant 0 : index
    %c0_132 = arith.constant 0 : index
    %184 = vector.load %arg10[%c1_130, %c0_131, %c0_132] : memref<5x1x128xf32, #tpu.memory_space<vmem>>, vector<1x1x128xf32>
    %185 = vector.shape_cast %184 : vector<1x1x128xf32> to vector<1x128xf32>
    %186 = vector.broadcast %185 : vector<1x128xf32> to vector<256x128xf32>
    %187 = arith.addf %183, %186 : vector<256x128xf32>
    %188 = arith.truncf %187 : vector<256x128xf32> to vector<256x128xbf16>
    %cst_133 = arith.constant 0.000000e+00 : bf16
    %189 = vector.broadcast %cst_133 : bf16 to vector<256x128xbf16>
    %190 = arith.maximumf %188, %189 : vector<256x128xbf16>
    %c1_134 = arith.constant 1 : index
    %c0_135 = arith.constant 0 : index
    %c0_136 = arith.constant 0 : index
    %191 = vector.load %arg11[%c1_134, %c0_135, %c0_136] : memref<5x128x128xbf16, #tpu.memory_space<vmem>>, vector<1x128x128xbf16>
    %192 = vector.shape_cast %191 : vector<1x128x128xbf16> to vector<128x128xbf16>
    %cst_137 = arith.constant dense<0.000000e+00> : vector<256x128xf32>
    %193 = tpu.matmul %190, %192, %cst_137 {dimension_numbers = #tpu.dot_dimension_numbers<[1], [0], [0], [1], [0, 0, 1, 1], [], []>} : vector<256x128xbf16>, vector<128x128xbf16>, vector<256x128xf32> -> vector<256x128xf32>
    %c1_138 = arith.constant 1 : index
    %c0_139 = arith.constant 0 : index
    %c0_140 = arith.constant 0 : index
    %194 = vector.load %arg12[%c1_138, %c0_139, %c0_140] : memref<5x1x128xf32, #tpu.memory_space<vmem>>, vector<1x1x128xf32>
    %195 = vector.shape_cast %194 : vector<1x1x128xf32> to vector<1x128xf32>
    %196 = vector.broadcast %195 : vector<1x128xf32> to vector<256x128xf32>
    %197 = arith.addf %193, %196 : vector<256x128xf32>
    %198 = arith.addf %177, %197 : vector<256x128xf32>
    %199 = vector.extract_strided_slice %152 {offsets = [0, 256], sizes = [256, 128], strides = [1, 1]} : vector<256x384xf32> to vector<256x128xf32>
    %200 = arith.addf %198, %199 : vector<256x128xf32>
    %201 = arith.truncf %200 : vector<256x128xf32> to vector<256x128xbf16>
    %cst_141 = arith.constant 0.000000e+00 : bf16
    %202 = vector.broadcast %cst_141 : bf16 to vector<256x128xbf16>
    %203 = arith.maximumf %201, %202 : vector<256x128xbf16>
    %c2_142 = arith.constant 2 : index
    %c0_143 = arith.constant 0 : index
    %c0_144 = arith.constant 0 : index
    %204 = vector.load %arg9[%c2_142, %c0_143, %c0_144] : memref<5x128x128xbf16, #tpu.memory_space<vmem>>, vector<1x128x128xbf16>
    %205 = vector.shape_cast %204 : vector<1x128x128xbf16> to vector<128x128xbf16>
    %cst_145 = arith.constant dense<0.000000e+00> : vector<256x128xf32>
    %206 = tpu.matmul %203, %205, %cst_145 {dimension_numbers = #tpu.dot_dimension_numbers<[1], [0], [0], [1], [0, 0, 1, 1], [], []>} : vector<256x128xbf16>, vector<128x128xbf16>, vector<256x128xf32> -> vector<256x128xf32>
    %c2_146 = arith.constant 2 : index
    %c0_147 = arith.constant 0 : index
    %c0_148 = arith.constant 0 : index
    %207 = vector.load %arg10[%c2_146, %c0_147, %c0_148] : memref<5x1x128xf32, #tpu.memory_space<vmem>>, vector<1x1x128xf32>
    %208 = vector.shape_cast %207 : vector<1x1x128xf32> to vector<1x128xf32>
    %209 = vector.broadcast %208 : vector<1x128xf32> to vector<256x128xf32>
    %210 = arith.addf %206, %209 : vector<256x128xf32>
    %211 = arith.truncf %210 : vector<256x128xf32> to vector<256x128xbf16>
    %cst_149 = arith.constant 0.000000e+00 : bf16
    %212 = vector.broadcast %cst_149 : bf16 to vector<256x128xbf16>
    %213 = arith.maximumf %211, %212 : vector<256x128xbf16>
    %c2_150 = arith.constant 2 : index
    %c0_151 = arith.constant 0 : index
    %c0_152 = arith.constant 0 : index
    %214 = vector.load %arg11[%c2_150, %c0_151, %c0_152] : memref<5x128x128xbf16, #tpu.memory_space<vmem>>, vector<1x128x128xbf16>
    %215 = vector.shape_cast %214 : vector<1x128x128xbf16> to vector<128x128xbf16>
    %cst_153 = arith.constant dense<0.000000e+00> : vector<256x128xf32>
    %216 = tpu.matmul %213, %215, %cst_153 {dimension_numbers = #tpu.dot_dimension_numbers<[1], [0], [0], [1], [0, 0, 1, 1], [], []>} : vector<256x128xbf16>, vector<128x128xbf16>, vector<256x128xf32> -> vector<256x128xf32>
    %c2_154 = arith.constant 2 : index
    %c0_155 = arith.constant 0 : index
    %c0_156 = arith.constant 0 : index
    %217 = vector.load %arg12[%c2_154, %c0_155, %c0_156] : memref<5x1x128xf32, #tpu.memory_space<vmem>>, vector<1x1x128xf32>
    %218 = vector.shape_cast %217 : vector<1x1x128xf32> to vector<1x128xf32>
    %219 = vector.broadcast %218 : vector<1x128xf32> to vector<256x128xf32>
    %220 = arith.addf %216, %219 : vector<256x128xf32>
    %221 = arith.addf %200, %220 : vector<256x128xf32>
    %222 = arith.truncf %221 : vector<256x128xf32> to vector<256x128xbf16>
    %cst_157 = arith.constant 0.000000e+00 : bf16
    %223 = vector.broadcast %cst_157 : bf16 to vector<256x128xbf16>
    %224 = arith.maximumf %222, %223 : vector<256x128xbf16>
    %c3_158 = arith.constant 3 : index
    %c0_159 = arith.constant 0 : index
    %c0_160 = arith.constant 0 : index
    %225 = vector.load %arg9[%c3_158, %c0_159, %c0_160] : memref<5x128x128xbf16, #tpu.memory_space<vmem>>, vector<1x128x128xbf16>
    %226 = vector.shape_cast %225 : vector<1x128x128xbf16> to vector<128x128xbf16>
    %cst_161 = arith.constant dense<0.000000e+00> : vector<256x128xf32>
    %227 = tpu.matmul %224, %226, %cst_161 {dimension_numbers = #tpu.dot_dimension_numbers<[1], [0], [0], [1], [0, 0, 1, 1], [], []>} : vector<256x128xbf16>, vector<128x128xbf16>, vector<256x128xf32> -> vector<256x128xf32>
    %c3_162 = arith.constant 3 : index
    %c0_163 = arith.constant 0 : index
    %c0_164 = arith.constant 0 : index
    %228 = vector.load %arg10[%c3_162, %c0_163, %c0_164] : memref<5x1x128xf32, #tpu.memory_space<vmem>>, vector<1x1x128xf32>
    %229 = vector.shape_cast %228 : vector<1x1x128xf32> to vector<1x128xf32>
    %230 = vector.broadcast %229 : vector<1x128xf32> to vector<256x128xf32>
    %231 = arith.addf %227, %230 : vector<256x128xf32>
    %232 = arith.truncf %231 : vector<256x128xf32> to vector<256x128xbf16>
    %cst_165 = arith.constant 0.000000e+00 : bf16
    %233 = vector.broadcast %cst_165 : bf16 to vector<256x128xbf16>
    %234 = arith.maximumf %232, %233 : vector<256x128xbf16>
    %c3_166 = arith.constant 3 : index
    %c0_167 = arith.constant 0 : index
    %c0_168 = arith.constant 0 : index
    %235 = vector.load %arg11[%c3_166, %c0_167, %c0_168] : memref<5x128x128xbf16, #tpu.memory_space<vmem>>, vector<1x128x128xbf16>
    %236 = vector.shape_cast %235 : vector<1x128x128xbf16> to vector<128x128xbf16>
    %cst_169 = arith.constant dense<0.000000e+00> : vector<256x128xf32>
    %237 = tpu.matmul %234, %236, %cst_169 {dimension_numbers = #tpu.dot_dimension_numbers<[1], [0], [0], [1], [0, 0, 1, 1], [], []>} : vector<256x128xbf16>, vector<128x128xbf16>, vector<256x128xf32> -> vector<256x128xf32>
    %c3_170 = arith.constant 3 : index
    %c0_171 = arith.constant 0 : index
    %c0_172 = arith.constant 0 : index
    %238 = vector.load %arg12[%c3_170, %c0_171, %c0_172] : memref<5x1x128xf32, #tpu.memory_space<vmem>>, vector<1x1x128xf32>
    %239 = vector.shape_cast %238 : vector<1x1x128xf32> to vector<1x128xf32>
    %240 = vector.broadcast %239 : vector<1x128xf32> to vector<256x128xf32>
    %241 = arith.addf %237, %240 : vector<256x128xf32>
    %242 = arith.addf %221, %241 : vector<256x128xf32>
    %243 = arith.truncf %242 : vector<256x128xf32> to vector<256x128xbf16>
    %cst_173 = arith.constant 0.000000e+00 : bf16
    %244 = vector.broadcast %cst_173 : bf16 to vector<256x128xbf16>
    %245 = arith.maximumf %243, %244 : vector<256x128xbf16>
    %c4_174 = arith.constant 4 : index
    %c0_175 = arith.constant 0 : index
    %c0_176 = arith.constant 0 : index
    %246 = vector.load %arg9[%c4_174, %c0_175, %c0_176] : memref<5x128x128xbf16, #tpu.memory_space<vmem>>, vector<1x128x128xbf16>
    %247 = vector.shape_cast %246 : vector<1x128x128xbf16> to vector<128x128xbf16>
    %cst_177 = arith.constant dense<0.000000e+00> : vector<256x128xf32>
    %248 = tpu.matmul %245, %247, %cst_177 {dimension_numbers = #tpu.dot_dimension_numbers<[1], [0], [0], [1], [0, 0, 1, 1], [], []>} : vector<256x128xbf16>, vector<128x128xbf16>, vector<256x128xf32> -> vector<256x128xf32>
    %c4_178 = arith.constant 4 : index
    %c0_179 = arith.constant 0 : index
    %c0_180 = arith.constant 0 : index
    %249 = vector.load %arg10[%c4_178, %c0_179, %c0_180] : memref<5x1x128xf32, #tpu.memory_space<vmem>>, vector<1x1x128xf32>
    %250 = vector.shape_cast %249 : vector<1x1x128xf32> to vector<1x128xf32>
    %251 = vector.broadcast %250 : vector<1x128xf32> to vector<256x128xf32>
    %252 = arith.addf %248, %251 : vector<256x128xf32>
    %253 = arith.truncf %252 : vector<256x128xf32> to vector<256x128xbf16>
    %cst_181 = arith.constant 0.000000e+00 : bf16
    %254 = vector.broadcast %cst_181 : bf16 to vector<256x128xbf16>
    %255 = arith.maximumf %253, %254 : vector<256x128xbf16>
    %c4_182 = arith.constant 4 : index
    %c0_183 = arith.constant 0 : index
    %c0_184 = arith.constant 0 : index
    %256 = vector.load %arg11[%c4_182, %c0_183, %c0_184] : memref<5x128x128xbf16, #tpu.memory_space<vmem>>, vector<1x128x128xbf16>
    %257 = vector.shape_cast %256 : vector<1x128x128xbf16> to vector<128x128xbf16>
    %cst_185 = arith.constant dense<0.000000e+00> : vector<256x128xf32>
    %258 = tpu.matmul %255, %257, %cst_185 {dimension_numbers = #tpu.dot_dimension_numbers<[1], [0], [0], [1], [0, 0, 1, 1], [], []>} : vector<256x128xbf16>, vector<128x128xbf16>, vector<256x128xf32> -> vector<256x128xf32>
    %c4_186 = arith.constant 4 : index
    %c0_187 = arith.constant 0 : index
    %c0_188 = arith.constant 0 : index
    %259 = vector.load %arg12[%c4_186, %c0_187, %c0_188] : memref<5x1x128xf32, #tpu.memory_space<vmem>>, vector<1x1x128xf32>
    %260 = vector.shape_cast %259 : vector<1x1x128xf32> to vector<1x128xf32>
    %261 = vector.broadcast %260 : vector<1x128xf32> to vector<256x128xf32>
    %262 = arith.addf %258, %261 : vector<256x128xf32>
    %263 = arith.addf %242, %262 : vector<256x128xf32>
    %264 = arith.truncf %263 : vector<256x128xf32> to vector<256x128xbf16>
    %cst_189 = arith.constant 0.000000e+00 : bf16
    %265 = vector.broadcast %cst_189 : bf16 to vector<256x128xbf16>
    %266 = arith.maximumf %264, %265 : vector<256x128xbf16>
    %cst_190 = arith.constant dense<0.000000e+00> : vector<256x8xf32>
    %267 = tpu.matmul %266, %5, %cst_190 {dimension_numbers = #tpu.dot_dimension_numbers<[1], [0], [0], [1], [0, 0, 1, 1], [], []>} : vector<256x128xbf16>, vector<128x8xbf16>, vector<256x8xf32> -> vector<256x8xf32>
    %268 = vector.broadcast %6 : vector<1x8xf32> to vector<256x8xf32>
    %269 = arith.addf %267, %268 : vector<256x8xf32>
    %c256_191 = arith.constant 256 : index
    %c0_192 = arith.constant 0 : index
    %270 = vector.load %arg15[%c256_191, %c0_192] : memref<512x8xf32, #tpu.memory_space<vmem>>, vector<256x8xf32>
    tpu.vector_store %arg15[%c256_191, %c0_192], %269 {strides = array<i32>} : memref<512x8xf32, #tpu.memory_space<vmem>>, vector<256x8xf32>,
    return
  }
  func.func @transform_0(%arg0: i32) -> (i32, i32) {
    %c0_i32 = arith.constant 0 : i32
    %c0_i32_0 = arith.constant 0 : i32
    return %arg0, %c0_i32 : i32, i32
  }
  func.func @transform_1(%arg0: i32) -> (i32, i32) {
    %c0_i32 = arith.constant 0 : i32
    %c0_i32_0 = arith.constant 0 : i32
    return %arg0, %c0_i32 : i32, i32
  }
  func.func @transform_2(%arg0: i32) -> (i32, i32) {
    %c0_i32 = arith.constant 0 : i32
    %c0_i32_0 = arith.constant 0 : i32
    return %arg0, %c0_i32 : i32, i32
  }
  func.func @transform_3(%arg0: i32) -> (i32, i32) {
    %c0_i32 = arith.constant 0 : i32
    %c0_i32_0 = arith.constant 0 : i32
    %c0_i32_1 = arith.constant 0 : i32
    return %c0_i32, %c0_i32_0 : i32, i32
  }
  func.func @transform_4(%arg0: i32) -> (i32, i32) {
    %c0_i32 = arith.constant 0 : i32
    %c0_i32_0 = arith.constant 0 : i32
    %c0_i32_1 = arith.constant 0 : i32
    return %c0_i32, %c0_i32_0 : i32, i32
  }
  func.func @transform_5(%arg0: i32) -> (i32, i32) {
    %c0_i32 = arith.constant 0 : i32
    %c0_i32_0 = arith.constant 0 : i32
    %c0_i32_1 = arith.constant 0 : i32
    return %c0_i32, %c0_i32_0 : i32, i32
  }
  func.func @transform_6(%arg0: i32) -> (i32, i32) {
    %c0_i32 = arith.constant 0 : i32
    %c0_i32_0 = arith.constant 0 : i32
    %c0_i32_1 = arith.constant 0 : i32
    return %c0_i32, %c0_i32_0 : i32, i32
  }
  func.func @transform_7(%arg0: i32) -> (i32, i32) {
    %c0_i32 = arith.constant 0 : i32
    %c0_i32_0 = arith.constant 0 : i32
    %c0_i32_1 = arith.constant 0 : i32
    return %c0_i32, %c0_i32_0 : i32, i32
  }
  func.func @transform_8(%arg0: i32) -> (i32, i32, i32) {
    %c0_i32 = arith.constant 0 : i32
    %c0_i32_0 = arith.constant 0 : i32
    %c0_i32_1 = arith.constant 0 : i32
    %c0_i32_2 = arith.constant 0 : i32
    return %c0_i32, %c0_i32_0, %c0_i32_1 : i32, i32, i32
  }
  func.func @transform_9(%arg0: i32) -> (i32, i32, i32) {
    %c0_i32 = arith.constant 0 : i32
    %c0_i32_0 = arith.constant 0 : i32
    %c0_i32_1 = arith.constant 0 : i32
    %c0_i32_2 = arith.constant 0 : i32
    return %c0_i32, %c0_i32_0, %c0_i32_1 : i32, i32, i32
  }
  func.func @transform_10(%arg0: i32) -> (i32, i32, i32) {
    %c0_i32 = arith.constant 0 : i32
    %c0_i32_0 = arith.constant 0 : i32
    %c0_i32_1 = arith.constant 0 : i32
    %c0_i32_2 = arith.constant 0 : i32
    return %c0_i32, %c0_i32_0, %c0_i32_1 : i32, i32, i32
  }
  func.func @transform_11(%arg0: i32) -> (i32, i32, i32) {
    %c0_i32 = arith.constant 0 : i32
    %c0_i32_0 = arith.constant 0 : i32
    %c0_i32_1 = arith.constant 0 : i32
    %c0_i32_2 = arith.constant 0 : i32
    return %c0_i32, %c0_i32_0, %c0_i32_1 : i32, i32, i32
  }
  func.func @transform_12(%arg0: i32) -> (i32, i32) {
    %c0_i32 = arith.constant 0 : i32
    %c0_i32_0 = arith.constant 0 : i32
    %c0_i32_1 = arith.constant 0 : i32
    return %c0_i32, %c0_i32_0 : i32, i32
  }
  func.func @transform_13(%arg0: i32) -> (i32, i32) {
    %c0_i32 = arith.constant 0 : i32
    %c0_i32_0 = arith.constant 0 : i32
    %c0_i32_1 = arith.constant 0 : i32
    return %c0_i32, %c0_i32_0 : i32, i32
  }
  func.func @transform_14(%arg0: i32) -> (i32, i32) {
    %c0_i32 = arith.constant 0 : i32
    %c0_i32_0 = arith.constant 0 : i32
    return %arg0, %c0_i32 : i32, i32
  }
}

</mosaic_0001>

<bundles_post_ra>
// kernel: tpu_custom_call.1
= control target key start
LH: loop header
LB: loop body
LE: loop exit
PB: predicated region body
PF: predicated region fallthrough
CT: control target
= control target key end

     0   :  { %s10056_s29 = smov 0   ;;  %s14423_s0 = inlined_call_operand.vmem [shape: f32[1024,16], index: 0, kind: input, shape index: {}]   ;;  %s14424_s1 = inlined_call_operand.vmem [shape: f32[1024,16], index: 1, kind: input, shape index: {}]   ;;  %s14425_s2 = inlined_call_operand.vmem [shape: f32[1024,16], index: 2, kind: input, shape index: {}]   ;;  %s14426_s3 = inlined_call_operand.vmem [shape: bf16[16,128], index: 3, kind: input, shape index: {}]   ;;  %s14427_s4 = inlined_call_operand.vmem [shape: bf16[16,128], index: 4, kind: input, shape index: {}]   ;;  %s14428_s5 = inlined_call_operand.vmem [shape: f32[1,128], index: 5, kind: input, shape index: {}]   ;;  %s14429_s6 = inlined_call_operand.vmem [shape: bf16[16,384], index: 6, kind: input, shape index: {}]   ;;  %s14430_s7 = inlined_call_operand.vmem [shape: f32[1,384], index: 7, kind: input, shape index: {}]   ;;  %s14431_s8 = inlined_call_operand.vmem [shape: bf16[5,128,128], index: 8, kind: input, shape index: {}]   ;;  %s14432_s9 = inlined_call_operand.vmem [shape: f32[5,1,128], index: 9, kind: input, shape index: {}]   ;;  %s14433_s10 = inlined_call_operand.vmem [shape: bf16[5,128,128], index: 10, kind: input, shape index: {}]   ;;  %s14434_s11 = inlined_call_operand.vmem [shape: f32[5,1,128], index: 11, kind: input, shape index: {}]   ;;  %s14435_s12 = inlined_call_operand.vmem [shape: bf16[128,8], index: 12, kind: input, shape index: {}]   ;;  %s14436_s13 = inlined_call_operand.vmem [shape: f32[1,8], index: 13, kind: input, shape index: {}]   ;;  %s14437_s14 = inlined_call_operand.vmem [shape: f32[1024,8], index: 14, kind: output, shape index: {}]  }
   0x1 LB: > { %s8618_s30 = sadd.s32 4294967295, %s9979_s29   ;;  %p8622_p0 = scmp.ge.s32.totalorder %s9979_s29, 1  ;;  %s9979_s29 = sphi %s10056_s29, %s24_s29  }
   0x2   : > { %p435_p1 = scmp.lt.s32.totalorder %s9979_s29, 3 }
   0x4   : > { %p436_p2 = pnand %p8622_p0, %p435_p1 }
   0x6   : > { %439 = sbr.rel (%p436_p2) target bundleno = 3804 (0xedc), region = 76 }
   0xb   : > { %v9758_v0 = vld [vmem:[%s14427_s4] sm:$0xff]  ;;  %s8623_s21 = sshll.u32 %s8618_s30, 6  ;;  %v9760_v3 = vld [vmem:[%s14429_s6 + $0x8] sm:$0xf0]  ;;  %v9777_v4 = vld [vmem:[%s14431_s8 + $0x38] sm:$0xff]  ;;  %vm693_vm0 = vcmask 130048  }
   0xc   : > { %v9757_v1 = vld [vmem:[%s14426_s3] sm:$0xff]  ;;  %p492_p3 = scmp.lt.s32.totalorder %s8623_s21, 127  ;;  %749 = vmatpush.bf16.msra.mxu0 %v9758_v0  ;;  %v9776_v15 = vld [vmem:[%s14431_s8 + $0x30] sm:$0xff]  ;;  %v9775_v34 = vld [vmem:[%s14431_s8 + $0x28] sm:$0xff]  ;;  %vm4561_vm1 = vcmask 64512  }
   0xd   : > { %v8673_v2 = vld [vmem:[%s14429_s6] sm:$0xf]  ;;  %892 = vmatpush.bf16.msra.mxu1 %v9757_v1 }
   0xe   : > { %v10079_v5 = vor.u32 %v9760_v3, %v8673_v2  ;;  %s14592_s21 = smov (!%p492_p3, %s8623_s21), 127  ;;  %v9774_v53 = vld [vmem:[%s14431_s8 + $0x20] sm:$0xff] }
   0xf   : > { %s10082_s26 = sshll.u32 %s14592_s21, 3 }
  0x10   : > { %14471 = vst [vmem:[#allocation2_spill] sm:$0xff] %v10079_v5  ;;  %1087 = vmatpush.bf16.msra.mxu2 %v10079_v5  ;;  %s10088_s30 = scalar_lea.vmem %s14424_s1, %s10082_s26  ;;  %s10094_s17 = scalar_lea.vmem %s14423_s0, %s10082_s26 }
  0x11   : > { %1559 = vmatpush.bf16.msrb.mxu1 %v9777_v4  ;;  %v591_v6 = vld [vmem:[%s10088_s30] sm:$0xff]  ;;  %v592_v7 = vld [vmem:[%s10088_s30 + $0x8] sm:$0xff]  ;;  %s10103_s20 = scalar_lea.vmem %s14425_s2, %s10082_s26  ;;  %v593_v16 = vld [vmem:[%s10088_s30 + $0x10] sm:$0xff]  ;;  %s12312_s16 = scalar_lea.vmem %s14437_s14, %s10082_s26 }
  0x12   : > { %v543_v8 = vld [vmem:[%s10094_s17] sm:$0xff]  ;;  %v623_v9 = vpack.c.bf16 %v592_v7, %v591_v6  ;;  %v544_v10 = vld [vmem:[%s10094_s17 + $0x8] sm:$0xff]  ;;  %v594_v17 = vld [vmem:[%s10088_s30 + $0x18] sm:$0xff] }
  0x13   : > { %v639_v11 = vld [vmem:[%s10103_s20] sm:$0xff]  ;;  %v640_v12 = vld [vmem:[%s10103_s20 + $0x8] sm:$0xff]  ;;  %v575_v13 = vpack.c.bf16 %v544_v10, %v543_v8  ;;  %v545_v18 = vld [vmem:[%s10094_s17 + $0x10] sm:$0xff]  ;;  %v624_v22 = vpack.c.bf16 %v594_v17, %v593_v16 }
  0x14   : > { %v10108_v14 = vpack.c.bf16 %v640_v12, %v639_v11  ;;  %8635 = vmatmul.msk.bf16.vlgmr.msra.gmra.mxu0 %vm693_vm0, %v623_v9  ;;  %v546_v19 = vld [vmem:[%s10094_s17 + $0x18] sm:$0xff]  ;;  %v641_v20 = vld [vmem:[%s10103_s20 + $0x10] sm:$0xff]  ;;  %v595_v25 = vld [vmem:[%s10088_s30 + $0x20] sm:$0xff] }
  0x15   : > { %8655 = vmatmul.msk.bf16.vlgmr.msra.gmra.mxu1 %vm693_vm0, %v575_v13  ;;  %v642_v21 = vld [vmem:[%s10103_s20 + $0x18] sm:$0xff]  ;;  %v576_v23 = vpack.c.bf16 %v546_v19, %v545_v18  ;;  %v596_v26 = vld [vmem:[%s10088_s30 + $0x28] sm:$0xff]  ;;  %v547_v27 = vld [vmem:[%s10094_s17 + $0x20] sm:$0xff] }
  0x16   : > { %8683 = vmatmul.msk.bf16.vlgmr.msra.gmra.mxu2 %vm693_vm0, %v10108_v14  ;;  %1560 = vmatpush.bf16.msrb.mxu1 %v9776_v15  ;;  %v10123_v24 = vpack.c.bf16 %v642_v21, %v641_v20  ;;  %v548_v28 = vld [vmem:[%s10094_s17 + $0x28] sm:$0xff]  ;;  %v643_v29 = vld [vmem:[%s10103_s20 + $0x20] sm:$0xff]  ;;  %v625_v31 = vpack.c.bf16 %v596_v26, %v595_v25  ;;  %v597_v35 = vld [vmem:[%s10088_s30 + $0x30] sm:$0xff] }
  0x17   : > { %v644_v30 = vld [vmem:[%s10103_s20 + $0x28] sm:$0xff]  ;;  %v577_v32 = vpack.c.bf16 %v548_v28, %v547_v27  ;;  %v598_v36 = vld [vmem:[%s10088_s30 + $0x38] sm:$0xff]  ;;  %v549_v37 = vld [vmem:[%s10094_s17 + $0x30] sm:$0xff] }
  0x18   : > { %v10135_v33 = vpack.c.bf16 %v644_v30, %v643_v29  ;;  %v550_v38 = vld [vmem:[%s10094_s17 + $0x38] sm:$0xff]  ;;  %v645_v39 = vld [vmem:[%s10103_s20 + $0x30] sm:$0xff]  ;;  %v626_v41 = vpack.c.bf16 %v598_v36, %v597_v35  ;;  %v599_v44 = vld [vmem:[%s10088_s30 + $0x40] sm:$0xff] }
  0x19   : > { %v646_v40 = vld [vmem:[%s10103_s20 + $0x38] sm:$0xff]  ;;  %v578_v42 = vpack.c.bf16 %v550_v38, %v549_v37  ;;  %v600_v45 = vld [vmem:[%s10088_s30 + $0x48] sm:$0xff]  ;;  %v551_v46 = vld [vmem:[%s10094_s17 + $0x40] sm:$0xff] }
  0x1a   : > { %1561 = vmatpush.bf16.msrb.mxu1 %v9775_v34  ;;  %v10150_v43 = vpack.c.bf16 %v646_v40, %v645_v39  ;;  %v552_v47 = vld [vmem:[%s10094_s17 + $0x48] sm:$0xff]  ;;  %v647_v48 = vld [vmem:[%s10103_s20 + $0x40] sm:$0xff]  ;;  %v627_v50 = vpack.c.bf16 %v600_v45, %v599_v44  ;;  %v601_v54 = vld [vmem:[%s10088_s30 + $0x50] sm:$0xff] }
  0x1b   : > { %v648_v49 = vld [vmem:[%s10103_s20 + $0x48] sm:$0xff]  ;;  %v579_v51 = vpack.c.bf16 %v552_v47, %v551_v46  ;;  %v602_v55 = vld [vmem:[%s10088_s30 + $0x58] sm:$0xff]  ;;  %v553_v56 = vld [vmem:[%s10094_s17 + $0x50] sm:$0xff] }
  0x1c   : > { %v10162_v52 = vpack.c.bf16 %v648_v49, %v647_v48  ;;  %v554_v57 = vld [vmem:[%s10094_s17 + $0x58] sm:$0xff]  ;;  %v649_v58 = vld [vmem:[%s10103_s20 + $0x50] sm:$0xff]  ;;  %v628_v60 = vpack.c.bf16 %v602_v55, %v601_v54  ;;  %v603_v63 = vld [vmem:[%s10088_s30 + $0x60] sm:$0xff] }
  0x1d   : > { %v650_v59 = vld [vmem:[%s10103_s20 + $0x58] sm:$0xff]  ;;  %v580_v61 = vpack.c.bf16 %v554_v57, %v553_v56  ;;  %v604_v0 = vld [vmem:[%s10088_s30 + $0x68] sm:$0xff]  ;;  %v555_v1 = vld [vmem:[%s10094_s17 + $0x60] sm:$0xff] }
  0x1e   : > { %1562 = vmatpush.bf16.msrb.mxu1 %v9774_v53  ;;  %v10177_v62 = vpack.c.bf16 %v650_v59, %v649_v58  ;;  %v556_v2 = vld [vmem:[%s10094_s17 + $0x68] sm:$0xff]  ;;  %v651_v3 = vld [vmem:[%s10103_s20 + $0x60] sm:$0xff]  ;;  %v629_v6 = vpack.c.bf16 %v604_v0, %v603_v63  ;;  %v9773_v9 = vld [vmem:[%s14431_s8 + $0x18] sm:$0xff] }
  0x1f   : > { %v652_v4 = vld [vmem:[%s10103_s20 + $0x68] sm:$0xff]  ;;  %v581_v7 = vpack.c.bf16 %v556_v2, %v555_v1  ;;  %v605_v10 = vld [vmem:[%s10088_s30 + $0x70] sm:$0xff]  ;;  %v606_v11 = vld [vmem:[%s10088_s30 + $0x78] sm:$0xff] }
  0x20   : > { %v10189_v8 = vpack.c.bf16 %v652_v4, %v651_v3  ;;  %v557_v12 = vld [vmem:[%s10094_s17 + $0x70] sm:$0xff]  ;;  %v558_v13 = vld [vmem:[%s10094_s17 + $0x78] sm:$0xff]  ;;  %v630_v17 = vpack.c.bf16 %v606_v11, %v605_v10  ;;  %v607_v21 = vld [vmem:[%s10088_s30 + $0x80] sm:$0xff] }
  0x21   : > { %v653_v15 = vld [vmem:[%s10103_s20 + $0x70] sm:$0xff]  ;;  %v654_v16 = vld [vmem:[%s10103_s20 + $0x78] sm:$0xff]  ;;  %v582_v18 = vpack.c.bf16 %v558_v13, %v557_v12  ;;  %v560_v25 = vld [vmem:[%s10094_s17 + $0x88] sm:$0xff] }
  0x22   : > { %1563 = vmatpush.bf16.msrb.mxu1 %v9773_v9  ;;  %v10204_v19 = vpack.c.bf16 %v654_v16, %v653_v15  ;;  %v9785_v20 = vld [vmem:[%s14433_s10 + $0x38] sm:$0xff]  ;;  %v655_v26 = vld [vmem:[%s10103_s20 + $0x80] sm:$0xff]  ;;  %v656_v27 = vld [vmem:[%s10103_s20 + $0x88] sm:$0xff] }
  0x23   : > { %1828 = vmatpush.bf16.msrb.mxu2 %v9785_v20  ;;  %v9772_v34 = vld [vmem:[%s14431_s8 + $0x10] sm:$0xff]  ;;  %v610_v38 = vld [vmem:[%s10088_s30 + $0x98] sm:$0xff]  ;;  %v611_v53 = vld [vmem:[%s10088_s30 + $0xa0] sm:$0xff] }
  0x24   : > { %8636 = vmatmul.msk.bf16.gmra.mxu0 %vm693_vm0, %v624_v22  ;;  %v608_v22 = vld [vmem:[%s10088_s30 + $0x88] sm:$0xff]  ;;  %v609_v37 = vld [vmem:[%s10088_s30 + $0x90] sm:$0xff]  ;;  %v562_v40 = vld [vmem:[%s10094_s17 + $0x98] sm:$0xff] }
  0x25   : > { %8656 = vmatmul.msk.bf16.gmra.mxu1 %vm693_vm0, %v576_v23  ;;  %v559_v23 = vld [vmem:[%s10094_s17 + $0x80] sm:$0xff]  ;;  %v631_v28 = vpack.c.bf16 %v608_v22, %v607_v21  ;;  %v561_v39 = vld [vmem:[%s10094_s17 + $0x90] sm:$0xff]  ;;  %v632_v44 = vpack.c.bf16 %v610_v38, %v609_v37  ;;  %v612_v54 = vld [vmem:[%s10088_s30 + $0xa8] sm:$0xff] }
  0x26   : > { %8684 = vmatmul.msk.bf16.gmra.mxu2 %vm693_vm0, %v10123_v24  ;;  %v583_v30 = vpack.c.bf16 %v560_v25, %v559_v23  ;;  %1564 = vmatpush.bf16.msrb.mxu1 %v9772_v34  ;;  %v584_v46 = vpack.c.bf16 %v562_v40, %v561_v39  ;;  %v9784_v49 = vld [vmem:[%s14433_s10 + $0x30] sm:$0xff]  ;;  %v563_v55 = vld [vmem:[%s10094_s17 + $0xa0] sm:$0xff]  ;;  %v8681_v56 = vld [vmem:[%s14429_s6 + $0x8] sm:$0xf]  ;;  %v633_v63 = vpack.c.bf16 %v612_v54, %v611_v53 }
  0x27   : > { %1829 = vmatpush.bf16.msrb.mxu2 %v9784_v49  ;;  %v9761_v57 = vld [vmem:[%s14429_s6 + $0x10] sm:$0xf0]  ;;  %v564_v58 = vld [vmem:[%s10094_s17 + $0xa8] sm:$0xff]  ;;  %v659_v59 = vld [vmem:[%s10103_s20 + $0xa0] sm:$0xff] }
  0x28   : > { %v585_v0 = vpack.c.bf16 %v564_v58, %v563_v55  ;;  %v9771_v4 = vld [vmem:[%s14431_s8 + $0x8] sm:$0xff]  ;;  %v613_v9 = vld [vmem:[%s10088_s30 + $0xb0] sm:$0xff]  ;;  %v614_v10 = vld [vmem:[%s10088_s30 + $0xb8] sm:$0xff] }
  0x29   : > { %v565_v11 = vld [vmem:[%s10094_s17 + $0xb0] sm:$0xff]  ;;  %v566_v12 = vld [vmem:[%s10094_s17 + $0xb8] sm:$0xff]  ;;  %v9783_v22 = vld [vmem:[%s14433_s10 + $0x28] sm:$0xff] }
  0x2a   : > { %1565 = vmatpush.bf16.msrb.mxu1 %v9771_v4  ;;  %v661_v13 = vld [vmem:[%s10103_s20 + $0xb0] sm:$0xff]  ;;  %v662_v15 = vld [vmem:[%s10103_s20 + $0xb8] sm:$0xff]  ;;  %v568_v34 = vld [vmem:[%s10094_s17 + $0xc8] sm:$0xff] }
  0x2b   : > { %v10299_v20 = vpack.c.bf16 %v662_v15, %v661_v13  ;;  %1830 = vmatpush.bf16.msrb.mxu2 %v9783_v22  ;;  %v663_v37 = vld [vmem:[%s10103_s20 + $0xc0] sm:$0xff]  ;;  %v664_v38 = vld [vmem:[%s10103_s20 + $0xc8] sm:$0xff]  ;;  %v569_v58 = vld [vmem:[%s10094_s17 + $0xd0] sm:$0xff] }
  0x2c   : > { %v9770_v49 = vld [vmem:[%s14431_s8] sm:$0xff] }
  0x2d   : > { %v571_v22 = vld [vmem:[%s10094_s17 + $0xe0] sm:$0xff] }
  0x2e   : > { %1566 = vmatpush.bf16.msrb.mxu1 %v9770_v49 }
  0x34   : > { %8637 = vmatmul.msk.bf16.gmra.mxu0 %vm693_vm0, %v625_v31  ;;  %v10221_v31 = vpack.c.bf16 %v656_v27, %v655_v26  ;;  %v615_v27 = vld [vmem:[%s10088_s30 + $0xc0] sm:$0xff] }
  0x35   : > { %8657 = vmatmul.msk.bf16.gmra.mxu1 %vm693_vm0, %v577_v32 }
  0x36   : > { %8685 = vmatmul.msk.bf16.gmra.mxu2 %vm693_vm0, %v10135_v33 }
  0x44   : > { %8638 = vmatmul.msk.bf16.gmra.mxu0 %vm693_vm0, %v626_v41  ;;  %v657_v41 = vld [vmem:[%s10103_s20 + $0x90] sm:$0xff] }
  0x45   : > { %8658 = vmatmul.msk.bf16.gmra.mxu1 %vm693_vm0, %v578_v42  ;;  %v658_v42 = vld [vmem:[%s10103_s20 + $0x98] sm:$0xff] }
  0x46   : > { %8686 = vmatmul.msk.bf16.gmra.mxu2 %vm693_vm0, %v10150_v43  ;;  %v10244_v47 = vpack.c.bf16 %v658_v42, %v657_v41  ;;  %v10324_v42 = vpack.c.bf16 %v664_v38, %v663_v37 }
  0x54   : > { %8639 = vmatmul.msk.bf16.gmra.mxu0 %vm693_vm0, %v627_v50 }
  0x55   : > { %8659 = vmatmul.msk.bf16.gmra.mxu1 %vm693_vm0, %v579_v51 }
  0x56   : > { %8687 = vmatmul.msk.bf16.gmra.mxu2 %vm693_vm0, %v10162_v52 }
  0x64   : > { %8640 = vmatmul.msk.bf16.gmra.mxu0 %vm693_vm0, %v628_v60  ;;  %v660_v60 = vld [vmem:[%s10103_s20 + $0xa8] sm:$0xff] }
  0x65   : > { %8660 = vmatmul.msk.bf16.gmra.mxu1 %vm693_vm0, %v580_v61  ;;  %v10271_v61 = vor.u32 %v9761_v57, %v8681_v56  ;;  %v10274_v1 = vpack.c.bf16 %v660_v60, %v659_v59  ;;  %v617_v56 = vld [vmem:[%s10088_s30 + $0xd0] sm:$0xff]  ;;  %v618_v57 = vld [vmem:[%s10088_s30 + $0xd8] sm:$0xff] }
  0x66   : > { %8688 = vmatmul.msk.bf16.gmra.mxu2 %vm693_vm0, %v10177_v62  ;;  %v570_v59 = vld [vmem:[%s10094_s17 + $0xd8] sm:$0xff]  ;;  %v665_v60 = vld [vmem:[%s10103_s20 + $0xd0] sm:$0xff] }
  0x67   : > { %14472 = vst [vmem:[#allocation3_spill] sm:$0xff] %v10271_v61  ;;  %1265 = vmatpush.bf16.msrb.mxu0 %v10271_v61  ;;  %v588_v4 = vpack.c.bf16 %v570_v59, %v569_v58  ;;  %v621_v59 = vld [vmem:[%s10088_s30 + $0xf0] sm:$0xff] }
  0x74   : > { %8641 = vmatmul.msk.bf16.gmra.mxu0 %vm693_vm0, %v629_v6 }
  0x75   : > { %8661 = vmatmul.msk.bf16.gmra.mxu1 %vm693_vm0, %v581_v7 }
  0x76   : > { %8689 = vmatmul.msk.bf16.gmra.mxu2 %vm693_vm0, %v10189_v8 }
  0x84   : > { %8642 = vmatmul.msk.bf16.gmra.mxu0 %vm693_vm0, %v630_v17  ;;  %v634_v17 = vpack.c.bf16 %v614_v10, %v613_v9 }
  0x85   : > { %8662 = vmatmul.msk.bf16.gmra.mxu1 %vm693_vm0, %v582_v18  ;;  %v586_v18 = vpack.c.bf16 %v566_v12, %v565_v11  ;;  %v9782_v12 = vld [vmem:[%s14433_s10 + $0x20] sm:$0xff] }
  0x86   : > { %8690 = vmatmul.msk.bf16.gmra.mxu2 %vm693_vm0, %v10204_v19 }
  0x87   : > { %1831 = vmatpush.bf16.msrb.mxu2 %v9782_v12  ;;  %v670_v12 = vld [vmem:[%s10103_s20 + $0xf8] sm:$0xff] }
  0x91   : > { %v10219_v29 = vpop.f32.mrf.mxu0 }
  0x92   : > { %v10223_v32 = vpop.f32.mrf.mxu1 }
  0x94   : > { %8643 = vmatmul.msk.bf16.gmra.mxu0 %vm693_vm0, %v631_v28  ;;  %v616_v28 = vld [vmem:[%s10088_s30 + $0xc8] sm:$0xff] }
  0x95   : > { %8663 = vmatmul.msk.bf16.gmra.mxu1 %vm693_vm0, %v583_v30  ;;  %v567_v30 = vld [vmem:[%s10094_s17 + $0xc0] sm:$0xff]  ;;  %v635_v39 = vpack.c.bf16 %v616_v28, %v615_v27  ;;  %v572_v27 = vld [vmem:[%s10094_s17 + $0xe8] sm:$0xff] }
  0x96   : > { %8691 = vmatmul.msk.bf16.gmra.mxu2 %vm693_vm0, %v10221_v31  ;;  %v587_v41 = vpack.c.bf16 %v568_v34, %v567_v30  ;;  %v667_v28 = vld [vmem:[%s10103_s20 + $0xe0] sm:$0xff]  ;;  %v668_v30 = vld [vmem:[%s10103_s20 + $0xe8] sm:$0xff] }
  0x99   : > { %v10232_v35 = vpop.f32.mrf.mxu0  ;;  %v10289_v7 = vpop.f32.mrf.mxu2 }
  0x9a   : > { %v10234_v36 = vpop.f32.mrf.mxu1 }
  0xa1   : > { %v10242_v45 = vpop.f32.mrf.mxu0  ;;  %v10310_v23 = vpop.f32.mrf.mxu2 }
  0xa2   : > { %v10246_v48 = vpop.f32.mrf.mxu1 }
  0xa4   : > { %8644 = vmatmul.msk.bf16.gmra.mxu0 %vm693_vm0, %v632_v44 }
  0xa5   : > { %8664 = vmatmul.msk.bf16.gmra.mxu1 %vm693_vm0, %v584_v46 }
  0xa6   : > { %8692 = vmatmul.msk.bf16.gmra.mxu2 %vm693_vm0, %v10244_v47 }
  0xa9   : > { %v10257_v51 = vpop.f32.mrf.mxu0  ;;  %v10322_v40 = vpop.f32.mrf.mxu2 }
  0xaa   : > { %v10255_v50 = vpop.f32.mrf.mxu1 }
  0xb1   : > { %v10279_v3 = vpop.f32.mrf.mxu0  ;;  %v10339_v54 = vpop.f32.mrf.mxu2 }
  0xb2   : > { %v10276_v2 = vpop.f32.mrf.mxu1 }
  0xb4   : > { %8645 = vmatmul.msk.bf16.gmra.mxu0 %vm693_vm0, %v633_v63  ;;  %v666_v63 = vld [vmem:[%s10103_s20 + $0xd8] sm:$0xff] }
  0xb5   : > { %8665 = vmatmul.msk.bf16.gmra.mxu1 %vm693_vm0, %v585_v0  ;;  %v636_v0 = vpack.c.bf16 %v618_v57, %v617_v56  ;;  %v10349_v9 = vpack.c.bf16 %v666_v63, %v665_v60  ;;  %v622_v60 = vld [vmem:[%s10088_s30 + $0xf8] sm:$0xff]  ;;  %v573_v63 = vld [vmem:[%s10094_s17 + $0xf0] sm:$0xff] }
  0xb6   : > { %8693 = vmatmul.msk.bf16.gmra.mxu2 %vm693_vm0, %v10274_v1 }
  0xb9   : > { %v10297_v16 = vpop.f32.mrf.mxu0  ;;  %v10354_v11 = vpop.f32.mrf.mxu2 }
  0xba   : > { %v10287_v6 = vpop.f32.mrf.mxu1 }
  0xc1   : > { %v10312_v25 = vpop.f32.mrf.mxu0  ;;  %v10372_v34 = vpop.f32.mrf.mxu2 }
  0xc2   : > { %v10301_v21 = vpop.f32.mrf.mxu1 }
  0xc4   : > { %8646 = vmatmul.msk.bf16.gmra.mxu0 %vm693_vm0, %v634_v17  ;;  %v619_v17 = vld [vmem:[%s10088_s30 + $0xe0] sm:$0xff] }
  0xc5   : > { %8666 = vmatmul.msk.bf16.gmra.mxu1 %vm693_vm0, %v586_v18  ;;  %v620_v18 = vld [vmem:[%s10088_s30 + $0xe8] sm:$0xff] }
  0xc6   : > { %8694 = vmatmul.msk.bf16.gmra.mxu2 %vm693_vm0, %v10299_v20  ;;  %v637_v37 = vpack.c.bf16 %v620_v18, %v619_v17  ;;  %v638_v17 = vpack.c.bf16 %v622_v60, %v621_v59  ;;  %v9781_v60 = vld [vmem:[%s14433_s10 + $0x18] sm:$0xff] }
  0xc7   : > { %1832 = vmatpush.bf16.msrb.mxu2 %v9781_v60 }
  0xc9   : > { %v10328_v46 = vpop.f32.mrf.mxu0  ;;  %v10384_v56 = vpop.f32.mrf.mxu2 }
  0xca   : > { %v10314_v26 = vpop.f32.mrf.mxu1 }
  0xd1   : > { %v10341_v55 = vpop.f32.mrf.mxu0 }
  0xd2   : > { %v10326_v44 = vpop.f32.mrf.mxu1 }
  0xd4   : > { %8647 = vmatmul.msk.bf16.gmra.mxu0 %vm693_vm0, %v635_v39  ;;  %v589_v39 = vpack.c.bf16 %v572_v27, %v571_v22  ;;  %v10401_v27 = vld [vmem:[%s14430_s7] sm:$0x7] }
  0xd5   : > { %8667 = vmatmul.msk.bf16.gmra.mxu1 %vm693_vm0, %v587_v41  ;;  %v10376_v41 = vpack.c.bf16 %v668_v30, %v667_v28  ;;  %v10405_v30 = vpop.f32.mrf.mxu2 }
  0xd6   : > { %8695 = vmatmul.msk.bf16.gmra.mxu2 %vm693_vm0, %v10324_v42 }
  0xd9   : > { %v10362_v13 = vpop.f32.mrf.mxu0 }
  0xda   : > { %v10337_v53 = vpop.f32.mrf.mxu1 }
  0xe1   : > { %v10374_v38 = vpop.f32.mrf.mxu0 }
  0xe2   : > { %v10351_v10 = vpop.f32.mrf.mxu1 }
  0xe4   : > { %8648 = vmatmul.msk.bf16.gmra.mxu0 %vm693_vm0, %v636_v0  ;;  %v574_v0 = vld [vmem:[%s10094_s17 + $0xf8] sm:$0xff] }
  0xe5   : > { %8668 = vmatmul.msk.bf16.gmra.mxu1 %vm693_vm0, %v588_v4  ;;  %v669_v4 = vld [vmem:[%s10103_s20 + $0xf0] sm:$0xff]  ;;  %v590_v18 = vpack.c.bf16 %v574_v0, %v573_v63  ;;  %v895_v63 = vadd.f32 %v10223_v32, %v10219_v29  ;;  %v10426_v0 = vld [vmem:[%s14428_s5] ss:$0 sm:$0xff] }
  0xe6   : > { %8696 = vmatmul.msk.bf16.gmra.mxu2 %vm693_vm0, %v10349_v9  ;;  %v10396_v22 = vpack.c.bf16 %v670_v12, %v669_v4  ;;  %v9759_v12 = vld [vmem:[%s14429_s6 + $0x4] sm:$0xf]  ;;  %v8675_v29 = vld [vmem:[%s14429_s6 + $0xc] sm:$0xf0] }
  0xe9   : > { %v10388_v58 = vpop.f32.mrf.mxu0 }
  0xea   : > { %v10364_v15 = vpop.f32.mrf.mxu1 }
  0xf1   : > { %v10413_v59 = vpop.f32.mrf.mxu0 }
  0xf2   : > { %v10378_v49 = vpop.f32.mrf.mxu1 }
  0xf4   : > { %8649 = vmatmul.msk.bf16.gmra.mxu0 %vm693_vm0, %v637_v37  ;;  %v10409_v37 = vperm.slane %v10401_v27, 0 }
  0xf5   : > { %8669 = vmatmul.msk.bf16.gmra.mxu1 %vm693_vm0, %v589_v39  ;;  %v897_v39 = vadd.f32 %v10234_v36, %v10232_v35 }
  0xf6   : > { %8697 = vmatmul.msk.bf16.gmra.mxu2 %vm693_vm0, %v10376_v41  ;;  %14473 = vst [vmem:[#allocation4_spill] sm:$0xff] %v10409_v37  ;;  %v1092_v35 = vadd.f32 %v10310_v23, %v10409_v37  ;;  %v1090_v36 = vadd.f32 %v10289_v7, %v10409_v37  ;;  %v977_v23 = vadd.f32 %v10426_v0, %v895_v63 }
  0xf7   : > { %v978_v4 = vadd.f32 %v10426_v0, %v897_v39  ;;  %v10449_v39 = vpop.f32.mrf.mxu2 }
  0xf8   : > { %v10447_v7 = vadd.f32 %v1090_v36, %v977_v23  ;;  %v9793_v36 = vld [vmem:[%s14431_s8 + $0x78] sm:$0xff]  ;;  %v1097_v23 = vadd.f32 %v10339_v54, %v10409_v37 }
  0xf9   : > { %v10452_v5 = vpop.f32.mrf.mxu0 }
  0xfa   : > { %v10386_v57 = vpop.f32.mrf.mxu1 }
 0x102   : > { %v10403_v28 = vpop.f32.mrf.mxu1 }
 0x104   : > { %8650 = vmatmul.msk.bf16.gmra.mxu0 %vm693_vm0, %v638_v17  ;;  %v10441_v17 = vor.u32 %v9759_v12, %v8675_v29  ;;  %v1443_v12 = vmax.f32 %v10447_v7, 0.0 }
 0x105   : > { %8670 = vmatmul.msk.bf16.gmra.mxu1 %vm693_vm0, %v590_v18  ;;  %v10444_v18 = vadd.f32 %v1092_v35, %v978_v4  ;;  %v902_v35 = vadd.f32 %v10255_v50, %v10257_v51  ;;  %v900_v4 = vadd.f32 %v10246_v48, %v10242_v45  ;;  %v10475_v50 = vpop.f32.mrf.mxu0 }
 0x106   : > { %8698 = vmatmul.msk.bf16.gmra.mxu2 %vm693_vm0, %v10396_v22  ;;  %14474 = vst [vmem:[#allocation5_spill] sm:$0xff] %v10441_v17  ;;  %1176 = vmatpush.bf16.msra.mxu3 %v10441_v17  ;;  %v10470_v17 = vpop.f32.mrf.mxu2 }
 0x107   : > { %v1444_v60 = vmax.f32 %v10444_v18, 0.0 }
 0x109   : > { %8699 = vmatmul.msk.bf16.vlgmr.msra.gmra.mxu3 %vm693_vm0, %v10108_v14  ;;  %v1475_v63 = vpack.c.bf16 %v1444_v60, %v1443_v12  ;;  %v980_v60 = vadd.f32 %v10426_v0, %v902_v35  ;;  %v979_v12 = vadd.f32 %v10426_v0, %v900_v4  ;;  %v907_v4 = vadd.f32 %v10287_v6, %v10297_v16 }
 0x10a   : > { %v10439_v32 = vpop.f32.mrf.mxu1  ;;  %2163 = vmatpush.bf16.msrb.mxu3 %v9793_v36 }
 0x10d   : > { %v10492_v36 = vpop.f32.mrf.mxu0 }
 0x112   : > { %v10457_v29 = vpop.f32.mrf.mxu1 }
 0x114   : > { %8715 = vmatmul.msk.bf16.vlgmr.msrb.gmra.mxu0 %vm693_vm0, %v10108_v14  ;;  %v1095_v14 = vadd.f32 %v10322_v40, %v10409_v37  ;;  %v10488_v40 = vpop.f32.mrf.mxu2 }
 0x115   : > { %1567 = vmatmul.bf16.vlgmr.msrb.gmra.mxu1 %v1475_v63  ;;  %v10480_v63 = vadd.f32 %v1097_v23, %v980_v60  ;;  %v9780_v23 = vld [vmem:[%s14433_s10 + $0x10] sm:$0xff]  ;;  %v1102_v60 = vadd.f32 %v10372_v34, %v10409_v37 }
 0x116   : > { %v10482_v45 = vadd.f32 %v1095_v14, %v979_v12  ;;  %v905_v14 = vadd.f32 %v10276_v2, %v10279_v3  ;;  %1833 = vmatpush.bf16.msrb.mxu2 %v9780_v23  ;;  %v1100_v12 = vadd.f32 %v10354_v11, %v10409_v37 }
 0x117   : > { %14475 = vst [vmem:[#allocation6_spill] sm:$0xff] %v10480_v63  ;;  %v1446_v48 = vmax.f32 %v10480_v63, 0.0  ;;  %v10515_v63 = vpop.f32.mrf.mxu0 }
 0x118   : > { %v1445_v54 = vmax.f32 %v10482_v45, 0.0 }
 0x119   : > { %8700 = vmatmul.msk.bf16.gmra.mxu3 %vm693_vm0, %v10123_v24 }
 0x11a   : > { %v10477_v51 = vpop.f32.mrf.mxu1  ;;  %v1476_v61 = vpack.c.bf16 %v1446_v48, %v1445_v54 }
 0x11c   : > { %v1116_v16 = vpop.f32.mrf.mxu2 }
 0x122   : > { %v10490_v35 = vpop.f32.mrf.mxu1 }
 0x124   : > { %8716 = vmatmul.msk.bf16.gmra.mxu0 %vm693_vm0, %v10123_v24  ;;  %v982_v24 = vadd.f32 %v10426_v0, %v907_v4  ;;  %v912_v4 = vadd.f32 %v10314_v26, %v10328_v46  ;;  %v10527_v23 = vpop.f32.mrf.mxu2 }
 0x125   : > { %1572 = vmatmul.bf16.gmra.mxu1 %v1476_v61  ;;  %v981_v61 = vadd.f32 %v10426_v0, %v905_v14  ;;  %v9792_v14 = vld [vmem:[%s14431_s8 + $0x70] sm:$0xff] }
 0x126   : > { %v10511_v6 = vadd.f32 %v1102_v60, %v982_v24  ;;  %v910_v60 = vadd.f32 %v10301_v21, %v10312_v25  ;;  %v10536_v24 = vpop.f32.mrf.mxu0  ;;  %2164 = vmatpush.bf16.msrb.mxu3 %v9792_v14  ;;  %v984_v26 = vadd.f32 %v10426_v0, %v912_v4  ;;  %v917_v14 = vadd.f32 %v10337_v53, %v10362_v13 }
 0x127   : > { %v10513_v54 = vadd.f32 %v1100_v12, %v981_v61  ;;  %v1107_v12 = vadd.f32 %v10405_v30, %v10409_v37 }
 0x128   : > { %v1448_v2 = vmax.f32 %v10511_v6, 0.0  ;;  %v983_v61 = vadd.f32 %v10426_v0, %v910_v60  ;;  %v9779_v60 = vld [vmem:[%s14433_s10 + $0x8] sm:$0xff] }
 0x129   : > { %8701 = vmatmul.msk.bf16.gmra.mxu3 %vm693_vm0, %v10135_v33  ;;  %v1447_v3 = vmax.f32 %v10513_v54, 0.0  ;;  %1834 = vmatpush.bf16.msrb.mxu2 %v9779_v60  ;;  %v922_v60 = vadd.f32 %v10364_v15, %v10388_v58 }
 0x12a   : > { %v10508_v48 = vpop.f32.mrf.mxu1 }
 0x12b   : > { %v1477_v34 = vpack.c.bf16 %v1448_v2, %v1447_v3  ;;  %v10544_v2 = vadd.f32 %v1107_v12, %v984_v26  ;;  %v915_v12 = vadd.f32 %v10326_v44, %v10341_v55  ;;  %v1110_v26 = vadd.f32 %v10449_v39, %v10409_v37 }
 0x12c   : > { %v1121_v25 = vpop.f32.mrf.mxu2 }
 0x12d   : > { %v1450_v21 = vmax.f32 %v10544_v2, 0.0  ;;  %v985_v53 = vadd.f32 %v10426_v0, %v915_v12 }
 0x132   : > { %v10521_v11 = vpop.f32.mrf.mxu1 }
 0x134   : > { %8717 = vmatmul.msk.bf16.gmra.mxu0 %vm693_vm0, %v10135_v33  ;;  %v1105_v33 = vadd.f32 %v10384_v56, %v10409_v37 }
 0x135   : > { %1577 = vmatmul.bf16.gmra.mxu1 %v1477_v34  ;;  %v10552_v34 = vpop.f32.mrf.mxu0 }
 0x136   : > { %v10546_v3 = vadd.f32 %v1105_v33, %v983_v61  ;;  %v1112_v33 = vadd.f32 %v10470_v17, %v10409_v37  ;;  %v1124_v61 = vpop.f32.mrf.mxu2 }
 0x138   : > { %v1449_v30 = vmax.f32 %v10546_v3, 0.0 }
 0x139   : > { %8702 = vmatmul.msk.bf16.gmra.mxu3 %vm693_vm0, %v10150_v43 }
 0x13a   : > { %v10541_v46 = vpop.f32.mrf.mxu1  ;;  %v1478_v4 = vpack.c.bf16 %v1450_v21, %v1449_v30 }
 0x13d   : > { %v10575_v30 = vpop.f32.mrf.mxu0 }
 0x13e   : > { %v1126_v39 = vpop.f32.mrf.mxu2 }
 0x142   : > { %v10554_v56 = vpop.f32.mrf.mxu1 }
 0x144   : > { %8718 = vmatmul.msk.bf16.gmra.mxu0 %vm693_vm0, %v10150_v43  ;;  %v986_v43 = vadd.f32 %v10426_v0, %v917_v14 }
 0x145   : > { %1582 = vmatmul.bf16.gmra.mxu1 %v1478_v4  ;;  %v10577_v4 = vadd.f32 %v1110_v26, %v985_v53  ;;  %v10589_v12 = vpop.f32.mrf.mxu0  ;;  %v920_v26 = vadd.f32 %v10351_v10, %v10374_v38  ;;  %v1115_v53 = vadd.f32 %v10488_v40, %v10409_v37 }
 0x146   : > { %v10573_v13 = vadd.f32 %v1112_v33, %v986_v43  ;;  %v9791_v33 = vld [vmem:[%s14431_s8 + $0x68] sm:$0xff]  ;;  %v1117_v43 = vadd.f32 %v1116_v16, %v10409_v37 }
 0x147   : > { %v1451_v55 = vmax.f32 %v10577_v4, 0.0  ;;  %2165 = vmatpush.bf16.msrb.mxu3 %v9791_v33  ;;  %v987_v15 = vadd.f32 %v10426_v0, %v920_v26  ;;  %v9778_v33 = vld [vmem:[%s14433_s10] sm:$0xff]  ;;  %v925_v26 = vadd.f32 %v10378_v49, %v10413_v59 }
 0x148   : > { %14476 = vst [vmem:[#allocation7_spill] sm:$0xff] %v10573_v13  ;;  %v1452_v44 = vmax.f32 %v10573_v13, 0.0  ;;  %1835 = vmatpush.bf16.msrb.mxu2 %v9778_v33  ;;  %v932_v33 = vadd.f32 %v10439_v32, %v10492_v36 }
 0x149   : > { %8703 = vmatmul.msk.bf16.gmra.mxu3 %vm693_vm0, %v10162_v52 }
 0x14a   : > { %v10570_v21 = vpop.f32.mrf.mxu1  ;;  %v1479_v14 = vpack.c.bf16 %v1452_v44, %v1451_v55  ;;  %v10605_v55 = vadd.f32 %v1115_v53, %v987_v15 }
 0x14c   : > { %v1453_v38 = vmax.f32 %v10605_v55, 0.0 }
 0x14d   : > { %v10608_v10 = vpop.f32.mrf.mxu0 }
 0x152   : > { %v10583_v17 = vpop.f32.mrf.mxu1 }
 0x154   : > { %8719 = vmatmul.msk.bf16.gmra.mxu0 %vm693_vm0, %v10162_v52  ;;  %v988_v52 = vadd.f32 %v10426_v0, %v922_v60  ;;  %v927_v60 = vadd.f32 %v10386_v57, %v10452_v5  ;;  %v989_v57 = vadd.f32 %v10426_v0, %v925_v26  ;;  %v9790_v26 = vld [vmem:[%s14431_s8 + $0x60] sm:$0xff] }
 0x155   : > { %1587 = vmatmul.bf16.gmra.mxu1 %v1479_v14  ;;  %v1129_v14 = vpop.f32.mrf.mxu2  ;;  %2166 = vmatpush.bf16.msrb.mxu3 %v9790_v26 }
 0x156   : > { %v10603_v58 = vadd.f32 %v1117_v43, %v988_v52  ;;  %v1122_v43 = vadd.f32 %v1121_v25, %v10409_v37  ;;  %v10628_v52 = vpop.f32.mrf.mxu0 }
 0x158   : > { %v1454_v13 = vmax.f32 %v10603_v58, 0.0 }
 0x159   : > { %8704 = vmatmul.msk.bf16.gmra.mxu3 %vm693_vm0, %v10177_v62 }
 0x15a   : > { %v10600_v44 = vpop.f32.mrf.mxu1  ;;  %v1480_v16 = vpack.c.bf16 %v1454_v13, %v1453_v38  ;;  %v1120_v13 = vadd.f32 %v10527_v23, %v10409_v37 }
 0x15c   : > { %v10635_v38 = vadd.f32 %v1120_v13, %v989_v57  ;;  %v1127_v13 = vadd.f32 %v1126_v39, %v10409_v37  ;;  %v992_v57 = vadd.f32 %v10426_v0, %v932_v33  ;;  %v937_v33 = vadd.f32 %v10477_v51, %v10536_v24 }
 0x15d   : > { %v1131_v53 = vpop.f32.mrf.mxu2 }
 0x15e   : > { %v1455_v59 = vmax.f32 %v10635_v38, 0.0  ;;  %v10660_v32 = vadd.f32 %v1127_v13, %v992_v57  ;;  %v1132_v13 = vadd.f32 %v1131_v53, %v10409_v37  ;;  %v1130_v57 = vadd.f32 %v1129_v14, %v10409_v37 }
 0x160   : > { %14477 = vst [vmem:[#allocation8_spill] sm:$0xff] %v10660_v32 }
 0x162   : > { %v10613_v40 = vpop.f32.mrf.mxu1 }
 0x164   : > { %8720 = vmatmul.msk.bf16.gmra.mxu0 %vm693_vm0, %v10177_v62  ;;  %v990_v62 = vadd.f32 %v10426_v0, %v927_v60 }
 0x165   : > { %1592 = vmatmul.bf16.gmra.mxu1 %v1480_v16  ;;  %v1134_v23 = vpop.f32.mrf.mxu2  ;;  %v10643_v16 = vpop.f32.mrf.mxu0 }
 0x166   : > { %v10633_v15 = vadd.f32 %v1122_v43, %v990_v62  ;;  %v930_v43 = vadd.f32 %v10403_v28, %v10475_v50  ;;  %v1125_v62 = vadd.f32 %v1124_v61, %v10409_v37  ;;  %v1458_v28 = vmax.f32 %v10660_v32, 0.0 }
 0x168   : > { %v1456_v49 = vmax.f32 %v10633_v15, 0.0 }
 0x169   : > { %8705 = vmatmul.msk.bf16.gmra.mxu3 %vm693_vm0, %v10189_v8 }
 0x16a   : > { %v10630_v5 = vpop.f32.mrf.mxu1  ;;  %v1481_v60 = vpack.c.bf16 %v1456_v49, %v1455_v59 }
 0x16d   : > { %v1136_v36 = vpop.f32.mrf.mxu2 }
 0x172   : > { %v10641_v25 = vpop.f32.mrf.mxu1 }
 0x174   : > { %8721 = vmatmul.msk.bf16.gmra.mxu0 %vm693_vm0, %v10189_v8  ;;  %v991_v8 = vadd.f32 %v10426_v0, %v930_v43  ;;  %v935_v43 = vadd.f32 %v10457_v29, %v10515_v63 }
 0x175   : > { %1597 = vmatmul.bf16.gmra.mxu1 %v1481_v60  ;;  %v10664_v60 = vpop.f32.mrf.mxu0  ;;  %v1139_v26 = vpop.f32.mrf.mxu2 }
 0x176   : > { %v10662_v59 = vadd.f32 %v1125_v62, %v991_v8  ;;  %v994_v8 = vadd.f32 %v10426_v0, %v937_v33 }
 0x178   : > { %14478 = vst [vmem:[#allocation9_spill] sm:$0xff] %v10662_v59  ;;  %v1457_v50 = vmax.f32 %v10662_v59, 0.0 }
 0x179   : > { %8706 = vmatmul.msk.bf16.gmra.mxu3 %vm693_vm0, %v10204_v19 }
 0x17a   : > { %v10657_v49 = vpop.f32.mrf.mxu1  ;;  %v1482_v39 = vpack.c.bf16 %v1458_v28, %v1457_v50  ;;  %v10686_v50 = vadd.f32 %v1132_v13, %v994_v8  ;;  %v10705_v13 = vld [vmem:[%s14432_s9] ss:$0 sm:$0xff]  ;;  %v940_v8 = vadd.f32 %v10490_v35, %v10552_v34 }
 0x17c   : > { %14479 = vst [vmem:[#allocation10_spill] sm:$0xff] %v10686_v50  ;;  %v1460_v24 = vmax.f32 %v10686_v50, 0.0 }
 0x17d   : > { %v10679_v62 = vpop.f32.mrf.mxu0 }
 0x182   : > { %v10670_v61 = vpop.f32.mrf.mxu1 }
 0x184   : > { %8722 = vmatmul.msk.bf16.gmra.mxu0 %vm693_vm0, %v10204_v19  ;;  %v993_v19 = vadd.f32 %v10426_v0, %v935_v43  ;;  %v942_v43 = vadd.f32 %v10508_v48, %v10575_v30 }
 0x185   : > { %1602 = vmatmul.bf16.gmra.mxu1 %v1482_v39  ;;  %v1141_v39 = vpop.f32.mrf.mxu2  ;;  %v10694_v63 = vpop.f32.mrf.mxu0 }
 0x186   : > { %v10688_v51 = vadd.f32 %v1130_v57, %v993_v19  ;;  %v9789_v57 = vld [vmem:[%s14431_s8 + $0x58] sm:$0xff]  ;;  %v1137_v19 = vadd.f32 %v1136_v36, %v10409_v37  ;;  %v996_v48 = vadd.f32 %v10426_v0, %v942_v43 }
 0x187   : > { %2167 = vmatpush.bf16.msrb.mxu3 %v9789_v57 }
 0x188   : > { %14480 = vst [vmem:[#allocation11_spill] sm:$0xff] %v10688_v51  ;;  %v1459_v29 = vmax.f32 %v10688_v51, 0.0  ;;  %v10719_v51 = vadd.f32 %v1137_v19, %v996_v48 }
 0x189   : > { %8707 = vmatmul.msk.bf16.gmra.mxu3 %vm693_vm0, %v10221_v31 }
 0x18a   : > { %v10683_v28 = vpop.f32.mrf.mxu1  ;;  %v1483_v33 = vpack.c.bf16 %v1460_v24, %v1459_v29  ;;  %v1462_v43 = vmax.f32 %v10719_v51, 0.0 }
 0x18c   : > { %v10696_v53 = vpop.f32.mrf.mxu3 }
 0x18d   : > { %v1144_v30 = vpop.f32.mrf.mxu2  ;;  %v10721_v32 = vpop.f32.mrf.mxu0 }
 0x192   : > { %v1568_v14 = vpop.f32.mrf.mxu1 }
 0x193   : > { %v1569_v24 = vadd.f32 %v10705_v13, %v1568_v14 }
 0x194   : > { %8723 = vmatmul.msk.bf16.gmra.mxu0 %vm693_vm0, %v10221_v31  ;;  %v1135_v31 = vadd.f32 %v1134_v23, %v10409_v37  ;;  %v10716_v50 = vpop.f32.mrf.mxu3 }
 0x195   : > { %1607 = vmatmul.bf16.gmra.mxu1 %v1483_v33  ;;  %v995_v33 = vadd.f32 %v10426_v0, %v940_v8  ;;  %v1712_v36 = vmax.f32 %v1569_v24, 0.0  ;;  %v1146_v48 = vpop.f32.mrf.mxu2  ;;  %v10736_v24 = vpop.f32.mrf.mxu0 }
 0x197   : > { %v10724_v34 = vadd.f32 %v1135_v31, %v995_v33  ;;  %v947_v31 = vadd.f32 %v10541_v46, %v10608_v10  ;;  %v945_v33 = vadd.f32 %v10521_v11, %v10589_v12 }
 0x199   : > { %8708 = vmatmul.msk.bf16.gmra.mxu3 %vm693_vm0, %v10244_v47  ;;  %v1461_v14 = vmax.f32 %v10724_v34, 0.0 }
 0x19a   : > { %v1570_v29 = vpop.f32.mrf.mxu1 }
 0x19b   : > { %v1571_v35 = vadd.f32 %v10705_v13, %v1570_v29  ;;  %v1484_v59 = vpack.c.bf16 %v1462_v43, %v1461_v14  ;;  %v9801_v29 = vld [vmem:[%s14433_s10 + $0x78] sm:$0xff] }
 0x19c   : > { %v10730_v19 = vpop.f32.mrf.mxu3  ;;  %2434 = vmatpush.bf16.msra.mxu0 %v9801_v29 }
 0x19d   : > { %v1713_v23 = vmax.f32 %v1571_v35, 0.0  ;;  %v1142_v35 = vadd.f32 %v1141_v39, %v10409_v37  ;;  %v1149_v11 = vpop.f32.mrf.mxu2  ;;  %v10756_v29 = vpop.f32.mrf.mxu0 }
 0x19f   : > { %v1744_v57 = vpack.c.bf16 %v1713_v23, %v1712_v36  ;;  %v1140_v36 = vadd.f32 %v1139_v26, %v10409_v37 }
 0x1a1   : > { %1836 = vmatmul.bf16.vlgmr.msrb.gmra.mxu2 %v1744_v57 }
 0x1a2   : > { %v1573_v8 = vpop.f32.mrf.mxu1 }
 0x1a3   : > { %v1574_v23 = vadd.f32 %v10705_v13, %v1573_v8 }
 0x1a4   : > { %8724 = vmatmul.msk.bf16.gmra.mxu0 %vm693_vm0, %v10244_v47  ;;  %v998_v47 = vadd.f32 %v10426_v0, %v947_v31  ;;  %v10747_v10 = vpop.f32.mrf.mxu3 }
 0x1a5   : > { %1612 = vmatmul.bf16.gmra.mxu1 %v1484_v59  ;;  %v997_v59 = vadd.f32 %v10426_v0, %v945_v33  ;;  %v1714_v12 = vmax.f32 %v1574_v23, 0.0  ;;  %v9788_v23 = vld [vmem:[%s14431_s8 + $0x50] sm:$0xff] }
 0x1a6   : > { %v10750_v43 = vadd.f32 %v1142_v35, %v998_v47  ;;  %2168 = vmatpush.bf16.msrb.mxu3 %v9788_v23 }
 0x1a7   : > { %v10753_v14 = vadd.f32 %v1140_v36, %v997_v59  ;;  %v952_v36 = vadd.f32 %v10570_v21, %v10643_v16  ;;  %v1147_v59 = vadd.f32 %v1146_v48, %v10409_v37 }
 0x1a8   : > { %14481 = vst [vmem:[#allocation12_spill] sm:$0xff] %v10750_v43  ;;  %v1464_v26 = vmax.f32 %v10750_v43, 0.0 }
 0x1a9   : > { %8709 = vmatmul.msk.bf16.gmra.mxu3 %vm693_vm0, %v10274_v1  ;;  %v1463_v8 = vmax.f32 %v10753_v14, 0.0 }
 0x1aa   : > { %v1575_v46 = vpop.f32.mrf.mxu1 }
 0x1ab   : > { %v1576_v57 = vadd.f32 %v10705_v13, %v1575_v46  ;;  %v1485_v47 = vpack.c.bf16 %v1464_v26, %v1463_v8  ;;  %v950_v46 = vadd.f32 %v10554_v56, %v10628_v52 }
 0x1ac   : > { %v10761_v35 = vpop.f32.mrf.mxu3 }
 0x1ad   : > { %v1715_v39 = vmax.f32 %v1576_v57, 0.0  ;;  %v1151_v57 = vpop.f32.mrf.mxu2 }
 0x1af   : > { %v1745_v31 = vpack.c.bf16 %v1715_v39, %v1714_v12  ;;  %v1145_v12 = vadd.f32 %v1144_v30, %v10409_v37  ;;  %v1000_v39 = vadd.f32 %v10426_v0, %v952_v36 }
 0x1b1   : > { %1841 = vmatmul.bf16.gmra.mxu2 %v1745_v31  ;;  %v999_v31 = vadd.f32 %v10426_v0, %v950_v46  ;;  %v10781_v8 = vadd.f32 %v1147_v59, %v1000_v39 }
 0x1b2   : > { %v1578_v33 = vpop.f32.mrf.mxu1 }
 0x1b3   : > { %v1579_v21 = vadd.f32 %v10705_v13, %v1578_v33  ;;  %v10784_v52 = vadd.f32 %v1145_v12, %v999_v31  ;;  %v1466_v30 = vmax.f32 %v10781_v8, 0.0  ;;  %v957_v12 = vadd.f32 %v10600_v44, %v10679_v62 }
 0x1b4   : > { %8725 = vmatmul.msk.bf16.gmra.mxu0 %vm693_vm0, %v10274_v1  ;;  %v10775_v1 = vpop.f32.mrf.mxu0  ;;  %v10778_v26 = vpop.f32.mrf.mxu3  ;;  %v1152_v31 = vadd.f32 %v1151_v57, %v10409_v37 }
 0x1b5   : > { %1617 = vmatmul.bf16.gmra.mxu1 %v1485_v47  ;;  %v1716_v48 = vmax.f32 %v1579_v21, 0.0  ;;  %v1465_v33 = vmax.f32 %v10784_v52, 0.0  ;;  %v1154_v23 = vpop.f32.mrf.mxu2  ;;  %v9800_v21 = vld [vmem:[%s14433_s10 + $0x70] sm:$0xff] }
 0x1b6   : > { %2435 = vmatpush.bf16.msra.mxu0 %v9800_v21 }
 0x1b7   : > { %v1486_v59 = vpack.c.bf16 %v1466_v30, %v1465_v33 }
 0x1b9   : > { %8710 = vmatmul.msk.bf16.gmra.mxu3 %vm693_vm0, %v10299_v20 }
 0x1ba   : > { %v1580_v16 = vpop.f32.mrf.mxu1 }
 0x1bb   : > { %v1581_v56 = vadd.f32 %v10705_v13, %v1580_v16  ;;  %v955_v16 = vadd.f32 %v10583_v17, %v10664_v60 }
 0x1bc   : > { %v10790_v46 = vpop.f32.mrf.mxu3  ;;  %v10792_v39 = vpop.f32.mrf.mxu0 }
 0x1bd   : > { %v1717_v47 = vmax.f32 %v1581_v56, 0.0  ;;  %v1150_v56 = vadd.f32 %v1149_v11, %v10409_v37  ;;  %v1001_v44 = vadd.f32 %v10426_v0, %v955_v16 }
 0x1bf   : > { %v1746_v36 = vpack.c.bf16 %v1717_v47, %v1716_v48  ;;  %v1002_v48 = vadd.f32 %v10426_v0, %v957_v12  ;;  %v10813_v17 = vadd.f32 %v1150_v56, %v1001_v44  ;;  %v1155_v44 = vadd.f32 %v1154_v23, %v10409_v37 }
 0x1c1   : > { %1846 = vmatmul.bf16.gmra.mxu2 %v1746_v36  ;;  %v10810_v62 = vadd.f32 %v1152_v31, %v1002_v48  ;;  %v1156_v36 = vpop.f32.mrf.mxu2  ;;  %v962_v31 = vadd.f32 %v10630_v5, %v10721_v32  ;;  %v9787_v48 = vld [vmem:[%s14431_s8 + $0x48] sm:$0xff] }
 0x1c2   : > { %v1583_v43 = vpop.f32.mrf.mxu1  ;;  %2169 = vmatpush.bf16.msrb.mxu3 %v9787_v48 }
 0x1c3   : > { %v1468_v11 = vmax.f32 %v10810_v62, 0.0 }
 0x1c4   : > { %8726 = vmatmul.msk.bf16.gmra.mxu0 %vm693_vm0, %v10299_v20  ;;  %v1584_v20 = vadd.f32 %v10705_v13, %v1583_v43  ;;  %v10807_v30 = vpop.f32.mrf.mxu3  ;;  %v1467_v43 = vmax.f32 %v10813_v17, 0.0 }
 0x1c5   : > { %1622 = vmatmul.bf16.gmra.mxu1 %v1486_v59 }
 0x1c6   : > { %v1718_v60 = vmax.f32 %v1584_v20, 0.0  ;;  %v1487_v16 = vpack.c.bf16 %v1468_v11, %v1467_v43  ;;  %v960_v20 = vadd.f32 %v10613_v40, %v10694_v63 }
 0x1c8   : > { %v1003_v32 = vadd.f32 %v10426_v0, %v960_v20 }
 0x1c9   : > { %8711 = vmatmul.msk.bf16.gmra.mxu3 %vm693_vm0, %v10324_v42  ;;  %v1159_v56 = vpop.f32.mrf.mxu2 }
 0x1ca   : > { %v1585_v47 = vpop.f32.mrf.mxu1  ;;  %v10838_v43 = vadd.f32 %v1155_v44, %v1003_v32  ;;  %v9799_v44 = vld [vmem:[%s14433_s10 + $0x68] sm:$0xff] }
 0x1cb   : > { %v1586_v33 = vadd.f32 %v10705_v13, %v1585_v47  ;;  %v1157_v47 = vadd.f32 %v1156_v36, %v10409_v37  ;;  %2436 = vmatpush.bf16.msra.mxu0 %v9799_v44 }
 0x1cc   : > { %v10819_v21 = vpop.f32.mrf.mxu3 }
 0x1cd   : > { %v1719_v57 = vmax.f32 %v1586_v33, 0.0  ;;  %v1004_v33 = vadd.f32 %v10426_v0, %v962_v31 }
 0x1cf   : > { %v1747_v59 = vpack.c.bf16 %v1719_v57, %v1718_v60  ;;  %v10835_v11 = vadd.f32 %v1157_v47, %v1004_v33  ;;  %v967_v47 = vadd.f32 %v10657_v49, %v10756_v29  ;;  %v965_v33 = vadd.f32 %v10641_v25, %v10736_v24 }
 0x1d1   : > { %1851 = vmatmul.bf16.gmra.mxu2 %v1747_v59  ;;  %v1470_v36 = vmax.f32 %v10835_v11, 0.0  ;;  %v1161_v23 = vpop.f32.mrf.mxu2  ;;  %v1006_v32 = vadd.f32 %v10426_v0, %v967_v47  ;;  %v1005_v29 = vadd.f32 %v10426_v0, %v965_v33 }
 0x1d2   : > { %v1588_v12 = vpop.f32.mrf.mxu1 }
 0x1d3   : > { %v1589_v60 = vadd.f32 %v10705_v13, %v1588_v12  ;;  %v1469_v12 = vmax.f32 %v10838_v43, 0.0 }
 0x1d4   : > { %v10832_v5 = vpop.f32.mrf.mxu3 }
 0x1d5   : > { %1627 = vmatmul.bf16.gmra.mxu1 %v1487_v16  ;;  %v1720_v40 = vmax.f32 %v1589_v60, 0.0  ;;  %v1488_v20 = vpack.c.bf16 %v1470_v36, %v1469_v12  ;;  %v1162_v60 = vadd.f32 %v1161_v23, %v10409_v37 }
 0x1d7   : > { %v10860_v36 = vadd.f32 %v1162_v60, %v1006_v32  ;;  %v972_v60 = vadd.f32 %v10683_v28, %v10792_v39  ;;  %v970_v32 = vadd.f32 %v10670_v61, %v10775_v1 }
 0x1d9   : > { %8712 = vmatmul.msk.bf16.gmra.mxu3 %vm693_vm0, %v10349_v9  ;;  %v1007_v28 = vadd.f32 %v10426_v0, %v970_v32 }
 0x1da   : > { %v1590_v57 = vpop.f32.mrf.mxu1 }
 0x1db   : > { %v1591_v59 = vadd.f32 %v10705_v13, %v1590_v57  ;;  %v1160_v57 = vadd.f32 %v1159_v56, %v10409_v37  ;;  %v1472_v56 = vmax.f32 %v10860_v36, 0.0 }
 0x1dc   : > { %v10844_v48 = vpop.f32.mrf.mxu3 }
 0x1dd   : > { %v1721_v63 = vmax.f32 %v1591_v59, 0.0  ;;  %v1164_v59 = vpop.f32.mrf.mxu2  ;;  %v10863_v25 = vadd.f32 %v1160_v57, %v1005_v29  ;;  %v9786_v57 = vld [vmem:[%s14431_s8 + $0x40] sm:$0xff]  ;;  %v1008_v29 = vadd.f32 %v10426_v0, %v972_v60 }
 0x1de   : > { %2170 = vmatpush.bf16.msrb.mxu3 %v9786_v57 }
 0x1df   : > { %v1748_v16 = vpack.c.bf16 %v1721_v63, %v1720_v40 }
 0x1e1   : > { %1856 = vmatmul.bf16.gmra.mxu2 %v1748_v16 }
 0x1e2   : > { %v1593_v31 = vpop.f32.mrf.mxu1 }
 0x1e3   : > { %v1594_v40 = vadd.f32 %v10705_v13, %v1593_v31  ;;  %v1471_v31 = vmax.f32 %v10863_v25, 0.0 }
 0x1e4   : > { %v10857_v49 = vpop.f32.mrf.mxu3 }
 0x1e5   : > { %1632 = vmatmul.bf16.gmra.mxu1 %v1488_v20  ;;  %v1722_v24 = vmax.f32 %v1594_v40, 0.0  ;;  %v1489_v47 = vpack.c.bf16 %v1472_v56, %v1471_v31  ;;  %v1166_v33 = vpop.f32.mrf.mxu2 }
 0x1e6   : > { %v1167_v40 = vadd.f32 %v1166_v33, %v10409_v37 }
 0x1e8   : > { %v10883_v39 = vadd.f32 %v1167_v40, %v1008_v29  ;;  %v9798_v40 = vld [vmem:[%s14433_s10 + $0x60] sm:$0xff] }
 0x1e9   : > { %8713 = vmatmul.msk.bf16.gmra.mxu3 %vm693_vm0, %v10376_v41  ;;  %2437 = vmatpush.bf16.msra.mxu0 %v9798_v40 }
 0x1ea   : > { %v1595_v63 = vpop.f32.mrf.mxu1  ;;  %v1474_v31 = vmax.f32 %v10883_v39, 0.0 }
 0x1eb   : > { %v1596_v16 = vadd.f32 %v10705_v13, %v1595_v63  ;;  %v1165_v63 = vadd.f32 %v1164_v59, %v10409_v37 }
 0x1ec   : > { %v10869_v44 = vpop.f32.mrf.mxu3 }
 0x1ed   : > { %v1723_v23 = vmax.f32 %v1596_v16, 0.0  ;;  %v10886_v56 = vadd.f32 %v1165_v63, %v1007_v28 }
 0x1ef   : > { %v1749_v12 = vpack.c.bf16 %v1723_v23, %v1722_v24 }
 0x1f1   : > { %1861 = vmatmul.bf16.gmra.mxu2 %v1749_v12 }
 0x1f2   : > { %v1598_v20 = vpop.f32.mrf.mxu1 }
 0x1f3   : > { %v1599_v16 = vadd.f32 %v10705_v13, %v1598_v20  ;;  %v1473_v20 = vmax.f32 %v10886_v56, 0.0 }
 0x1f4   : > { %v10888_v1 = vpop.f32.mrf.mxu3 }
 0x1f5   : > { %1637 = vmatmul.bf16.gmra.mxu1 %v1489_v47  ;;  %v1724_v12 = vmax.f32 %v1599_v16, 0.0  ;;  %v1490_v47 = vpack.c.bf16 %v1474_v31, %v1473_v20 }
 0x1f9   : > { %8714 = vmatmul.msk.bf16.gmra.mxu3 %vm693_vm0, %v10396_v22 }
 0x1fa   : > { %v1600_v24 = vpop.f32.mrf.mxu1 }
 0x1fb   : > { %v1601_v23 = vadd.f32 %v10705_v13, %v1600_v24 }
 0x1fc   : > { %v10894_v33 = vpop.f32.mrf.mxu3 }
 0x1fd   : > { %v1725_v61 = vmax.f32 %v1601_v23, 0.0 }
 0x1ff   : > { %v1750_v59 = vpack.c.bf16 %v1725_v61, %v1724_v12 }
 0x201   : > { %1866 = vmatmul.bf16.gmra.mxu2 %v1750_v59 }
 0x202   : > { %v1603_v0 = vpop.f32.mrf.mxu1 }
 0x203   : > { %v1604_v60 = vadd.f32 %v10705_v13, %v1603_v0  ;;  %v10907_v0 = vpop.f32.mrf.mxu0 }
 0x204   : > { %v10901_v24 = vpop.f32.mrf.mxu3  ;;  %14482 = vst [vmem:[#allocation13_spill] sm:$0xff] %v10907_v0 }
 0x205   : > { %1642 = vmatmul.bf16.gmra.mxu1 %v1490_v47  ;;  %v1726_v63 = vmax.f32 %v1604_v60, 0.0 }
 0x20a   : > { %v1605_v57 = vpop.f32.mrf.mxu1 }
 0x20b   : > { %v1606_v32 = vadd.f32 %v10705_v13, %v1605_v57  ;;  %v10912_v57 = vld [vmem:[%s14434_s11] ss:$0 sm:$0xff] }
 0x20c   : > { %v10905_v31 = vpop.f32.mrf.mxu3 }
 0x20d   : > { %v1727_v29 = vmax.f32 %v1606_v32, 0.0 }
 0x20f   : > { %v1751_v16 = vpack.c.bf16 %v1727_v29, %v1726_v63  ;;  %v10916_v63 = vpop.f32.mrf.mxu0  ;;  %8727 = vmatmul.msk.bf16.gmra.mxu0 %vm693_vm0, %v10324_v42 }
 0x210   : > { %14483 = vst [vmem:[#allocation14_spill] sm:$0xff] %v10916_v63 }
 0x211   : > { %1871 = vmatmul.bf16.gmra.mxu2 %v1751_v16  ;;  %v10922_v16 = vperm.slane %v10401_v27, 1 }
 0x212   : > { %v1608_v28 = vpop.f32.mrf.mxu1 }
 0x213   : > { %v1609_v23 = vadd.f32 %v10705_v13, %v1608_v28  ;;  %14484 = vst [vmem:[#allocation15_spill] sm:$0xff] %v10922_v16  ;;  %v1179_v42 = vadd.f32 %v10696_v53, %v10922_v16 }
 0x214   : > { %v10914_v40 = vpop.f32.mrf.mxu3 }
 0x215   : > { %v1728_v59 = vmax.f32 %v1609_v23, 0.0  ;;  %v9797_v23 = vld [vmem:[%s14433_s10 + $0x58] sm:$0xff] }
 0x216   : > { %2438 = vmatpush.bf16.msra.mxu0 %v9797_v23 }
 0x217   : > { %v10933_v37 = vpop.f32.mrf.mxu0 }
 0x218   : > { %14485 = vst [vmem:[#allocation16_spill] sm:$0xff] %v10933_v37 }
 0x21a   : > { %v1610_v12 = vpop.f32.mrf.mxu1 }
 0x21b   : > { %v1611_v61 = vadd.f32 %v10705_v13, %v1610_v12 }
 0x21d   : > { %v1729_v20 = vmax.f32 %v1611_v61, 0.0 }
 0x21f   : > { %v1752_v47 = vpack.c.bf16 %v1729_v20, %v1728_v59  ;;  %v10946_v0 = vpop.f32.mrf.mxu0  ;;  %8728 = vmatmul.msk.bf16.gmra.mxu0 %vm693_vm0, %v10349_v9  ;;  %v1184_v9 = vadd.f32 %v10730_v19, %v10922_v16 }
 0x220   : > { %14486 = vst [vmem:[#allocation17_spill] sm:$0xff] %v10946_v0 }
 0x221   : > { %1876 = vmatmul.bf16.gmra.mxu2 %v1752_v47 }
 0x222   : > { %v1613_v60 = vpop.f32.mrf.mxu1 }
 0x223   : > { %v1614_v28 = vadd.f32 %v10705_v13, %v1613_v60  ;;  %v1181_v60 = vadd.f32 %v10716_v50, %v10922_v16 }
 0x224   : > { %v1837_v32 = vpop.f32.mrf.mxu2 }
 0x225   : > { %v1838_v29 = vadd.f32 %v10912_v57, %v1837_v32  ;;  %v1730_v47 = vmax.f32 %v1614_v28, 0.0 }
 0x227   : > { %v1917_v61 = vadd.f32 %v1838_v29, %v10447_v7 }
 0x229   : > { %v10937_v63 = vadd.f32 %v1917_v61, %v1179_v42  ;;  %v9809_v42 = vld [vmem:[%s14431_s8 + $0xb8] sm:$0xff] }
 0x22a   : > { %v1615_v12 = vpop.f32.mrf.mxu1  ;;  %2769 = vmatpush.bf16.msra.mxu1 %v9809_v42 }
 0x22b   : > { %v1616_v59 = vadd.f32 %v10705_v13, %v1615_v12  ;;  %v10940_v12 = vpop.f32.mrf.mxu3  ;;  %v2045_v28 = vmax.f32 %v10937_v63, 0.0 }
 0x22c   : > { %v1839_v20 = vpop.f32.mrf.mxu2 }
 0x22d   : > { %v1731_v32 = vmax.f32 %v1616_v59, 0.0  ;;  %v1840_v27 = vadd.f32 %v10912_v57, %v1839_v20 }
 0x22f   : > { %v1918_v7 = vadd.f32 %v1840_v27, %v10444_v18  ;;  %v1753_v29 = vpack.c.bf16 %v1731_v32, %v1730_v47 }
 0x231   : > { %v10942_v23 = vadd.f32 %v1918_v7, %v1181_v60  ;;  %1881 = vmatmul.bf16.gmra.mxu2 %v1753_v29 }
 0x232   : > { %v1618_v53 = vpop.f32.mrf.mxu1 }
 0x233   : > { %v2046_v59 = vmax.f32 %v10942_v23, 0.0  ;;  %v1619_v50 = vadd.f32 %v10705_v13, %v1618_v53  ;;  %v10952_v61 = vpop.f32.mrf.mxu3  ;;  %v10962_v53 = vpop.f32.mrf.mxu0 }
 0x234   : > { %v1842_v20 = vpop.f32.mrf.mxu2  ;;  %14487 = vst [vmem:[#allocation18_spill] sm:$0xff] %v10962_v53 }
 0x235   : > { %v2077_v37 = vpack.c.bf16 %v2046_v59, %v2045_v28  ;;  %v1843_v18 = vadd.f32 %v10912_v57, %v1842_v20  ;;  %v1732_v7 = vmax.f32 %v1619_v50, 0.0  ;;  %v1186_v28 = vadd.f32 %v10747_v10, %v10922_v16  ;;  %v14488_v20 = vld [vmem:[#allocation6_spill] sm:$0xff] }
 0x237   : > { %2171 = vmatmul.bf16.vlgmr.msrb.gmra.mxu3 %v2077_v37  ;;  %v1919_v32 = vadd.f32 %v1843_v18, %v10482_v45 }
 0x239   : > { %v10966_v59 = vadd.f32 %v1919_v32, %v1184_v9  ;;  %v9796_v9 = vld [vmem:[%s14433_s10 + $0x50] sm:$0xff] }
 0x23a   : > { %v1620_v47 = vpop.f32.mrf.mxu1  ;;  %2439 = vmatpush.bf16.msra.mxu0 %v9796_v9 }
 0x23b   : > { %v1621_v27 = vadd.f32 %v10705_v13, %v1620_v47  ;;  %v2047_v19 = vmax.f32 %v10966_v59, 0.0  ;;  %v10975_v0 = vpop.f32.mrf.mxu0  ;;  %8729 = vmatmul.msk.bf16.gmra.mxu0 %vm693_vm0, %v10376_v41 }
 0x23c   : > { %v1844_v60 = vpop.f32.mrf.mxu2 }
 0x23d   : > { %v1733_v37 = vmax.f32 %v1621_v27, 0.0  ;;  %v1845_v29 = vadd.f32 %v10912_v57, %v1844_v60  ;;  %v10973_v27 = vpop.f32.mrf.mxu3 }
 0x23f   : > { %v1920_v45 = vadd.f32 %v1845_v29, %v14488_v20  ;;  %v1754_v18 = vpack.c.bf16 %v1733_v37, %v1732_v7  ;;  %v1189_v20 = vadd.f32 %v10761_v35, %v10922_v16 }
 0x241   : > { %v10969_v47 = vadd.f32 %v1920_v45, %v1186_v28  ;;  %1886 = vmatmul.bf16.gmra.mxu2 %v1754_v18 }
 0x242   : > { %v1623_v42 = vpop.f32.mrf.mxu1 }
 0x243   : > { %v2048_v50 = vmax.f32 %v10969_v47, 0.0  ;;  %v1624_v32 = vadd.f32 %v10705_v13, %v1623_v42  ;;  %v10991_v42 = vpop.f32.mrf.mxu0 }
 0x244   : > { %v1847_v60 = vpop.f32.mrf.mxu2 }
 0x245   : > { %v2078_v53 = vpack.c.bf16 %v2048_v50, %v2047_v19  ;;  %v1848_v10 = vadd.f32 %v10912_v57, %v1847_v60  ;;  %v1734_v41 = vmax.f32 %v1624_v32, 0.0  ;;  %v10989_v18 = vpop.f32.mrf.mxu3  ;;  %v1191_v19 = vadd.f32 %v10778_v26, %v10922_v16 }
 0x247   : > { %2176 = vmatmul.bf16.gmra.mxu3 %v2078_v53  ;;  %v1921_v37 = vadd.f32 %v1848_v10, %v10513_v54 }
 0x249   : > { %v10995_v50 = vadd.f32 %v1921_v37, %v1189_v20  ;;  %v9808_v20 = vld [vmem:[%s14431_s8 + $0xb0] sm:$0xff] }
 0x24a   : > { %v1625_v7 = vpop.f32.mrf.mxu1  ;;  %2770 = vmatpush.bf16.msra.mxu1 %v9808_v20 }
 0x24b   : > { %v1626_v29 = vadd.f32 %v10705_v13, %v1625_v7  ;;  %v2049_v32 = vmax.f32 %v10995_v50, 0.0 }
 0x24c   : > { %v1849_v28 = vpop.f32.mrf.mxu2 }
 0x24d   : > { %v1735_v45 = vmax.f32 %v1626_v29, 0.0  ;;  %v1850_v53 = vadd.f32 %v10912_v57, %v1849_v28  ;;  %v11002_v28 = vpop.f32.mrf.mxu0  ;;  %8730 = vmatmul.msk.bf16.gmra.mxu0 %vm693_vm0, %v10396_v22  ;;  %v1194_v22 = vadd.f32 %v10790_v46, %v10922_v16 }
 0x24f   : > { %v1922_v54 = vadd.f32 %v1850_v53, %v10511_v6  ;;  %v1755_v60 = vpack.c.bf16 %v1735_v45, %v1734_v41  ;;  %v11007_v6 = vpop.f32.mrf.mxu3 }
 0x251   : > { %v10998_v10 = vadd.f32 %v1922_v54, %v1191_v19  ;;  %1891 = vmatmul.bf16.gmra.mxu2 %v1755_v60 }
 0x252   : > { %v1628_v35 = vpop.f32.mrf.mxu1 }
 0x253   : > { %v2050_v9 = vmax.f32 %v10998_v10, 0.0  ;;  %v1629_v37 = vadd.f32 %v10705_v13, %v1628_v35  ;;  %v1196_v35 = vadd.f32 %v10807_v30, %v10922_v16 }
 0x254   : > { %v1852_v7 = vpop.f32.mrf.mxu2 }
 0x255   : > { %v2079_v29 = vpack.c.bf16 %v2050_v9, %v2049_v32  ;;  %v1853_v26 = vadd.f32 %v10912_v57, %v1852_v7  ;;  %v1736_v54 = vmax.f32 %v1629_v37, 0.0  ;;  %v11018_v9 = vpop.f32.mrf.mxu0 }
 0x256   : > { %14489 = vst [vmem:[#allocation6_spill] sm:$0xff] %v11018_v9 }
 0x257   : > { %2181 = vmatmul.bf16.gmra.mxu3 %v2079_v29  ;;  %v1923_v45 = vadd.f32 %v1853_v26, %v10546_v3  ;;  %v11027_v20 = vpop.f32.mrf.mxu3 }
 0x259   : > { %v11022_v7 = vadd.f32 %v1923_v45, %v1194_v22  ;;  %v9795_v45 = vld [vmem:[%s14433_s10 + $0x48] sm:$0xff] }
 0x25a   : > { %v1630_v41 = vpop.f32.mrf.mxu1  ;;  %2440 = vmatpush.bf16.msra.mxu0 %v9795_v45 }
 0x25b   : > { %v1631_v53 = vadd.f32 %v10705_v13, %v1630_v41  ;;  %v2051_v37 = vmax.f32 %v11022_v7, 0.0 }
 0x25c   : > { %v1854_v19 = vpop.f32.mrf.mxu2 }
 0x25d   : > { %v1737_v60 = vmax.f32 %v1631_v53, 0.0  ;;  %v1855_v32 = vadd.f32 %v10912_v57, %v1854_v19  ;;  %v11031_v9 = vpop.f32.mrf.mxu0 }
 0x25e   : > { %14491 = vst [vmem:[#allocation20_spill] sm:$0xff] %v11031_v9 }
 0x25f   : > { %v1924_v3 = vadd.f32 %v1855_v32, %v10544_v2  ;;  %v1756_v29 = vpack.c.bf16 %v1737_v60, %v1736_v54  ;;  %v11040_v32 = vpop.f32.mrf.mxu3 }
 0x261   : > { %v11025_v26 = vadd.f32 %v1924_v3, %v1196_v35  ;;  %1896 = vmatmul.bf16.gmra.mxu2 %v1756_v29  ;;  %v1199_v3 = vadd.f32 %v10819_v21, %v10922_v16 }
 0x262   : > { %v1633_v46 = vpop.f32.mrf.mxu1 }
 0x263   : > { %14490 = vst [vmem:[#allocation19_spill] sm:$0xff] %v11025_v26  ;;  %v2052_v41 = vmax.f32 %v11025_v26, 0.0  ;;  %v1634_v2 = vadd.f32 %v10705_v13, %v1633_v46 }
 0x264   : > { %v1857_v53 = vpop.f32.mrf.mxu2 }
 0x265   : > { %v2080_v19 = vpack.c.bf16 %v2052_v41, %v2051_v37  ;;  %v1858_v30 = vadd.f32 %v10912_v57, %v1857_v53  ;;  %v1738_v29 = vmax.f32 %v1634_v2, 0.0  ;;  %v11045_v41 = vpop.f32.mrf.mxu0  ;;  %v1201_v53 = vadd.f32 %v10832_v5, %v10922_v16 }
 0x266   : > { %14492 = vst [vmem:[#allocation21_spill] sm:$0xff] %v11045_v41 }
 0x267   : > { %2186 = vmatmul.bf16.gmra.mxu3 %v2080_v19  ;;  %v1925_v54 = vadd.f32 %v1858_v30, %v10577_v4  ;;  %v14493_v4 = vld [vmem:[#allocation7_spill] sm:$0xff]  ;;  %v11056_v26 = vpop.f32.mrf.mxu3 }
 0x269   : > { %v11049_v19 = vadd.f32 %v1925_v54, %v1199_v3  ;;  %v9807_v3 = vld [vmem:[%s14431_s8 + $0xa8] sm:$0xff] }
 0x26a   : > { %v1635_v22 = vpop.f32.mrf.mxu1  ;;  %2771 = vmatpush.bf16.msra.mxu1 %v9807_v3 }
 0x26b   : > { %v1636_v60 = vadd.f32 %v10705_v13, %v1635_v22  ;;  %v2053_v21 = vmax.f32 %v11049_v19, 0.0 }
 0x26c   : > { %v1859_v35 = vpop.f32.mrf.mxu2 }
 0x26d   : > { %v1739_v37 = vmax.f32 %v1636_v60, 0.0  ;;  %v1860_v46 = vadd.f32 %v10912_v57, %v1859_v35  ;;  %v11058_v41 = vpop.f32.mrf.mxu0 }
 0x26f   : > { %v1926_v30 = vadd.f32 %v1860_v46, %v14493_v4  ;;  %v1757_v22 = vpack.c.bf16 %v1739_v37, %v1738_v29  ;;  %v1204_v4 = vadd.f32 %v10844_v48, %v10922_v16 }
 0x271   : > { %v11052_v9 = vadd.f32 %v1926_v30, %v1201_v53  ;;  %1901 = vmatmul.bf16.gmra.mxu2 %v1757_v22 }
 0x272   : > { %v1638_v45 = vpop.f32.mrf.mxu1 }
 0x273   : > { %v2054_v2 = vmax.f32 %v11052_v9, 0.0  ;;  %v1639_v54 = vadd.f32 %v10705_v13, %v1638_v45  ;;  %v1206_v45 = vadd.f32 %v10857_v49, %v10922_v16 }
 0x274   : > { %v1862_v60 = vpop.f32.mrf.mxu2 }
 0x275   : > { %v2081_v35 = vpack.c.bf16 %v2054_v2, %v2053_v21  ;;  %v1863_v5 = vadd.f32 %v10912_v57, %v1862_v60  ;;  %v1740_v30 = vmax.f32 %v1639_v54, 0.0 }
 0x277   : > { %2191 = vmatmul.bf16.gmra.mxu3 %v2081_v35  ;;  %v1927_v37 = vadd.f32 %v1863_v5, %v10605_v55  ;;  %v11075_v55 = vpop.f32.mrf.mxu3  ;;  %v11077_v5 = vpop.f32.mrf.mxu0 }
 0x278   : > { %14494 = vst [vmem:[#allocation7_spill] sm:$0xff] %v11077_v5 }
 0x279   : > { %v11072_v2 = vadd.f32 %v1927_v37, %v1204_v4  ;;  %v9794_v4 = vld [vmem:[%s14433_s10 + $0x40] sm:$0xff] }
 0x27a   : > { %v1640_v29 = vpop.f32.mrf.mxu1  ;;  %2441 = vmatpush.bf16.msra.mxu0 %v9794_v4 }
 0x27b   : > { %v1641_v46 = vadd.f32 %v10705_v13, %v1640_v29  ;;  %v2055_v54 = vmax.f32 %v11072_v2, 0.0 }
 0x27c   : > { %v1864_v53 = vpop.f32.mrf.mxu2 }
 0x27d   : > { %v1741_v22 = vmax.f32 %v1641_v46, 0.0  ;;  %v1865_v21 = vadd.f32 %v10912_v57, %v1864_v53 }
 0x27f   : > { %v1928_v60 = vadd.f32 %v1865_v21, %v10603_v58  ;;  %v1758_v35 = vpack.c.bf16 %v1741_v22, %v1740_v30  ;;  %v11085_v37 = vpop.f32.mrf.mxu3  ;;  %v11090_v22 = vpop.f32.mrf.mxu0 }
 0x280   : > { %14495 = vst [vmem:[#allocation22_spill] sm:$0xff] %v11090_v22 }
 0x281   : > { %v11079_v3 = vadd.f32 %v1928_v60, %v1206_v45  ;;  %1906 = vmatmul.bf16.gmra.mxu2 %v1758_v35  ;;  %v1209_v35 = vadd.f32 %v10869_v44, %v10922_v16 }
 0x282   : > { %v1643_v48 = vpop.f32.mrf.mxu1 }
 0x283   : > { %v2056_v29 = vmax.f32 %v11079_v3, 0.0  ;;  %v1644_v58 = vadd.f32 %v10705_v13, %v1643_v48 }
 0x284   : > { %v1867_v46 = vpop.f32.mrf.mxu2 }
 0x285   : > { %v2082_v53 = vpack.c.bf16 %v2056_v29, %v2055_v54  ;;  %v1868_v49 = vadd.f32 %v10912_v57, %v1867_v46  ;;  %v1742_v54 = vmax.f32 %v1644_v58, 0.0  ;;  %v1211_v46 = vadd.f32 %v10888_v1, %v10922_v16 }
 0x287   : > { %2196 = vmatmul.bf16.gmra.mxu3 %v2082_v53  ;;  %v1929_v21 = vadd.f32 %v1868_v49, %v10635_v38  ;;  %v11108_v4 = vpop.f32.mrf.mxu0 }
 0x289   : > { %v11099_v53 = vadd.f32 %v1929_v21, %v1209_v35 }
 0x28a   : > { %v1645_v30 = vpop.f32.mrf.mxu1 }
 0x28b   : > { %v1646_v45 = vadd.f32 %v10705_v13, %v1645_v30  ;;  %v11104_v13 = vpop.f32.mrf.mxu3  ;;  %v2057_v49 = vmax.f32 %v11099_v53, 0.0 }
 0x28c   : > { %v1869_v60 = vpop.f32.mrf.mxu2 }
 0x28d   : > { %v1743_v48 = vmax.f32 %v1646_v45, 0.0  ;;  %v1870_v29 = vadd.f32 %v10912_v57, %v1869_v60  ;;  %v1214_v45 = vadd.f32 %v10894_v33, %v10922_v16 }
 0x28f   : > { %v1930_v22 = vadd.f32 %v1870_v29, %v10633_v15  ;;  %v1759_v5 = vpack.c.bf16 %v1743_v48, %v1742_v54  ;;  %v9806_v15 = vld [vmem:[%s14431_s8 + $0xa0] sm:$0xff]  ;;  %v11120_v54 = vpop.f32.mrf.mxu0  ;;  %v1216_v48 = vadd.f32 %v10901_v24, %v10922_v16  ;;  %v14501_v24 = vld [vmem:[#allocation11_spill] sm:$0xff] }
 0x290   : > { %2772 = vmatpush.bf16.msra.mxu1 %v9806_v15 }
 0x291   : > { %v11102_v38 = vadd.f32 %v1930_v22, %v1211_v46  ;;  %1911 = vmatmul.bf16.gmra.mxu2 %v1759_v5  ;;  %v14496_v22 = vld [vmem:[#allocation9_spill] sm:$0xff]  ;;  %v14498_v46 = vld [vmem:[#allocation8_spill] sm:$0xff] }
 0x292   : > { %14497 = vst [vmem:[#allocation9_spill] sm:$0xff] %v11120_v54 }
 0x293   : > { %v2058_v44 = vmax.f32 %v11102_v38, 0.0  ;;  %v11118_v35 = vpop.f32.mrf.mxu3 }
 0x294   : > { %v1872_v58 = vpop.f32.mrf.mxu2 }
 0x295   : > { %v2083_v30 = vpack.c.bf16 %v2058_v44, %v2057_v49  ;;  %v1873_v1 = vadd.f32 %v10912_v57, %v1872_v58 }
 0x297   : > { %2201 = vmatmul.bf16.gmra.mxu3 %v2083_v30  ;;  %v1931_v21 = vadd.f32 %v1873_v1, %v14496_v22 }
 0x299   : > { %v11124_v29 = vadd.f32 %v1931_v21, %v1214_v45 }
 0x29b   : > { %v2059_v58 = vmax.f32 %v11124_v29, 0.0  ;;  %v11132_v22 = vpop.f32.mrf.mxu3 }
 0x29c   : > { %v1874_v5 = vpop.f32.mrf.mxu2 }
 0x29d   : > { %v1875_v60 = vadd.f32 %v10912_v57, %v1874_v5  ;;  %v11134_v5 = vpop.f32.mrf.mxu0 }
 0x29e   : > { %14500 = vst [vmem:[#allocation23_spill] sm:$0xff] %v11134_v5 }
 0x29f   : > { %v1932_v49 = vadd.f32 %v1875_v60, %v14498_v46  ;;  %v1219_v60 = vadd.f32 %v10905_v31, %v10922_v16  ;;  %v1221_v46 = vadd.f32 %v10914_v40, %v10922_v16  ;;  %v9805_v40 = vld [vmem:[%s14431_s8 + $0x98] sm:$0xff] }
 0x2a0   : > { %2773 = vmatpush.bf16.msra.mxu1 %v9805_v40 }
 0x2a1   : > { %v11127_v44 = vadd.f32 %v1932_v49, %v1216_v48 }
 0x2a3   : > { %14499 = vst [vmem:[#allocation8_spill] sm:$0xff] %v11127_v44  ;;  %v2060_v30 = vmax.f32 %v11127_v44, 0.0 }
 0x2a4   : > { %v1877_v33 = vpop.f32.mrf.mxu2 }
 0x2a5   : > { %v2084_v1 = vpack.c.bf16 %v2060_v30, %v2059_v58  ;;  %v1878_v15 = vadd.f32 %v10912_v57, %v1877_v33  ;;  %v14503_v58 = vld [vmem:[#allocation10_spill] sm:$0xff]  ;;  %v11149_v5 = vpop.f32.mrf.mxu0 }
 0x2a6   : > { %14505 = vst [vmem:[#allocation24_spill] sm:$0xff] %v11149_v5 }
 0x2a7   : > { %2206 = vmatmul.bf16.gmra.mxu3 %v2084_v1  ;;  %v1933_v21 = vadd.f32 %v1878_v15, %v14501_v24  ;;  %v11147_v1 = vpop.f32.mrf.mxu3 }
 0x2a9   : > { %v11142_v49 = vadd.f32 %v1933_v21, %v1219_v60 }
 0x2ab   : > { %14502 = vst [vmem:[#allocation11_spill] sm:$0xff] %v11142_v49  ;;  %v2061_v15 = vmax.f32 %v11142_v49, 0.0 }
 0x2ac   : > { %v1879_v45 = vpop.f32.mrf.mxu2 }
 0x2ad   : > { %v1880_v48 = vadd.f32 %v10912_v57, %v1879_v45 }
 0x2af   : > { %v1934_v30 = vadd.f32 %v1880_v48, %v14503_v58  ;;  %v1224_v58 = vadd.f32 %v10940_v12, %v10922_v16 }
 0x2b1   : > { %v11145_v33 = vadd.f32 %v1934_v30, %v1221_v46  ;;  %v11158_v46 = vpop.f32.mrf.mxu0  ;;  %v11165_v30 = vld [vmem:[%s14432_s9 + $0x1] ss:$0 sm:$0xff] }
 0x2b2   : > { %14506 = vst [vmem:[#allocation25_spill] sm:$0xff] %v11158_v46 }
 0x2b3   : > { %14504 = vst [vmem:[#allocation10_spill] sm:$0xff] %v11145_v33  ;;  %v2062_v24 = vmax.f32 %v11145_v33, 0.0 }
 0x2b4   : > { %v1882_v31 = vpop.f32.mrf.mxu2 }
 0x2b5   : > { %v2085_v44 = vpack.c.bf16 %v2062_v24, %v2061_v15  ;;  %v1883_v45 = vadd.f32 %v10912_v57, %v1882_v31  ;;  %v1226_v15 = vadd.f32 %v10952_v61, %v10922_v16 }
 0x2b7   : > { %2211 = vmatmul.bf16.gmra.mxu3 %v2085_v44  ;;  %v1935_v60 = vadd.f32 %v1883_v45, %v10724_v34 }
 0x2b9   : > { %v11170_v24 = vadd.f32 %v1935_v60, %v1224_v58  ;;  %v11179_v61 = vpop.f32.mrf.mxu0 }
 0x2ba   : > { %v2172_v21 = vpop.f32.mrf.mxu3 }
 0x2bb   : > { %v2173_v31 = vadd.f32 %v11165_v30, %v2172_v21  ;;  %v2063_v46 = vmax.f32 %v11170_v24, 0.0  ;;  %v9817_v21 = vld [vmem:[%s14433_s10 + $0xb8] sm:$0xff] }
 0x2bc   : > { %v1884_v48 = vpop.f32.mrf.mxu2  ;;  %3040 = vmatpush.bf16.msra.mxu2 %v9817_v21 }
 0x2bd   : > { %v1885_v44 = vadd.f32 %v10912_v57, %v1884_v48  ;;  %v2316_v48 = vmax.f32 %v2173_v31, 0.0 }
 0x2bf   : > { %v1936_v34 = vadd.f32 %v1885_v44, %v10719_v51 }
 0x2c1   : > { %v11174_v45 = vadd.f32 %v1936_v34, %v1226_v15  ;;  %v1229_v34 = vadd.f32 %v10973_v27, %v10922_v16  ;;  %v11194_v31 = vpop.f32.mrf.mxu0 }
 0x2c2   : > { %v2174_v40 = vpop.f32.mrf.mxu3 }
 0x2c3   : > { %v2175_v12 = vadd.f32 %v11165_v30, %v2174_v40  ;;  %v2064_v33 = vmax.f32 %v11174_v45, 0.0 }
 0x2c4   : > { %v1887_v5 = vpop.f32.mrf.mxu2 }
 0x2c5   : > { %v2317_v49 = vmax.f32 %v2175_v12, 0.0  ;;  %v2086_v54 = vpack.c.bf16 %v2064_v33, %v2063_v46  ;;  %v1888_v51 = vadd.f32 %v10912_v57, %v1887_v5 }
 0x2c7   : > { %v2348_v60 = vpack.c.bf16 %v2317_v49, %v2316_v48  ;;  %2216 = vmatmul.bf16.gmra.mxu3 %v2086_v54  ;;  %v1937_v44 = vadd.f32 %v1888_v51, %v10753_v14  ;;  %v1231_v49 = vadd.f32 %v10989_v18, %v10922_v16  ;;  %v14507_v54 = vld [vmem:[#allocation12_spill] sm:$0xff] }
 0x2c9   : > { %2442 = vmatmul.bf16.vlgmr.msra.gmra.mxu0 %v2348_v60  ;;  %v11191_v5 = vadd.f32 %v1937_v44, %v1229_v34 }
 0x2ca   : > { %v2177_v58 = vpop.f32.mrf.mxu3 }
 0x2cb   : > { %v2178_v40 = vadd.f32 %v11165_v30, %v2177_v58  ;;  %v2065_v27 = vmax.f32 %v11191_v5, 0.0  ;;  %v9804_v58 = vld [vmem:[%s14431_s8 + $0x90] sm:$0xff] }
 0x2cc   : > { %v1889_v15 = vpop.f32.mrf.mxu2  ;;  %2774 = vmatpush.bf16.msra.mxu1 %v9804_v58 }
 0x2cd   : > { %v1890_v33 = vadd.f32 %v10912_v57, %v1889_v15  ;;  %v2318_v21 = vmax.f32 %v2178_v40, 0.0  ;;  %v1234_v40 = vadd.f32 %v11007_v6, %v10922_v16 }
 0x2cf   : > { %v1938_v46 = vadd.f32 %v1890_v33, %v14507_v54 }
 0x2d1   : > { %v11197_v12 = vadd.f32 %v1938_v46, %v1231_v49  ;;  %v11206_v49 = vpop.f32.mrf.mxu0 }
 0x2d2   : > { %v2179_v14 = vpop.f32.mrf.mxu3 }
 0x2d3   : > { %v2180_v48 = vadd.f32 %v11165_v30, %v2179_v14  ;;  %v2066_v60 = vmax.f32 %v11197_v12, 0.0 }
 0x2d4   : > { %v1892_v51 = vpop.f32.mrf.mxu2 }
 0x2d5   : > { %v2319_v18 = vmax.f32 %v2180_v48, 0.0  ;;  %v2087_v44 = vpack.c.bf16 %v2066_v60, %v2065_v27  ;;  %v1893_v15 = vadd.f32 %v10912_v57, %v1892_v51  ;;  %v1236_v48 = vadd.f32 %v11027_v20, %v10922_v16 }
 0x2d7   : > { %2221 = vmatmul.bf16.gmra.mxu3 %v2087_v44  ;;  %v2349_v34 = vpack.c.bf16 %v2319_v18, %v2318_v21  ;;  %v1939_v54 = vadd.f32 %v1893_v15, %v10784_v52 }
 0x2d9   : > { %2447 = vmatmul.bf16.gmra.mxu0 %v2349_v34  ;;  %v11214_v27 = vadd.f32 %v1939_v54, %v1234_v40  ;;  %v11223_v34 = vpop.f32.mrf.mxu0 }
 0x2da   : > { %v2182_v33 = vpop.f32.mrf.mxu3 }
 0x2db   : > { %v2183_v51 = vadd.f32 %v11165_v30, %v2182_v33  ;;  %v2067_v44 = vmax.f32 %v11214_v27, 0.0  ;;  %v9816_v33 = vld [vmem:[%s14433_s10 + $0xb0] sm:$0xff] }
 0x2dc   : > { %v1894_v46 = vpop.f32.mrf.mxu2  ;;  %3041 = vmatpush.bf16.msra.mxu2 %v9816_v33 }
 0x2dd   : > { %v1895_v14 = vadd.f32 %v10912_v57, %v1894_v46  ;;  %v2320_v58 = vmax.f32 %v2183_v51, 0.0 }
 0x2df   : > { %v1940_v60 = vadd.f32 %v1895_v14, %v10781_v8 }
 0x2e1   : > { %v11218_v21 = vadd.f32 %v1940_v60, %v1236_v48  ;;  %v1239_v60 = vadd.f32 %v11040_v32, %v10922_v16 }
 0x2e2   : > { %v2184_v18 = vpop.f32.mrf.mxu3 }
 0x2e3   : > { %v2185_v52 = vadd.f32 %v11165_v30, %v2184_v18  ;;  %v2068_v6 = vmax.f32 %v11218_v21, 0.0  ;;  %v11233_v18 = vpop.f32.mrf.mxu0 }
 0x2e4   : > { %v1897_v15 = vpop.f32.mrf.mxu2 }
 0x2e5   : > { %v2321_v20 = vmax.f32 %v2185_v52, 0.0  ;;  %v2088_v54 = vpack.c.bf16 %v2068_v6, %v2067_v44  ;;  %v1898_v46 = vadd.f32 %v10912_v57, %v1897_v15  ;;  %v1241_v52 = vadd.f32 %v11056_v26, %v10922_v16 }
 0x2e7   : > { %2226 = vmatmul.bf16.gmra.mxu3 %v2088_v54  ;;  %v2350_v8 = vpack.c.bf16 %v2321_v20, %v2320_v58  ;;  %v1941_v14 = vadd.f32 %v1898_v46, %v10813_v17 }
 0x2e9   : > { %2452 = vmatmul.bf16.gmra.mxu0 %v2350_v8  ;;  %v11237_v44 = vadd.f32 %v1941_v14, %v1239_v60 }
 0x2ea   : > { %v2187_v40 = vpop.f32.mrf.mxu3 }
 0x2eb   : > { %v2188_v15 = vadd.f32 %v11165_v30, %v2187_v40  ;;  %v2069_v32 = vmax.f32 %v11237_v44, 0.0  ;;  %v9803_v40 = vld [vmem:[%s14431_s8 + $0x88] sm:$0xff] }
 0x2ec   : > { %v1899_v48 = vpop.f32.mrf.mxu2  ;;  %2775 = vmatpush.bf16.msra.mxu1 %v9803_v40 }
 0x2ed   : > { %v1900_v51 = vadd.f32 %v10912_v57, %v1899_v48  ;;  %v2322_v8 = vmax.f32 %v2188_v15, 0.0 }
 0x2ef   : > { %v1942_v6 = vadd.f32 %v1900_v51, %v10810_v62  ;;  %v11247_v62 = vpop.f32.mrf.mxu0 }
 0x2f1   : > { %v11241_v58 = vadd.f32 %v1942_v6, %v1241_v52  ;;  %v1244_v6 = vadd.f32 %v11075_v55, %v10922_v16 }
 0x2f2   : > { %v2189_v17 = vpop.f32.mrf.mxu3 }
 0x2f3   : > { %v2190_v20 = vadd.f32 %v11165_v30, %v2189_v17  ;;  %v2070_v54 = vmax.f32 %v11241_v58, 0.0  ;;  %v1246_v17 = vadd.f32 %v11085_v37, %v10922_v16 }
 0x2f4   : > { %v1902_v46 = vpop.f32.mrf.mxu2 }
 0x2f5   : > { %v2323_v33 = vmax.f32 %v2190_v20, 0.0  ;;  %v2089_v48 = vpack.c.bf16 %v2070_v54, %v2069_v32  ;;  %v1903_v26 = vadd.f32 %v10912_v57, %v1902_v46 }
 0x2f7   : > { %2231 = vmatmul.bf16.gmra.mxu3 %v2089_v48  ;;  %v2351_v14 = vpack.c.bf16 %v2323_v33, %v2322_v8  ;;  %v1943_v51 = vadd.f32 %v1903_v26, %v10838_v43  ;;  %v11264_v43 = vpop.f32.mrf.mxu0 }
 0x2f9   : > { %2457 = vmatmul.bf16.gmra.mxu0 %v2351_v14  ;;  %v11258_v20 = vadd.f32 %v1943_v51, %v1244_v6 }
 0x2fa   : > { %v2192_v60 = vpop.f32.mrf.mxu3 }
 0x2fb   : > { %v2193_v54 = vadd.f32 %v11165_v30, %v2192_v60  ;;  %v2071_v55 = vmax.f32 %v11258_v20, 0.0 }
 0x2fc   : > { %v1904_v52 = vpop.f32.mrf.mxu2 }
 0x2fd   : > { %v1905_v15 = vadd.f32 %v10912_v57, %v1904_v52  ;;  %v2324_v14 = vmax.f32 %v2193_v54, 0.0 }
 0x2ff   : > { %v1944_v32 = vadd.f32 %v1905_v15, %v10835_v11  ;;  %v9815_v11 = vld [vmem:[%s14433_s10 + $0xa8] sm:$0xff] }
 0x300   : > { %3042 = vmatpush.bf16.msra.mxu2 %v9815_v11 }
 0x301   : > { %v11262_v46 = vadd.f32 %v1944_v32, %v1246_v17  ;;  %v11274_v17 = vpop.f32.mrf.mxu0  ;;  %v1249_v32 = vadd.f32 %v11104_v13, %v10922_v16 }
 0x302   : > { %v2194_v8 = vpop.f32.mrf.mxu3 }
 0x303   : > { %v2195_v33 = vadd.f32 %v11165_v30, %v2194_v8  ;;  %v2072_v48 = vmax.f32 %v11262_v46, 0.0  ;;  %v1251_v8 = vadd.f32 %v11118_v35, %v10922_v16 }
 0x304   : > { %v1907_v26 = vpop.f32.mrf.mxu2 }
 0x305   : > { %v2325_v37 = vmax.f32 %v2195_v33, 0.0  ;;  %v2090_v40 = vpack.c.bf16 %v2072_v48, %v2071_v55  ;;  %v1908_v60 = vadd.f32 %v10912_v57, %v1907_v26 }
 0x307   : > { %2236 = vmatmul.bf16.gmra.mxu3 %v2090_v40  ;;  %v2352_v51 = vpack.c.bf16 %v2325_v37, %v2324_v14  ;;  %v1945_v6 = vadd.f32 %v1908_v60, %v10863_v25 }
 0x309   : > { %2462 = vmatmul.bf16.gmra.mxu0 %v2352_v51  ;;  %v11281_v33 = vadd.f32 %v1945_v6, %v1249_v32  ;;  %v11290_v35 = vpop.f32.mrf.mxu0 }
 0x30a   : > { %v2197_v52 = vpop.f32.mrf.mxu3 }
 0x30b   : > { %v2198_v48 = vadd.f32 %v11165_v30, %v2197_v52  ;;  %v2073_v37 = vmax.f32 %v11281_v33, 0.0  ;;  %v9802_v52 = vld [vmem:[%s14431_s8 + $0x80] sm:$0xff] }
 0x30c   : > { %v1909_v15 = vpop.f32.mrf.mxu2  ;;  %2776 = vmatpush.bf16.msra.mxu1 %v9802_v52 }
 0x30d   : > { %v1910_v54 = vadd.f32 %v10912_v57, %v1909_v15  ;;  %v2326_v11 = vmax.f32 %v2198_v48, 0.0  ;;  %v1256_v48 = vadd.f32 %v11147_v1, %v10922_v16 }
 0x30f   : > { %v1946_v55 = vadd.f32 %v1910_v54, %v10860_v36 }
 0x311   : > { %v11285_v26 = vadd.f32 %v1946_v55, %v1251_v8  ;;  %v1254_v8 = vadd.f32 %v11132_v22, %v10922_v16 }
 0x312   : > { %v2199_v25 = vpop.f32.mrf.mxu3 }
 0x313   : > { %v2200_v14 = vadd.f32 %v11165_v30, %v2199_v25  ;;  %v2074_v13 = vmax.f32 %v11285_v26, 0.0 }
 0x314   : > { %v1912_v40 = vpop.f32.mrf.mxu2 }
 0x315   : > { %v2327_v60 = vmax.f32 %v2200_v14, 0.0  ;;  %v2091_v51 = vpack.c.bf16 %v2074_v13, %v2073_v37  ;;  %v1913_v6 = vadd.f32 %v10912_v57, %v1912_v40  ;;  %v11305_v37 = vpop.f32.mrf.mxu0 }
 0x317   : > { %2241 = vmatmul.bf16.gmra.mxu3 %v2091_v51  ;;  %v2353_v36 = vpack.c.bf16 %v2327_v60, %v2326_v11  ;;  %v1947_v32 = vadd.f32 %v1913_v6, %v10886_v56 }
 0x319   : > { %2467 = vmatmul.bf16.gmra.mxu0 %v2353_v36  ;;  %v11302_v25 = vadd.f32 %v1947_v32, %v1254_v8 }
 0x31a   : > { %v2202_v15 = vpop.f32.mrf.mxu3 }
 0x31b   : > { %v2203_v13 = vadd.f32 %v11165_v30, %v2202_v15  ;;  %v2075_v22 = vmax.f32 %v11302_v25, 0.0 }
 0x31c   : > { %v1914_v54 = vpop.f32.mrf.mxu2 }
 0x31d   : > { %v1915_v55 = vadd.f32 %v10912_v57, %v1914_v54  ;;  %v2328_v60 = vmax.f32 %v2203_v13, 0.0  ;;  %v11316_v36 = vpop.f32.mrf.mxu0 }
 0x31f   : > { %v1948_v14 = vadd.f32 %v1915_v55, %v10883_v39  ;;  %v9814_v39 = vld [vmem:[%s14433_s10 + $0xa0] sm:$0xff] }
 0x320   : > { %3043 = vmatpush.bf16.msra.mxu2 %v9814_v39  ;;  %v9813_v39 = vld [vmem:[%s14433_s10 + $0x98] sm:$0xff] }
 0x321   : > { %v11308_v40 = vadd.f32 %v1948_v14, %v1256_v48 }
 0x322   : > { %v2204_v56 = vpop.f32.mrf.mxu3 }
 0x323   : > { %14508 = vst [vmem:[#allocation12_spill] sm:$0xff] %v11308_v40  ;;  %v2205_v11 = vadd.f32 %v11165_v30, %v2204_v56  ;;  %v2076_v57 = vmax.f32 %v11308_v40, 0.0 }
 0x324   : > { %3044 = vmatpush.bf16.msra.mxu2 %v9813_v39 }
 0x325   : > { %v2329_v51 = vmax.f32 %v2205_v11, 0.0  ;;  %v2092_v1 = vpack.c.bf16 %v2076_v57, %v2075_v22  ;;  %v11320_v8 = vpop.f32.mrf.mxu0 }
 0x327   : > { %2246 = vmatmul.bf16.gmra.mxu3 %v2092_v1  ;;  %v2354_v6 = vpack.c.bf16 %v2329_v51, %v2328_v60  ;;  %v11329_v1 = vld [vmem:[%s14434_s11 + $0x1] ss:$0 sm:$0xff] }
 0x329   : > { %2472 = vmatmul.bf16.gmra.mxu0 %v2354_v6 }
 0x32a   : > { %v2207_v52 = vpop.f32.mrf.mxu3 }
 0x32b   : > { %v2208_v15 = vadd.f32 %v11165_v30, %v2207_v52 }
 0x32d   : > { %v2330_v55 = vmax.f32 %v2208_v15, 0.0  ;;  %v11322_v56 = vpop.f32.mrf.mxu0 }
 0x32e   : > { %14509 = vst [vmem:[#allocation26_spill] sm:$0xff] %v11322_v56 }
 0x332   : > { %v2209_v32 = vpop.f32.mrf.mxu3 }
 0x333   : > { %v2210_v54 = vadd.f32 %v11165_v30, %v2209_v32 }
 0x335   : > { %v2331_v48 = vmax.f32 %v2210_v54, 0.0  ;;  %v9960_v54 = vld [vmem:[%s14430_s7] sm:$0x7] }
 0x337   : > { %v2355_v14 = vpack.c.bf16 %v2331_v48, %v2330_v55  ;;  %v11338_v55 = vperm.slane %v9960_v54, 2 }
 0x339   : > { %2477 = vmatmul.bf16.gmra.mxu0 %v2355_v14  ;;  %14510 = vst [vmem:[#allocation27_spill] sm:$0xff] %v11338_v55 }
 0x33a   : > { %v2212_v13 = vpop.f32.mrf.mxu3 }
 0x33b   : > { %v2213_v11 = vadd.f32 %v11165_v30, %v2212_v13  ;;  %v14511_v13 = vld [vmem:[#allocation13_spill] sm:$0xff] }
 0x33d   : > { %v2332_v60 = vmax.f32 %v2213_v11, 0.0  ;;  %v1268_v11 = vadd.f32 %v14511_v13, %v11338_v55 }
 0x342   : > { %v2214_v22 = vpop.f32.mrf.mxu3 }
 0x343   : > { %v2215_v57 = vadd.f32 %v11165_v30, %v2214_v22 }
 0x345   : > { %v2333_v51 = vmax.f32 %v2215_v57, 0.0  ;;  %v14512_v57 = vld [vmem:[#allocation14_spill] sm:$0xff] }
 0x346   : > { %v2443_v6 = vpop.f32.mrf.mxu0 }
 0x347   : > { %v2356_v52 = vpack.c.bf16 %v2333_v51, %v2332_v60  ;;  %v2444_v15 = vadd.f32 %v11329_v1, %v2443_v6  ;;  %v1270_v60 = vadd.f32 %v14512_v57, %v11338_v55 }
 0x349   : > { %2482 = vmatmul.bf16.gmra.mxu0 %v2356_v52  ;;  %v2523_v48 = vadd.f32 %v2444_v15, %v10937_v63 }
 0x34a   : > { %v2217_v32 = vpop.f32.mrf.mxu3 }
 0x34b   : > { %v11346_v51 = vadd.f32 %v2523_v48, %v1268_v11  ;;  %v2218_v39 = vadd.f32 %v11165_v30, %v2217_v32 }
 0x34d   : > { %v2651_v15 = vmax.f32 %v11346_v51, 0.0  ;;  %v2334_v16 = vmax.f32 %v2218_v39, 0.0 }
 0x34e   : > { %v2445_v14 = vpop.f32.mrf.mxu0 }
 0x34f   : > { %v2446_v22 = vadd.f32 %v11329_v1, %v2445_v14 }
 0x351   : > { %v2524_v6 = vadd.f32 %v2446_v22, %v10942_v23  ;;  %v9825_v23 = vld [vmem:[%s14431_s8 + $0xf8] sm:$0xff] }
 0x352   : > { %v2219_v52 = vpop.f32.mrf.mxu3  ;;  %3343 = vmatpush.bf16.msra.mxu3 %v9825_v23 }
 0x353   : > { %v11350_v54 = vadd.f32 %v2524_v6, %v1270_v60  ;;  %v2220_v63 = vadd.f32 %v11165_v30, %v2219_v52  ;;  %v14513_v60 = vld [vmem:[#allocation16_spill] sm:$0xff] }
 0x354   : > { %v1273_v39 = vadd.f32 %v14513_v60, %v11338_v55 }
 0x355   : > { %v2652_v13 = vmax.f32 %v11350_v54, 0.0  ;;  %v2335_v14 = vmax.f32 %v2220_v63, 0.0 }
 0x356   : > { %v2448_v40 = vpop.f32.mrf.mxu0 }
 0x357   : > { %v2683_v56 = vpack.c.bf16 %v2652_v13, %v2651_v15  ;;  %v2357_v57 = vpack.c.bf16 %v2335_v14, %v2334_v16  ;;  %v2449_v48 = vadd.f32 %v11329_v1, %v2448_v40  ;;  %v14514_v16 = vld [vmem:[#allocation17_spill] sm:$0xff] }
 0x358   : > { %v1275_v52 = vadd.f32 %v14514_v16, %v11338_v55 }
 0x359   : > { %2487 = vmatmul.bf16.gmra.mxu0 %v2357_v57  ;;  %2777 = vmatmul.bf16.vlgmr.msra.gmra.mxu1 %v2683_v56  ;;  %v2525_v11 = vadd.f32 %v2449_v48, %v10966_v59 }
 0x35a   : > { %v2222_v32 = vpop.f32.mrf.mxu3 }
 0x35b   : > { %v11365_v40 = vadd.f32 %v2525_v11, %v1273_v39  ;;  %v2223_v56 = vadd.f32 %v11165_v30, %v2222_v32  ;;  %v9812_v11 = vld [vmem:[%s14433_s10 + $0x90] sm:$0xff] }
 0x35c   : > { %3045 = vmatpush.bf16.msra.mxu2 %v9812_v11 }
 0x35d   : > { %v2336_v14 = vmax.f32 %v2223_v56, 0.0  ;;  %v2653_v48 = vmax.f32 %v11365_v40, 0.0 }
 0x35e   : > { %v2450_v22 = vpop.f32.mrf.mxu0 }
 0x35f   : > { %v2451_v6 = vadd.f32 %v11329_v1, %v2450_v22 }
 0x361   : > { %v2526_v63 = vadd.f32 %v2451_v6, %v10969_v47 }
 0x362   : > { %v2224_v15 = vpop.f32.mrf.mxu3 }
 0x363   : > { %v11369_v13 = vadd.f32 %v2526_v63, %v1275_v52  ;;  %v2225_v59 = vadd.f32 %v11165_v30, %v2224_v15  ;;  %v14515_v52 = vld [vmem:[#allocation18_spill] sm:$0xff]  ;;  %v1280_v15 = vadd.f32 %v10975_v0, %v11338_v55 }
 0x364   : > { %v1278_v56 = vadd.f32 %v14515_v52, %v11338_v55 }
 0x365   : > { %v2337_v57 = vmax.f32 %v2225_v59, 0.0  ;;  %v2654_v23 = vmax.f32 %v11369_v13, 0.0 }
 0x366   : > { %v2453_v22 = vpop.f32.mrf.mxu0 }
 0x367   : > { %v2358_v60 = vpack.c.bf16 %v2337_v57, %v2336_v14  ;;  %v2684_v32 = vpack.c.bf16 %v2654_v23, %v2653_v48  ;;  %v2454_v47 = vadd.f32 %v11329_v1, %v2453_v22 }
 0x369   : > { %2492 = vmatmul.bf16.gmra.mxu0 %v2358_v60  ;;  %2782 = vmatmul.bf16.gmra.mxu1 %v2684_v32  ;;  %v2527_v6 = vadd.f32 %v2454_v47, %v10995_v50 }
 0x36a   : > { %v2227_v39 = vpop.f32.mrf.mxu3 }
 0x36b   : > { %v11384_v59 = vadd.f32 %v2527_v6, %v1278_v56  ;;  %v2228_v14 = vadd.f32 %v11165_v30, %v2227_v39 }
 0x36d   : > { %v2338_v11 = vmax.f32 %v2228_v14, 0.0  ;;  %v2655_v60 = vmax.f32 %v11384_v59, 0.0  ;;  %v1285_v14 = vadd.f32 %v11002_v28, %v11338_v55  ;;  %v9811_v28 = vld [vmem:[%s14433_s10 + $0x88] sm:$0xff] }
 0x36e   : > { %v2455_v16 = vpop.f32.mrf.mxu0  ;;  %3046 = vmatpush.bf16.msra.mxu2 %v9811_v28 }
 0x36f   : > { %v2456_v63 = vadd.f32 %v11329_v1, %v2455_v16 }
 0x371   : > { %v2528_v57 = vadd.f32 %v2456_v63, %v10998_v10  ;;  %v9824_v10 = vld [vmem:[%s14431_s8 + $0xf0] sm:$0xff]  ;;  %v1283_v63 = vadd.f32 %v10991_v42, %v11338_v55 }
 0x372   : > { %v2229_v48 = vpop.f32.mrf.mxu3  ;;  %3344 = vmatpush.bf16.msra.mxu3 %v9824_v10 }
 0x373   : > { %v11388_v23 = vadd.f32 %v2528_v57, %v1280_v15  ;;  %v2230_v50 = vadd.f32 %v11165_v30, %v2229_v48 }
 0x375   : > { %v2339_v22 = vmax.f32 %v2230_v50, 0.0  ;;  %v2656_v32 = vmax.f32 %v11388_v23, 0.0  ;;  %v14516_v50 = vld [vmem:[#allocation19_spill] sm:$0xff] }
 0x376   : > { %v2458_v47 = vpop.f32.mrf.mxu0 }
 0x377   : > { %v2359_v16 = vpack.c.bf16 %v2339_v22, %v2338_v11  ;;  %v2685_v0 = vpack.c.bf16 %v2656_v32, %v2655_v60  ;;  %v2459_v6 = vadd.f32 %v11329_v1, %v2458_v47 }
 0x379   : > { %2497 = vmatmul.bf16.gmra.mxu0 %v2359_v16  ;;  %2787 = vmatmul.bf16.gmra.mxu1 %v2685_v0  ;;  %v2529_v52 = vadd.f32 %v2459_v6, %v11022_v7 }
 0x37a   : > { %v2232_v39 = vpop.f32.mrf.mxu3 }
 0x37b   : > { %v11403_v57 = vadd.f32 %v2529_v52, %v1283_v63  ;;  %v2233_v48 = vadd.f32 %v11165_v30, %v2232_v39 }
 0x37d   : > { %v2340_v32 = vmax.f32 %v2233_v48, 0.0  ;;  %v2657_v42 = vmax.f32 %v11403_v57, 0.0 }
 0x37e   : > { %v2460_v56 = vpop.f32.mrf.mxu0 }
 0x37f   : > { %v2461_v15 = vadd.f32 %v11329_v1, %v2460_v56 }
 0x381   : > { %v2530_v11 = vadd.f32 %v2461_v15, %v14516_v50  ;;  %v14517_v15 = vld [vmem:[#allocation6_spill] sm:$0xff]  ;;  %v14518_v50 = vld [vmem:[#allocation20_spill] sm:$0xff] }
 0x382   : > { %v2234_v22 = vpop.f32.mrf.mxu3 }
 0x383   : > { %v11407_v60 = vadd.f32 %v2530_v11, %v1285_v14  ;;  %v2235_v7 = vadd.f32 %v11165_v30, %v2234_v22  ;;  %v1288_v14 = vadd.f32 %v14517_v15, %v11338_v55  ;;  %v1290_v11 = vadd.f32 %v14518_v50, %v11338_v55 }
 0x385   : > { %v2341_v47 = vmax.f32 %v2235_v7, 0.0  ;;  %v2658_v16 = vmax.f32 %v11407_v60, 0.0 }
 0x386   : > { %v2463_v0 = vpop.f32.mrf.mxu0 }
 0x387   : > { %v2360_v6 = vpack.c.bf16 %v2341_v47, %v2340_v32  ;;  %v2686_v39 = vpack.c.bf16 %v2658_v16, %v2657_v42  ;;  %v2464_v10 = vadd.f32 %v11329_v1, %v2463_v0 }
 0x389   : > { %2502 = vmatmul.bf16.gmra.mxu0 %v2360_v6  ;;  %2792 = vmatmul.bf16.gmra.mxu1 %v2686_v39  ;;  %v2531_v56 = vadd.f32 %v2464_v10, %v11049_v19 }
 0x38a   : > { %v2237_v52 = vpop.f32.mrf.mxu3 }
 0x38b   : > { %v11422_v22 = vadd.f32 %v2531_v56, %v1288_v14  ;;  %v2238_v7 = vadd.f32 %v11165_v30, %v2237_v52 }
 0x38d   : > { %v2342_v16 = vmax.f32 %v2238_v7, 0.0  ;;  %v2659_v0 = vmax.f32 %v11422_v22, 0.0  ;;  %v1295_v7 = vadd.f32 %v11058_v41, %v11338_v55 }
 0x38e   : > { %v2465_v63 = vpop.f32.mrf.mxu0 }
 0x38f   : > { %v2466_v48 = vadd.f32 %v11329_v1, %v2465_v63 }
 0x391   : > { %v2532_v32 = vadd.f32 %v2466_v48, %v11052_v9  ;;  %v9823_v9 = vld [vmem:[%s14431_s8 + $0xe8] sm:$0xff]  ;;  %v14519_v48 = vld [vmem:[#allocation21_spill] sm:$0xff] }
 0x392   : > { %v2239_v47 = vpop.f32.mrf.mxu3  ;;  %3345 = vmatpush.bf16.msra.mxu3 %v9823_v9  ;;  %v1293_v50 = vadd.f32 %v14519_v48, %v11338_v55  ;;  %v14520_v48 = vld [vmem:[#allocation7_spill] sm:$0xff] }
 0x393   : > { %v11426_v42 = vadd.f32 %v2532_v32, %v1290_v11  ;;  %v2240_v19 = vadd.f32 %v11165_v30, %v2239_v47 }
 0x395   : > { %v2343_v28 = vmax.f32 %v2240_v19, 0.0  ;;  %v2660_v6 = vmax.f32 %v11426_v42, 0.0 }
 0x396   : > { %v2468_v39 = vpop.f32.mrf.mxu0 }
 0x397   : > { %v2361_v10 = vpack.c.bf16 %v2343_v28, %v2342_v16  ;;  %v2687_v63 = vpack.c.bf16 %v2660_v6, %v2659_v0  ;;  %v2469_v56 = vadd.f32 %v11329_v1, %v2468_v39  ;;  %v9810_v0 = vld [vmem:[%s14433_s10 + $0x80] sm:$0xff] }
 0x398   : > { %3047 = vmatpush.bf16.msra.mxu2 %v9810_v0 }
 0x399   : > { %2507 = vmatmul.bf16.gmra.mxu0 %v2361_v10  ;;  %2797 = vmatmul.bf16.gmra.mxu1 %v2687_v63  ;;  %v2533_v15 = vadd.f32 %v2469_v56, %v11072_v2 }
 0x39a   : > { %v2242_v52 = vpop.f32.mrf.mxu3 }
 0x39b   : > { %v11441_v32 = vadd.f32 %v2533_v15, %v1293_v50  ;;  %v2243_v47 = vadd.f32 %v11165_v30, %v2242_v52  ;;  %v1298_v50 = vadd.f32 %v14520_v48, %v11338_v55 }
 0x39d   : > { %v2344_v6 = vmax.f32 %v2243_v47, 0.0  ;;  %v2661_v10 = vmax.f32 %v11441_v32, 0.0 }
 0x39e   : > { %v2470_v14 = vpop.f32.mrf.mxu0 }
 0x39f   : > { %v2471_v11 = vadd.f32 %v11329_v1, %v2470_v14 }
 0x3a1   : > { %v2534_v19 = vadd.f32 %v2471_v11, %v11079_v3 }
 0x3a2   : > { %v2244_v16 = vpop.f32.mrf.mxu3 }
 0x3a3   : > { %v11445_v28 = vadd.f32 %v2534_v19, %v1295_v7  ;;  %v2245_v2 = vadd.f32 %v11165_v30, %v2244_v16  ;;  %v14521_v7 = vld [vmem:[#allocation22_spill] sm:$0xff] }
 0x3a4   : > { %v1300_v47 = vadd.f32 %v14521_v7, %v11338_v55 }
 0x3a5   : > { %v2345_v39 = vmax.f32 %v2245_v2, 0.0  ;;  %v2662_v41 = vmax.f32 %v11445_v28, 0.0 }
 0x3a6   : > { %v2473_v63 = vpop.f32.mrf.mxu0 }
 0x3a7   : > { %v2362_v56 = vpack.c.bf16 %v2345_v39, %v2344_v6  ;;  %v2688_v52 = vpack.c.bf16 %v2662_v41, %v2661_v10  ;;  %v2474_v3 = vadd.f32 %v11329_v1, %v2473_v63 }
 0x3a9   : > { %2512 = vmatmul.bf16.gmra.mxu0 %v2362_v56  ;;  %2802 = vmatmul.bf16.gmra.mxu1 %v2688_v52  ;;  %v2535_v15 = vadd.f32 %v2474_v3, %v11099_v53 }
 0x3aa   : > { %v2247_v9 = vpop.f32.mrf.mxu3 }
 0x3ab   : > { %v11460_v19 = vadd.f32 %v2535_v15, %v1298_v50  ;;  %v2248_v16 = vadd.f32 %v11165_v30, %v2247_v9  ;;  %v14522_v50 = vld [vmem:[#allocation9_spill] sm:$0xff] }
 0x3ad   : > { %v2346_v39 = vmax.f32 %v2248_v16, 0.0  ;;  %v2663_v41 = vmax.f32 %v11460_v19, 0.0 }
 0x3ae   : > { %v2475_v14 = vpop.f32.mrf.mxu0 }
 0x3af   : > { %v2476_v11 = vadd.f32 %v11329_v1, %v2475_v14  ;;  %v1303_v14 = vadd.f32 %v11108_v4, %v11338_v55  ;;  %v14524_v4 = vld [vmem:[#allocation11_spill] sm:$0xff] }
 0x3b1   : > { %v2536_v2 = vadd.f32 %v2476_v11, %v11102_v38  ;;  %v9822_v38 = vld [vmem:[%s14431_s8 + $0xe0] sm:$0xff]  ;;  %v1305_v11 = vadd.f32 %v14522_v50, %v11338_v55 }
 0x3b2   : > { %v2249_v0 = vpop.f32.mrf.mxu3  ;;  %3346 = vmatpush.bf16.msra.mxu3 %v9822_v38 }
 0x3b3   : > { %v11464_v6 = vadd.f32 %v2536_v2, %v1300_v47  ;;  %v2250_v53 = vadd.f32 %v11165_v30, %v2249_v0  ;;  %v14523_v47 = vld [vmem:[#allocation8_spill] sm:$0xff] }
 0x3b5   : > { %v2347_v10 = vmax.f32 %v2250_v53, 0.0  ;;  %v2664_v63 = vmax.f32 %v11464_v6, 0.0 }
 0x3b6   : > { %v2478_v56 = vpop.f32.mrf.mxu0 }
 0x3b7   : > { %v2363_v52 = vpack.c.bf16 %v2347_v10, %v2346_v39  ;;  %v2689_v3 = vpack.c.bf16 %v2664_v63, %v2663_v41  ;;  %v2479_v15 = vadd.f32 %v11329_v1, %v2478_v56  ;;  %v14525_v56 = vld [vmem:[#allocation23_spill] sm:$0xff] }
 0x3b9   : > { %2517 = vmatmul.bf16.gmra.mxu0 %v2363_v52  ;;  %2807 = vmatmul.bf16.gmra.mxu1 %v2689_v3  ;;  %v2537_v9 = vadd.f32 %v2479_v15, %v11124_v29  ;;  %v1308_v52 = vadd.f32 %v14525_v56, %v11338_v55  ;;  %v14526_v15 = vld [vmem:[#allocation24_spill] sm:$0xff]  ;;  %v14528_v56 = vld [vmem:[#allocation25_spill] sm:$0xff] }
 0x3ba   : > { %v1310_v38 = vadd.f32 %v14526_v15, %v11338_v55 }
 0x3bb   : > { %v11479_v7 = vadd.f32 %v2537_v9, %v1303_v14 }
 0x3bd   : > { %v2665_v0 = vmax.f32 %v11479_v7, 0.0 }
 0x3be   : > { %v2480_v30 = vpop.f32.mrf.mxu0 }
 0x3bf   : > { %v2481_v48 = vadd.f32 %v11329_v1, %v2480_v30  ;;  %v14527_v30 = vld [vmem:[#allocation10_spill] sm:$0xff] }
 0x3c1   : > { %v2538_v16 = vadd.f32 %v2481_v48, %v14523_v47 }
 0x3c3   : > { %v11482_v2 = vadd.f32 %v2538_v16, %v1305_v11 }
 0x3c5   : > { %v2666_v29 = vmax.f32 %v11482_v2, 0.0 }
 0x3c6   : > { %v2483_v53 = vpop.f32.mrf.mxu0 }
 0x3c7   : > { %v2690_v39 = vpack.c.bf16 %v2666_v29, %v2665_v0  ;;  %v2484_v10 = vadd.f32 %v11329_v1, %v2483_v53  ;;  %v11504_v53 = vld [vmem:[%s14432_s9 + $0x2] ss:$0 sm:$0xff] }
 0x3c9   : > { %2812 = vmatmul.bf16.gmra.mxu1 %v2690_v39  ;;  %v2539_v41 = vadd.f32 %v2484_v10, %v14524_v4  ;;  %v9821_v39 = vld [vmem:[%s14431_s8 + $0xd8] sm:$0xff] }
 0x3ca   : > { %3347 = vmatpush.bf16.msra.mxu3 %v9821_v39 }
 0x3cb   : > { %v11493_v9 = vadd.f32 %v2539_v41, %v1308_v52  ;;  %v1313_v52 = vadd.f32 %v14528_v56, %v11338_v55 }
 0x3cd   : > { %v2667_v50 = vmax.f32 %v11493_v9, 0.0 }
 0x3ce   : > { %v2485_v63 = vpop.f32.mrf.mxu0 }
 0x3cf   : > { %v2486_v3 = vadd.f32 %v11329_v1, %v2485_v63 }
 0x3d1   : > { %v2540_v14 = vadd.f32 %v2486_v3, %v14527_v30 }
 0x3d3   : > { %v11496_v48 = vadd.f32 %v2540_v14, %v1310_v38  ;;  %v1315_v38 = vadd.f32 %v11179_v61, %v11338_v55  ;;  %v9833_v61 = vld [vmem:[%s14433_s10 + $0xf8] sm:$0xff] }
 0x3d4   : > { %3614 = vmatpush.bf16.msrb.mxu0 %v9833_v61 }
 0x3d5   : > { %v2668_v11 = vmax.f32 %v11496_v48, 0.0 }
 0x3d6   : > { %v2488_v47 = vpop.f32.mrf.mxu0  ;;  %v2778_v16 = vpop.f32.mrf.mxu1 }
 0x3d7   : > { %v2691_v0 = vpack.c.bf16 %v2668_v11, %v2667_v50  ;;  %v2489_v29 = vadd.f32 %v11329_v1, %v2488_v47  ;;  %v2779_v4 = vadd.f32 %v11504_v53, %v2778_v16 }
 0x3d9   : > { %2817 = vmatmul.bf16.gmra.mxu1 %v2691_v0  ;;  %v2541_v10 = vadd.f32 %v2489_v29, %v11170_v24  ;;  %v2922_v14 = vmax.f32 %v2779_v4, 0.0 }
 0x3db   : > { %v11517_v30 = vadd.f32 %v2541_v10, %v1313_v52  ;;  %v1318_v52 = vadd.f32 %v11194_v31, %v11338_v55 }
 0x3dd   : > { %v2669_v16 = vmax.f32 %v11517_v30, 0.0 }
 0x3de   : > { %v2490_v41 = vpop.f32.mrf.mxu0  ;;  %v2780_v63 = vpop.f32.mrf.mxu1 }
 0x3df   : > { %v2491_v3 = vadd.f32 %v11329_v1, %v2490_v41  ;;  %v2781_v15 = vadd.f32 %v11504_v53, %v2780_v63 }
 0x3e1   : > { %v2542_v24 = vadd.f32 %v2491_v3, %v11174_v45  ;;  %v2923_v50 = vmax.f32 %v2781_v15, 0.0 }
 0x3e3   : > { %v11520_v11 = vadd.f32 %v2542_v24, %v1315_v38  ;;  %v2954_v47 = vpack.c.bf16 %v2923_v50, %v2922_v14  ;;  %v1320_v38 = vadd.f32 %v11206_v49, %v11338_v55  ;;  %v9820_v49 = vld [vmem:[%s14431_s8 + $0xd0] sm:$0xff] }
 0x3e4   : > { %3348 = vmatpush.bf16.msra.mxu3 %v9820_v49 }
 0x3e5   : > { %3048 = vmatmul.bf16.vlgmr.msra.gmra.mxu2 %v2954_v47  ;;  %v2670_v0 = vmax.f32 %v11520_v11, 0.0 }
 0x3e6   : > { %v2493_v29 = vpop.f32.mrf.mxu0  ;;  %v2783_v39 = vpop.f32.mrf.mxu1 }
 0x3e7   : > { %v2692_v41 = vpack.c.bf16 %v2670_v0, %v2669_v16  ;;  %v2494_v63 = vadd.f32 %v11329_v1, %v2493_v29  ;;  %v2784_v10 = vadd.f32 %v11504_v53, %v2783_v39 }
 0x3e9   : > { %2822 = vmatmul.bf16.gmra.mxu1 %v2692_v41  ;;  %v2543_v45 = vadd.f32 %v2494_v63, %v11191_v5  ;;  %v2924_v24 = vmax.f32 %v2784_v10, 0.0 }
 0x3eb   : > { %v11536_v14 = vadd.f32 %v2543_v45, %v1318_v52 }
 0x3ed   : > { %v2671_v0 = vmax.f32 %v11536_v14, 0.0 }
 0x3ee   : > { %v2495_v4 = vpop.f32.mrf.mxu0  ;;  %v2785_v56 = vpop.f32.mrf.mxu1 }
 0x3ef   : > { %v2496_v3 = vadd.f32 %v11329_v1, %v2495_v4  ;;  %v2786_v15 = vadd.f32 %v11504_v53, %v2785_v56  ;;  %v1323_v4 = vadd.f32 %v11223_v34, %v11338_v55 }
 0x3f1   : > { %v2544_v5 = vadd.f32 %v2496_v3, %v11197_v12  ;;  %v2925_v50 = vmax.f32 %v2786_v15, 0.0  ;;  %v1325_v3 = vadd.f32 %v11233_v18, %v11338_v55  ;;  %v9832_v18 = vld [vmem:[%s14433_s10 + $0xf0] sm:$0xff] }
 0x3f2   : > { %3615 = vmatpush.bf16.msrb.mxu0 %v9832_v18 }
 0x3f3   : > { %v11539_v47 = vadd.f32 %v2544_v5, %v1320_v38  ;;  %v2955_v16 = vpack.c.bf16 %v2925_v50, %v2924_v24 }
 0x3f5   : > { %3053 = vmatmul.bf16.gmra.mxu2 %v2955_v16  ;;  %v2672_v31 = vmax.f32 %v11539_v47, 0.0 }
 0x3f6   : > { %v2498_v29 = vpop.f32.mrf.mxu0  ;;  %v2788_v39 = vpop.f32.mrf.mxu1 }
 0x3f7   : > { %v2693_v41 = vpack.c.bf16 %v2672_v31, %v2671_v0  ;;  %v2499_v63 = vadd.f32 %v11329_v1, %v2498_v29  ;;  %v2789_v61 = vadd.f32 %v11504_v53, %v2788_v39 }
 0x3f9   : > { %2827 = vmatmul.bf16.gmra.mxu1 %v2693_v41  ;;  %v2545_v12 = vadd.f32 %v2499_v63, %v11214_v27  ;;  %v2926_v38 = vmax.f32 %v2789_v61, 0.0 }
 0x3fb   : > { %v11555_v15 = vadd.f32 %v2545_v12, %v1323_v4  ;;  %v1328_v12 = vadd.f32 %v11247_v62, %v11338_v55 }
 0x3fd   : > { %v2673_v16 = vmax.f32 %v11555_v15, 0.0 }
 0x3fe   : > { %v2500_v45 = vpop.f32.mrf.mxu0  ;;  %v2790_v10 = vpop.f32.mrf.mxu1 }
 0x3ff   : > { %v2501_v56 = vadd.f32 %v11329_v1, %v2500_v45  ;;  %v2791_v52 = vadd.f32 %v11504_v53, %v2790_v10  ;;  %v1330_v10 = vadd.f32 %v11264_v43, %v11338_v55  ;;  %v9819_v43 = vld [vmem:[%s14431_s8 + $0xc8] sm:$0xff] }
 0x400   : > { %3349 = vmatpush.bf16.msra.mxu3 %v9819_v43  ;;  %v1340_v43 = vadd.f32 %v11316_v36, %v11338_v55  ;;  %v9818_v36 = vld [vmem:[%s14431_s8 + $0xc0] sm:$0xff] }
 0x401   : > { %v2546_v27 = vadd.f32 %v2501_v56, %v11218_v21  ;;  %v2927_v24 = vmax.f32 %v2791_v52, 0.0 }
 0x403   : > { %v11558_v5 = vadd.f32 %v2546_v27, %v1325_v3  ;;  %v2956_v50 = vpack.c.bf16 %v2927_v24, %v2926_v38 }
 0x404   : > { %3350 = vmatpush.bf16.msra.mxu3 %v9818_v36 }
 0x405   : > { %3058 = vmatmul.bf16.gmra.mxu2 %v2956_v50  ;;  %v2674_v34 = vmax.f32 %v11558_v5, 0.0 }
 0x406   : > { %v2503_v0 = vpop.f32.mrf.mxu0  ;;  %v2793_v31 = vpop.f32.mrf.mxu1 }
 0x407   : > { %v2694_v29 = vpack.c.bf16 %v2674_v34, %v2673_v16  ;;  %v2504_v39 = vadd.f32 %v11329_v1, %v2503_v0  ;;  %v2794_v41 = vadd.f32 %v11504_v53, %v2793_v31 }
 0x409   : > { %2832 = vmatmul.bf16.gmra.mxu1 %v2694_v29  ;;  %v2547_v21 = vadd.f32 %v2504_v39, %v11237_v44  ;;  %v2928_v56 = vmax.f32 %v2794_v41, 0.0  ;;  %v1333_v39 = vadd.f32 %v11274_v17, %v11338_v55  ;;  %v1335_v41 = vadd.f32 %v11290_v35, %v11338_v55  ;;  %v9831_v35 = vld [vmem:[%s14433_s10 + $0xe8] sm:$0xff] }
 0x40a   : > { %3616 = vmatpush.bf16.msrb.mxu0 %v9831_v35 }
 0x40b   : > { %v11574_v4 = vadd.f32 %v2547_v21, %v1328_v12 }
 0x40d   : > { %v2675_v27 = vmax.f32 %v11574_v4, 0.0 }
 0x40e   : > { %v2505_v63 = vpop.f32.mrf.mxu0  ;;  %v2795_v49 = vpop.f32.mrf.mxu1 }
 0x40f   : > { %v2506_v61 = vadd.f32 %v11329_v1, %v2505_v63  ;;  %v2796_v45 = vadd.f32 %v11504_v53, %v2795_v49 }
 0x411   : > { %v2548_v44 = vadd.f32 %v2506_v61, %v11241_v58  ;;  %v2929_v52 = vmax.f32 %v2796_v45, 0.0 }
 0x413   : > { %v11577_v3 = vadd.f32 %v2548_v44, %v1330_v10  ;;  %v2957_v38 = vpack.c.bf16 %v2929_v52, %v2928_v56 }
 0x415   : > { %3063 = vmatmul.bf16.gmra.mxu2 %v2957_v38  ;;  %v2676_v62 = vmax.f32 %v11577_v3, 0.0 }
 0x416   : > { %v2508_v24 = vpop.f32.mrf.mxu0  ;;  %v2798_v50 = vpop.f32.mrf.mxu1 }
 0x417   : > { %v2695_v16 = vpack.c.bf16 %v2676_v62, %v2675_v27  ;;  %v2509_v34 = vadd.f32 %v11329_v1, %v2508_v24  ;;  %v2799_v0 = vadd.f32 %v11504_v53, %v2798_v50  ;;  %v1338_v50 = vadd.f32 %v11305_v37, %v11338_v55 }
 0x419   : > { %2837 = vmatmul.bf16.gmra.mxu1 %v2695_v16  ;;  %v2549_v58 = vadd.f32 %v2509_v34, %v11258_v20  ;;  %v2930_v49 = vmax.f32 %v2799_v0, 0.0 }
 0x41b   : > { %v11593_v63 = vadd.f32 %v2549_v58, %v1333_v39 }
 0x41d   : > { %v2677_v10 = vmax.f32 %v11593_v63, 0.0 }
 0x41e   : > { %v2510_v31 = vpop.f32.mrf.mxu0  ;;  %v2800_v29 = vpop.f32.mrf.mxu1 }
 0x41f   : > { %v2511_v18 = vadd.f32 %v11329_v1, %v2510_v31  ;;  %v2801_v21 = vadd.f32 %v11504_v53, %v2800_v29 }
 0x421   : > { %v2550_v20 = vadd.f32 %v2511_v18, %v11262_v46  ;;  %v2931_v12 = vmax.f32 %v2801_v21, 0.0 }
 0x423   : > { %v11596_v61 = vadd.f32 %v2550_v20, %v1335_v41  ;;  %v2958_v45 = vpack.c.bf16 %v2931_v12, %v2930_v49 }
 0x425   : > { %3068 = vmatmul.bf16.gmra.mxu2 %v2958_v45  ;;  %v2678_v17 = vmax.f32 %v11596_v61, 0.0 }
 0x426   : > { %v2513_v56 = vpop.f32.mrf.mxu0  ;;  %v2803_v44 = vpop.f32.mrf.mxu1 }
 0x427   : > { %v2696_v52 = vpack.c.bf16 %v2678_v17, %v2677_v10  ;;  %v2514_v38 = vadd.f32 %v11329_v1, %v2513_v56  ;;  %v2804_v27 = vadd.f32 %v11504_v53, %v2803_v44  ;;  %v1343_v17 = vadd.f32 %v11320_v8, %v11338_v55 }
 0x429   : > { %2842 = vmatmul.bf16.gmra.mxu1 %v2696_v52  ;;  %v2551_v46 = vadd.f32 %v2514_v38, %v11281_v33  ;;  %v2932_v0 = vmax.f32 %v2804_v27, 0.0  ;;  %v14529_v52 = vld [vmem:[#allocation26_spill] sm:$0xff]  ;;  %v14530_v27 = vld [vmem:[#allocation12_spill] sm:$0xff] }
 0x42a   : > { %v1345_v38 = vadd.f32 %v14529_v52, %v11338_v55  ;;  %v9829_v52 = vld [vmem:[%s14433_s10 + $0xd8] sm:$0xff] }
 0x42b   : > { %v11612_v58 = vadd.f32 %v2551_v46, %v1338_v50 }
 0x42d   : > { %v2679_v18 = vmax.f32 %v11612_v58, 0.0 }
 0x42e   : > { %v2515_v62 = vpop.f32.mrf.mxu0  ;;  %v2805_v24 = vpop.f32.mrf.mxu1 }
 0x42f   : > { %v2516_v16 = vadd.f32 %v11329_v1, %v2515_v62  ;;  %v2806_v34 = vadd.f32 %v11504_v53, %v2805_v24 }
 0x431   : > { %v2552_v31 = vadd.f32 %v2516_v16, %v11285_v26  ;;  %v2933_v33 = vmax.f32 %v2806_v34, 0.0 }
 0x433   : > { %v11615_v29 = vadd.f32 %v2552_v31, %v1340_v43  ;;  %v2959_v39 = vpack.c.bf16 %v2933_v33, %v2932_v0  ;;  %v9830_v0 = vld [vmem:[%s14433_s10 + $0xe0] sm:$0xff] }
 0x434   : > { %3617 = vmatpush.bf16.msrb.mxu0 %v9830_v0 }
 0x435   : > { %3073 = vmatmul.bf16.gmra.mxu2 %v2959_v39  ;;  %v2680_v37 = vmax.f32 %v11615_v29, 0.0 }
 0x436   : > { %v2518_v21 = vpop.f32.mrf.mxu0  ;;  %v2808_v41 = vpop.f32.mrf.mxu1 }
 0x437   : > { %v2697_v49 = vpack.c.bf16 %v2680_v37, %v2679_v18  ;;  %v2519_v20 = vadd.f32 %v11329_v1, %v2518_v21  ;;  %v2809_v12 = vadd.f32 %v11504_v53, %v2808_v41 }
 0x438   : > { %3618 = vmatpush.bf16.msrb.mxu0 %v9829_v52 }
 0x439   : > { %2847 = vmatmul.bf16.gmra.mxu1 %v2697_v49  ;;  %v2553_v26 = vadd.f32 %v2519_v20, %v11302_v25  ;;  %v2934_v46 = vmax.f32 %v2809_v12, 0.0 }
 0x43b   : > { %v11631_v35 = vadd.f32 %v2553_v26, %v1343_v17  ;;  %v11648_v17 = vld [vmem:[%s14434_s11 + $0x2] ss:$0 sm:$0xff] }
 0x43d   : > { %v2681_v16 = vmax.f32 %v11631_v35, 0.0 }
 0x43e   : > { %v2520_v45 = vpop.f32.mrf.mxu0  ;;  %v2810_v10 = vpop.f32.mrf.mxu1 }
 0x43f   : > { %v2521_v56 = vadd.f32 %v11329_v1, %v2520_v45  ;;  %v2811_v44 = vadd.f32 %v11504_v53, %v2810_v10 }
 0x441   : > { %v2554_v62 = vadd.f32 %v2521_v56, %v14530_v27  ;;  %v2935_v25 = vmax.f32 %v2811_v44, 0.0 }
 0x443   : > { %v11634_v24 = vadd.f32 %v2554_v62, %v1345_v38  ;;  %v2960_v50 = vpack.c.bf16 %v2935_v25, %v2934_v46 }
 0x445   : > { %3078 = vmatmul.bf16.gmra.mxu2 %v2960_v50  ;;  %v2682_v8 = vmax.f32 %v11634_v24, 0.0 }
 0x446   : > { %v2813_v1 = vpop.f32.mrf.mxu1 }
 0x447   : > { %v2698_v34 = vpack.c.bf16 %v2682_v8, %v2681_v16  ;;  %v2814_v43 = vadd.f32 %v11504_v53, %v2813_v1 }
 0x449   : > { %2852 = vmatmul.bf16.gmra.mxu1 %v2698_v34  ;;  %v2936_v39 = vmax.f32 %v2814_v43, 0.0 }
 0x44e   : > { %v2815_v31 = vpop.f32.mrf.mxu1 }
 0x44f   : > { %v2816_v33 = vadd.f32 %v11504_v53, %v2815_v31 }
 0x451   : > { %v2937_v18 = vmax.f32 %v2816_v33, 0.0 }
 0x453   : > { %v2961_v37 = vpack.c.bf16 %v2937_v18, %v2936_v39  ;;  %v9841_v18 = vld [vmem:[%s14431_s8 + $0x138] sm:$0xff] }
 0x454   : > { %3917 = vmatpush.bf16.msrb.mxu1 %v9841_v18 }
 0x455   : > { %3083 = vmatmul.bf16.gmra.mxu2 %v2961_v37 }
 0x456   : > { %v2818_v21 = vpop.f32.mrf.mxu1 }
 0x457   : > { %v2819_v41 = vadd.f32 %v11504_v53, %v2818_v21 }
 0x459   : > { %v2938_v36 = vmax.f32 %v2819_v41, 0.0 }
 0x45e   : > { %v2820_v49 = vpop.f32.mrf.mxu1 }
 0x45f   : > { %v2821_v20 = vadd.f32 %v11504_v53, %v2820_v49 }
 0x461   : > { %v2939_v26 = vmax.f32 %v2821_v20, 0.0 }
 0x463   : > { %v2962_v12 = vpack.c.bf16 %v2939_v26, %v2938_v36 }
 0x465   : > { %3088 = vmatmul.bf16.gmra.mxu2 %v2962_v12 }
 0x466   : > { %v2823_v45 = vpop.f32.mrf.mxu1 }
 0x467   : > { %v2824_v56 = vadd.f32 %v11504_v53, %v2823_v45 }
 0x468   : > { %v3049_v10 = vpop.f32.mrf.mxu2 }
 0x469   : > { %v3050_v44 = vadd.f32 %v11648_v17, %v3049_v10  ;;  %v2940_v62 = vmax.f32 %v2824_v56, 0.0 }
 0x46b   : > { %v11657_v25 = vadd.f32 %v3050_v44, %v11346_v51 }
 0x46d   : > { %v3225_v34 = vmax.f32 %v11657_v25, 0.0 }
 0x46e   : > { %v2825_v38 = vpop.f32.mrf.mxu1 }
 0x46f   : > { %v2826_v46 = vadd.f32 %v11504_v53, %v2825_v38 }
 0x470   : > { %v3051_v27 = vpop.f32.mrf.mxu2 }
 0x471   : > { %v2941_v50 = vmax.f32 %v2826_v46, 0.0  ;;  %v3052_v16 = vadd.f32 %v11648_v17, %v3051_v27  ;;  %v9828_v46 = vld [vmem:[%s14433_s10 + $0xd0] sm:$0xff] }
 0x472   : > { %3619 = vmatpush.bf16.msrb.mxu0 %v9828_v46 }
 0x473   : > { %v11661_v8 = vadd.f32 %v3052_v16, %v11350_v54  ;;  %v2963_v1 = vpack.c.bf16 %v2941_v50, %v2940_v62 }
 0x475   : > { %v3226_v43 = vmax.f32 %v11661_v8, 0.0  ;;  %3093 = vmatmul.bf16.gmra.mxu2 %v2963_v1 }
 0x476   : > { %v2828_v0 = vpop.f32.mrf.mxu1 }
 0x477   : > { %v3257_v31 = vpack.c.bf16 %v3226_v43, %v3225_v34  ;;  %v2829_v39 = vadd.f32 %v11504_v53, %v2828_v0 }
 0x478   : > { %v3054_v33 = vpop.f32.mrf.mxu2 }
 0x479   : > { %3351 = vmatmul.bf16.vlgmr.msra.gmra.mxu3 %v3257_v31  ;;  %v3055_v51 = vadd.f32 %v11648_v17, %v3054_v33  ;;  %v2942_v41 = vmax.f32 %v2829_v39, 0.0 }
 0x47b   : > { %v11672_v49 = vadd.f32 %v3055_v51, %v11365_v40 }
 0x47d   : > { %v3227_v45 = vmax.f32 %v11672_v49, 0.0 }
 0x47e   : > { %v2830_v54 = vpop.f32.mrf.mxu1 }
 0x47f   : > { %v2831_v37 = vadd.f32 %v11504_v53, %v2830_v54 }
 0x480   : > { %v3056_v21 = vpop.f32.mrf.mxu2 }
 0x481   : > { %v2943_v20 = vmax.f32 %v2831_v37, 0.0  ;;  %v3057_v36 = vadd.f32 %v11648_v17, %v3056_v21  ;;  %v9840_v37 = vld [vmem:[%s14431_s8 + $0x130] sm:$0xff] }
 0x482   : > { %3918 = vmatpush.bf16.msrb.mxu1 %v9840_v37 }
 0x483   : > { %v11676_v26 = vadd.f32 %v3057_v36, %v11369_v13  ;;  %v2964_v12 = vpack.c.bf16 %v2943_v20, %v2942_v41 }
 0x485   : > { %v3228_v10 = vmax.f32 %v11676_v26, 0.0  ;;  %3098 = vmatmul.bf16.gmra.mxu2 %v2964_v12 }
 0x486   : > { %v2833_v56 = vpop.f32.mrf.mxu1 }
 0x487   : > { %v3258_v44 = vpack.c.bf16 %v3228_v10, %v3227_v45  ;;  %v2834_v38 = vadd.f32 %v11504_v53, %v2833_v56 }
 0x488   : > { %v3059_v52 = vpop.f32.mrf.mxu2 }
 0x489   : > { %3356 = vmatmul.bf16.gmra.mxu3 %v3258_v44  ;;  %v3060_v40 = vadd.f32 %v11648_v17, %v3059_v52  ;;  %v2944_v50 = vmax.f32 %v2834_v38, 0.0 }
 0x48b   : > { %v11687_v16 = vadd.f32 %v3060_v40, %v11384_v59 }
 0x48d   : > { %v3229_v31 = vmax.f32 %v11687_v16, 0.0 }
 0x48e   : > { %v2835_v13 = vpop.f32.mrf.mxu1 }
 0x48f   : > { %v2836_v27 = vadd.f32 %v11504_v53, %v2835_v13 }
 0x490   : > { %v3061_v62 = vpop.f32.mrf.mxu2 }
 0x491   : > { %v2945_v1 = vmax.f32 %v2836_v27, 0.0  ;;  %v3062_v34 = vadd.f32 %v11648_v17, %v3061_v62  ;;  %v9827_v27 = vld [vmem:[%s14433_s10 + $0xc8] sm:$0xff] }
 0x492   : > { %3620 = vmatpush.bf16.msrb.mxu0 %v9827_v27 }
 0x493   : > { %v11691_v43 = vadd.f32 %v3062_v34, %v11388_v23  ;;  %v2965_v0 = vpack.c.bf16 %v2945_v1, %v2944_v50 }
 0x495   : > { %v3230_v33 = vmax.f32 %v11691_v43, 0.0  ;;  %3103 = vmatmul.bf16.gmra.mxu2 %v2965_v0 }
 0x496   : > { %v2838_v39 = vpop.f32.mrf.mxu1 }
 0x497   : > { %v3259_v51 = vpack.c.bf16 %v3230_v33, %v3229_v31  ;;  %v2839_v54 = vadd.f32 %v11504_v53, %v2838_v39 }
 0x498   : > { %v3064_v18 = vpop.f32.mrf.mxu2 }
 0x499   : > { %3361 = vmatmul.bf16.gmra.mxu3 %v3259_v51  ;;  %v3065_v59 = vadd.f32 %v11648_v17, %v3064_v18  ;;  %v2946_v20 = vmax.f32 %v2839_v54, 0.0 }
 0x49b   : > { %v11702_v36 = vadd.f32 %v3065_v59, %v11403_v57 }
 0x49d   : > { %v3231_v44 = vmax.f32 %v11702_v36, 0.0 }
 0x49e   : > { %v2840_v23 = vpop.f32.mrf.mxu1 }
 0x49f   : > { %v2841_v21 = vadd.f32 %v11504_v53, %v2840_v23 }
 0x4a0   : > { %v3066_v41 = vpop.f32.mrf.mxu2 }
 0x4a1   : > { %v2947_v12 = vmax.f32 %v2841_v21, 0.0  ;;  %v3067_v45 = vadd.f32 %v11648_v17, %v3066_v41  ;;  %v9839_v21 = vld [vmem:[%s14431_s8 + $0x128] sm:$0xff] }
 0x4a2   : > { %3919 = vmatpush.bf16.msrb.mxu1 %v9839_v21 }
 0x4a3   : > { %v11706_v10 = vadd.f32 %v3067_v45, %v11407_v60  ;;  %v2966_v56 = vpack.c.bf16 %v2947_v12, %v2946_v20 }
 0x4a5   : > { %v3232_v52 = vmax.f32 %v11706_v10, 0.0  ;;  %3108 = vmatmul.bf16.gmra.mxu2 %v2966_v56 }
 0x4a6   : > { %v2843_v38 = vpop.f32.mrf.mxu1 }
 0x4a7   : > { %v3260_v40 = vpack.c.bf16 %v3232_v52, %v3231_v44  ;;  %v2844_v13 = vadd.f32 %v11504_v53, %v2843_v38 }
 0x4a8   : > { %v3069_v46 = vpop.f32.mrf.mxu2 }
 0x4a9   : > { %3366 = vmatmul.bf16.gmra.mxu3 %v3260_v40  ;;  %v3070_v57 = vadd.f32 %v11648_v17, %v3069_v46  ;;  %v2948_v1 = vmax.f32 %v2844_v13, 0.0 }
 0x4ab   : > { %v11717_v34 = vadd.f32 %v3070_v57, %v11422_v22 }
 0x4ad   : > { %v3233_v51 = vmax.f32 %v11717_v34, 0.0 }
 0x4ae   : > { %v2845_v60 = vpop.f32.mrf.mxu1 }
 0x4af   : > { %v2846_v62 = vadd.f32 %v11504_v53, %v2845_v60 }
 0x4b0   : > { %v3071_v50 = vpop.f32.mrf.mxu2 }
 0x4b1   : > { %v2949_v0 = vmax.f32 %v2846_v62, 0.0  ;;  %v3072_v31 = vadd.f32 %v11648_v17, %v3071_v50  ;;  %v9826_v62 = vld [vmem:[%s14433_s10 + $0xc0] sm:$0xff] }
 0x4b2   : > { %3621 = vmatpush.bf16.msrb.mxu0 %v9826_v62 }
 0x4b3   : > { %v11721_v33 = vadd.f32 %v3072_v31, %v11426_v42  ;;  %v2967_v39 = vpack.c.bf16 %v2949_v0, %v2948_v1  ;;  %v9961_v0 = vld [vmem:[%s14427_s4] sm:$0xff] }
 0x4b5   : > { %v3234_v18 = vmax.f32 %v11721_v33, 0.0  ;;  %3113 = vmatmul.bf16.gmra.mxu2 %v2967_v39 }
 0x4b6   : > { %v2848_v54 = vpop.f32.mrf.mxu1  ;;  %4793 = vmatpush.bf16.msra.mxu0 %v9961_v0 }
 0x4b7   : > { %v3261_v59 = vpack.c.bf16 %v3234_v18, %v3233_v51  ;;  %v2849_v23 = vadd.f32 %v11504_v53, %v2848_v54 }
 0x4b8   : > { %v3074_v37 = vpop.f32.mrf.mxu2 }
 0x4b9   : > { %3371 = vmatmul.bf16.gmra.mxu3 %v3261_v59  ;;  %v3075_v22 = vadd.f32 %v11648_v17, %v3074_v37  ;;  %v2950_v12 = vmax.f32 %v2849_v23, 0.0 }
 0x4bb   : > { %v11732_v45 = vadd.f32 %v3075_v22, %v11441_v32 }
 0x4bd   : > { %v3235_v40 = vmax.f32 %v11732_v45, 0.0 }
 0x4be   : > { %v2850_v42 = vpop.f32.mrf.mxu1 }
 0x4bf   : > { %v2851_v41 = vadd.f32 %v11504_v53, %v2850_v42 }
 0x4c0   : > { %v3076_v20 = vpop.f32.mrf.mxu2 }
 0x4c1   : > { %v2951_v56 = vmax.f32 %v2851_v41, 0.0  ;;  %v3077_v44 = vadd.f32 %v11648_v17, %v3076_v20 }
 0x4c3   : > { %v11736_v52 = vadd.f32 %v3077_v44, %v11445_v28  ;;  %v2968_v38 = vpack.c.bf16 %v2951_v56, %v2950_v12 }
 0x4c5   : > { %v3236_v46 = vmax.f32 %v11736_v52, 0.0  ;;  %3118 = vmatmul.bf16.gmra.mxu2 %v2968_v38 }
 0x4c6   : > { %v2853_v13 = vpop.f32.mrf.mxu1 }
 0x4c7   : > { %v3262_v57 = vpack.c.bf16 %v3236_v46, %v3235_v40  ;;  %v2854_v60 = vadd.f32 %v11504_v53, %v2853_v13 }
 0x4c8   : > { %v3079_v27 = vpop.f32.mrf.mxu2 }
 0x4c9   : > { %3376 = vmatmul.bf16.gmra.mxu3 %v3262_v57  ;;  %v3080_v32 = vadd.f32 %v11648_v17, %v3079_v27  ;;  %v2952_v31 = vmax.f32 %v2854_v60, 0.0 }
 0x4cb   : > { %v11750_v39 = vadd.f32 %v3080_v32, %v11460_v19  ;;  %v9838_v19 = vld [vmem:[%s14431_s8 + $0x120] sm:$0xff] }
 0x4cc   : > { %3920 = vmatpush.bf16.msrb.mxu1 %v9838_v19 }
 0x4ce   : > { %v2855_v28 = vpop.f32.mrf.mxu1 }
 0x4cf   : > { %v2856_v50 = vadd.f32 %v11504_v53, %v2855_v28  ;;  %v3237_v53 = vmax.f32 %v11750_v39, 0.0 }
 0x4d0   : > { %v3081_v1 = vpop.f32.mrf.mxu2 }
 0x4d1   : > { %v2953_v51 = vmax.f32 %v2856_v50, 0.0  ;;  %v3082_v18 = vadd.f32 %v11648_v17, %v3081_v1  ;;  %v11788_v50 = vld [vmem:[%s14432_s9 + $0x3] ss:$0 sm:$0xff] }
 0x4d3   : > { %v11754_v54 = vadd.f32 %v3082_v18, %v11464_v6  ;;  %v2969_v59 = vpack.c.bf16 %v2953_v51, %v2952_v31 }
 0x4d5   : > { %v3238_v37 = vmax.f32 %v11754_v54, 0.0  ;;  %3123 = vmatmul.bf16.gmra.mxu2 %v2969_v59 }
 0x4d7   : > { %v3263_v23 = vpack.c.bf16 %v3238_v37, %v3237_v53 }
 0x4d8   : > { %v3084_v22 = vpop.f32.mrf.mxu2 }
 0x4d9   : > { %3381 = vmatmul.bf16.gmra.mxu3 %v3263_v23  ;;  %v3085_v21 = vadd.f32 %v11648_v17, %v3084_v22 }
 0x4db   : > { %v11763_v6 = vadd.f32 %v3085_v21, %v11479_v7 }
 0x4dd   : > { %v3239_v12 = vmax.f32 %v11763_v6, 0.0 }
 0x4e0   : > { %v3086_v42 = vpop.f32.mrf.mxu2 }
 0x4e1   : > { %v3087_v41 = vadd.f32 %v11648_v17, %v3086_v42 }
 0x4e3   : > { %v11767_v20 = vadd.f32 %v3087_v41, %v11482_v2  ;;  %v14531_v41 = vld [vmem:[#allocation3_spill] sm:$0xff] }
 0x4e5   : > { %v3240_v56 = vmax.f32 %v11767_v20, 0.0 }
 0x4e7   : > { %v3264_v44 = vpack.c.bf16 %v3240_v56, %v3239_v12 }
 0x4e8   : > { %v3089_v38 = vpop.f32.mrf.mxu2 }
 0x4e9   : > { %3386 = vmatmul.bf16.gmra.mxu3 %v3264_v44  ;;  %v3090_v40 = vadd.f32 %v11648_v17, %v3089_v38 }
 0x4eb   : > { %v11773_v13 = vadd.f32 %v3090_v40, %v11493_v9  ;;  %v9837_v9 = vld [vmem:[%s14431_s8 + $0x118] sm:$0xff] }
 0x4ec   : > { %3921 = vmatpush.bf16.msrb.mxu1 %v9837_v9 }
 0x4ed   : > { %v3241_v2 = vmax.f32 %v11773_v13, 0.0 }
 0x4f0   : > { %v3091_v46 = vpop.f32.mrf.mxu2 }
 0x4f1   : > { %v3092_v7 = vadd.f32 %v11648_v17, %v3091_v46 }
 0x4f3   : > { %v11777_v57 = vadd.f32 %v3092_v7, %v11496_v48 }
 0x4f5   : > { %v3242_v27 = vmax.f32 %v11777_v57, 0.0 }
 0x4f7   : > { %v3265_v60 = vpack.c.bf16 %v3242_v27, %v3241_v2 }
 0x4f8   : > { %v3094_v32 = vpop.f32.mrf.mxu2 }
 0x4f9   : > { %3391 = vmatmul.bf16.gmra.mxu3 %v3265_v60  ;;  %v3095_v28 = vadd.f32 %v11648_v17, %v3094_v32 }
 0x4fb   : > { %v11791_v1 = vadd.f32 %v3095_v28, %v11517_v30  ;;  %v9849_v30 = vld [vmem:[%s14433_s10 + $0x138] sm:$0xff] }
 0x4fc   : > { %v3352_v62 = vpop.f32.mrf.mxu3  ;;  %4188 = vmatpush.bf16.msrb.mxu2 %v9849_v30 }
 0x4fd   : > { %v3353_v31 = vadd.f32 %v11788_v50, %v3352_v62  ;;  %v3243_v59 = vmax.f32 %v11791_v1, 0.0 }
 0x4ff   : > { %v3496_v23 = vmax.f32 %v3353_v31, 0.0 }
 0x500   : > { %v3096_v48 = vpop.f32.mrf.mxu2 }
 0x501   : > { %v3097_v0 = vadd.f32 %v11648_v17, %v3096_v48 }
 0x503   : > { %v11796_v51 = vadd.f32 %v3097_v0, %v11520_v11 }
 0x504   : > { %v3354_v18 = vpop.f32.mrf.mxu3 }
 0x505   : > { %v3244_v53 = vmax.f32 %v11796_v51, 0.0  ;;  %v3355_v37 = vadd.f32 %v11788_v50, %v3354_v18 }
 0x507   : > { %v3497_v22 = vmax.f32 %v3355_v37, 0.0  ;;  %v3266_v21 = vpack.c.bf16 %v3244_v53, %v3243_v59 }
 0x508   : > { %v3099_v19 = vpop.f32.mrf.mxu2 }
 0x509   : > { %v3528_v42 = vpack.c.bf16 %v3497_v22, %v3496_v23  ;;  %3396 = vmatmul.bf16.gmra.mxu3 %v3266_v21  ;;  %v3100_v12 = vadd.f32 %v11648_v17, %v3099_v19 }
 0x50b   : > { %3622 = vmatmul.bf16.vlgmr.msrb.gmra.mxu0 %v3528_v42  ;;  %v11807_v44 = vadd.f32 %v3100_v12, %v11536_v14 }
 0x50c   : > { %v3357_v11 = vpop.f32.mrf.mxu3  ;;  %5277 = vmatpush.bf16.msrb.mxu0 %v14531_v41 }
 0x50d   : > { %v3358_v40 = vadd.f32 %v11788_v50, %v3357_v11  ;;  %v3245_v2 = vmax.f32 %v11807_v44, 0.0 }
 0x50f   : > { %v3498_v32 = vmax.f32 %v3358_v40, 0.0 }
 0x510   : > { %v3101_v56 = vpop.f32.mrf.mxu2 }
 0x511   : > { %v3102_v38 = vadd.f32 %v11648_v17, %v3101_v56 }
 0x513   : > { %v11812_v46 = vadd.f32 %v3102_v38, %v11539_v47  ;;  %v9836_v47 = vld [vmem:[%s14431_s8 + $0x110] sm:$0xff] }
 0x514   : > { %v3359_v7 = vpop.f32.mrf.mxu3  ;;  %3922 = vmatpush.bf16.msrb.mxu1 %v9836_v47 }
 0x515   : > { %v3246_v27 = vmax.f32 %v11812_v46, 0.0  ;;  %v3360_v60 = vadd.f32 %v11788_v50, %v3359_v7 }
 0x517   : > { %v3499_v62 = vmax.f32 %v3360_v60, 0.0  ;;  %v3267_v28 = vpack.c.bf16 %v3246_v27, %v3245_v2 }
 0x518   : > { %v3104_v9 = vpop.f32.mrf.mxu2 }
 0x519   : > { %3401 = vmatmul.bf16.gmra.mxu3 %v3267_v28  ;;  %v3529_v14 = vpack.c.bf16 %v3499_v62, %v3498_v32  ;;  %v3105_v0 = vadd.f32 %v11648_v17, %v3104_v9 }
 0x51b   : > { %3627 = vmatmul.bf16.gmra.mxu0 %v3529_v14  ;;  %v11822_v18 = vadd.f32 %v3105_v0, %v11555_v15  ;;  %v9848_v15 = vld [vmem:[%s14433_s10 + $0x130] sm:$0xff] }
 0x51c   : > { %v3362_v48 = vpop.f32.mrf.mxu3  ;;  %4189 = vmatpush.bf16.msrb.mxu2 %v9848_v15 }
 0x51d   : > { %v3363_v53 = vadd.f32 %v11788_v50, %v3362_v48  ;;  %v3247_v22 = vmax.f32 %v11822_v18, 0.0 }
 0x51f   : > { %v3500_v19 = vmax.f32 %v3363_v53, 0.0 }
 0x520   : > { %v3106_v31 = vpop.f32.mrf.mxu2 }
 0x521   : > { %v3107_v59 = vadd.f32 %v11648_v17, %v3106_v31 }
 0x523   : > { %v11827_v37 = vadd.f32 %v3107_v59, %v11558_v5 }
 0x524   : > { %v3364_v23 = vpop.f32.mrf.mxu3 }
 0x525   : > { %v3248_v21 = vmax.f32 %v11827_v37, 0.0  ;;  %v3365_v30 = vadd.f32 %v11788_v50, %v3364_v23 }
 0x527   : > { %v3501_v42 = vmax.f32 %v3365_v30, 0.0  ;;  %v3268_v11 = vpack.c.bf16 %v3248_v21, %v3247_v22 }
 0x528   : > { %v3109_v41 = vpop.f32.mrf.mxu2 }
 0x529   : > { %3406 = vmatmul.bf16.gmra.mxu3 %v3268_v11  ;;  %v3530_v12 = vpack.c.bf16 %v3501_v42, %v3500_v19  ;;  %v3110_v56 = vadd.f32 %v11648_v17, %v3109_v41 }
 0x52b   : > { %3632 = vmatmul.bf16.gmra.mxu0 %v3530_v12  ;;  %v11837_v40 = vadd.f32 %v3110_v56, %v11574_v4 }
 0x52c   : > { %v3367_v5 = vpop.f32.mrf.mxu3 }
 0x52d   : > { %v3368_v2 = vadd.f32 %v11788_v50, %v3367_v5  ;;  %v3249_v32 = vmax.f32 %v11837_v40, 0.0 }
 0x52f   : > { %v3502_v9 = vmax.f32 %v3368_v2, 0.0 }
 0x530   : > { %v3111_v38 = vpop.f32.mrf.mxu2 }
 0x531   : > { %v3112_v7 = vadd.f32 %v11648_v17, %v3111_v38 }
 0x533   : > { %v11842_v27 = vadd.f32 %v3112_v7, %v11577_v3  ;;  %v9835_v3 = vld [vmem:[%s14431_s8 + $0x108] sm:$0xff] }
 0x534   : > { %v3369_v60 = vpop.f32.mrf.mxu3  ;;  %3923 = vmatpush.bf16.msrb.mxu1 %v9835_v3 }
 0x535   : > { %v3250_v62 = vmax.f32 %v11842_v27, 0.0  ;;  %v3370_v28 = vadd.f32 %v11788_v50, %v3369_v60 }
 0x537   : > { %v3503_v14 = vmax.f32 %v3370_v28, 0.0  ;;  %v3269_v48 = vpack.c.bf16 %v3250_v62, %v3249_v32 }
 0x538   : > { %v3114_v0 = vpop.f32.mrf.mxu2 }
 0x539   : > { %3411 = vmatmul.bf16.gmra.mxu3 %v3269_v48  ;;  %v3531_v4 = vpack.c.bf16 %v3503_v14, %v3502_v9  ;;  %v3115_v31 = vadd.f32 %v11648_v17, %v3114_v0 }
 0x53b   : > { %3637 = vmatmul.bf16.gmra.mxu0 %v3531_v4  ;;  %v11852_v53 = vadd.f32 %v3115_v31, %v11593_v63  ;;  %v9847_v63 = vld [vmem:[%s14433_s10 + $0x128] sm:$0xff] }
 0x53c   : > { %v3372_v47 = vpop.f32.mrf.mxu3  ;;  %4190 = vmatpush.bf16.msrb.mxu2 %v9847_v63 }
 0x53d   : > { %v3373_v22 = vadd.f32 %v11788_v50, %v3372_v47  ;;  %v3251_v19 = vmax.f32 %v11852_v53, 0.0 }
 0x53f   : > { %v3504_v15 = vmax.f32 %v3373_v22, 0.0 }
 0x540   : > { %v3116_v59 = vpop.f32.mrf.mxu2 }
 0x541   : > { %v3117_v23 = vadd.f32 %v11648_v17, %v3116_v59 }
 0x543   : > { %v11857_v21 = vadd.f32 %v3117_v23, %v11596_v61 }
 0x544   : > { %v3374_v30 = vpop.f32.mrf.mxu3 }
 0x545   : > { %v3252_v42 = vmax.f32 %v11857_v21, 0.0  ;;  %v3375_v11 = vadd.f32 %v11788_v50, %v3374_v30 }
 0x547   : > { %v3505_v41 = vmax.f32 %v3375_v11, 0.0  ;;  %v3270_v12 = vpack.c.bf16 %v3252_v42, %v3251_v19 }
 0x548   : > { %v3119_v5 = vpop.f32.mrf.mxu2 }
 0x549   : > { %3416 = vmatmul.bf16.gmra.mxu3 %v3270_v12  ;;  %v3532_v56 = vpack.c.bf16 %v3505_v41, %v3504_v15  ;;  %v3120_v38 = vadd.f32 %v11648_v17, %v3119_v5 }
 0x54b   : > { %3642 = vmatmul.bf16.gmra.mxu0 %v3532_v56  ;;  %v11867_v2 = vadd.f32 %v3120_v38, %v11612_v58  ;;  %v9834_v58 = vld [vmem:[%s14431_s8 + $0x100] sm:$0xff] }
 0x54c   : > { %v3377_v61 = vpop.f32.mrf.mxu3  ;;  %3924 = vmatpush.bf16.msrb.mxu1 %v9834_v58 }
 0x54d   : > { %v3378_v32 = vadd.f32 %v11788_v50, %v3377_v61  ;;  %v3253_v9 = vmax.f32 %v11867_v2, 0.0 }
 0x54f   : > { %v3506_v0 = vmax.f32 %v3378_v32, 0.0 }
 0x550   : > { %v3121_v7 = vpop.f32.mrf.mxu2 }
 0x551   : > { %v3122_v60 = vadd.f32 %v11648_v17, %v3121_v7 }
 0x553   : > { %v11872_v62 = vadd.f32 %v3122_v60, %v11615_v29  ;;  %v9962_v29 = vld [vmem:[%s14426_s3] sm:$0xff] }
 0x554   : > { %v3379_v28 = vpop.f32.mrf.mxu3  ;;  %4930 = vmatpush.bf16.msra.mxu1 %v9962_v29  ;;  %v11908_v29 = vld [vmem:[%s14434_s11 + $0x3] ss:$0 sm:$0xff] }
 0x555   : > { %v3254_v14 = vmax.f32 %v11872_v62, 0.0  ;;  %v3380_v48 = vadd.f32 %v11788_v50, %v3379_v28 }
 0x557   : > { %v3507_v4 = vmax.f32 %v3380_v48, 0.0  ;;  %v3271_v47 = vpack.c.bf16 %v3254_v14, %v3253_v9 }
 0x558   : > { %v3124_v31 = vpop.f32.mrf.mxu2 }
 0x559   : > { %3421 = vmatmul.bf16.gmra.mxu3 %v3271_v47  ;;  %v3533_v3 = vpack.c.bf16 %v3507_v4, %v3506_v0  ;;  %v3125_v23 = vadd.f32 %v11648_v17, %v3124_v31  ;;  %v9845_v31 = vld [vmem:[%s14433_s10 + $0x118] sm:$0xff] }
 0x55b   : > { %3647 = vmatmul.bf16.gmra.mxu0 %v3533_v3  ;;  %v11885_v30 = vadd.f32 %v3125_v23, %v11631_v35  ;;  %v9846_v35 = vld [vmem:[%s14433_s10 + $0x120] sm:$0xff] }
 0x55c   : > { %v3382_v59 = vpop.f32.mrf.mxu3  ;;  %4191 = vmatpush.bf16.msrb.mxu2 %v9846_v35 }
 0x55d   : > { %v3383_v42 = vadd.f32 %v11788_v50, %v3382_v59  ;;  %v3255_v41 = vmax.f32 %v11885_v30, 0.0 }
 0x55f   : > { %v3508_v5 = vmax.f32 %v3383_v42, 0.0 }
 0x560   : > { %v3126_v22 = vpop.f32.mrf.mxu2  ;;  %4192 = vmatpush.bf16.msrb.mxu2 %v9845_v31 }
 0x561   : > { %v3127_v19 = vadd.f32 %v11648_v17, %v3126_v22 }
 0x563   : > { %v11890_v11 = vadd.f32 %v3127_v19, %v11634_v24 }
 0x564   : > { %v3384_v15 = vpop.f32.mrf.mxu3 }
 0x565   : > { %v3256_v12 = vmax.f32 %v11890_v11, 0.0  ;;  %v3385_v63 = vadd.f32 %v11788_v50, %v3384_v15 }
 0x567   : > { %v3509_v56 = vmax.f32 %v3385_v63, 0.0  ;;  %v3272_v61 = vpack.c.bf16 %v3256_v12, %v3255_v41 }
 0x569   : > { %3426 = vmatmul.bf16.gmra.mxu3 %v3272_v61  ;;  %v3534_v17 = vpack.c.bf16 %v3509_v56, %v3508_v5 }
 0x56b   : > { %3652 = vmatmul.bf16.gmra.mxu0 %v3534_v17 }
 0x56c   : > { %v3387_v24 = vpop.f32.mrf.mxu3 }
 0x56d   : > { %v3388_v38 = vadd.f32 %v11788_v50, %v3387_v24 }
 0x56f   : > { %v3510_v32 = vmax.f32 %v3388_v38, 0.0 }
 0x574   : > { %v3389_v7 = vpop.f32.mrf.mxu3 }
 0x575   : > { %v3390_v60 = vadd.f32 %v11788_v50, %v3389_v7 }
 0x577   : > { %v3511_v28 = vmax.f32 %v3390_v60, 0.0 }
 0x579   : > { %v3535_v9 = vpack.c.bf16 %v3511_v28, %v3510_v32 }
 0x57b   : > { %3657 = vmatmul.bf16.gmra.mxu0 %v3535_v9 }
 0x57c   : > { %v3392_v14 = vpop.f32.mrf.mxu3 }
 0x57d   : > { %v3393_v48 = vadd.f32 %v11788_v50, %v3392_v14 }
 0x57f   : > { %v3512_v47 = vmax.f32 %v3393_v48, 0.0 }
 0x584   : > { %v3394_v0 = vpop.f32.mrf.mxu3 }
 0x585   : > { %v3395_v4 = vadd.f32 %v11788_v50, %v3394_v0 }
 0x587   : > { %v3513_v58 = vmax.f32 %v3395_v4, 0.0 }
 0x588   : > { %v3623_v3 = vpop.f32.mrf.mxu0 }
 0x589   : > { %v3536_v59 = vpack.c.bf16 %v3513_v58, %v3512_v47  ;;  %v3624_v22 = vadd.f32 %v11908_v29, %v3623_v3 }
 0x58b   : > { %3662 = vmatmul.bf16.gmra.mxu0 %v3536_v59  ;;  %v11912_v42 = vadd.f32 %v3624_v22, %v11657_v25 }
 0x58c   : > { %v3397_v23 = vpop.f32.mrf.mxu3 }
 0x58d   : > { %v3398_v41 = vadd.f32 %v11788_v50, %v3397_v23  ;;  %v3799_v5 = vmax.f32 %v11912_v42, 0.0 }
 0x58f   : > { %v3514_v35 = vmax.f32 %v3398_v41, 0.0 }
 0x590   : > { %v3625_v19 = vpop.f32.mrf.mxu0 }
 0x591   : > { %v3626_v15 = vadd.f32 %v11908_v29, %v3625_v19 }
 0x593   : > { %v11917_v12 = vadd.f32 %v3626_v15, %v11661_v8 }
 0x594   : > { %v3399_v63 = vpop.f32.mrf.mxu3 }
 0x595   : > { %v3800_v56 = vmax.f32 %v11917_v12, 0.0  ;;  %v3400_v61 = vadd.f32 %v11788_v50, %v3399_v63 }
 0x597   : > { %v3831_v17 = vpack.c.bf16 %v3800_v56, %v3799_v5  ;;  %v3515_v24 = vmax.f32 %v3400_v61, 0.0 }
 0x598   : > { %v3628_v38 = vpop.f32.mrf.mxu0 }
 0x599   : > { %3925 = vmatmul.bf16.vlgmr.msrb.gmra.mxu1 %v3831_v17  ;;  %v3537_v25 = vpack.c.bf16 %v3515_v24, %v3514_v35  ;;  %v3629_v60 = vadd.f32 %v11908_v29, %v3628_v38 }
 0x59b   : > { %3667 = vmatmul.bf16.gmra.mxu0 %v3537_v25  ;;  %v11924_v8 = vadd.f32 %v3629_v60, %v11672_v49  ;;  %v9844_v49 = vld [vmem:[%s14433_s10 + $0x110] sm:$0xff] }
 0x59c   : > { %v3402_v7 = vpop.f32.mrf.mxu3  ;;  %4193 = vmatpush.bf16.msrb.mxu2 %v9844_v49 }
 0x59d   : > { %v3403_v9 = vadd.f32 %v11788_v50, %v3402_v7  ;;  %v3801_v0 = vmax.f32 %v11924_v8, 0.0 }
 0x59f   : > { %v3516_v58 = vmax.f32 %v3403_v9, 0.0 }
 0x5a0   : > { %v3630_v32 = vpop.f32.mrf.mxu0 }
 0x5a1   : > { %v3631_v28 = vadd.f32 %v11908_v29, %v3630_v32 }
 0x5a3   : > { %v11929_v14 = vadd.f32 %v3631_v28, %v11676_v26 }
 0x5a4   : > { %v3404_v48 = vpop.f32.mrf.mxu3 }
 0x5a5   : > { %v3802_v4 = vmax.f32 %v11929_v14, 0.0  ;;  %v3405_v47 = vadd.f32 %v11788_v50, %v3404_v48 }
 0x5a7   : > { %v3517_v31 = vmax.f32 %v3405_v47, 0.0  ;;  %v3832_v3 = vpack.c.bf16 %v3802_v4, %v3801_v0 }
 0x5a8   : > { %v3633_v59 = vpop.f32.mrf.mxu0 }
 0x5a9   : > { %3930 = vmatmul.bf16.gmra.mxu1 %v3832_v3  ;;  %v3538_v23 = vpack.c.bf16 %v3517_v31, %v3516_v58  ;;  %v3634_v22 = vadd.f32 %v11908_v29, %v3633_v59 }
 0x5ab   : > { %3672 = vmatmul.bf16.gmra.mxu0 %v3538_v23  ;;  %v11939_v15 = vadd.f32 %v3634_v22, %v11687_v16 }
 0x5ac   : > { %v3407_v26 = vpop.f32.mrf.mxu3 }
 0x5ad   : > { %v3408_v63 = vadd.f32 %v11788_v50, %v3407_v26  ;;  %v3803_v61 = vmax.f32 %v11939_v15, 0.0 }
 0x5af   : > { %v3518_v24 = vmax.f32 %v3408_v63, 0.0 }
 0x5b0   : > { %v3635_v19 = vpop.f32.mrf.mxu0 }
 0x5b1   : > { %v3636_v41 = vadd.f32 %v11908_v29, %v3635_v19 }
 0x5b3   : > { %v11944_v5 = vadd.f32 %v3636_v41, %v11691_v43  ;;  %v9769_v43 = vld [vmem:[%s14435_s12 + $0x38] sm:$0xff] }
 0x5b4   : > { %v3409_v56 = vpop.f32.mrf.mxu3  ;;  %4472 = vmatpush.bf16.msrb.mxu3 %v9769_v43 }
 0x5b5   : > { %v3804_v35 = vmax.f32 %v11944_v5, 0.0  ;;  %v3410_v17 = vadd.f32 %v11788_v50, %v3409_v56 }
 0x5b7   : > { %v3519_v38 = vmax.f32 %v3410_v17, 0.0  ;;  %v3833_v25 = vpack.c.bf16 %v3804_v35, %v3803_v61 }
 0x5b8   : > { %v3638_v7 = vpop.f32.mrf.mxu0 }
 0x5b9   : > { %3935 = vmatmul.bf16.gmra.mxu1 %v3833_v25  ;;  %v3539_v16 = vpack.c.bf16 %v3519_v38, %v3518_v24  ;;  %v3639_v32 = vadd.f32 %v11908_v29, %v3638_v7 }
 0x5bb   : > { %3677 = vmatmul.bf16.gmra.mxu0 %v3539_v16  ;;  %v11954_v9 = vadd.f32 %v3639_v32, %v11702_v36  ;;  %v9843_v36 = vld [vmem:[%s14433_s10 + $0x108] sm:$0xff] }
 0x5bc   : > { %v3412_v60 = vpop.f32.mrf.mxu3  ;;  %4194 = vmatpush.bf16.msrb.mxu2 %v9843_v36  ;;  %v9842_v36 = vld [vmem:[%s14433_s10 + $0x100] sm:$0xff] }
 0x5bd   : > { %v3413_v0 = vadd.f32 %v11788_v50, %v3412_v60  ;;  %v3805_v58 = vmax.f32 %v11954_v9, 0.0 }
 0x5bf   : > { %v3520_v49 = vmax.f32 %v3413_v0, 0.0 }
 0x5c0   : > { %v3640_v28 = vpop.f32.mrf.mxu0  ;;  %4195 = vmatpush.bf16.msrb.mxu2 %v9842_v36 }
 0x5c1   : > { %v3641_v48 = vadd.f32 %v11908_v29, %v3640_v28 }
 0x5c3   : > { %v11959_v4 = vadd.f32 %v3641_v48, %v11706_v10 }
 0x5c4   : > { %v3414_v47 = vpop.f32.mrf.mxu3 }
 0x5c5   : > { %v3806_v31 = vmax.f32 %v11959_v4, 0.0  ;;  %v3415_v3 = vadd.f32 %v11788_v50, %v3414_v47 }
 0x5c7   : > { %v3521_v59 = vmax.f32 %v3415_v3, 0.0  ;;  %v3834_v23 = vpack.c.bf16 %v3806_v31, %v3805_v58 }
 0x5c8   : > { %v3643_v26 = vpop.f32.mrf.mxu0 }
 0x5c9   : > { %3940 = vmatmul.bf16.gmra.mxu1 %v3834_v23  ;;  %v3540_v22 = vpack.c.bf16 %v3521_v59, %v3520_v49  ;;  %v3644_v19 = vadd.f32 %v11908_v29, %v3643_v26 }
 0x5cb   : > { %3682 = vmatmul.bf16.gmra.mxu0 %v3540_v22  ;;  %v11969_v63 = vadd.f32 %v3644_v19, %v11717_v34  ;;  %v14532_v19 = vld [vmem:[#allocation2_spill] sm:$0xff] }
 0x5cc   : > { %v3417_v10 = vpop.f32.mrf.mxu3  ;;  %5099 = vmatpush.bf16.msra.mxu2 %v14532_v19 }
 0x5cd   : > { %v3418_v61 = vadd.f32 %v11788_v50, %v3417_v10  ;;  %v3807_v24 = vmax.f32 %v11969_v63, 0.0 }
 0x5cf   : > { %v3522_v7 = vmax.f32 %v3418_v61, 0.0 }
 0x5d0   : > { %v3645_v41 = vpop.f32.mrf.mxu0 }
 0x5d1   : > { %v3646_v56 = vadd.f32 %v11908_v29, %v3645_v41 }
 0x5d3   : > { %v11974_v35 = vadd.f32 %v3646_v56, %v11721_v33  ;;  %v9768_v33 = vld [vmem:[%s14435_s12 + $0x30] sm:$0xff] }
 0x5d4   : > { %v3419_v17 = vpop.f32.mrf.mxu3  ;;  %4473 = vmatpush.bf16.msrb.mxu3 %v9768_v33 }
 0x5d5   : > { %v3808_v38 = vmax.f32 %v11974_v35, 0.0  ;;  %v3420_v25 = vadd.f32 %v11788_v50, %v3419_v17 }
 0x5d7   : > { %v3523_v16 = vmax.f32 %v3420_v25, 0.0  ;;  %v3835_v60 = vpack.c.bf16 %v3808_v38, %v3807_v24 }
 0x5d8   : > { %v3648_v32 = vpop.f32.mrf.mxu0 }
 0x5d9   : > { %3945 = vmatmul.bf16.gmra.mxu1 %v3835_v60  ;;  %v3541_v34 = vpack.c.bf16 %v3523_v16, %v3522_v7  ;;  %v3649_v28 = vadd.f32 %v11908_v29, %v3648_v32 }
 0x5db   : > { %3687 = vmatmul.bf16.gmra.mxu0 %v3541_v34  ;;  %v11984_v0 = vadd.f32 %v3649_v28, %v11732_v45 }
 0x5dc   : > { %v3422_v43 = vpop.f32.mrf.mxu3 }
 0x5dd   : > { %v3423_v58 = vadd.f32 %v11788_v50, %v3422_v43  ;;  %v3809_v49 = vmax.f32 %v11984_v0, 0.0 }
 0x5df   : > { %v3524_v45 = vmax.f32 %v3423_v58, 0.0 }
 0x5e0   : > { %v3650_v48 = vpop.f32.mrf.mxu0 }
 0x5e1   : > { %v3651_v47 = vadd.f32 %v11908_v29, %v3650_v48 }
 0x5e3   : > { %v11989_v31 = vadd.f32 %v3651_v47, %v11736_v52 }
 0x5e4   : > { %v3424_v3 = vpop.f32.mrf.mxu3 }
 0x5e5   : > { %v3810_v59 = vmax.f32 %v11989_v31, 0.0  ;;  %v3425_v23 = vadd.f32 %v11788_v50, %v3424_v3 }
 0x5e7   : > { %v3525_v26 = vmax.f32 %v3425_v23, 0.0  ;;  %v3836_v22 = vpack.c.bf16 %v3810_v59, %v3809_v49 }
 0x5e8   : > { %v3653_v10 = vpop.f32.mrf.mxu0 }
 0x5e9   : > { %3950 = vmatmul.bf16.gmra.mxu1 %v3836_v22  ;;  %v3542_v52 = vpack.c.bf16 %v3525_v26, %v3524_v45  ;;  %v3654_v56 = vadd.f32 %v11908_v29, %v3653_v10 }
 0x5eb   : > { %3692 = vmatmul.bf16.gmra.mxu0 %v3542_v52  ;;  %v12000_v17 = vadd.f32 %v3654_v56, %v11750_v39 }
 0x5ec   : > { %v3427_v41 = vpop.f32.mrf.mxu3 }
 0x5ed   : > { %v3428_v38 = vadd.f32 %v11788_v50, %v3427_v41  ;;  %v3811_v16 = vmax.f32 %v12000_v17, 0.0 }
 0x5ef   : > { %v3526_v34 = vmax.f32 %v3428_v38, 0.0 }
 0x5f0   : > { %v3655_v61 = vpop.f32.mrf.mxu0 }
 0x5f1   : > { %v3656_v24 = vadd.f32 %v11908_v29, %v3655_v61  ;;  %v12036_v61 = vld [vmem:[%s14432_s9 + $0x4] ss:$0 sm:$0xff] }
 0x5f3   : > { %v12005_v25 = vadd.f32 %v3656_v24, %v11754_v54  ;;  %v9767_v54 = vld [vmem:[%s14435_s12 + $0x28] sm:$0xff] }
 0x5f4   : > { %v3429_v7 = vpop.f32.mrf.mxu3  ;;  %4474 = vmatpush.bf16.msrb.mxu3 %v9767_v54 }
 0x5f5   : > { %v3812_v60 = vmax.f32 %v12005_v25, 0.0  ;;  %v3430_v32 = vadd.f32 %v11788_v50, %v3429_v7 }
 0x5f7   : > { %v3527_v43 = vmax.f32 %v3430_v32, 0.0  ;;  %v3837_v28 = vpack.c.bf16 %v3812_v60, %v3811_v16 }
 0x5f8   : > { %v3658_v33 = vpop.f32.mrf.mxu0 }
 0x5f9   : > { %3955 = vmatmul.bf16.gmra.mxu1 %v3837_v28  ;;  %v3543_v39 = vpack.c.bf16 %v3527_v43, %v3526_v34  ;;  %v3659_v48 = vadd.f32 %v11908_v29, %v3658_v33 }
 0x5fb   : > { %3697 = vmatmul.bf16.gmra.mxu0 %v3543_v39  ;;  %v12015_v58 = vadd.f32 %v3659_v48, %v11763_v6 }
 0x5fd   : > { %v3813_v49 = vmax.f32 %v12015_v58, 0.0 }
 0x600   : > { %v3660_v47 = vpop.f32.mrf.mxu0 }
 0x601   : > { %v3661_v50 = vadd.f32 %v11908_v29, %v3660_v47 }
 0x603   : > { %v12019_v3 = vadd.f32 %v3661_v50, %v11767_v20 }
 0x605   : > { %v3814_v59 = vmax.f32 %v12019_v3, 0.0 }
 0x607   : > { %v3838_v23 = vpack.c.bf16 %v3814_v59, %v3813_v49 }
 0x608   : > { %v3663_v36 = vpop.f32.mrf.mxu0 }
 0x609   : > { %3960 = vmatmul.bf16.gmra.mxu1 %v3838_v23  ;;  %v3664_v45 = vadd.f32 %v11908_v29, %v3663_v36 }
 0x60b   : > { %v12025_v22 = vadd.f32 %v3664_v45, %v11773_v13 }
 0x60d   : > { %v3815_v20 = vmax.f32 %v12025_v22, 0.0 }
 0x610   : > { %v3665_v26 = vpop.f32.mrf.mxu0 }
 0x611   : > { %v3666_v6 = vadd.f32 %v11908_v29, %v3665_v26 }
 0x613   : > { %v12029_v10 = vadd.f32 %v3666_v6, %v11777_v57  ;;  %v9766_v57 = vld [vmem:[%s14435_s12 + $0x20] sm:$0xff] }
 0x614   : > { %4475 = vmatpush.bf16.msrb.mxu3 %v9766_v57 }
 0x615   : > { %v3816_v19 = vmax.f32 %v12029_v10, 0.0 }
 0x616   : > { %v3926_v52 = vpop.f32.mrf.mxu1 }
 0x617   : > { %v3839_v41 = vpack.c.bf16 %v3816_v19, %v3815_v20  ;;  %v3927_v13 = vadd.f32 %v12036_v61, %v3926_v52 }
 0x618   : > { %v3668_v56 = vpop.f32.mrf.mxu0 }
 0x619   : > { %3965 = vmatmul.bf16.gmra.mxu1 %v3839_v41  ;;  %v3669_v24 = vadd.f32 %v11908_v29, %v3668_v56  ;;  %v4070_v60 = vmax.f32 %v3927_v13, 0.0 }
 0x61b   : > { %v12045_v32 = vadd.f32 %v3669_v24, %v11791_v1 }
 0x61d   : > { %v3817_v39 = vmax.f32 %v12045_v32, 0.0 }
 0x61e   : > { %v3928_v38 = vpop.f32.mrf.mxu1 }
 0x61f   : > { %v3929_v7 = vadd.f32 %v12036_v61, %v3928_v38  ;;  %v9765_v38 = vld [vmem:[%s14435_s12 + $0x18] sm:$0xff] }
 0x620   : > { %v3670_v16 = vpop.f32.mrf.mxu0  ;;  %4476 = vmatpush.bf16.msrb.mxu3 %v9765_v38 }
 0x621   : > { %v4071_v34 = vmax.f32 %v3929_v7, 0.0  ;;  %v3671_v43 = vadd.f32 %v11908_v29, %v3670_v16 }
 0x623   : > { %v4102_v28 = vpack.c.bf16 %v4071_v34, %v4070_v60  ;;  %v12049_v33 = vadd.f32 %v3671_v43, %v11796_v51 }
 0x625   : > { %v3818_v48 = vmax.f32 %v12049_v33, 0.0  ;;  %4196 = vmatmul.bf16.vlgmr.msrb.gmra.mxu2 %v4102_v28 }
 0x626   : > { %v3931_v54 = vpop.f32.mrf.mxu1 }
 0x627   : > { %v3840_v47 = vpack.c.bf16 %v3818_v48, %v3817_v39  ;;  %v3932_v49 = vadd.f32 %v12036_v61, %v3931_v54 }
 0x628   : > { %v3673_v50 = vpop.f32.mrf.mxu0 }
 0x629   : > { %3970 = vmatmul.bf16.gmra.mxu1 %v3840_v47  ;;  %v3674_v1 = vadd.f32 %v11908_v29, %v3673_v50  ;;  %v4072_v45 = vmax.f32 %v3932_v49, 0.0 }
 0x62b   : > { %v12057_v51 = vadd.f32 %v3674_v1, %v11807_v44 }
 0x62d   : > { %v3819_v52 = vmax.f32 %v12057_v51, 0.0 }
 0x62e   : > { %v3933_v59 = vpop.f32.mrf.mxu1 }
 0x62f   : > { %v3934_v23 = vadd.f32 %v12036_v61, %v3933_v59 }
 0x630   : > { %v3675_v36 = vpop.f32.mrf.mxu0 }
 0x631   : > { %v4073_v26 = vmax.f32 %v3934_v23, 0.0  ;;  %v3676_v6 = vadd.f32 %v11908_v29, %v3675_v36 }
 0x633   : > { %v12061_v20 = vadd.f32 %v3676_v6, %v11812_v46  ;;  %v4103_v19 = vpack.c.bf16 %v4073_v26, %v4072_v45 }
 0x635   : > { %v3820_v41 = vmax.f32 %v12061_v20, 0.0  ;;  %4201 = vmatmul.bf16.gmra.mxu2 %v4103_v19 }
 0x636   : > { %v3936_v56 = vpop.f32.mrf.mxu1 }
 0x637   : > { %v3841_v13 = vpack.c.bf16 %v3820_v41, %v3819_v52  ;;  %v3937_v57 = vadd.f32 %v12036_v61, %v3936_v56 }
 0x638   : > { %v3678_v24 = vpop.f32.mrf.mxu0 }
 0x639   : > { %3975 = vmatmul.bf16.gmra.mxu1 %v3841_v13  ;;  %v3679_v44 = vadd.f32 %v11908_v29, %v3678_v24  ;;  %v4074_v60 = vmax.f32 %v3937_v57, 0.0 }
 0x63b   : > { %v12072_v34 = vadd.f32 %v3679_v44, %v11822_v18 }
 0x63d   : > { %v3821_v54 = vmax.f32 %v12072_v34, 0.0 }
 0x63e   : > { %v3938_v46 = vpop.f32.mrf.mxu1 }
 0x63f   : > { %v3939_v7 = vadd.f32 %v12036_v61, %v3938_v46  ;;  %v9764_v46 = vld [vmem:[%s14435_s12 + $0x10] sm:$0xff] }
 0x640   : > { %v3680_v16 = vpop.f32.mrf.mxu0  ;;  %4477 = vmatpush.bf16.msrb.mxu3 %v9764_v46 }
 0x641   : > { %v4075_v43 = vmax.f32 %v3939_v7, 0.0  ;;  %v3681_v28 = vadd.f32 %v11908_v29, %v3680_v16 }
 0x643   : > { %v12076_v39 = vadd.f32 %v3681_v28, %v11827_v37  ;;  %v4104_v48 = vpack.c.bf16 %v4075_v43, %v4074_v60 }
 0x645   : > { %v3822_v47 = vmax.f32 %v12076_v39, 0.0  ;;  %4206 = vmatmul.bf16.gmra.mxu2 %v4104_v48 }
 0x646   : > { %v3941_v50 = vpop.f32.mrf.mxu1 }
 0x647   : > { %v3842_v49 = vpack.c.bf16 %v3822_v47, %v3821_v54  ;;  %v3942_v59 = vadd.f32 %v12036_v61, %v3941_v50 }
 0x648   : > { %v3683_v1 = vpop.f32.mrf.mxu0 }
 0x649   : > { %3980 = vmatmul.bf16.gmra.mxu1 %v3842_v49  ;;  %v3684_v18 = vadd.f32 %v11908_v29, %v3683_v1  ;;  %v4076_v37 = vmax.f32 %v3942_v59, 0.0 }
 0x64b   : > { %v12084_v26 = vadd.f32 %v3684_v18, %v11837_v40 }
 0x64d   : > { %v3823_v56 = vmax.f32 %v12084_v26, 0.0 }
 0x64e   : > { %v3943_v23 = vpop.f32.mrf.mxu1 }
 0x64f   : > { %v3944_v36 = vadd.f32 %v12036_v61, %v3943_v23 }
 0x650   : > { %v3685_v45 = vpop.f32.mrf.mxu0 }
 0x651   : > { %v4077_v6 = vmax.f32 %v3944_v36, 0.0  ;;  %v3686_v19 = vadd.f32 %v11908_v29, %v3685_v45 }
 0x653   : > { %v12088_v52 = vadd.f32 %v3686_v19, %v11842_v27  ;;  %v4105_v41 = vpack.c.bf16 %v4077_v6, %v4076_v37 }
 0x655   : > { %v3824_v13 = vmax.f32 %v12088_v52, 0.0  ;;  %4211 = vmatmul.bf16.gmra.mxu2 %v4105_v41 }
 0x656   : > { %v3946_v24 = vpop.f32.mrf.mxu1 }
 0x657   : > { %v3843_v57 = vpack.c.bf16 %v3824_v13, %v3823_v56  ;;  %v3947_v38 = vadd.f32 %v12036_v61, %v3946_v24 }
 0x658   : > { %v3688_v44 = vpop.f32.mrf.mxu0 }
 0x659   : > { %3985 = vmatmul.bf16.gmra.mxu1 %v3843_v57  ;;  %v3689_v40 = vadd.f32 %v11908_v29, %v3688_v44  ;;  %v4078_v60 = vmax.f32 %v3947_v38, 0.0 }
 0x65b   : > { %v12099_v43 = vadd.f32 %v3689_v40, %v11852_v53 }
 0x65d   : > { %v3825_v50 = vmax.f32 %v12099_v43, 0.0 }
 0x65e   : > { %v3948_v27 = vpop.f32.mrf.mxu1 }
 0x65f   : > { %v3949_v7 = vadd.f32 %v12036_v61, %v3948_v27 }
 0x660   : > { %v3690_v16 = vpop.f32.mrf.mxu0 }
 0x661   : > { %v4079_v28 = vmax.f32 %v3949_v7, 0.0  ;;  %v3691_v48 = vadd.f32 %v11908_v29, %v3690_v16 }
 0x663   : > { %v12103_v54 = vadd.f32 %v3691_v48, %v11857_v21  ;;  %v4106_v47 = vpack.c.bf16 %v4079_v28, %v4078_v60 }
 0x665   : > { %v3826_v49 = vmax.f32 %v12103_v54, 0.0  ;;  %4216 = vmatmul.bf16.gmra.mxu2 %v4106_v47 }
 0x666   : > { %v3951_v1 = vpop.f32.mrf.mxu1 }
 0x667   : > { %v3844_v59 = vpack.c.bf16 %v3826_v49, %v3825_v50  ;;  %v3952_v23 = vadd.f32 %v12036_v61, %v3951_v1 }
 0x668   : > { %v3693_v18 = vpop.f32.mrf.mxu0 }
 0x669   : > { %3990 = vmatmul.bf16.gmra.mxu1 %v3844_v59  ;;  %v3694_v53 = vadd.f32 %v11908_v29, %v3693_v18  ;;  %v4080_v21 = vmax.f32 %v3952_v23, 0.0 }
 0x66b   : > { %v12111_v6 = vadd.f32 %v3694_v53, %v11867_v2  ;;  %v9763_v2 = vld [vmem:[%s14435_s12 + $0x8] sm:$0xff] }
 0x66c   : > { %4478 = vmatpush.bf16.msrb.mxu3 %v9763_v2  ;;  %v9857_v2 = vld [vmem:[%s14431_s8 + $0x38] sm:$0xff] }
 0x66d   : > { %v3827_v24 = vmax.f32 %v12111_v6, 0.0  ;;  %5571 = vmatpush.bf16.msrb.mxu1 %v9857_v2 }
 0x66e   : > { %v3953_v36 = vpop.f32.mrf.mxu1 }
 0x66f   : > { %v3954_v45 = vadd.f32 %v12036_v61, %v3953_v36  ;;  %v4642_v36 = vld [vmem:[%s10088_s30 + $0x100] sm:$0xff] }
 0x670   : > { %v3695_v37 = vpop.f32.mrf.mxu0 }
 0x671   : > { %v4081_v19 = vmax.f32 %v3954_v45, 0.0  ;;  %v3696_v41 = vadd.f32 %v11908_v29, %v3695_v37  ;;  %v4643_v45 = vld [vmem:[%s10088_s30 + $0x108] sm:$0xff] }
 0x673   : > { %v12115_v56 = vadd.f32 %v3696_v41, %v11872_v62  ;;  %v4107_v13 = vpack.c.bf16 %v4081_v19, %v4080_v21  ;;  %v4594_v19 = vld [vmem:[%s10094_s17 + $0x100] sm:$0xff]  ;;  %v4595_v41 = vld [vmem:[%s10094_s17 + $0x108] sm:$0xff] }
 0x675   : > { %v3828_v57 = vmax.f32 %v12115_v56, 0.0  ;;  %4221 = vmatmul.bf16.gmra.mxu2 %v4107_v13 }
 0x676   : > { %v3956_v44 = vpop.f32.mrf.mxu1 }
 0x677   : > { %v3845_v38 = vpack.c.bf16 %v3828_v57, %v3827_v24  ;;  %v3957_v46 = vadd.f32 %v12036_v61, %v3956_v44  ;;  %v9762_v24 = vld [vmem:[%s14435_s12] sm:$0xff]  ;;  %v4626_v57 = vpack.c.bf16 %v4595_v41, %v4594_v19 }
 0x678   : > { %v3698_v40 = vpop.f32.mrf.mxu0  ;;  %4479 = vmatpush.bf16.msrb.mxu3 %v9762_v24 }
 0x679   : > { %3995 = vmatmul.bf16.gmra.mxu1 %v3845_v38  ;;  %v3699_v62 = vadd.f32 %v11908_v29, %v3698_v40  ;;  %v4082_v60 = vmax.f32 %v3957_v46, 0.0  ;;  %v14533_v38 = vld [vmem:[#allocation5_spill] sm:$0xff] }
 0x67b   : > { %v12126_v28 = vadd.f32 %v3699_v62, %v11885_v30  ;;  %v4644_v62 = vld [vmem:[%s10088_s30 + $0x110] sm:$0xff] }
 0x67c   : > { %5188 = vmatpush.bf16.msra.mxu3 %v14533_v38  ;;  %v4599_v38 = vld [vmem:[%s10094_s17 + $0x128] sm:$0xff] }
 0x67d   : > { %v3829_v1 = vmax.f32 %v12126_v28, 0.0 }
 0x67e   : > { %v3958_v27 = vpop.f32.mrf.mxu1 }
 0x67f   : > { %v3959_v7 = vadd.f32 %v12036_v61, %v3958_v27  ;;  %v4645_v27 = vld [vmem:[%s10088_s30 + $0x118] sm:$0xff] }
 0x680   : > { %v3700_v16 = vpop.f32.mrf.mxu0 }
 0x681   : > { %v4083_v48 = vmax.f32 %v3959_v7, 0.0  ;;  %v3701_v47 = vadd.f32 %v11908_v29, %v3700_v16  ;;  %v4675_v16 = vpack.c.bf16 %v4645_v27, %v4644_v62 }
 0x683   : > { %v12130_v50 = vadd.f32 %v3701_v47, %v11890_v11  ;;  %v4108_v49 = vpack.c.bf16 %v4083_v48, %v4082_v60  ;;  %v4674_v11 = vpack.c.bf16 %v4643_v45, %v4642_v36  ;;  %v4596_v47 = vld [vmem:[%s10094_s17 + $0x110] sm:$0xff] }
 0x685   : > { %v3830_v59 = vmax.f32 %v12130_v50, 0.0  ;;  %4226 = vmatmul.bf16.gmra.mxu2 %v4108_v49  ;;  %9219 = vmatmul.msk.bf16.vlgmr.msra.gmra.mxu0 %vm693_vm0, %v4674_v11  ;;  %v4597_v49 = vld [vmem:[%s10094_s17 + $0x118] sm:$0xff]  ;;  %v4647_v11 = vld [vmem:[%s10088_s30 + $0x128] sm:$0xff] }
 0x686   : > { %v3961_v18 = vpop.f32.mrf.mxu1 }
 0x687   : > { %v3846_v23 = vpack.c.bf16 %v3830_v59, %v3829_v1  ;;  %v3962_v30 = vadd.f32 %v12036_v61, %v3961_v18  ;;  %v4627_v59 = vpack.c.bf16 %v4597_v49, %v4596_v47  ;;  %v4648_v49 = vld [vmem:[%s10088_s30 + $0x130] sm:$0xff] }
 0x689   : > { %4000 = vmatmul.bf16.gmra.mxu1 %v3846_v23  ;;  %v4084_v37 = vmax.f32 %v3962_v30, 0.0  ;;  %v12159_v30 = vld [vmem:[%s14434_s11 + $0x4] ss:$0 sm:$0xff] }
 0x68e   : > { %v3963_v53 = vpop.f32.mrf.mxu1 }
 0x68f   : > { %v3964_v29 = vadd.f32 %v12036_v61, %v3963_v53 }
 0x691   : > { %v4085_v21 = vmax.f32 %v3964_v29, 0.0  ;;  %v4646_v29 = vld [vmem:[%s10088_s30 + $0x120] sm:$0xff] }
 0x693   : > { %v4109_v13 = vpack.c.bf16 %v4085_v21, %v4084_v37  ;;  %v4676_v21 = vpack.c.bf16 %v4647_v11, %v4646_v29  ;;  %v4600_v11 = vld [vmem:[%s10094_s17 + $0x130] sm:$0xff] }
 0x695   : > { %4231 = vmatmul.bf16.gmra.mxu2 %v4109_v13  ;;  %9220 = vmatmul.msk.bf16.gmra.mxu0 %vm693_vm0, %v4675_v16 }
 0x696   : > { %v3966_v44 = vpop.f32.mrf.mxu1 }
 0x697   : > { %v3967_v40 = vadd.f32 %v12036_v61, %v3966_v44  ;;  %v4598_v44 = vld [vmem:[%s10094_s17 + $0x120] sm:$0xff] }
 0x698   : > { %v4628_v27 = vpack.c.bf16 %v4599_v38, %v4598_v44 }
 0x699   : > { %9235 = vmatmul.msk.bf16.vlgmr.msra.gmra.mxu1 %vm693_vm0, %v4626_v57  ;;  %v4086_v60 = vmax.f32 %v3967_v40, 0.0 }
 0x69e   : > { %v3968_v46 = vpop.f32.mrf.mxu1 }
 0x69f   : > { %v3969_v7 = vadd.f32 %v12036_v61, %v3968_v46 }
 0x6a1   : > { %v4087_v48 = vmax.f32 %v3969_v7, 0.0 }
 0x6a3   : > { %v4110_v1 = vpack.c.bf16 %v4087_v48, %v4086_v60 }
 0x6a5   : > { %4236 = vmatmul.bf16.gmra.mxu2 %v4110_v1  ;;  %9221 = vmatmul.msk.bf16.gmra.mxu0 %vm693_vm0, %v4676_v21  ;;  %v4649_v1 = vld [vmem:[%s10088_s30 + $0x138] sm:$0xff] }
 0x6a6   : > { %v3971_v18 = vpop.f32.mrf.mxu1 }
 0x6a7   : > { %v3972_v53 = vadd.f32 %v12036_v61, %v3971_v18  ;;  %v4677_v18 = vpack.c.bf16 %v4649_v1, %v4648_v49 }
 0x6a8   : > { %v4197_v23 = vpop.f32.mrf.mxu2 }
 0x6a9   : > { %9236 = vmatmul.msk.bf16.gmra.mxu1 %vm693_vm0, %v4627_v59  ;;  %v4198_v36 = vadd.f32 %v12159_v30, %v4197_v23  ;;  %v4088_v41 = vmax.f32 %v3972_v53, 0.0 }
 0x6ab   : > { %v4277_v13 = vadd.f32 %v4198_v36, %v11912_v42 }
 0x6ad   : > { %v4373_v46 = vmax.f32 %v4277_v13, 0.0 }
 0x6ae   : > { %v3973_v45 = vpop.f32.mrf.mxu1 }
 0x6af   : > { %v3974_v37 = vadd.f32 %v12036_v61, %v3973_v45 }
 0x6b0   : > { %v4199_v19 = vpop.f32.mrf.mxu2 }
 0x6b1   : > { %v4089_v24 = vmax.f32 %v3974_v37, 0.0  ;;  %v4200_v57 = vadd.f32 %v12159_v30, %v4199_v19  ;;  %v4601_v37 = vld [vmem:[%s10094_s17 + $0x138] sm:$0xff] }
 0x6b3   : > { %v4278_v40 = vadd.f32 %v4200_v57, %v11917_v12  ;;  %v4111_v2 = vpack.c.bf16 %v4089_v24, %v4088_v41  ;;  %v9856_v12 = vld [vmem:[%s14431_s8 + $0x30] sm:$0xff]  ;;  %v4629_v24 = vpack.c.bf16 %v4601_v37, %v4600_v11 }
 0x6b4   : > { %5572 = vmatpush.bf16.msrb.mxu1 %v9856_v12  ;;  %v4602_v12 = vld [vmem:[%s10094_s17 + $0x140] sm:$0xff]  ;;  %v4652_v37 = vld [vmem:[%s10088_s30 + $0x150] sm:$0xff] }
 0x6b5   : > { %v4374_v62 = vmax.f32 %v4278_v40, 0.0  ;;  %4241 = vmatmul.bf16.gmra.mxu2 %v4111_v2  ;;  %9222 = vmatmul.msk.bf16.gmra.mxu0 %vm693_vm0, %v4677_v18 }
 0x6b6   : > { %v3976_v7 = vpop.f32.mrf.mxu1 }
 0x6b7   : > { %v4405_v16 = vpack.c.bf16 %v4374_v62, %v4373_v46  ;;  %v3977_v42 = vadd.f32 %v12036_v61, %v3976_v7  ;;  %v4650_v46 = vld [vmem:[%s10088_s30 + $0x140] sm:$0xff] }
 0x6b8   : > { %v4202_v60 = vpop.f32.mrf.mxu2 }
 0x6b9   : > { %4480 = vmatmul.bf16.vlgmr.msrb.gmra.mxu3 %v4405_v16  ;;  %9237 = vmatmul.msk.bf16.gmra.mxu1 %vm693_vm0, %v4628_v27  ;;  %v4203_v48 = vadd.f32 %v12159_v30, %v4202_v60  ;;  %v4090_v53 = vmax.f32 %v3977_v42, 0.0 }
 0x6bb   : > { %v4279_v36 = vadd.f32 %v4203_v48, %v11924_v8 }
 0x6bd   : > { %v4375_v41 = vmax.f32 %v4279_v36, 0.0 }
 0x6be   : > { %v3978_v47 = vpop.f32.mrf.mxu1 }
 0x6bf   : > { %v3979_v59 = vadd.f32 %v12036_v61, %v3978_v47  ;;  %v4603_v47 = vld [vmem:[%s10094_s17 + $0x148] sm:$0xff] }
 0x6c0   : > { %v4204_v23 = vpop.f32.mrf.mxu2 }
 0x6c1   : > { %v4091_v45 = vmax.f32 %v3979_v59, 0.0  ;;  %v4205_v29 = vadd.f32 %v12159_v30, %v4204_v23  ;;  %v4630_v23 = vpack.c.bf16 %v4603_v47, %v4602_v12  ;;  %v4654_v12 = vld [vmem:[%s10088_s30 + $0x160] sm:$0xff] }
 0x6c3   : > { %v4280_v21 = vadd.f32 %v4205_v29, %v11929_v14  ;;  %v4112_v19 = vpack.c.bf16 %v4091_v45, %v4090_v53  ;;  %v4651_v14 = vld [vmem:[%s10088_s30 + $0x148] sm:$0xff] }
 0x6c4   : > { %v4678_v27 = vpack.c.bf16 %v4651_v14, %v4650_v46 }
 0x6c5   : > { %v4376_v13 = vmax.f32 %v4280_v21, 0.0  ;;  %4246 = vmatmul.bf16.gmra.mxu2 %v4112_v19  ;;  %v4653_v21 = vld [vmem:[%s10088_s30 + $0x158] sm:$0xff] }
 0x6c6   : > { %v3981_v57 = vpop.f32.mrf.mxu1  ;;  %9223 = vmatmul.msk.bf16.gmra.mxu0 %vm693_vm0, %v4678_v27 }
 0x6c7   : > { %v4406_v44 = vpack.c.bf16 %v4376_v13, %v4375_v41  ;;  %v3982_v8 = vadd.f32 %v12036_v61, %v3981_v57  ;;  %v4679_v41 = vpack.c.bf16 %v4653_v21, %v4652_v37 }
 0x6c8   : > { %v4207_v38 = vpop.f32.mrf.mxu2 }
 0x6c9   : > { %4485 = vmatmul.bf16.gmra.mxu3 %v4406_v44  ;;  %9238 = vmatmul.msk.bf16.gmra.mxu1 %vm693_vm0, %v4629_v24  ;;  %v4208_v40 = vadd.f32 %v12159_v30, %v4207_v38  ;;  %v4092_v16 = vmax.f32 %v3982_v8, 0.0  ;;  %v4604_v8 = vld [vmem:[%s10094_s17 + $0x150] sm:$0xff] }
 0x6cb   : > { %v4281_v60 = vadd.f32 %v4208_v40, %v11939_v15  ;;  %v4605_v40 = vld [vmem:[%s10094_s17 + $0x158] sm:$0xff] }
 0x6cc   : > { %v4631_v27 = vpack.c.bf16 %v4605_v40, %v4604_v8 }
 0x6cd   : > { %v4377_v59 = vmax.f32 %v4281_v60, 0.0 }
 0x6ce   : > { %v3983_v2 = vpop.f32.mrf.mxu1 }
 0x6cf   : > { %v3984_v62 = vadd.f32 %v12036_v61, %v3983_v2 }
 0x6d0   : > { %v4209_v7 = vpop.f32.mrf.mxu2 }
 0x6d1   : > { %v4093_v42 = vmax.f32 %v3984_v62, 0.0  ;;  %v4210_v48 = vadd.f32 %v12159_v30, %v4209_v7 }
 0x6d3   : > { %v4282_v49 = vadd.f32 %v4210_v48, %v11944_v5  ;;  %v4113_v1 = vpack.c.bf16 %v4093_v42, %v4092_v16  ;;  %v9855_v5 = vld [vmem:[%s14431_s8 + $0x28] sm:$0xff] }
 0x6d4   : > { %5573 = vmatpush.bf16.msrb.mxu1 %v9855_v5 }
 0x6d5   : > { %v4378_v18 = vmax.f32 %v4282_v49, 0.0  ;;  %4251 = vmatmul.bf16.gmra.mxu2 %v4113_v1 }
 0x6d6   : > { %v3986_v53 = vpop.f32.mrf.mxu1  ;;  %9224 = vmatmul.msk.bf16.gmra.mxu0 %vm693_vm0, %v4679_v41 }
 0x6d7   : > { %v4407_v36 = vpack.c.bf16 %v4378_v18, %v4377_v59  ;;  %v3987_v15 = vadd.f32 %v12036_v61, %v3986_v53 }
 0x6d8   : > { %v4212_v45 = vpop.f32.mrf.mxu2 }
 0x6d9   : > { %4490 = vmatmul.bf16.gmra.mxu3 %v4407_v36  ;;  %9239 = vmatmul.msk.bf16.gmra.mxu1 %vm693_vm0, %v4630_v23  ;;  %v4213_v29 = vadd.f32 %v12159_v30, %v4212_v45  ;;  %v4094_v24 = vmax.f32 %v3987_v15, 0.0  ;;  %v4606_v36 = vld [vmem:[%s10094_s17 + $0x160] sm:$0xff]  ;;  %v4607_v45 = vld [vmem:[%s10094_s17 + $0x168] sm:$0xff] }
 0x6da   : > { %v4632_v37 = vpack.c.bf16 %v4607_v45, %v4606_v36 }
 0x6db   : > { %v4283_v57 = vadd.f32 %v4213_v29, %v11954_v9 }
 0x6dd   : > { %v4379_v14 = vmax.f32 %v4283_v57, 0.0  ;;  %v4656_v57 = vld [vmem:[%s10088_s30 + $0x170] sm:$0xff] }
 0x6de   : > { %v3988_v11 = vpop.f32.mrf.mxu1 }
 0x6df   : > { %v3989_v19 = vadd.f32 %v12036_v61, %v3988_v11 }
 0x6e0   : > { %v4214_v13 = vpop.f32.mrf.mxu2 }
 0x6e1   : > { %v4095_v44 = vmax.f32 %v3989_v19, 0.0  ;;  %v4215_v38 = vadd.f32 %v12159_v30, %v4214_v13 }
 0x6e3   : > { %v4284_v2 = vadd.f32 %v4215_v38, %v11959_v4  ;;  %v4114_v46 = vpack.c.bf16 %v4095_v44, %v4094_v24  ;;  %v4655_v4 = vld [vmem:[%s10088_s30 + $0x168] sm:$0xff]  ;;  %v4657_v44 = vld [vmem:[%s10088_s30 + $0x178] sm:$0xff] }
 0x6e4   : > { %v4680_v49 = vpack.c.bf16 %v4655_v4, %v4654_v12  ;;  %v4681_v8 = vpack.c.bf16 %v4657_v44, %v4656_v57 }
 0x6e5   : > { %v4380_v62 = vmax.f32 %v4284_v2, 0.0  ;;  %4256 = vmatmul.bf16.gmra.mxu2 %v4114_v46 }
 0x6e6   : > { %v3991_v7 = vpop.f32.mrf.mxu1  ;;  %9225 = vmatmul.msk.bf16.gmra.mxu0 %vm693_vm0, %v4680_v49 }
 0x6e7   : > { %v4408_v16 = vpack.c.bf16 %v4380_v62, %v4379_v14  ;;  %v3992_v9 = vadd.f32 %v12036_v61, %v3991_v7  ;;  %v4609_v7 = vld [vmem:[%s10094_s17 + $0x178] sm:$0xff] }
 0x6e8   : > { %v4217_v60 = vpop.f32.mrf.mxu2 }
 0x6e9   : > { %4495 = vmatmul.bf16.gmra.mxu3 %v4408_v16  ;;  %9240 = vmatmul.msk.bf16.gmra.mxu1 %vm693_vm0, %v4631_v27  ;;  %v4218_v42 = vadd.f32 %v12159_v30, %v4217_v60  ;;  %v4096_v59 = vmax.f32 %v3992_v9, 0.0  ;;  %v4608_v27 = vld [vmem:[%s10094_s17 + $0x170] sm:$0xff] }
 0x6eb   : > { %v4285_v18 = vadd.f32 %v4218_v42, %v11969_v63 }
 0x6ed   : > { %v4381_v5 = vmax.f32 %v4285_v18, 0.0  ;;  %v4659_v18 = vld [vmem:[%s10088_s30 + $0x188] sm:$0xff] }
 0x6ee   : > { %v3993_v48 = vpop.f32.mrf.mxu1 }
 0x6ef   : > { %v3994_v47 = vadd.f32 %v12036_v61, %v3993_v48  ;;  %v4633_v48 = vpack.c.bf16 %v4609_v7, %v4608_v27 }
 0x6f0   : > { %v4219_v1 = vpop.f32.mrf.mxu2 }
 0x6f1   : > { %v4097_v23 = vmax.f32 %v3994_v47, 0.0  ;;  %v4220_v53 = vadd.f32 %v12159_v30, %v4219_v1 }
 0x6f3   : > { %v4286_v15 = vadd.f32 %v4220_v53, %v11974_v35  ;;  %v4115_v29 = vpack.c.bf16 %v4097_v23, %v4096_v59  ;;  %v9854_v35 = vld [vmem:[%s14431_s8 + $0x20] sm:$0xff] }
 0x6f4   : > { %5574 = vmatpush.bf16.msrb.mxu1 %v9854_v35  ;;  %v4658_v59 = vld [vmem:[%s10088_s30 + $0x180] sm:$0xff] }
 0x6f5   : > { %v4382_v11 = vmax.f32 %v4286_v15, 0.0  ;;  %4261 = vmatmul.bf16.gmra.mxu2 %v4115_v29  ;;  %v4682_v53 = vpack.c.bf16 %v4659_v18, %v4658_v59  ;;  %v9865_v59 = vld [vmem:[%s14433_s10 + $0x38] sm:$0xff] }
 0x6f6   : > { %v3996_v21 = vpop.f32.mrf.mxu1  ;;  %9226 = vmatmul.msk.bf16.gmra.mxu0 %vm693_vm0, %v4681_v8  ;;  %v4691_v8 = vld [vmem:[%s10103_s20 + $0x108] sm:$0xff]  ;;  %5840 = vmatpush.bf16.msrb.mxu2 %v9865_v59  ;;  %v4617_v59 = vld [vmem:[%s10094_s17 + $0x1b8] sm:$0xff] }
 0x6f7   : > { %v4409_v19 = vpack.c.bf16 %v4382_v11, %v4381_v5  ;;  %v3997_v63 = vadd.f32 %v12036_v61, %v3996_v21  ;;  %v4610_v11 = vld [vmem:[%s10094_s17 + $0x180] sm:$0xff] }
 0x6f8   : > { %v4222_v41 = vpop.f32.mrf.mxu2 }
 0x6f9   : > { %4500 = vmatmul.bf16.gmra.mxu3 %v4409_v19  ;;  %9241 = vmatmul.msk.bf16.gmra.mxu1 %vm693_vm0, %v4632_v37  ;;  %v4223_v13 = vadd.f32 %v12159_v30, %v4222_v41  ;;  %v4098_v2 = vmax.f32 %v3997_v63, 0.0  ;;  %v4611_v37 = vld [vmem:[%s10094_s17 + $0x188] sm:$0xff] }
 0x6fb   : > { %v4287_v46 = vadd.f32 %v4223_v13, %v11984_v0 }
 0x6fd   : > { %v4383_v9 = vmax.f32 %v4287_v46, 0.0  ;;  %v4660_v46 = vld [vmem:[%s10088_s30 + $0x190] sm:$0xff] }
 0x6fe   : > { %v3998_v24 = vpop.f32.mrf.mxu1 }
 0x6ff   : > { %v3999_v38 = vadd.f32 %v12036_v61, %v3998_v24 }
 0x700   : > { %v4224_v40 = vpop.f32.mrf.mxu2 }
 0x701   : > { %v4099_v14 = vmax.f32 %v3999_v38, 0.0  ;;  %v4225_v62 = vadd.f32 %v12159_v30, %v4224_v40  ;;  %v9853_v38 = vld [vmem:[%s14431_s8 + $0x18] sm:$0xff] }
 0x702   : > { %5575 = vmatpush.bf16.msrb.mxu1 %v9853_v38 }
 0x703   : > { %v4288_v16 = vadd.f32 %v4225_v62, %v11989_v31  ;;  %v4116_v60 = vpack.c.bf16 %v4099_v14, %v4098_v2  ;;  %v4795_v31 = vpop.f32.mrf.mxu0  ;;  %v4661_v14 = vld [vmem:[%s10088_s30 + $0x198] sm:$0xff] }
 0x704   : > { %v4683_v27 = vpack.c.bf16 %v4661_v14, %v4660_v46  ;;  %v4694_v14 = vld [vmem:[%s10103_s20 + $0x120] sm:$0xff] }
 0x705   : > { %v4384_v42 = vmax.f32 %v4288_v16, 0.0  ;;  %4266 = vmatmul.bf16.gmra.mxu2 %v4116_v60 }
 0x706   : > { %v4001_v12 = vpop.f32.mrf.mxu1  ;;  %9227 = vmatmul.msk.bf16.gmra.mxu0 %vm693_vm0, %v4682_v53  ;;  %v4693_v53 = vld [vmem:[%s10103_s20 + $0x118] sm:$0xff] }
 0x707   : > { %v4410_v4 = vpack.c.bf16 %v4384_v42, %v4383_v9  ;;  %v4002_v0 = vadd.f32 %v12036_v61, %v4001_v12  ;;  %v4612_v42 = vld [vmem:[%s10094_s17 + $0x190] sm:$0xff] }
 0x708   : > { %v4227_v47 = vpop.f32.mrf.mxu2 }
 0x709   : > { %4505 = vmatmul.bf16.gmra.mxu3 %v4410_v4  ;;  %9242 = vmatmul.msk.bf16.gmra.mxu1 %vm693_vm0, %v4633_v48  ;;  %v4228_v49 = vadd.f32 %v12159_v30, %v4227_v47  ;;  %v4100_v45 = vmax.f32 %v4002_v0, 0.0  ;;  %v4613_v48 = vld [vmem:[%s10094_s17 + $0x198] sm:$0xff] }
 0x70a   : > { %v4635_v0 = vpack.c.bf16 %v4613_v48, %v4612_v42  ;;  %v4664_v42 = vld [vmem:[%s10088_s30 + $0x1b0] sm:$0xff]  ;;  %v4665_v48 = vld [vmem:[%s10088_s30 + $0x1b8] sm:$0xff] }
 0x70b   : > { %v4289_v15 = vadd.f32 %v4228_v49, %v12000_v17  ;;  %v4797_v17 = vpop.f32.mrf.mxu0 }
 0x70d   : > { %v4385_v41 = vmax.f32 %v4289_v15, 0.0  ;;  %v4662_v15 = vld [vmem:[%s10088_s30 + $0x1a0] sm:$0xff] }
 0x70e   : > { %v4003_v1 = vpop.f32.mrf.mxu1 }
 0x70f   : > { %v4004_v23 = vadd.f32 %v12036_v61, %v4003_v1  ;;  %v4634_v61 = vpack.c.bf16 %v4611_v37, %v4610_v11 }
 0x710   : > { %v4229_v36 = vpop.f32.mrf.mxu2 }
 0x711   : > { %v4101_v29 = vmax.f32 %v4004_v23, 0.0  ;;  %v4230_v5 = vadd.f32 %v12159_v30, %v4229_v36  ;;  %v4692_v23 = vld [vmem:[%s10103_s20 + $0x110] sm:$0xff] }
 0x713   : > { %v4290_v21 = vadd.f32 %v4230_v5, %v12005_v25  ;;  %v4117_v19 = vpack.c.bf16 %v4101_v29, %v4100_v45  ;;  %v4690_v25 = vld [vmem:[%s10103_s20 + $0x100] sm:$0xff]  ;;  %v4800_v2 = vpop.f32.mrf.mxu0  ;;  %v4663_v29 = vld [vmem:[%s10088_s30 + $0x1a8] sm:$0xff] }
 0x714   : > { %v12269_v9 = vpack.c.bf16 %v4691_v8, %v4690_v25  ;;  %v4684_v11 = vpack.c.bf16 %v4663_v29, %v4662_v15 }
 0x715   : > { %v4386_v63 = vmax.f32 %v4290_v21, 0.0  ;;  %4271 = vmatmul.bf16.gmra.mxu2 %v4117_v19 }
 0x716   : > { %v4932_v13 = vpop.f32.mrf.mxu1  ;;  %9228 = vmatmul.msk.bf16.gmra.mxu0 %vm693_vm0, %v4683_v27  ;;  %v9852_v27 = vld [vmem:[%s14431_s8 + $0x10] sm:$0xff] }
 0x717   : > { %v4411_v35 = vpack.c.bf16 %v4386_v63, %v4385_v41  ;;  %v12254_v24 = vadd.f32 %v4932_v13, %v4795_v31  ;;  %v12292_v41 = vpack.c.bf16 %v4693_v53, %v4692_v23  ;;  %v4614_v63 = vld [vmem:[%s10094_s17 + $0x1a0] sm:$0xff]  ;;  %5576 = vmatpush.bf16.msrb.mxu1 %v9852_v27  ;;  %v4619_v27 = vld [vmem:[%s10094_s17 + $0x1c8] sm:$0xff] }
 0x718   : > { %v4232_v57 = vpop.f32.mrf.mxu2 }
 0x719   : > { %4510 = vmatmul.bf16.gmra.mxu3 %v4411_v35  ;;  %9243 = vmatmul.msk.bf16.gmra.mxu1 %vm693_vm0, %v4634_v61  ;;  %v4233_v44 = vadd.f32 %v12159_v30, %v4232_v57  ;;  %v4615_v61 = vld [vmem:[%s10094_s17 + $0x1a8] sm:$0xff] }
 0x71a   : > { %v4636_v57 = vpack.c.bf16 %v4615_v61, %v4614_v63  ;;  %v4696_v61 = vld [vmem:[%s10103_s20 + $0x130] sm:$0xff] }
 0x71b   : > { %v4291_v16 = vadd.f32 %v4233_v44, %v12015_v58  ;;  %v4802_v49 = vpop.f32.mrf.mxu0 }
 0x71d   : > { %v4387_v4 = vmax.f32 %v4291_v16, 0.0 }
 0x71e   : > { %v4934_v40 = vpop.f32.mrf.mxu1 }
 0x71f   : > { %v12265_v62 = vadd.f32 %v4934_v40, %v4797_v17 }
 0x720   : > { %v4234_v7 = vpop.f32.mrf.mxu2 }
 0x721   : > { %v4235_v60 = vadd.f32 %v12159_v30, %v4234_v7  ;;  %v4695_v7 = vld [vmem:[%s10103_s20 + $0x128] sm:$0xff] }
 0x723   : > { %v4292_v12 = vadd.f32 %v4235_v60, %v12019_v3  ;;  %v4805_v45 = vpop.f32.mrf.mxu0 }
 0x725   : > { %v4388_v47 = vmax.f32 %v4292_v12, 0.0  ;;  %9251 = vmatmul.msk.bf16.vlgmr.msra.gmra.mxu2 %vm693_vm0, %v12269_v9 }
 0x726   : > { %v4937_v58 = vpop.f32.mrf.mxu1  ;;  %9229 = vmatmul.msk.bf16.gmra.mxu0 %vm693_vm0, %v4684_v11  ;;  %v9864_v11 = vld [vmem:[%s14433_s10 + $0x30] sm:$0xff] }
 0x727   : > { %v4412_v1 = vpack.c.bf16 %v4388_v47, %v4387_v4  ;;  %v12277_v31 = vadd.f32 %v4937_v58, %v4800_v2  ;;  %v4685_v4 = vpack.c.bf16 %v4665_v48, %v4664_v42  ;;  %5841 = vmatpush.bf16.msrb.mxu2 %v9864_v11 }
 0x728   : > { %v4237_v18 = vpop.f32.mrf.mxu2 }
 0x729   : > { %4515 = vmatmul.bf16.gmra.mxu3 %v4412_v1  ;;  %9244 = vmatmul.msk.bf16.gmra.mxu1 %vm693_vm0, %v4635_v0  ;;  %v4238_v3 = vadd.f32 %v12159_v30, %v4237_v18  ;;  %v4616_v1 = vld [vmem:[%s10094_s17 + $0x1b0] sm:$0xff] }
 0x72b   : > { %v4293_v21 = vadd.f32 %v4238_v3, %v12025_v22  ;;  %v4807_v44 = vpop.f32.mrf.mxu0 }
 0x72d   : > { %v4389_v17 = vmax.f32 %v4293_v21, 0.0 }
 0x72e   : > { %v4939_v36 = vpop.f32.mrf.mxu1 }
 0x72f   : > { %v12288_v5 = vadd.f32 %v4939_v36, %v4802_v49  ;;  %v12329_v49 = vpack.c.bf16 %v4695_v7, %v4694_v14  ;;  %v4618_v14 = vld [vmem:[%s10094_s17 + $0x1c0] sm:$0xff] }
 0x730   : > { %v4239_v37 = vpop.f32.mrf.mxu2 }
 0x731   : > { %v4240_v19 = vadd.f32 %v12159_v30, %v4239_v37 }
 0x733   : > { %v4294_v13 = vadd.f32 %v4240_v19, %v12029_v10  ;;  %v12305_v10 = vld [vmem:[%s14436_s13] ss:$0 sm:$0xff]  ;;  %v4810_v60 = vpop.f32.mrf.mxu0 }
 0x735   : > { %v4390_v35 = vmax.f32 %v4294_v13, 0.0  ;;  %9252 = vmatmul.msk.bf16.gmra.mxu2 %vm693_vm0, %v12292_v41  ;;  %v4697_v13 = vld [vmem:[%s10103_s20 + $0x138] sm:$0xff] }
 0x736   : > { %v4942_v22 = vpop.f32.mrf.mxu1  ;;  %9230 = vmatmul.msk.bf16.gmra.mxu0 %vm693_vm0, %v4685_v4 }
 0x737   : > { %v4413_v25 = vpack.c.bf16 %v4390_v35, %v4389_v17  ;;  %v12300_v38 = vadd.f32 %v4942_v22, %v4805_v45  ;;  %v4667_v22 = vld [vmem:[%s10088_s30 + $0x1c8] sm:$0xff] }
 0x738   : > { %v4242_v8 = vpop.f32.mrf.mxu2 }
 0x739   : > { %4520 = vmatmul.bf16.gmra.mxu3 %v4413_v25  ;;  %9245 = vmatmul.msk.bf16.gmra.mxu1 %vm693_vm0, %v4636_v57  ;;  %v4243_v2 = vadd.f32 %v12159_v30, %v4242_v8  ;;  %v4666_v57 = vld [vmem:[%s10088_s30 + $0x1c0] sm:$0xff] }
 0x73a   : > { %v4686_v25 = vpack.c.bf16 %v4667_v22, %v4666_v57 }
 0x73b   : > { %v4295_v0 = vadd.f32 %v4243_v2, %v12045_v32  ;;  %v4637_v32 = vpack.c.bf16 %v4617_v59, %v4616_v1  ;;  %v4812_v15 = vpop.f32.mrf.mxu0 }
 0x73c   : > { %v4481_v40 = vpop.f32.mrf.mxu3 }
 0x73d   : > { %v4482_v46 = vadd.f32 %v12305_v10, %v4481_v40  ;;  %v4391_v23 = vmax.f32 %v4295_v0, 0.0 }
 0x73e   : > { %v4944_v16 = vpop.f32.mrf.mxu1 }
 0x73f   : > { %4562 = vst.msk [vmem:[%s12312_s16] sm:$0xff] %vm4561_vm1, %v4482_v46  ;;  %v12325_v12 = vadd.f32 %v4944_v16, %v4807_v44  ;;  %v12358_v46 = vpack.c.bf16 %v4697_v13, %v4696_v61  ;;  %v4621_v61 = vld [vmem:[%s10094_s17 + $0x1d8] sm:$0xff] }
 0x740   : > { %v4244_v47 = vpop.f32.mrf.mxu2 }
 0x741   : > { %v4245_v58 = vadd.f32 %v12159_v30, %v4244_v47 }
 0x743   : > { %v4296_v18 = vadd.f32 %v4245_v58, %v12049_v33  ;;  %v4815_v35 = vpop.f32.mrf.mxu0 }
 0x744   : > { %v4483_v3 = vpop.f32.mrf.mxu3 }
 0x745   : > { %v4392_v53 = vmax.f32 %v4296_v18, 0.0  ;;  %v4484_v36 = vadd.f32 %v12305_v10, %v4483_v3  ;;  %9253 = vmatmul.msk.bf16.gmra.mxu2 %vm693_vm0, %v12329_v49  ;;  %v4698_v3 = vld [vmem:[%s10103_s20 + $0x140] sm:$0xff] }
 0x746   : > { %v4947_v45 = vpop.f32.mrf.mxu1  ;;  %9231 = vmatmul.msk.bf16.gmra.mxu0 %vm693_vm0, %v4686_v25 }
 0x747   : > { %4563 = vst.msk [vmem:[%s12312_s16 + $0x8] sm:$0xff] %vm4561_vm1, %v4484_v36  ;;  %v4414_v29 = vpack.c.bf16 %v4392_v53, %v4391_v23  ;;  %v12340_v33 = vadd.f32 %v4947_v45, %v4810_v60  ;;  %v9851_v23 = vld [vmem:[%s14431_s8 + $0x8] sm:$0xff]  ;;  %v4668_v45 = vld [vmem:[%s10088_s30 + $0x1d0] sm:$0xff] }
 0x748   : > { %v4247_v37 = vpop.f32.mrf.mxu2  ;;  %v4699_v53 = vld [vmem:[%s10103_s20 + $0x148] sm:$0xff]  ;;  %5577 = vmatpush.bf16.msrb.mxu1 %v9851_v23  ;;  %v4622_v23 = vld [vmem:[%s10094_s17 + $0x1e0] sm:$0xff] }
 0x749   : > { %4525 = vmatmul.bf16.gmra.mxu3 %v4414_v29  ;;  %9246 = vmatmul.msk.bf16.gmra.mxu1 %vm693_vm0, %v4637_v32  ;;  %v4248_v19 = vadd.f32 %v12159_v30, %v4247_v37 }
 0x74b   : > { %v4297_v40 = vadd.f32 %v4248_v19, %v12057_v51  ;;  %v4638_v51 = vpack.c.bf16 %v4619_v27, %v4618_v14  ;;  %v12367_v47 = vpop.f32.mrf.mxu0  ;;  %v12389_v19 = vpack.c.bf16 %v4699_v53, %v4698_v3  ;;  %v4623_v53 = vld [vmem:[%s10094_s17 + $0x1e8] sm:$0xff] }
 0x74c   : > { %v4486_v21 = vpop.f32.mrf.mxu3 }
 0x74d   : > { %v4487_v63 = vadd.f32 %v12305_v10, %v4486_v21  ;;  %v4393_v60 = vmax.f32 %v4297_v40, 0.0 }
 0x74e   : > { %v4949_v17 = vpop.f32.mrf.mxu1 }
 0x74f   : > { %4564 = vst.msk [vmem:[%s12312_s16 + $0x10] sm:$0xff] %vm4561_vm1, %v4487_v63  ;;  %v12354_v44 = vadd.f32 %v4949_v17, %v4812_v15  ;;  %v4669_v15 = vld [vmem:[%s10088_s30 + $0x1d8] sm:$0xff]  ;;  %v4620_v63 = vld [vmem:[%s10094_s17 + $0x1d0] sm:$0xff] }
 0x750   : > { %v4249_v8 = vpop.f32.mrf.mxu2  ;;  %v4687_v29 = vpack.c.bf16 %v4669_v15, %v4668_v45 }
 0x751   : > { %v4250_v2 = vadd.f32 %v12159_v30, %v4249_v8 }
 0x753   : > { %v4298_v7 = vadd.f32 %v4250_v2, %v12061_v20  ;;  %v4820_v32 = vpop.f32.mrf.mxu0  ;;  %v9863_v2 = vld [vmem:[%s14433_s10 + $0x28] sm:$0xff] }
 0x754   : > { %v4488_v16 = vpop.f32.mrf.mxu3  ;;  %5842 = vmatpush.bf16.msrb.mxu2 %v9863_v2  ;;  %v4672_v2 = vld [vmem:[%s10088_s30 + $0x1f0] sm:$0xff] }
 0x755   : > { %v4394_v42 = vmax.f32 %v4298_v7, 0.0  ;;  %v4489_v48 = vadd.f32 %v12305_v10, %v4488_v16  ;;  %9254 = vmatmul.msk.bf16.gmra.mxu2 %vm693_vm0, %v12358_v46 }
 0x756   : > { %v4952_v4 = vpop.f32.mrf.mxu1  ;;  %9232 = vmatmul.msk.bf16.gmra.mxu0 %vm693_vm0, %v4687_v29 }
 0x757   : > { %4565 = vst.msk [vmem:[%s12312_s16 + $0x18] sm:$0xff] %vm4561_vm1, %v4489_v48  ;;  %v4415_v20 = vpack.c.bf16 %v4394_v42, %v4393_v60  ;;  %v12371_v0 = vadd.f32 %v4952_v4, %v4815_v35  ;;  %v4700_v60 = vld [vmem:[%s10103_s20 + $0x150] sm:$0xff]  ;;  %v4701_v42 = vld [vmem:[%s10103_s20 + $0x158] sm:$0xff]  ;;  %v4670_v4 = vld [vmem:[%s10088_s30 + $0x1e0] sm:$0xff] }
 0x758   : > { %v4252_v58 = vpop.f32.mrf.mxu2  ;;  %v12420_v3 = vpack.c.bf16 %v4701_v42, %v4700_v60 }
 0x759   : > { %4530 = vmatmul.bf16.gmra.mxu3 %v4415_v20  ;;  %9247 = vmatmul.msk.bf16.gmra.mxu1 %vm693_vm0, %v4638_v51  ;;  %v4253_v59 = vadd.f32 %v12159_v30, %v4252_v58  ;;  %v4671_v20 = vld [vmem:[%s10088_s30 + $0x1e8] sm:$0xff] }
 0x75a   : > { %v4688_v58 = vpack.c.bf16 %v4671_v20, %v4670_v4  ;;  %v4625_v4 = vld [vmem:[%s10094_s17 + $0x1f8] sm:$0xff] }
 0x75b   : > { %v4299_v37 = vadd.f32 %v4253_v59, %v12072_v34  ;;  %v4639_v34 = vpack.c.bf16 %v4621_v61, %v4620_v63  ;;  %v12398_v8 = vpop.f32.mrf.mxu0 }
 0x75c   : > { %v4491_v1 = vpop.f32.mrf.mxu3 }
 0x75d   : > { %v4492_v18 = vadd.f32 %v12305_v10, %v4491_v1  ;;  %v4395_v35 = vmax.f32 %v4299_v37, 0.0 }
 0x75e   : > { %v12381_v36 = vpop.f32.mrf.mxu1 }
 0x75f   : > { %4566 = vst.msk [vmem:[%s12312_s16 + $0x20] sm:$0xff] %vm4561_vm1, %v4492_v18 }
 0x760   : > { %v4254_v11 = vpop.f32.mrf.mxu2 }
 0x761   : > { %v4255_v21 = vadd.f32 %v12159_v30, %v4254_v11 }
 0x763   : > { %v4300_v13 = vadd.f32 %v4255_v21, %v12076_v39  ;;  %v4825_v51 = vpop.f32.mrf.mxu0 }
 0x764   : > { %v4493_v17 = vpop.f32.mrf.mxu3 }
 0x765   : > { %v4396_v57 = vmax.f32 %v4300_v13, 0.0  ;;  %v4494_v22 = vadd.f32 %v12305_v10, %v4493_v17  ;;  %9255 = vmatmul.msk.bf16.gmra.mxu2 %vm693_vm0, %v12389_v19 }
 0x766   : > { %v4957_v25 = vpop.f32.mrf.mxu1  ;;  %9233 = vmatmul.msk.bf16.gmra.mxu0 %vm693_vm0, %v4688_v58 }
 0x767   : > { %4567 = vst.msk [vmem:[%s12312_s16 + $0x28] sm:$0xff] %vm4561_vm1, %v4494_v22  ;;  %v4416_v40 = vpack.c.bf16 %v4396_v57, %v4395_v35  ;;  %v12402_v39 = vadd.f32 %v4957_v25, %v4820_v32  ;;  %v4702_v57 = vld [vmem:[%s10103_s20 + $0x160] sm:$0xff] }
 0x768   : > { %v4257_v14 = vpop.f32.mrf.mxu2  ;;  %v9850_v22 = vld [vmem:[%s14431_s8] sm:$0xff] }
 0x769   : > { %4535 = vmatmul.bf16.gmra.mxu3 %v4416_v40  ;;  %9248 = vmatmul.msk.bf16.gmra.mxu1 %vm693_vm0, %v4639_v34  ;;  %v4258_v7 = vadd.f32 %v12159_v30, %v4257_v14  ;;  %v4703_v34 = vld [vmem:[%s10103_s20 + $0x168] sm:$0xff]  ;;  %v4673_v14 = vld [vmem:[%s10088_s30 + $0x1f8] sm:$0xff] }
 0x76a   : > { %5578 = vmatpush.bf16.msrb.mxu1 %v9850_v22  ;;  %v12451_v42 = vpack.c.bf16 %v4703_v34, %v4702_v57 }
 0x76b   : > { %v4301_v59 = vadd.f32 %v4258_v7, %v12084_v26  ;;  %v4640_v26 = vpack.c.bf16 %v4623_v53, %v4622_v23  ;;  %v12429_v21 = vpop.f32.mrf.mxu0 }
 0x76c   : > { %v4496_v27 = vpop.f32.mrf.mxu3 }
 0x76d   : > { %v4497_v16 = vadd.f32 %v12305_v10, %v4496_v27  ;;  %v4397_v15 = vmax.f32 %v4301_v59, 0.0  ;;  %v4689_v27 = vpack.c.bf16 %v4673_v14, %v4672_v2 }
 0x76e   : > { %v12412_v48 = vpop.f32.mrf.mxu1 }
 0x76f   : > { %4568 = vst.msk [vmem:[%s12312_s16 + $0x30] sm:$0xff] %vm4561_vm1, %v4497_v16 }
 0x770   : > { %v4259_v1 = vpop.f32.mrf.mxu2 }
 0x771   : > { %v4260_v18 = vadd.f32 %v12159_v30, %v4259_v1 }
 0x773   : > { %v4302_v32 = vadd.f32 %v4260_v18, %v12088_v52  ;;  %v4830_v40 = vpop.f32.mrf.mxu0 }
 0x774   : > { %v4498_v45 = vpop.f32.mrf.mxu3 }
 0x775   : > { %v4398_v29 = vmax.f32 %v4302_v32, 0.0  ;;  %v4499_v11 = vadd.f32 %v12305_v10, %v4498_v45  ;;  %9256 = vmatmul.msk.bf16.gmra.mxu2 %vm693_vm0, %v12420_v3 }
 0x776   : > { %v4962_v37 = vpop.f32.mrf.mxu1  ;;  %9234 = vmatmul.msk.bf16.gmra.mxu0 %vm693_vm0, %v4689_v27 }
 0x777   : > { %4569 = vst.msk [vmem:[%s12312_s16 + $0x38] sm:$0xff] %vm4561_vm1, %v4499_v11  ;;  %v4417_v52 = vpack.c.bf16 %v4398_v29, %v4397_v15  ;;  %v12433_v63 = vadd.f32 %v4962_v37, %v4825_v51  ;;  %v4624_v51 = vld [vmem:[%s10094_s17 + $0x1f0] sm:$0xff] }
 0x778   : > { %v4262_v61 = vpop.f32.mrf.mxu2  ;;  %v4704_v37 = vld [vmem:[%s10103_s20 + $0x170] sm:$0xff] }
 0x779   : > { %4540 = vmatmul.bf16.gmra.mxu3 %v4417_v52  ;;  %9249 = vmatmul.msk.bf16.gmra.mxu1 %vm693_vm0, %v4640_v26  ;;  %v4263_v17 = vadd.f32 %v12159_v30, %v4262_v61  ;;  %v4705_v52 = vld [vmem:[%s10103_s20 + $0x178] sm:$0xff] }
 0x77a   : > { %v12480_v22 = vpack.c.bf16 %v4705_v52, %v4704_v37 }
 0x77b   : > { %v4303_v16 = vadd.f32 %v4263_v17, %v12099_v43  ;;  %v4641_v43 = vpack.c.bf16 %v4625_v4, %v4624_v51  ;;  %v12460_v53 = vpop.f32.mrf.mxu0 }
 0x77c   : > { %v4501_v13 = vpop.f32.mrf.mxu3 }
 0x77d   : > { %v4502_v35 = vadd.f32 %v12305_v10, %v4501_v13  ;;  %v4399_v1 = vmax.f32 %v4303_v16, 0.0 }
 0x77e   : > { %v12443_v25 = vpop.f32.mrf.mxu1 }
 0x77f   : > { %4570 = vst.msk [vmem:[%s12312_s16 + $0x40] sm:$0xff] %vm4561_vm1, %v4502_v35 }
 0x780   : > { %v4264_v7 = vpop.f32.mrf.mxu2 }
 0x781   : > { %v4265_v60 = vadd.f32 %v12159_v30, %v4264_v7 }
 0x783   : > { %v4304_v20 = vadd.f32 %v4265_v60, %v12103_v54  ;;  %v9862_v54 = vld [vmem:[%s14433_s10 + $0x20] sm:$0xff]  ;;  %v4835_v13 = vpop.f32.mrf.mxu0 }
 0x784   : > { %v4503_v58 = vpop.f32.mrf.mxu3  ;;  %5843 = vmatpush.bf16.msrb.mxu2 %v9862_v54 }
 0x785   : > { %v4400_v59 = vmax.f32 %v4304_v20, 0.0  ;;  %v4504_v18 = vadd.f32 %v12305_v10, %v4503_v58  ;;  %9257 = vmatmul.msk.bf16.gmra.mxu2 %vm693_vm0, %v12451_v42  ;;  %v4706_v58 = vld [vmem:[%s10103_s20 + $0x180] sm:$0xff] }
 0x786   : > { %v4967_v23 = vpop.f32.mrf.mxu1  ;;  %9283 = vmatmul.msk.bf16.vlgmr.msrb.gmra.mxu0 %vm693_vm0, %v12269_v9 }
 0x787   : > { %4571 = vst.msk [vmem:[%s12312_s16 + $0x48] sm:$0xff] %vm4561_vm1, %v4504_v18  ;;  %v4418_v32 = vpack.c.bf16 %v4400_v59, %v4399_v1  ;;  %v12464_v45 = vadd.f32 %v4967_v23, %v4830_v40  ;;  %v4707_v1 = vld [vmem:[%s10103_s20 + $0x188] sm:$0xff] }
 0x788   : > { %v4267_v15 = vpop.f32.mrf.mxu2  ;;  %v12504_v54 = vpack.c.bf16 %v4707_v1, %v4706_v58 }
 0x789   : > { %4545 = vmatmul.bf16.gmra.mxu3 %v4418_v32  ;;  %9250 = vmatmul.msk.bf16.gmra.mxu1 %vm693_vm0, %v4641_v43  ;;  %v4268_v11 = vadd.f32 %v12159_v30, %v4267_v15 }
 0x78b   : > { %v4305_v35 = vadd.f32 %v4268_v11, %v12111_v6  ;;  %v12488_v7 = vpop.f32.mrf.mxu0 }
 0x78c   : > { %v4506_v29 = vpop.f32.mrf.mxu3 }
 0x78d   : > { %v4507_v26 = vadd.f32 %v12305_v10, %v4506_v29  ;;  %v4401_v2 = vmax.f32 %v4305_v35, 0.0 }
 0x78e   : > { %v12474_v61 = vpop.f32.mrf.mxu1 }
 0x78f   : > { %4572 = vst.msk [vmem:[%s12312_s16 + $0x50] sm:$0xff] %vm4561_vm1, %v4507_v26 }
 0x790   : > { %v4269_v17 = vpop.f32.mrf.mxu2 }
 0x791   : > { %v4270_v57 = vadd.f32 %v12159_v30, %v4269_v17 }
 0x793   : > { %v4306_v34 = vadd.f32 %v4270_v57, %v12115_v56  ;;  %v4840_v18 = vpop.f32.mrf.mxu0  ;;  %v14534_v57 = vld [vmem:[#allocation4_spill] sm:$0xff] }
 0x794   : > { %v4508_v40 = vpop.f32.mrf.mxu3 }
 0x795   : > { %v4402_v14 = vmax.f32 %v4306_v34, 0.0  ;;  %v4509_v27 = vadd.f32 %v12305_v10, %v4508_v40  ;;  %9258 = vmatmul.msk.bf16.gmra.mxu2 %vm693_vm0, %v12480_v22 }
 0x796   : > { %v4972_v6 = vpop.f32.mrf.mxu1  ;;  %9284 = vmatmul.msk.bf16.gmra.mxu0 %vm693_vm0, %v12292_v41 }
 0x797   : > { %4573 = vst.msk [vmem:[%s12312_s16 + $0x58] sm:$0xff] %vm4561_vm1, %v4509_v27  ;;  %v4419_v16 = vpack.c.bf16 %v4402_v14, %v4401_v2  ;;  %v12492_v60 = vadd.f32 %v4972_v6, %v4835_v13  ;;  %v4708_v2 = vld [vmem:[%s10103_s20 + $0x190] sm:$0xff]  ;;  %v4709_v14 = vld [vmem:[%s10103_s20 + $0x198] sm:$0xff] }
 0x798   : > { %v4272_v56 = vpop.f32.mrf.mxu2  ;;  %v12541_v1 = vpack.c.bf16 %v4709_v14, %v4708_v2 }
 0x799   : > { %4550 = vmatmul.bf16.gmra.mxu3 %v4419_v16  ;;  %v4273_v4 = vadd.f32 %v12159_v30, %v4272_v56  ;;  %v12530_v16 = vld [vmem:[%s14428_s5] ss:$0 sm:$0xff] }
 0x79a   : > { %v5012_v56 = vadd.f32 %v12530_v16, %v12254_v24  ;;  %v5014_v2 = vadd.f32 %v12530_v16, %v12277_v31  ;;  %v5015_v14 = vadd.f32 %v12530_v16, %v12288_v5 }
 0x79b   : > { %v4307_v23 = vadd.f32 %v4273_v4, %v12126_v28  ;;  %v12512_v52 = vpop.f32.mrf.mxu0  ;;  %v5013_v4 = vadd.f32 %v12530_v16, %v12265_v62 }
 0x79c   : > { %v4511_v51 = vpop.f32.mrf.mxu3 }
 0x79d   : > { %v4512_v20 = vadd.f32 %v12305_v10, %v4511_v51  ;;  %v4403_v11 = vmax.f32 %v4307_v23, 0.0 }
 0x79e   : > { %v12498_v59 = vpop.f32.mrf.mxu1 }
 0x79f   : > { %4574 = vst.msk [vmem:[%s12312_s16 + $0x60] sm:$0xff] %vm4561_vm1, %v4512_v20 }
 0x7a0   : > { %v4274_v43 = vpop.f32.mrf.mxu2 }
 0x7a1   : > { %v4275_v32 = vadd.f32 %v12159_v30, %v4274_v43 }
 0x7a3   : > { %v4308_v15 = vadd.f32 %v4275_v32, %v12130_v50  ;;  %v9861_v50 = vld [vmem:[%s14433_s10 + $0x18] sm:$0xff]  ;;  %v4845_v6 = vpop.f32.mrf.mxu0 }
 0x7a4   : > { %v4513_v29 = vpop.f32.mrf.mxu3  ;;  %5844 = vmatpush.bf16.msrb.mxu2 %v9861_v50  ;;  %v9873_v50 = vld [vmem:[%s14431_s8 + $0x78] sm:$0xff] }
 0x7a5   : > { %v4404_v26 = vmax.f32 %v4308_v15, 0.0  ;;  %v4514_v37 = vadd.f32 %v12305_v10, %v4513_v29  ;;  %9259 = vmatmul.msk.bf16.gmra.mxu2 %vm693_vm0, %v12504_v54  ;;  %6173 = vmatpush.bf16.msrb.mxu3 %v9873_v50  ;;  %v4712_v50 = vld [vmem:[%s10103_s20 + $0x1b0] sm:$0xff] }
 0x7a6   : > { %v4977_v28 = vpop.f32.mrf.mxu1  ;;  %9285 = vmatmul.msk.bf16.gmra.mxu0 %vm693_vm0, %v12329_v49 }
 0x7a7   : > { %4575 = vst.msk [vmem:[%s12312_s16 + $0x68] sm:$0xff] %vm4561_vm1, %v4514_v37  ;;  %v4420_v30 = vpack.c.bf16 %v4404_v26, %v4403_v11  ;;  %v12516_v13 = vadd.f32 %v4977_v28, %v4840_v18 }
 0x7a8   : > { %v5101_v17 = vpop.f32.mrf.mxu2 }
 0x7a9   : > { %4555 = vmatmul.bf16.gmra.mxu3 %v4420_v30  ;;  %v5102_v34 = vadd.f32 %v5101_v17, %v14534_v57  ;;  %v4710_v17 = vld [vmem:[%s10103_s20 + $0x1a0] sm:$0xff] }
 0x7ab   : > { %v12538_v20 = vadd.f32 %v5102_v34, %v5012_v56  ;;  %v12552_v15 = vpop.f32.mrf.mxu0 }
 0x7ac   : > { %v4516_v35 = vpop.f32.mrf.mxu3 }
 0x7ad   : > { %v4517_v40 = vadd.f32 %v12305_v10, %v4516_v35  ;;  %v5455_v24 = vmax.f32 %v12538_v20, 0.0  ;;  %v4711_v35 = vld [vmem:[%s10103_s20 + $0x1a8] sm:$0xff] }
 0x7ae   : > { %v12525_v27 = vpop.f32.mrf.mxu1 }
 0x7af   : > { %4576 = vst.msk [vmem:[%s12312_s16 + $0x70] sm:$0xff] %vm4561_vm1, %v4517_v40 }
 0x7b0   : > { %v5103_v51 = vpop.f32.mrf.mxu2 }
 0x7b1   : > { %v5104_v58 = vadd.f32 %v5103_v51, %v14534_v57  ;;  %v12578_v51 = vpack.c.bf16 %v4711_v35, %v4710_v17  ;;  %v4713_v17 = vld [vmem:[%s10103_s20 + $0x1b8] sm:$0xff] }
 0x7b3   : > { %v12545_v18 = vadd.f32 %v5104_v58, %v5013_v4  ;;  %v4850_v40 = vpop.f32.mrf.mxu0 }
 0x7b4   : > { %v4518_v43 = vpop.f32.mrf.mxu3 }
 0x7b5   : > { %v5456_v23 = vmax.f32 %v12545_v18, 0.0  ;;  %v4519_v62 = vadd.f32 %v12305_v10, %v4518_v43  ;;  %9260 = vmatmul.msk.bf16.gmra.mxu2 %vm693_vm0, %v12541_v1 }
 0x7b6   : > { %v4982_v32 = vpop.f32.mrf.mxu1  ;;  %9286 = vmatmul.msk.bf16.gmra.mxu0 %vm693_vm0, %v12358_v46 }
 0x7b7   : > { %v5487_v29 = vpack.c.bf16 %v5456_v23, %v5455_v24  ;;  %4577 = vst.msk [vmem:[%s12312_s16 + $0x78] sm:$0xff] %vm4561_vm1, %v4519_v62  ;;  %v12556_v11 = vadd.f32 %v4982_v32, %v4845_v6 }
 0x7b8   : > { %v5106_v26 = vpop.f32.mrf.mxu2 }
 0x7b9   : > { %5579 = vmatmul.bf16.vlgmr.msrb.gmra.mxu1 %v5487_v29  ;;  %9267 = vmatmul.msk.bf16.vlgmr.msra.gmra.mxu3 %vm693_vm0, %v12269_v9  ;;  %v5107_v28 = vadd.f32 %v5106_v26, %v14534_v57  ;;  %v9860_v29 = vld [vmem:[%s14433_s10 + $0x10] sm:$0xff] }
 0x7ba   : > { %5845 = vmatpush.bf16.msrb.mxu2 %v9860_v29 }
 0x7bb   : > { %v12575_v6 = vadd.f32 %v5107_v28, %v5014_v2  ;;  %v12589_v23 = vpop.f32.mrf.mxu0  ;;  %v5016_v2 = vadd.f32 %v12530_v16, %v12300_v38 }
 0x7bc   : > { %v4521_v37 = vpop.f32.mrf.mxu3 }
 0x7bd   : > { %v4522_v30 = vadd.f32 %v12305_v10, %v4521_v37  ;;  %v5457_v58 = vmax.f32 %v12575_v6, 0.0 }
 0x7be   : > { %v12567_v34 = vpop.f32.mrf.mxu1 }
 0x7bf   : > { %4578 = vst.msk [vmem:[%s12312_s16 + $0x80] sm:$0xff] %vm4561_vm1, %v4522_v30 }
 0x7c0   : > { %v5108_v9 = vpop.f32.mrf.mxu2 }
 0x7c1   : > { %v5109_v56 = vadd.f32 %v5108_v9, %v14534_v57 }
 0x7c3   : > { %v12582_v4 = vadd.f32 %v5109_v56, %v5015_v14 }
 0x7c4   : > { %v4523_v31 = vpop.f32.mrf.mxu3 }
 0x7c5   : > { %v5458_v43 = vmax.f32 %v12582_v4, 0.0  ;;  %v4524_v24 = vadd.f32 %v12305_v10, %v4523_v31  ;;  %9261 = vmatmul.msk.bf16.gmra.mxu2 %vm693_vm0, %v12578_v51  ;;  %v12615_v31 = vpack.c.bf16 %v4713_v17, %v4712_v50  ;;  %v9872_v17 = vld [vmem:[%s14431_s8 + $0x70] sm:$0xff] }
 0x7c6   : > { %v4987_v5 = vpop.f32.mrf.mxu1  ;;  %9287 = vmatmul.msk.bf16.gmra.mxu0 %vm693_vm0, %v12389_v19  ;;  %6174 = vmatpush.bf16.msrb.mxu3 %v9872_v17  ;;  %v9859_v17 = vld [vmem:[%s14433_s10 + $0x8] sm:$0xff] }
 0x7c7   : > { %4579 = vst.msk [vmem:[%s12312_s16 + $0x88] sm:$0xff] %vm4561_vm1, %v4524_v24  ;;  %v5488_v62 = vpack.c.bf16 %v5458_v43, %v5457_v58  ;;  %v12593_v32 = vadd.f32 %v4987_v5, %v4850_v40  ;;  %v4855_v40 = vpop.f32.mrf.mxu0  ;;  %5846 = vmatpush.bf16.msrb.mxu2 %v9859_v17 }
 0x7c8   : > { %v5111_v26 = vpop.f32.mrf.mxu2 }
 0x7c9   : > { %5584 = vmatmul.bf16.gmra.mxu1 %v5488_v62  ;;  %9268 = vmatmul.msk.bf16.gmra.mxu3 %vm693_vm0, %v12292_v41  ;;  %v5112_v28 = vadd.f32 %v5111_v26, %v14534_v57  ;;  %v5017_v41 = vadd.f32 %v12530_v16, %v12325_v12 }
 0x7cb   : > { %v12612_v14 = vadd.f32 %v5112_v28, %v5016_v2  ;;  %v4714_v2 = vld [vmem:[%s10103_s20 + $0x1c0] sm:$0xff] }
 0x7cc   : > { %v4526_v37 = vpop.f32.mrf.mxu3 }
 0x7cd   : > { %v4527_v30 = vadd.f32 %v12305_v10, %v4526_v37  ;;  %v5459_v38 = vmax.f32 %v12612_v14, 0.0 }
 0x7ce   : > { %v12604_v35 = vpop.f32.mrf.mxu1 }
 0x7cf   : > { %4580 = vst.msk [vmem:[%s12312_s16 + $0x90] sm:$0xff] %vm4561_vm1, %v4527_v30  ;;  %v12626_v62 = vpop.f32.mrf.mxu0 }
 0x7d0   : > { %v5113_v9 = vpop.f32.mrf.mxu2 }
 0x7d1   : > { %v5114_v56 = vadd.f32 %v5113_v9, %v14534_v57  ;;  %v4715_v9 = vld [vmem:[%s10103_s20 + $0x1c8] sm:$0xff] }
 0x7d3   : > { %v12619_v58 = vadd.f32 %v5114_v56, %v5017_v41  ;;  %v5018_v56 = vadd.f32 %v12530_v16, %v12340_v33 }
 0x7d4   : > { %v4528_v43 = vpop.f32.mrf.mxu3 }
 0x7d5   : > { %v5460_v24 = vmax.f32 %v12619_v58, 0.0  ;;  %v4529_v12 = vadd.f32 %v12305_v10, %v4528_v43  ;;  %9262 = vmatmul.msk.bf16.gmra.mxu2 %vm693_vm0, %v12615_v31  ;;  %v5019_v43 = vadd.f32 %v12530_v16, %v12354_v44 }
 0x7d6   : > { %v4992_v5 = vpop.f32.mrf.mxu1  ;;  %9288 = vmatmul.msk.bf16.gmra.mxu0 %vm693_vm0, %v12420_v3 }
 0x7d7   : > { %4581 = vst.msk [vmem:[%s12312_s16 + $0x98] sm:$0xff] %vm4561_vm1, %v4529_v12  ;;  %v5489_v29 = vpack.c.bf16 %v5460_v24, %v5459_v38  ;;  %v12630_v26 = vadd.f32 %v4992_v5, %v4855_v40  ;;  %v4860_v40 = vpop.f32.mrf.mxu0  ;;  %v12652_v12 = vpack.c.bf16 %v4715_v9, %v4714_v2 }
 0x7d8   : > { %v5116_v37 = vpop.f32.mrf.mxu2 }
 0x7d9   : > { %5589 = vmatmul.bf16.gmra.mxu1 %v5489_v29  ;;  %9269 = vmatmul.msk.bf16.gmra.mxu3 %vm693_vm0, %v12329_v49  ;;  %v5117_v30 = vadd.f32 %v5116_v37, %v14534_v57 }
 0x7db   : > { %v12649_v38 = vadd.f32 %v5117_v30, %v5018_v56 }
 0x7dc   : > { %v4531_v28 = vpop.f32.mrf.mxu3 }
 0x7dd   : > { %v4532_v50 = vadd.f32 %v12305_v10, %v4531_v28  ;;  %v5461_v29 = vmax.f32 %v12649_v38, 0.0 }
 0x7de   : > { %v12641_v41 = vpop.f32.mrf.mxu1 }
 0x7df   : > { %4582 = vst.msk [vmem:[%s12312_s16 + $0xa0] sm:$0xff] %vm4561_vm1, %v4532_v50  ;;  %v12670_v9 = vpop.f32.mrf.mxu0 }
 0x7e0   : > { %v5118_v49 = vpop.f32.mrf.mxu2 }
 0x7e1   : > { %v5119_v24 = vadd.f32 %v5118_v49, %v14534_v57  ;;  %v4955_v49 = vadd.f32 %v12381_v36, %v12367_v47 }
 0x7e3   : > { %v12656_v5 = vadd.f32 %v5119_v24, %v5019_v43  ;;  %v4716_v24 = vld [vmem:[%s10103_s20 + $0x1d0] sm:$0xff] }
 0x7e4   : > { %v4533_v33 = vpop.f32.mrf.mxu3 }
 0x7e5   : > { %v5462_v37 = vmax.f32 %v12656_v5, 0.0  ;;  %v4534_v28 = vadd.f32 %v12305_v10, %v4533_v33  ;;  %9263 = vmatmul.msk.bf16.gmra.mxu2 %vm693_vm0, %v12652_v12  ;;  %v4717_v33 = vld [vmem:[%s10103_s20 + $0x1d8] sm:$0xff] }
 0x7e6   : > { %v4997_v44 = vpop.f32.mrf.mxu1  ;;  %v12690_v36 = vpack.c.bf16 %v4717_v33, %v4716_v24  ;;  %9289 = vmatmul.msk.bf16.gmra.mxu0 %vm693_vm0, %v12451_v42 }
 0x7e7   : > { %4583 = vst.msk [vmem:[%s12312_s16 + $0xa8] sm:$0xff] %vm4561_vm1, %v4534_v28  ;;  %v5490_v30 = vpack.c.bf16 %v5462_v37, %v5461_v29  ;;  %v12665_v50 = vadd.f32 %v4997_v44, %v4860_v40  ;;  %v5020_v37 = vadd.f32 %v12530_v16, %v12371_v0  ;;  %v5021_v28 = vadd.f32 %v12530_v16, %v4955_v49 }
 0x7e8   : > { %v5121_v2 = vpop.f32.mrf.mxu2 }
 0x7e9   : > { %5594 = vmatmul.bf16.gmra.mxu1 %v5490_v30  ;;  %9270 = vmatmul.msk.bf16.gmra.mxu3 %vm693_vm0, %v12358_v46  ;;  %v5122_v43 = vadd.f32 %v5121_v2, %v14534_v57  ;;  %v4865_v30 = vpop.f32.mrf.mxu0 }
 0x7eb   : > { %v12687_v44 = vadd.f32 %v5122_v43, %v5020_v37 }
 0x7ec   : > { %v4536_v56 = vpop.f32.mrf.mxu3 }
 0x7ed   : > { %v4537_v40 = vadd.f32 %v12305_v10, %v4536_v56  ;;  %v5463_v0 = vmax.f32 %v12687_v44, 0.0 }
 0x7ee   : > { %v12680_v29 = vpop.f32.mrf.mxu1 }
 0x7ef   : > { %4584 = vst.msk [vmem:[%s12312_s16 + $0xb0] sm:$0xff] %vm4561_vm1, %v4537_v40 }
 0x7f0   : > { %v5123_v46 = vpop.f32.mrf.mxu2 }
 0x7f1   : > { %v5124_v47 = vadd.f32 %v5123_v46, %v14534_v57  ;;  %v12707_v46 = vpop.f32.mrf.mxu0 }
 0x7f3   : > { %v12694_v17 = vadd.f32 %v5124_v47, %v5021_v28  ;;  %v4960_v28 = vadd.f32 %v12412_v48, %v12398_v8 }
 0x7f4   : > { %v4538_v2 = vpop.f32.mrf.mxu3 }
 0x7f5   : > { %v5464_v56 = vmax.f32 %v12694_v17, 0.0  ;;  %v4539_v49 = vadd.f32 %v12305_v10, %v4538_v2  ;;  %9264 = vmatmul.msk.bf16.gmra.mxu2 %vm693_vm0, %v12690_v36  ;;  %v5023_v48 = vadd.f32 %v12530_v16, %v4960_v28 }
 0x7f6   : > { %v5002_v43 = vpop.f32.mrf.mxu1  ;;  %9290 = vmatmul.msk.bf16.gmra.mxu0 %vm693_vm0, %v12480_v22 }
 0x7f7   : > { %4585 = vst.msk [vmem:[%s12312_s16 + $0xb8] sm:$0xff] %vm4561_vm1, %v4539_v49  ;;  %v5491_v40 = vpack.c.bf16 %v5464_v56, %v5463_v0  ;;  %v12703_v24 = vadd.f32 %v5002_v43, %v4865_v30  ;;  %v9871_v30 = vld [vmem:[%s14431_s8 + $0x68] sm:$0xff]  ;;  %v4718_v0 = vld [vmem:[%s10103_s20 + $0x1e0] sm:$0xff] }
 0x7f8   : > { %v5126_v33 = vpop.f32.mrf.mxu2  ;;  %v4719_v56 = vld [vmem:[%s10103_s20 + $0x1e8] sm:$0xff]  ;;  %6175 = vmatpush.bf16.msrb.mxu3 %v9871_v30 }
 0x7f9   : > { %5599 = vmatmul.bf16.gmra.mxu1 %v5491_v40  ;;  %9271 = vmatmul.msk.bf16.gmra.mxu3 %vm693_vm0, %v12389_v19  ;;  %v5127_v47 = vadd.f32 %v5126_v33, %v14534_v57  ;;  %v5022_v19 = vadd.f32 %v12530_v16, %v12402_v39  ;;  %v12728_v33 = vpack.c.bf16 %v4719_v56, %v4718_v0  ;;  %v4870_v28 = vpop.f32.mrf.mxu0 }
 0x7fb   : > { %v12725_v43 = vadd.f32 %v5127_v47, %v5022_v19  ;;  %v9858_v19 = vld [vmem:[%s14433_s10] sm:$0xff] }
 0x7fc   : > { %v4541_v37 = vpop.f32.mrf.mxu3  ;;  %5847 = vmatpush.bf16.msrb.mxu2 %v9858_v19 }
 0x7fd   : > { %v4542_v2 = vadd.f32 %v12305_v10, %v4541_v37  ;;  %v5465_v39 = vmax.f32 %v12725_v43, 0.0 }
 0x7fe   : > { %v12718_v49 = vpop.f32.mrf.mxu1 }
 0x7ff   : > { %4586 = vst.msk [vmem:[%s12312_s16 + $0xc0] sm:$0xff] %vm4561_vm1, %v4542_v2 }
 0x800   : > { %v5128_v8 = vpop.f32.mrf.mxu2 }
 0x801   : > { %v5129_v40 = vadd.f32 %v5128_v8, %v14534_v57 }
 0x803   : > { %v12732_v37 = vadd.f32 %v5129_v40, %v5023_v48  ;;  %v4965_v48 = vadd.f32 %v12443_v25, %v12429_v21 }
 0x804   : > { %v4543_v55 = vpop.f32.mrf.mxu3 }
 0x805   : > { %v5466_v2 = vmax.f32 %v12732_v37, 0.0  ;;  %v4544_v30 = vadd.f32 %v12305_v10, %v4543_v55  ;;  %9265 = vmatmul.msk.bf16.gmra.mxu2 %vm693_vm0, %v12728_v33 }
 0x806   : > { %v5007_v47 = vpop.f32.mrf.mxu1  ;;  %9291 = vmatmul.msk.bf16.gmra.mxu0 %vm693_vm0, %v12504_v54 }
 0x807   : > { %4587 = vst.msk [vmem:[%s12312_s16 + $0xc8] sm:$0xff] %vm4561_vm1, %v4544_v30  ;;  %v5492_v0 = vpack.c.bf16 %v5466_v2, %v5465_v39  ;;  %v12741_v56 = vadd.f32 %v5007_v47, %v4870_v28  ;;  %v4720_v2 = vld [vmem:[%s10103_s20 + $0x1f0] sm:$0xff]  ;;  %v4721_v30 = vld [vmem:[%s10103_s20 + $0x1f8] sm:$0xff]  ;;  %v5024_v28 = vadd.f32 %v12530_v16, %v12433_v63 }
 0x808   : > { %v5131_v8 = vpop.f32.mrf.mxu2  ;;  %v12762_v21 = vpack.c.bf16 %v4721_v30, %v4720_v2  ;;  %v4970_v30 = vadd.f32 %v12474_v61, %v12460_v53 }
 0x809   : > { %5604 = vmatmul.bf16.gmra.mxu1 %v5492_v0  ;;  %9272 = vmatmul.msk.bf16.gmra.mxu3 %vm693_vm0, %v12420_v3  ;;  %v5132_v40 = vadd.f32 %v5131_v8, %v14534_v57  ;;  %v5025_v3 = vadd.f32 %v12530_v16, %v4965_v48 }
 0x80b   : > { %v12759_v0 = vadd.f32 %v5132_v40, %v5024_v28 }
 0x80c   : > { %v4546_v55 = vpop.f32.mrf.mxu3 }
 0x80d   : > { %v4547_v39 = vadd.f32 %v12305_v10, %v4546_v55  ;;  %v5467_v63 = vmax.f32 %v12759_v0, 0.0 }
 0x80f   : > { %4588 = vst.msk [vmem:[%s12312_s16 + $0xd0] sm:$0xff] %vm4561_vm1, %v4547_v39 }
 0x810   : > { %v5133_v47 = vpop.f32.mrf.mxu2 }
 0x811   : > { %v5134_v19 = vadd.f32 %v5133_v47, %v14534_v57 }
 0x813   : > { %v12766_v25 = vadd.f32 %v5134_v19, %v5025_v3  ;;  %v9870_v3 = vld [vmem:[%s14431_s8 + $0x60] sm:$0xff]  ;;  %v5026_v19 = vadd.f32 %v12530_v16, %v12464_v45 }
 0x814   : > { %v4548_v8 = vpop.f32.mrf.mxu3  ;;  %6176 = vmatpush.bf16.msrb.mxu3 %v9870_v3 }
 0x815   : > { %v5468_v55 = vmax.f32 %v12766_v25, 0.0  ;;  %v4549_v39 = vadd.f32 %v12305_v10, %v4548_v8  ;;  %9266 = vmatmul.msk.bf16.gmra.mxu2 %vm693_vm0, %v12762_v21  ;;  %v5027_v8 = vadd.f32 %v12530_v16, %v4970_v30 }
 0x816   : > { %9292 = vmatmul.msk.bf16.gmra.mxu0 %vm693_vm0, %v12541_v1 }
 0x817   : > { %4589 = vst.msk [vmem:[%s12312_s16 + $0xd8] sm:$0xff] %vm4561_vm1, %v4549_v39  ;;  %v5493_v48 = vpack.c.bf16 %v5468_v55, %v5467_v63 }
 0x818   : > { %v5136_v40 = vpop.f32.mrf.mxu2 }
 0x819   : > { %5609 = vmatmul.bf16.gmra.mxu1 %v5493_v48  ;;  %9273 = vmatmul.msk.bf16.gmra.mxu3 %vm693_vm0, %v12451_v42  ;;  %v5137_v28 = vadd.f32 %v5136_v40, %v14534_v57 }
 0x81b   : > { %v12789_v63 = vadd.f32 %v5137_v28, %v5026_v19  ;;  %v4975_v28 = vadd.f32 %v12498_v59, %v12488_v7  ;;  %v12807_v19 = vpop.f32.mrf.mxu1 }
 0x81c   : > { %v4551_v2 = vpop.f32.mrf.mxu3 }
 0x81d   : > { %v4552_v47 = vadd.f32 %v12305_v10, %v4551_v2  ;;  %v5469_v39 = vmax.f32 %v12789_v63, 0.0 }
 0x81f   : > { %4590 = vst.msk [vmem:[%s12312_s16 + $0xe0] sm:$0xff] %vm4561_vm1, %v4552_v47 }
 0x820   : > { %v5138_v42 = vpop.f32.mrf.mxu2 }
 0x821   : > { %v5139_v53 = vadd.f32 %v5138_v42, %v14534_v57  ;;  %v5028_v42 = vadd.f32 %v12530_v16, %v12492_v60 }
 0x823   : > { %v12794_v61 = vadd.f32 %v5139_v53, %v5027_v8  ;;  %v5029_v53 = vadd.f32 %v12530_v16, %v4975_v28  ;;  %v4980_v28 = vadd.f32 %v12525_v27, %v12512_v52  ;;  %v12846_v27 = vpop.f32.mrf.mxu0 }
 0x824   : > { %v4553_v55 = vpop.f32.mrf.mxu3 }
 0x825   : > { %v5470_v45 = vmax.f32 %v12794_v61, 0.0  ;;  %v4554_v48 = vadd.f32 %v12305_v10, %v4553_v55 }
 0x826   : > { %9293 = vmatmul.msk.bf16.gmra.mxu0 %vm693_vm0, %v12578_v51 }
 0x827   : > { %4591 = vst.msk [vmem:[%s12312_s16 + $0xe8] sm:$0xff] %vm4561_vm1, %v4554_v48  ;;  %v5494_v40 = vpack.c.bf16 %v5470_v45, %v5469_v39 }
 0x828   : > { %v5141_v2 = vpop.f32.mrf.mxu2 }
 0x829   : > { %5614 = vmatmul.bf16.gmra.mxu1 %v5494_v40  ;;  %9274 = vmatmul.msk.bf16.gmra.mxu3 %vm693_vm0, %v12480_v22  ;;  %v5142_v47 = vadd.f32 %v5141_v2, %v14534_v57 }
 0x82b   : > { %v12814_v22 = vadd.f32 %v5142_v47, %v5028_v42  ;;  %v9869_v42 = vld [vmem:[%s14431_s8 + $0x58] sm:$0xff] }
 0x82c   : > { %v4556_v30 = vpop.f32.mrf.mxu3  ;;  %6177 = vmatpush.bf16.msrb.mxu3 %v9869_v42 }
 0x82d   : > { %v4557_v3 = vadd.f32 %v12305_v10, %v4556_v30  ;;  %v5471_v39 = vmax.f32 %v12814_v22, 0.0  ;;  %v12829_v30 = vld [vmem:[%s14432_s9] ss:$0 sm:$0xff] }
 0x82f   : > { %4592 = vst.msk [vmem:[%s12312_s16 + $0xf0] sm:$0xff] %vm4561_vm1, %v4557_v3 }
 0x830   : > { %v5143_v8 = vpop.f32.mrf.mxu2 }
 0x831   : > { %v5144_v55 = vadd.f32 %v5143_v8, %v14534_v57 }
 0x833   : > { %v12819_v7 = vadd.f32 %v5144_v55, %v5029_v53  ;;  %v5030_v53 = vadd.f32 %v12530_v16, %v12516_v13 }
 0x834   : > { %v4558_v59 = vpop.f32.mrf.mxu3 }
 0x835   : > { %v5472_v45 = vmax.f32 %v12819_v7, 0.0  ;;  %v4559_v60 = vadd.f32 %v12305_v10, %v4558_v59 }
 0x836   : > { %v5580_v48 = vpop.f32.mrf.mxu1  ;;  %9294 = vmatmul.msk.bf16.gmra.mxu0 %vm693_vm0, %v12615_v31 }
 0x837   : > { %4593 = vst.msk [vmem:[%s12312_s16 + $0xf8] sm:$0xff] %vm4561_vm1, %v4559_v60  ;;  %v5495_v40 = vpack.c.bf16 %v5472_v45, %v5471_v39  ;;  %v5581_v10 = vadd.f32 %v12829_v30, %v5580_v48 }
 0x838   : > { %v5146_v2 = vpop.f32.mrf.mxu2 }
 0x839   : > { %5619 = vmatmul.bf16.gmra.mxu1 %v5495_v40  ;;  %9275 = vmatmul.msk.bf16.gmra.mxu3 %vm693_vm0, %v12504_v54  ;;  %v5147_v3 = vadd.f32 %v5146_v2, %v14534_v57  ;;  %v5031_v54 = vadd.f32 %v12530_v16, %v4980_v28  ;;  %v5724_v59 = vmax.f32 %v5581_v10, 0.0 }
 0x83b   : > { %v12848_v39 = vadd.f32 %v5147_v3, %v5030_v53 }
 0x83c   : > { %v12835_v47 = vpop.f32.mrf.mxu3 }
 0x83d   : > { %v5473_v2 = vmax.f32 %v12848_v39, 0.0 }
 0x83e   : > { %v5582_v8 = vpop.f32.mrf.mxu1 }
 0x83f   : > { %v5583_v55 = vadd.f32 %v12829_v30, %v5582_v8  ;;  %v4985_v8 = vadd.f32 %v12567_v34, %v12552_v15 }
 0x840   : > { %v5148_v52 = vpop.f32.mrf.mxu2 }
 0x841   : > { %v5725_v45 = vmax.f32 %v5583_v55, 0.0  ;;  %v5149_v60 = vadd.f32 %v5148_v52, %v14534_v57  ;;  %v9881_v52 = vld [vmem:[%s14433_s10 + $0x78] sm:$0xff] }
 0x842   : > { %6442 = vmatpush.bf16.msra.mxu0 %v9881_v52 }
 0x843   : > { %v5756_v48 = vpack.c.bf16 %v5725_v45, %v5724_v59  ;;  %v12853_v40 = vadd.f32 %v5149_v60, %v5031_v54  ;;  %v5032_v45 = vadd.f32 %v12530_v16, %v12556_v11 }
 0x844   : > { %v12855_v13 = vpop.f32.mrf.mxu3 }
 0x845   : > { %14535 = vst [vmem:[#allocation13_spill] sm:$0xff] %v12853_v40  ;;  %v5474_v28 = vmax.f32 %v12853_v40, 0.0  ;;  %5848 = vmatmul.bf16.vlgmr.msrb.gmra.mxu2 %v5756_v48 }
 0x846   : > { %v5585_v42 = vpop.f32.mrf.mxu1 }
 0x847   : > { %v5496_v10 = vpack.c.bf16 %v5474_v28, %v5473_v2  ;;  %v5586_v55 = vadd.f32 %v12829_v30, %v5585_v42 }
 0x848   : > { %v5151_v3 = vpop.f32.mrf.mxu2 }
 0x849   : > { %5624 = vmatmul.bf16.gmra.mxu1 %v5496_v10  ;;  %9276 = vmatmul.msk.bf16.gmra.mxu3 %vm693_vm0, %v12541_v1  ;;  %v5152_v54 = vadd.f32 %v5151_v3, %v14534_v57  ;;  %v5033_v1 = vadd.f32 %v12530_v16, %v4985_v8  ;;  %v5726_v34 = vmax.f32 %v5586_v55, 0.0  ;;  %v4990_v55 = vadd.f32 %v12604_v35, %v12589_v23 }
 0x84b   : > { %v12874_v48 = vadd.f32 %v5152_v54, %v5032_v45 }
 0x84c   : > { %v12863_v53 = vpop.f32.mrf.mxu3 }
 0x84d   : > { %v5475_v40 = vmax.f32 %v12874_v48, 0.0 }
 0x84e   : > { %v5587_v59 = vpop.f32.mrf.mxu1 }
 0x84f   : > { %v5588_v60 = vadd.f32 %v12829_v30, %v5587_v59 }
 0x850   : > { %v5153_v15 = vpop.f32.mrf.mxu2 }
 0x851   : > { %v5727_v2 = vmax.f32 %v5588_v60, 0.0  ;;  %v5154_v28 = vadd.f32 %v5153_v15, %v14534_v57 }
 0x853   : > { %v12877_v42 = vadd.f32 %v5154_v28, %v5033_v1  ;;  %v5757_v10 = vpack.c.bf16 %v5727_v2, %v5726_v34  ;;  %v9868_v1 = vld [vmem:[%s14431_s8 + $0x50] sm:$0xff] }
 0x854   : > { %v12879_v3 = vpop.f32.mrf.mxu3  ;;  %6178 = vmatpush.bf16.msrb.mxu3 %v9868_v1 }
 0x855   : > { %v5476_v11 = vmax.f32 %v12877_v42, 0.0  ;;  %5853 = vmatmul.bf16.gmra.mxu2 %v5757_v10 }
 0x856   : > { %v5590_v52 = vpop.f32.mrf.mxu1 }
 0x857   : > { %v5497_v59 = vpack.c.bf16 %v5476_v11, %v5475_v40  ;;  %v5591_v45 = vadd.f32 %v12829_v30, %v5590_v52  ;;  %v5034_v40 = vadd.f32 %v12530_v16, %v12593_v32 }
 0x858   : > { %v5156_v8 = vpop.f32.mrf.mxu2 }
 0x859   : > { %5629 = vmatmul.bf16.gmra.mxu1 %v5497_v59  ;;  %9277 = vmatmul.msk.bf16.gmra.mxu3 %vm693_vm0, %v12578_v51  ;;  %v5157_v60 = vadd.f32 %v5156_v8, %v14534_v57  ;;  %v5035_v51 = vadd.f32 %v12530_v16, %v4990_v55  ;;  %v5728_v35 = vmax.f32 %v5591_v45, 0.0  ;;  %v4995_v45 = vadd.f32 %v12641_v41, %v12626_v62 }
 0x85b   : > { %v12898_v2 = vadd.f32 %v5157_v60, %v5034_v40 }
 0x85c   : > { %v12887_v54 = vpop.f32.mrf.mxu3 }
 0x85d   : > { %v5477_v8 = vmax.f32 %v12898_v2, 0.0 }
 0x85e   : > { %v5592_v15 = vpop.f32.mrf.mxu1 }
 0x85f   : > { %v5593_v34 = vadd.f32 %v12829_v30, %v5592_v15 }
 0x860   : > { %v5158_v23 = vpop.f32.mrf.mxu2 }
 0x861   : > { %v5729_v28 = vmax.f32 %v5593_v34, 0.0  ;;  %v5159_v10 = vadd.f32 %v5158_v23, %v14534_v57 }
 0x863   : > { %v12901_v11 = vadd.f32 %v5159_v10, %v5035_v51  ;;  %v5758_v52 = vpack.c.bf16 %v5729_v28, %v5728_v35  ;;  %v9880_v51 = vld [vmem:[%s14433_s10 + $0x70] sm:$0xff]  ;;  %v5036_v35 = vadd.f32 %v12530_v16, %v12630_v26 }
 0x864   : > { %v12903_v59 = vpop.f32.mrf.mxu3  ;;  %6443 = vmatpush.bf16.msra.mxu0 %v9880_v51 }
 0x865   : > { %v5478_v32 = vmax.f32 %v12901_v11, 0.0  ;;  %5858 = vmatmul.bf16.gmra.mxu2 %v5758_v52 }
 0x866   : > { %v5595_v1 = vpop.f32.mrf.mxu1 }
 0x867   : > { %v5498_v15 = vpack.c.bf16 %v5478_v32, %v5477_v8  ;;  %v5596_v40 = vadd.f32 %v12829_v30, %v5595_v1 }
 0x868   : > { %v5161_v55 = vpop.f32.mrf.mxu2 }
 0x869   : > { %5634 = vmatmul.bf16.gmra.mxu1 %v5498_v15  ;;  %9278 = vmatmul.msk.bf16.gmra.mxu3 %vm693_vm0, %v12615_v31  ;;  %v5162_v34 = vadd.f32 %v5161_v55, %v14534_v57  ;;  %v5037_v31 = vadd.f32 %v12530_v16, %v4995_v45  ;;  %v5730_v41 = vmax.f32 %v5596_v40, 0.0  ;;  %v5000_v40 = vadd.f32 %v12680_v29, %v12670_v9 }
 0x86b   : > { %v12922_v10 = vadd.f32 %v5162_v34, %v5036_v35 }
 0x86c   : > { %v12911_v60 = vpop.f32.mrf.mxu3 }
 0x86d   : > { %v5479_v55 = vmax.f32 %v12922_v10, 0.0 }
 0x86e   : > { %v5597_v23 = vpop.f32.mrf.mxu1 }
 0x86f   : > { %v5598_v28 = vadd.f32 %v12829_v30, %v5597_v23 }
 0x870   : > { %v5163_v62 = vpop.f32.mrf.mxu2 }
 0x871   : > { %v5731_v52 = vmax.f32 %v5598_v28, 0.0  ;;  %v5164_v8 = vadd.f32 %v5163_v62, %v14534_v57 }
 0x873   : > { %v12925_v32 = vadd.f32 %v5164_v8, %v5037_v31  ;;  %v5759_v1 = vpack.c.bf16 %v5731_v52, %v5730_v41  ;;  %v9867_v31 = vld [vmem:[%s14431_s8 + $0x48] sm:$0xff]  ;;  %v5038_v41 = vadd.f32 %v12530_v16, %v12665_v50  ;;  %v5039_v8 = vadd.f32 %v12530_v16, %v5000_v40 }
 0x874   : > { %v12927_v15 = vpop.f32.mrf.mxu3  ;;  %6179 = vmatpush.bf16.msrb.mxu3 %v9867_v31 }
 0x875   : > { %14536 = vst [vmem:[#allocation14_spill] sm:$0xff] %v12925_v32  ;;  %v5480_v26 = vmax.f32 %v12925_v32, 0.0  ;;  %5863 = vmatmul.bf16.gmra.mxu2 %v5759_v1 }
 0x876   : > { %v5600_v51 = vpop.f32.mrf.mxu1 }
 0x877   : > { %v5499_v23 = vpack.c.bf16 %v5480_v26, %v5479_v55  ;;  %v5601_v35 = vadd.f32 %v12829_v30, %v5600_v51 }
 0x878   : > { %v5166_v45 = vpop.f32.mrf.mxu2 }
 0x879   : > { %5639 = vmatmul.bf16.gmra.mxu1 %v5499_v23  ;;  %9279 = vmatmul.msk.bf16.gmra.mxu3 %vm693_vm0, %v12652_v12  ;;  %v5167_v28 = vadd.f32 %v5166_v45, %v14534_v57  ;;  %v5732_v29 = vmax.f32 %v5601_v35, 0.0  ;;  %v9879_v35 = vld [vmem:[%s14433_s10 + $0x68] sm:$0xff] }
 0x87a   : > { %6444 = vmatpush.bf16.msra.mxu0 %v9879_v35 }
 0x87b   : > { %v12946_v1 = vadd.f32 %v5167_v28, %v5038_v41  ;;  %v5005_v28 = vadd.f32 %v12718_v49, %v12707_v46 }
 0x87c   : > { %v12935_v34 = vpop.f32.mrf.mxu3 }
 0x87d   : > { %v5481_v32 = vmax.f32 %v12946_v1, 0.0 }
 0x87e   : > { %v5602_v62 = vpop.f32.mrf.mxu1 }
 0x87f   : > { %v5603_v52 = vadd.f32 %v12829_v30, %v5602_v62 }
 0x880   : > { %v5168_v9 = vpop.f32.mrf.mxu2 }
 0x881   : > { %v5733_v55 = vmax.f32 %v5603_v52, 0.0  ;;  %v5169_v26 = vadd.f32 %v5168_v9, %v14534_v57  ;;  %v5040_v9 = vadd.f32 %v12530_v16, %v12703_v24 }
 0x883   : > { %v12949_v51 = vadd.f32 %v5169_v26, %v5039_v8  ;;  %v5760_v23 = vpack.c.bf16 %v5733_v55, %v5732_v29  ;;  %v5041_v55 = vadd.f32 %v12530_v16, %v5005_v28 }
 0x884   : > { %v12951_v45 = vpop.f32.mrf.mxu3 }
 0x885   : > { %14537 = vst [vmem:[#allocation16_spill] sm:$0xff] %v12949_v51  ;;  %v5482_v50 = vmax.f32 %v12949_v51, 0.0  ;;  %5868 = vmatmul.bf16.gmra.mxu2 %v5760_v23 }
 0x886   : > { %v5605_v31 = vpop.f32.mrf.mxu1 }
 0x887   : > { %v5500_v62 = vpack.c.bf16 %v5482_v50, %v5481_v32  ;;  %v5606_v52 = vadd.f32 %v12829_v30, %v5605_v31 }
 0x888   : > { %v5171_v40 = vpop.f32.mrf.mxu2 }
 0x889   : > { %5644 = vmatmul.bf16.gmra.mxu1 %v5500_v62  ;;  %9280 = vmatmul.msk.bf16.gmra.mxu3 %vm693_vm0, %v12690_v36  ;;  %v5172_v8 = vadd.f32 %v5171_v40, %v14534_v57  ;;  %v5734_v23 = vmax.f32 %v5606_v52, 0.0  ;;  %v9866_v52 = vld [vmem:[%s14431_s8 + $0x40] sm:$0xff] }
 0x88a   : > { %6180 = vmatpush.bf16.msrb.mxu3 %v9866_v52 }
 0x88b   : > { %v12970_v50 = vadd.f32 %v5172_v8, %v5040_v9  ;;  %v5010_v8 = vadd.f32 %v12807_v19, %v12846_v27 }
 0x88c   : > { %v12962_v41 = vpop.f32.mrf.mxu3 }
 0x88d   : > { %14538 = vst [vmem:[#allocation17_spill] sm:$0xff] %v12970_v50  ;;  %v5483_v40 = vmax.f32 %v12970_v50, 0.0 }
 0x88e   : > { %v5607_v32 = vpop.f32.mrf.mxu1 }
 0x88f   : > { %v5608_v29 = vadd.f32 %v12829_v30, %v5607_v32 }
 0x890   : > { %v5173_v26 = vpop.f32.mrf.mxu2 }
 0x891   : > { %v5735_v62 = vmax.f32 %v5608_v29, 0.0  ;;  %v5174_v46 = vadd.f32 %v5173_v26, %v14534_v57 }
 0x893   : > { %v12973_v49 = vadd.f32 %v5174_v46, %v5041_v55  ;;  %v5761_v31 = vpack.c.bf16 %v5735_v62, %v5734_v23  ;;  %v5043_v62 = vadd.f32 %v12530_v16, %v5010_v8 }
 0x894   : > { %v12975_v35 = vpop.f32.mrf.mxu3 }
 0x895   : > { %14539 = vst [vmem:[#allocation18_spill] sm:$0xff] %v12973_v49  ;;  %v5484_v24 = vmax.f32 %v12973_v49, 0.0  ;;  %5873 = vmatmul.bf16.gmra.mxu2 %v5761_v31 }
 0x896   : > { %v5610_v32 = vpop.f32.mrf.mxu1 }
 0x897   : > { %v5501_v51 = vpack.c.bf16 %v5484_v24, %v5483_v40  ;;  %v5611_v29 = vadd.f32 %v12829_v30, %v5610_v32 }
 0x898   : > { %v5176_v28 = vpop.f32.mrf.mxu2 }
 0x899   : > { %5649 = vmatmul.bf16.gmra.mxu1 %v5501_v51  ;;  %9281 = vmatmul.msk.bf16.gmra.mxu3 %vm693_vm0, %v12728_v33  ;;  %v5177_v55 = vadd.f32 %v5176_v28, %v14534_v57  ;;  %v5042_v51 = vadd.f32 %v12530_v16, %v12741_v56  ;;  %v5736_v31 = vmax.f32 %v5611_v29, 0.0 }
 0x89b   : > { %v12994_v40 = vadd.f32 %v5177_v55, %v5042_v51  ;;  %v9878_v55 = vld [vmem:[%s14433_s10 + $0x60] sm:$0xff] }
 0x89c   : > { %v12986_v9 = vpop.f32.mrf.mxu3  ;;  %6445 = vmatpush.bf16.msra.mxu0 %v9878_v55 }
 0x89d   : > { %14540 = vst [vmem:[#allocation19_spill] sm:$0xff] %v12994_v40  ;;  %v5485_v28 = vmax.f32 %v12994_v40, 0.0 }
 0x89e   : > { %v5612_v26 = vpop.f32.mrf.mxu1 }
 0x89f   : > { %v5613_v23 = vadd.f32 %v12829_v30, %v5612_v26 }
 0x8a0   : > { %v5178_v46 = vpop.f32.mrf.mxu2 }
 0x8a1   : > { %v5737_v24 = vmax.f32 %v5613_v23, 0.0  ;;  %v5179_v19 = vadd.f32 %v5178_v46, %v14534_v57 }
 0x8a3   : > { %v12997_v27 = vadd.f32 %v5179_v19, %v5043_v62  ;;  %v5762_v32 = vpack.c.bf16 %v5737_v24, %v5736_v31 }
 0x8a4   : > { %v12999_v52 = vpop.f32.mrf.mxu3 }
 0x8a5   : > { %14541 = vst [vmem:[#allocation6_spill] sm:$0xff] %v12997_v27  ;;  %v5486_v56 = vmax.f32 %v12997_v27, 0.0  ;;  %5878 = vmatmul.bf16.gmra.mxu2 %v5762_v32 }
 0x8a6   : > { %v5615_v26 = vpop.f32.mrf.mxu1 }
 0x8a7   : > { %v5502_v49 = vpack.c.bf16 %v5486_v56, %v5485_v28  ;;  %v5616_v57 = vadd.f32 %v12829_v30, %v5615_v26  ;;  %v13018_v26 = vpop.f32.mrf.mxu0 }
 0x8a8   : > { %14542 = vst [vmem:[#allocation20_spill] sm:$0xff] %v13018_v26 }
 0x8a9   : > { %5654 = vmatmul.bf16.gmra.mxu1 %v5502_v49  ;;  %9282 = vmatmul.msk.bf16.gmra.mxu3 %vm693_vm0, %v12762_v21  ;;  %v5738_v51 = vmax.f32 %v5616_v57, 0.0 }
 0x8ac   : > { %v13005_v16 = vpop.f32.mrf.mxu3 }
 0x8ae   : > { %v5617_v8 = vpop.f32.mrf.mxu1 }
 0x8af   : > { %v5618_v29 = vadd.f32 %v12829_v30, %v5617_v8 }
 0x8b1   : > { %v5739_v23 = vmax.f32 %v5618_v29, 0.0  ;;  %v13023_v29 = vld [vmem:[%s14434_s11] ss:$0 sm:$0xff] }
 0x8b3   : > { %v5763_v62 = vpack.c.bf16 %v5739_v23, %v5738_v51  ;;  %v13027_v23 = vpop.f32.mrf.mxu0  ;;  %9295 = vmatmul.msk.bf16.gmra.mxu0 %vm693_vm0, %v12652_v12 }
 0x8b4   : > { %v13012_v49 = vpop.f32.mrf.mxu3  ;;  %14543 = vst [vmem:[#allocation21_spill] sm:$0xff] %v13027_v23 }
 0x8b5   : > { %5883 = vmatmul.bf16.gmra.mxu2 %v5763_v62 }
 0x8b6   : > { %v5620_v46 = vpop.f32.mrf.mxu1 }
 0x8b7   : > { %v5621_v31 = vadd.f32 %v12829_v30, %v5620_v46 }
 0x8b9   : > { %v5740_v28 = vmax.f32 %v5621_v31, 0.0  ;;  %v9877_v31 = vld [vmem:[%s14433_s10 + $0x58] sm:$0xff] }
 0x8ba   : > { %6446 = vmatpush.bf16.msra.mxu0 %v9877_v31 }
 0x8bb   : > { %v13041_v27 = vpop.f32.mrf.mxu0 }
 0x8bc   : > { %v13016_v32 = vpop.f32.mrf.mxu3  ;;  %14545 = vst [vmem:[#allocation7_spill] sm:$0xff] %v13041_v27 }
 0x8be   : > { %v5622_v24 = vpop.f32.mrf.mxu1 }
 0x8bf   : > { %v5623_v19 = vadd.f32 %v12829_v30, %v5622_v24 }
 0x8c1   : > { %v5741_v56 = vmax.f32 %v5623_v19, 0.0 }
 0x8c3   : > { %v5764_v8 = vpack.c.bf16 %v5741_v56, %v5740_v28  ;;  %v13054_v50 = vpop.f32.mrf.mxu0  ;;  %9296 = vmatmul.msk.bf16.gmra.mxu0 %vm693_vm0, %v12690_v36 }
 0x8c4   : > { %v13025_v51 = vpop.f32.mrf.mxu3 }
 0x8c5   : > { %5888 = vmatmul.bf16.gmra.mxu2 %v5764_v8  ;;  %v14544_v8 = vld [vmem:[#allocation15_spill] sm:$0xff] }
 0x8c6   : > { %v5625_v57 = vpop.f32.mrf.mxu1  ;;  %v5191_v23 = vadd.f32 %v12835_v47, %v14544_v8  ;;  %v5196_v36 = vadd.f32 %v12863_v53, %v14544_v8 }
 0x8c7   : > { %v5626_v46 = vadd.f32 %v12829_v30, %v5625_v57  ;;  %v5193_v57 = vadd.f32 %v12855_v13, %v14544_v8 }
 0x8c8   : > { %v5849_v55 = vpop.f32.mrf.mxu2 }
 0x8c9   : > { %v5850_v62 = vadd.f32 %v13023_v29, %v5849_v55  ;;  %v5742_v26 = vmax.f32 %v5626_v46, 0.0 }
 0x8cb   : > { %v5929_v19 = vadd.f32 %v5850_v62, %v12538_v20 }
 0x8cd   : > { %v13045_v40 = vadd.f32 %v5929_v19, %v5191_v23  ;;  %v9889_v23 = vld [vmem:[%s14431_s8 + $0xb8] sm:$0xff] }
 0x8ce   : > { %v5627_v24 = vpop.f32.mrf.mxu1  ;;  %6775 = vmatpush.bf16.msra.mxu1 %v9889_v23 }
 0x8cf   : > { %v5628_v28 = vadd.f32 %v12829_v30, %v5627_v24  ;;  %v13048_v24 = vpop.f32.mrf.mxu3  ;;  %v6057_v46 = vmax.f32 %v13045_v40, 0.0 }
 0x8d0   : > { %v5851_v56 = vpop.f32.mrf.mxu2 }
 0x8d1   : > { %v5743_v12 = vmax.f32 %v5628_v28, 0.0  ;;  %v5852_v55 = vadd.f32 %v13023_v29, %v5851_v56 }
 0x8d3   : > { %v5930_v20 = vadd.f32 %v5852_v55, %v12545_v18  ;;  %v5765_v62 = vpack.c.bf16 %v5743_v12, %v5742_v26 }
 0x8d5   : > { %v13050_v31 = vadd.f32 %v5930_v20, %v5193_v57  ;;  %5893 = vmatmul.bf16.gmra.mxu2 %v5765_v62 }
 0x8d6   : > { %v5630_v47 = vpop.f32.mrf.mxu1 }
 0x8d7   : > { %v6058_v28 = vmax.f32 %v13050_v31, 0.0  ;;  %v5631_v13 = vadd.f32 %v12829_v30, %v5630_v47  ;;  %v13060_v26 = vpop.f32.mrf.mxu3  ;;  %v13070_v47 = vpop.f32.mrf.mxu0 }
 0x8d8   : > { %v5854_v56 = vpop.f32.mrf.mxu2  ;;  %14546 = vst [vmem:[#allocation22_spill] sm:$0xff] %v13070_v47 }
 0x8d9   : > { %v6089_v27 = vpack.c.bf16 %v6058_v28, %v6057_v46  ;;  %v5855_v18 = vadd.f32 %v13023_v29, %v5854_v56  ;;  %v5744_v20 = vmax.f32 %v5631_v13, 0.0  ;;  %v5198_v46 = vadd.f32 %v12879_v3, %v14544_v8 }
 0x8db   : > { %6181 = vmatmul.bf16.vlgmr.msrb.gmra.mxu3 %v6089_v27  ;;  %v5931_v12 = vadd.f32 %v5855_v18, %v12575_v6 }
 0x8dd   : > { %v13074_v28 = vadd.f32 %v5931_v12, %v5196_v36  ;;  %v9876_v12 = vld [vmem:[%s14433_s10 + $0x50] sm:$0xff] }
 0x8de   : > { %v5632_v19 = vpop.f32.mrf.mxu1  ;;  %6447 = vmatpush.bf16.msra.mxu0 %v9876_v12 }
 0x8df   : > { %v5633_v55 = vadd.f32 %v12829_v30, %v5632_v19  ;;  %v6059_v53 = vmax.f32 %v13074_v28, 0.0  ;;  %v13081_v19 = vpop.f32.mrf.mxu3  ;;  %v13083_v47 = vpop.f32.mrf.mxu0  ;;  %9297 = vmatmul.msk.bf16.gmra.mxu0 %vm693_vm0, %v12728_v33 }
 0x8e0   : > { %v5856_v57 = vpop.f32.mrf.mxu2 }
 0x8e1   : > { %v5745_v27 = vmax.f32 %v5633_v55, 0.0  ;;  %v5857_v62 = vadd.f32 %v13023_v29, %v5856_v57 }
 0x8e3   : > { %v5932_v6 = vadd.f32 %v5857_v62, %v12582_v4  ;;  %v5766_v56 = vpack.c.bf16 %v5745_v27, %v5744_v20 }
 0x8e5   : > { %v13077_v18 = vadd.f32 %v5932_v6, %v5198_v46  ;;  %5898 = vmatmul.bf16.gmra.mxu2 %v5766_v56  ;;  %v5201_v46 = vadd.f32 %v12887_v54, %v14544_v8 }
 0x8e6   : > { %v5635_v23 = vpop.f32.mrf.mxu1 }
 0x8e7   : > { %v6060_v13 = vmax.f32 %v13077_v18, 0.0  ;;  %v5636_v3 = vadd.f32 %v12829_v30, %v5635_v23  ;;  %v13099_v23 = vpop.f32.mrf.mxu0 }
 0x8e8   : > { %v5859_v55 = vpop.f32.mrf.mxu2 }
 0x8e9   : > { %v6090_v57 = vpack.c.bf16 %v6060_v13, %v6059_v53  ;;  %v5860_v4 = vadd.f32 %v13023_v29, %v5859_v55  ;;  %v5746_v33 = vmax.f32 %v5636_v3, 0.0  ;;  %v13097_v53 = vpop.f32.mrf.mxu3  ;;  %v5203_v13 = vadd.f32 %v12903_v59, %v14544_v8 }
 0x8eb   : > { %6186 = vmatmul.bf16.gmra.mxu3 %v6090_v57  ;;  %v5933_v20 = vadd.f32 %v5860_v4, %v12612_v14 }
 0x8ed   : > { %v13103_v55 = vadd.f32 %v5933_v20, %v5201_v46  ;;  %v9888_v46 = vld [vmem:[%s14431_s8 + $0xb0] sm:$0xff] }
 0x8ee   : > { %v5637_v36 = vpop.f32.mrf.mxu1  ;;  %6776 = vmatpush.bf16.msra.mxu1 %v9888_v46 }
 0x8ef   : > { %v5638_v27 = vadd.f32 %v12829_v30, %v5637_v36  ;;  %v6061_v3 = vmax.f32 %v13103_v55, 0.0 }
 0x8f0   : > { %v5861_v62 = vpop.f32.mrf.mxu2 }
 0x8f1   : > { %v5747_v6 = vmax.f32 %v5638_v27, 0.0  ;;  %v5862_v56 = vadd.f32 %v13023_v29, %v5861_v62  ;;  %v13110_v62 = vpop.f32.mrf.mxu0  ;;  %9298 = vmatmul.msk.bf16.gmra.mxu0 %vm693_vm0, %v12762_v21  ;;  %v5206_v21 = vadd.f32 %v12911_v60, %v14544_v8 }
 0x8f3   : > { %v5934_v14 = vadd.f32 %v5862_v56, %v12619_v58  ;;  %v5767_v57 = vpack.c.bf16 %v5747_v6, %v5746_v33  ;;  %v13115_v58 = vpop.f32.mrf.mxu3 }
 0x8f5   : > { %v13106_v4 = vadd.f32 %v5934_v14, %v5203_v13  ;;  %5903 = vmatmul.bf16.gmra.mxu2 %v5767_v57 }
 0x8f6   : > { %v5640_v54 = vpop.f32.mrf.mxu1 }
 0x8f7   : > { %v6062_v12 = vmax.f32 %v13106_v4, 0.0  ;;  %v5641_v20 = vadd.f32 %v12829_v30, %v5640_v54  ;;  %v5208_v54 = vadd.f32 %v12927_v15, %v14544_v8 }
 0x8f8   : > { %v5864_v36 = vpop.f32.mrf.mxu2 }
 0x8f9   : > { %v6091_v27 = vpack.c.bf16 %v6062_v12, %v6061_v3  ;;  %v5865_v59 = vadd.f32 %v13023_v29, %v5864_v36  ;;  %v5748_v14 = vmax.f32 %v5641_v20, 0.0  ;;  %v13126_v12 = vpop.f32.mrf.mxu0 }
 0x8fa   : > { %14547 = vst [vmem:[#allocation9_spill] sm:$0xff] %v13126_v12 }
 0x8fb   : > { %6191 = vmatmul.bf16.gmra.mxu3 %v6091_v27  ;;  %v5935_v6 = vadd.f32 %v5865_v59, %v12649_v38  ;;  %v13135_v46 = vpop.f32.mrf.mxu3 }
 0x8fd   : > { %v13130_v36 = vadd.f32 %v5935_v6, %v5206_v21  ;;  %v9875_v6 = vld [vmem:[%s14433_s10 + $0x48] sm:$0xff] }
 0x8fe   : > { %v5642_v33 = vpop.f32.mrf.mxu1  ;;  %6448 = vmatpush.bf16.msra.mxu0 %v9875_v6 }
 0x8ff   : > { %v5643_v56 = vadd.f32 %v12829_v30, %v5642_v33  ;;  %v6063_v20 = vmax.f32 %v13130_v36, 0.0 }
 0x900   : > { %v5866_v13 = vpop.f32.mrf.mxu2 }
 0x901   : > { %v5749_v57 = vmax.f32 %v5643_v56, 0.0  ;;  %v5867_v3 = vadd.f32 %v13023_v29, %v5866_v13  ;;  %v13139_v12 = vpop.f32.mrf.mxu0 }
 0x902   : > { %14548 = vst [vmem:[#allocation8_spill] sm:$0xff] %v13139_v12 }
 0x903   : > { %v5936_v38 = vadd.f32 %v5867_v3, %v12656_v5  ;;  %v5768_v27 = vpack.c.bf16 %v5749_v57, %v5748_v14  ;;  %v13148_v3 = vpop.f32.mrf.mxu3 }
 0x905   : > { %v13133_v59 = vadd.f32 %v5936_v38, %v5208_v54  ;;  %5908 = vmatmul.bf16.gmra.mxu2 %v5768_v27  ;;  %v5211_v38 = vadd.f32 %v12935_v34, %v14544_v8 }
 0x906   : > { %v5645_v60 = vpop.f32.mrf.mxu1 }
 0x907   : > { %v6064_v33 = vmax.f32 %v13133_v59, 0.0  ;;  %v5646_v5 = vadd.f32 %v12829_v30, %v5645_v60 }
 0x908   : > { %v5869_v56 = vpop.f32.mrf.mxu2 }
 0x909   : > { %v6092_v13 = vpack.c.bf16 %v6064_v33, %v6063_v20  ;;  %v5870_v15 = vadd.f32 %v13023_v29, %v5869_v56  ;;  %v5750_v27 = vmax.f32 %v5646_v5, 0.0  ;;  %v13153_v33 = vpop.f32.mrf.mxu0  ;;  %v5213_v56 = vadd.f32 %v12951_v45, %v14544_v8 }
 0x90a   : > { %14549 = vst [vmem:[#allocation11_spill] sm:$0xff] %v13153_v33 }
 0x90b   : > { %6196 = vmatmul.bf16.gmra.mxu3 %v6092_v13  ;;  %v5937_v14 = vadd.f32 %v5870_v15, %v12687_v44  ;;  %v13164_v12 = vpop.f32.mrf.mxu3 }
 0x90d   : > { %v13157_v13 = vadd.f32 %v5937_v14, %v5211_v38  ;;  %v9887_v14 = vld [vmem:[%s14431_s8 + $0xa8] sm:$0xff] }
 0x90e   : > { %v5647_v21 = vpop.f32.mrf.mxu1  ;;  %6777 = vmatpush.bf16.msra.mxu1 %v9887_v14 }
 0x90f   : > { %v5648_v57 = vadd.f32 %v12829_v30, %v5647_v21  ;;  %v6065_v34 = vmax.f32 %v13157_v13, 0.0 }
 0x910   : > { %v5871_v54 = vpop.f32.mrf.mxu2 }
 0x911   : > { %v5751_v20 = vmax.f32 %v5648_v57, 0.0  ;;  %v5872_v60 = vadd.f32 %v13023_v29, %v5871_v54  ;;  %v13166_v33 = vpop.f32.mrf.mxu0 }
 0x913   : > { %v5938_v44 = vadd.f32 %v5872_v60, %v12694_v17  ;;  %v5769_v15 = vpack.c.bf16 %v5751_v20, %v5750_v27 }
 0x915   : > { %v13160_v21 = vadd.f32 %v5938_v44, %v5213_v56  ;;  %5913 = vmatmul.bf16.gmra.mxu2 %v5769_v15  ;;  %v5216_v56 = vadd.f32 %v12962_v41, %v14544_v8 }
 0x916   : > { %v5650_v6 = vpop.f32.mrf.mxu1 }
 0x917   : > { %v6066_v5 = vmax.f32 %v13160_v21, 0.0  ;;  %v5651_v17 = vadd.f32 %v12829_v30, %v5650_v6  ;;  %v5218_v6 = vadd.f32 %v12975_v35, %v14544_v8 }
 0x918   : > { %v5874_v57 = vpop.f32.mrf.mxu2 }
 0x919   : > { %v6093_v54 = vpack.c.bf16 %v6066_v5, %v6065_v34  ;;  %v5875_v45 = vadd.f32 %v13023_v29, %v5874_v57  ;;  %v5752_v44 = vmax.f32 %v5651_v17, 0.0 }
 0x91b   : > { %6201 = vmatmul.bf16.gmra.mxu3 %v6093_v54  ;;  %v5939_v27 = vadd.f32 %v5875_v45, %v12725_v43  ;;  %v13183_v43 = vpop.f32.mrf.mxu3  ;;  %v13185_v45 = vpop.f32.mrf.mxu0 }
 0x91c   : > { %14550 = vst [vmem:[#allocation23_spill] sm:$0xff] %v13185_v45 }
 0x91d   : > { %v13180_v5 = vadd.f32 %v5939_v27, %v5216_v56  ;;  %v9874_v56 = vld [vmem:[%s14433_s10 + $0x40] sm:$0xff] }
 0x91e   : > { %v5652_v38 = vpop.f32.mrf.mxu1  ;;  %6449 = vmatpush.bf16.msra.mxu0 %v9874_v56 }
 0x91f   : > { %v5653_v20 = vadd.f32 %v12829_v30, %v5652_v38  ;;  %v6067_v17 = vmax.f32 %v13180_v5, 0.0 }
 0x920   : > { %v5876_v60 = vpop.f32.mrf.mxu2 }
 0x921   : > { %v5753_v15 = vmax.f32 %v5653_v20, 0.0  ;;  %v5877_v34 = vadd.f32 %v13023_v29, %v5876_v60 }
 0x923   : > { %v5940_v57 = vadd.f32 %v5877_v34, %v12732_v37  ;;  %v5770_v54 = vpack.c.bf16 %v5753_v15, %v5752_v44  ;;  %v13193_v27 = vpop.f32.mrf.mxu3  ;;  %v13198_v15 = vpop.f32.mrf.mxu0 }
 0x924   : > { %14551 = vst [vmem:[#allocation24_spill] sm:$0xff] %v13198_v15 }
 0x925   : > { %v13187_v14 = vadd.f32 %v5940_v57, %v5218_v6  ;;  %5918 = vmatmul.bf16.gmra.mxu2 %v5770_v54  ;;  %v5221_v54 = vadd.f32 %v12986_v9, %v14544_v8 }
 0x926   : > { %v5655_v41 = vpop.f32.mrf.mxu1 }
 0x927   : > { %v6068_v38 = vmax.f32 %v13187_v14, 0.0  ;;  %v5656_v37 = vadd.f32 %v12829_v30, %v5655_v41 }
 0x928   : > { %v5879_v20 = vpop.f32.mrf.mxu2 }
 0x929   : > { %v6094_v60 = vpack.c.bf16 %v6068_v38, %v6067_v17  ;;  %v5880_v35 = vadd.f32 %v13023_v29, %v5879_v20  ;;  %v5754_v17 = vmax.f32 %v5656_v37, 0.0  ;;  %v5223_v20 = vadd.f32 %v12999_v52, %v14544_v8 }
 0x92b   : > { %6206 = vmatmul.bf16.gmra.mxu3 %v6094_v60  ;;  %v5941_v34 = vadd.f32 %v5880_v35, %v12759_v0  ;;  %v13216_v56 = vpop.f32.mrf.mxu0 }
 0x92d   : > { %v13207_v60 = vadd.f32 %v5941_v34, %v5221_v54  ;;  %v5226_v34 = vadd.f32 %v13005_v16, %v14544_v8 }
 0x92e   : > { %v5657_v44 = vpop.f32.mrf.mxu1 }
 0x92f   : > { %v5658_v6 = vadd.f32 %v12829_v30, %v5657_v44  ;;  %v13212_v30 = vpop.f32.mrf.mxu3  ;;  %v6069_v35 = vmax.f32 %v13207_v60, 0.0 }
 0x930   : > { %v5881_v57 = vpop.f32.mrf.mxu2 }
 0x931   : > { %v5755_v41 = vmax.f32 %v5658_v6, 0.0  ;;  %v5882_v38 = vadd.f32 %v13023_v29, %v5881_v57 }
 0x933   : > { %v5942_v15 = vadd.f32 %v5882_v38, %v12766_v25  ;;  %v5771_v45 = vpack.c.bf16 %v5755_v41, %v5754_v17  ;;  %v9886_v25 = vld [vmem:[%s14431_s8 + $0xa0] sm:$0xff]  ;;  %v13228_v54 = vpop.f32.mrf.mxu0  ;;  %v5228_v17 = vadd.f32 %v13012_v49, %v14544_v8 }
 0x934   : > { %6778 = vmatpush.bf16.msra.mxu1 %v9886_v25 }
 0x935   : > { %v13210_v0 = vadd.f32 %v5942_v15, %v5223_v20  ;;  %5923 = vmatmul.bf16.gmra.mxu2 %v5771_v45 }
 0x937   : > { %v6070_v9 = vmax.f32 %v13210_v0, 0.0  ;;  %v13226_v57 = vpop.f32.mrf.mxu3 }
 0x938   : > { %v5884_v37 = vpop.f32.mrf.mxu2 }
 0x939   : > { %v6095_v44 = vpack.c.bf16 %v6070_v9, %v6069_v35  ;;  %v5885_v52 = vadd.f32 %v13023_v29, %v5884_v37 }
 0x93b   : > { %6211 = vmatmul.bf16.gmra.mxu3 %v6095_v44  ;;  %v5943_v15 = vadd.f32 %v5885_v52, %v12789_v63  ;;  %v13242_v52 = vpop.f32.mrf.mxu0 }
 0x93c   : > { %14552 = vst [vmem:[#allocation10_spill] sm:$0xff] %v13242_v52 }
 0x93d   : > { %v13232_v41 = vadd.f32 %v5943_v15, %v5226_v34 }
 0x93f   : > { %v6071_v63 = vmax.f32 %v13232_v41, 0.0  ;;  %v13240_v44 = vpop.f32.mrf.mxu3 }
 0x940   : > { %v5886_v45 = vpop.f32.mrf.mxu2 }
 0x941   : > { %v5887_v6 = vadd.f32 %v13023_v29, %v5886_v45  ;;  %v5233_v45 = vadd.f32 %v13025_v51, %v14544_v8  ;;  %v9885_v51 = vld [vmem:[%s14431_s8 + $0x98] sm:$0xff] }
 0x942   : > { %6779 = vmatpush.bf16.msra.mxu1 %v9885_v51 }
 0x943   : > { %v5944_v38 = vadd.f32 %v5887_v6, %v12794_v61  ;;  %v5231_v61 = vadd.f32 %v13016_v32, %v14544_v8 }
 0x945   : > { %v13235_v20 = vadd.f32 %v5944_v38, %v5228_v17 }
 0x947   : > { %v6072_v35 = vmax.f32 %v13235_v20, 0.0  ;;  %v13255_v38 = vpop.f32.mrf.mxu3 }
 0x948   : > { %v5889_v16 = vpop.f32.mrf.mxu2 }
 0x949   : > { %v6096_v9 = vpack.c.bf16 %v6072_v35, %v6071_v63  ;;  %v5890_v37 = vadd.f32 %v13023_v29, %v5889_v16  ;;  %v13257_v63 = vpop.f32.mrf.mxu0 }
 0x94a   : > { %14554 = vst [vmem:[#allocation26_spill] sm:$0xff] %v13257_v63 }
 0x94b   : > { %6216 = vmatmul.bf16.gmra.mxu3 %v6096_v9  ;;  %v5945_v49 = vadd.f32 %v5890_v37, %v12814_v22 }
 0x94d   : > { %v13250_v34 = vadd.f32 %v5945_v49, %v5231_v61  ;;  %v5236_v61 = vadd.f32 %v13048_v24, %v14544_v8 }
 0x94f   : > { %v6073_v22 = vmax.f32 %v13250_v34, 0.0 }
 0x950   : > { %v5891_v25 = vpop.f32.mrf.mxu2 }
 0x951   : > { %v5892_v15 = vadd.f32 %v13023_v29, %v5891_v25  ;;  %v13266_v25 = vpop.f32.mrf.mxu0 }
 0x952   : > { %14555 = vst [vmem:[#allocation12_spill] sm:$0xff] %v13266_v25 }
 0x953   : > { %v5946_v6 = vadd.f32 %v5892_v15, %v12819_v7  ;;  %v13273_v15 = vld [vmem:[%s14432_s9 + $0x1] ss:$0 sm:$0xff] }
 0x955   : > { %v13253_v17 = vadd.f32 %v5946_v6, %v5233_v45  ;;  %v5238_v6 = vadd.f32 %v13060_v26, %v14544_v8 }
 0x957   : > { %14553 = vst [vmem:[#allocation25_spill] sm:$0xff] %v13253_v17  ;;  %v6074_v35 = vmax.f32 %v13253_v17, 0.0 }
 0x958   : > { %v5894_v32 = vpop.f32.mrf.mxu2 }
 0x959   : > { %v6097_v16 = vpack.c.bf16 %v6074_v35, %v6073_v22  ;;  %v5895_v9 = vadd.f32 %v13023_v29, %v5894_v32  ;;  %v13287_v26 = vpop.f32.mrf.mxu0 }
 0x95b   : > { %6221 = vmatmul.bf16.gmra.mxu3 %v6097_v16  ;;  %v5947_v37 = vadd.f32 %v5895_v9, %v12848_v39  ;;  %v14556_v39 = vld [vmem:[#allocation13_spill] sm:$0xff] }
 0x95d   : > { %v13278_v22 = vadd.f32 %v5947_v37, %v5236_v61 }
 0x95e   : > { %v6182_v7 = vpop.f32.mrf.mxu3 }
 0x95f   : > { %v6183_v32 = vadd.f32 %v13273_v15, %v6182_v7  ;;  %v6075_v51 = vmax.f32 %v13278_v22, 0.0  ;;  %v9897_v7 = vld [vmem:[%s14433_s10 + $0xb8] sm:$0xff] }
 0x960   : > { %v5896_v49 = vpop.f32.mrf.mxu2  ;;  %7044 = vmatpush.bf16.msra.mxu2 %v9897_v7 }
 0x961   : > { %v5897_v45 = vadd.f32 %v13023_v29, %v5896_v49  ;;  %v6326_v49 = vmax.f32 %v6183_v32, 0.0  ;;  %v13302_v32 = vpop.f32.mrf.mxu0 }
 0x963   : > { %v5948_v35 = vadd.f32 %v5897_v45, %v14556_v39 }
 0x965   : > { %v13282_v16 = vadd.f32 %v5948_v35, %v5238_v6  ;;  %v5241_v35 = vadd.f32 %v13081_v19, %v14544_v8 }
 0x966   : > { %v6184_v9 = vpop.f32.mrf.mxu3 }
 0x967   : > { %v6185_v24 = vadd.f32 %v13273_v15, %v6184_v9  ;;  %v6076_v25 = vmax.f32 %v13282_v16, 0.0 }
 0x968   : > { %v5899_v17 = vpop.f32.mrf.mxu2 }
 0x969   : > { %v6327_v63 = vmax.f32 %v6185_v24, 0.0  ;;  %v6098_v52 = vpack.c.bf16 %v6076_v25, %v6075_v51  ;;  %v5900_v61 = vadd.f32 %v13023_v29, %v5899_v17 }
 0x96b   : > { %v6358_v37 = vpack.c.bf16 %v6327_v63, %v6326_v49  ;;  %6226 = vmatmul.bf16.gmra.mxu3 %v6098_v52  ;;  %v5949_v6 = vadd.f32 %v5900_v61, %v12874_v48  ;;  %v5243_v63 = vadd.f32 %v13097_v53, %v14544_v8 }
 0x96d   : > { %6450 = vmatmul.bf16.vlgmr.msra.gmra.mxu0 %v6358_v37  ;;  %v13299_v17 = vadd.f32 %v5949_v6, %v5241_v35  ;;  %v13314_v35 = vpop.f32.mrf.mxu0 }
 0x96e   : > { %v6187_v45 = vpop.f32.mrf.mxu3 }
 0x96f   : > { %v6188_v9 = vadd.f32 %v13273_v15, %v6187_v45  ;;  %v6077_v19 = vmax.f32 %v13299_v17, 0.0  ;;  %v9884_v45 = vld [vmem:[%s14431_s8 + $0x90] sm:$0xff] }
 0x970   : > { %v5901_v39 = vpop.f32.mrf.mxu2  ;;  %6780 = vmatpush.bf16.msra.mxu1 %v9884_v45 }
 0x971   : > { %v5902_v25 = vadd.f32 %v13023_v29, %v5901_v39  ;;  %v6328_v61 = vmax.f32 %v6188_v9, 0.0 }
 0x973   : > { %v5950_v52 = vadd.f32 %v5902_v25, %v12877_v42 }
 0x975   : > { %v13305_v24 = vadd.f32 %v5950_v52, %v5243_v63  ;;  %v5246_v52 = vadd.f32 %v13115_v58, %v14544_v8 }
 0x976   : > { %v6189_v48 = vpop.f32.mrf.mxu3 }
 0x977   : > { %v6190_v51 = vadd.f32 %v13273_v15, %v6189_v48  ;;  %v6078_v49 = vmax.f32 %v13305_v24, 0.0  ;;  %v5248_v48 = vadd.f32 %v13135_v46, %v14544_v8 }
 0x978   : > { %v5904_v37 = vpop.f32.mrf.mxu2 }
 0x979   : > { %v6329_v53 = vmax.f32 %v6190_v51, 0.0  ;;  %v6099_v7 = vpack.c.bf16 %v6078_v49, %v6077_v19  ;;  %v5905_v6 = vadd.f32 %v13023_v29, %v5904_v37 }
 0x97b   : > { %6231 = vmatmul.bf16.gmra.mxu3 %v6099_v7  ;;  %v6359_v42 = vpack.c.bf16 %v6329_v53, %v6328_v61  ;;  %v5951_v25 = vadd.f32 %v5905_v6, %v12898_v2  ;;  %v13331_v6 = vpop.f32.mrf.mxu0 }
 0x97d   : > { %6455 = vmatmul.bf16.gmra.mxu0 %v6359_v42  ;;  %v13322_v51 = vadd.f32 %v5951_v25, %v5246_v52 }
 0x97e   : > { %v6192_v39 = vpop.f32.mrf.mxu3 }
 0x97f   : > { %v6193_v49 = vadd.f32 %v13273_v15, %v6192_v39  ;;  %v6079_v53 = vmax.f32 %v13322_v51, 0.0  ;;  %v9896_v39 = vld [vmem:[%s14433_s10 + $0xb0] sm:$0xff] }
 0x980   : > { %v5906_v63 = vpop.f32.mrf.mxu2  ;;  %7045 = vmatpush.bf16.msra.mxu2 %v9896_v39 }
 0x981   : > { %v5907_v9 = vadd.f32 %v13023_v29, %v5906_v63  ;;  %v6330_v42 = vmax.f32 %v6193_v49, 0.0 }
 0x983   : > { %v5952_v19 = vadd.f32 %v5907_v9, %v12901_v11  ;;  %v13341_v49 = vpop.f32.mrf.mxu0 }
 0x985   : > { %v13326_v37 = vadd.f32 %v5952_v19, %v5248_v48  ;;  %v5251_v48 = vadd.f32 %v13148_v3, %v14544_v8 }
 0x986   : > { %v6194_v61 = vpop.f32.mrf.mxu3 }
 0x987   : > { %v6195_v2 = vadd.f32 %v13273_v15, %v6194_v61  ;;  %v6080_v58 = vmax.f32 %v13326_v37, 0.0  ;;  %v5253_v61 = vadd.f32 %v13164_v12, %v14544_v8 }
 0x988   : > { %v5909_v7 = vpop.f32.mrf.mxu2 }
 0x989   : > { %v6331_v46 = vmax.f32 %v6195_v2, 0.0  ;;  %v6100_v45 = vpack.c.bf16 %v6080_v58, %v6079_v53  ;;  %v5910_v25 = vadd.f32 %v13023_v29, %v5909_v7  ;;  %v14557_v53 = vld [vmem:[#allocation14_spill] sm:$0xff] }
 0x98b   : > { %6236 = vmatmul.bf16.gmra.mxu3 %v6100_v45  ;;  %v6360_v11 = vpack.c.bf16 %v6331_v46, %v6330_v42  ;;  %v5953_v52 = vadd.f32 %v5910_v25, %v12922_v10 }
 0x98d   : > { %6460 = vmatmul.bf16.gmra.mxu0 %v6360_v11  ;;  %v13345_v2 = vadd.f32 %v5953_v52, %v5251_v48  ;;  %v13355_v48 = vpop.f32.mrf.mxu0 }
 0x98e   : > { %v6197_v63 = vpop.f32.mrf.mxu3 }
 0x98f   : > { %v6198_v7 = vadd.f32 %v13273_v15, %v6197_v63  ;;  %v6081_v3 = vmax.f32 %v13345_v2, 0.0  ;;  %v9883_v63 = vld [vmem:[%s14431_s8 + $0x88] sm:$0xff] }
 0x990   : > { %v5911_v9 = vpop.f32.mrf.mxu2  ;;  %6781 = vmatpush.bf16.msra.mxu1 %v9883_v63 }
 0x991   : > { %v5912_v19 = vadd.f32 %v13023_v29, %v5911_v9  ;;  %v6332_v11 = vmax.f32 %v6198_v7, 0.0 }
 0x993   : > { %v5954_v58 = vadd.f32 %v5912_v19, %v14557_v53 }
 0x995   : > { %v13349_v42 = vadd.f32 %v5954_v58, %v5253_v61  ;;  %v5256_v58 = vadd.f32 %v13183_v43, %v14544_v8 }
 0x996   : > { %v6199_v10 = vpop.f32.mrf.mxu3 }
 0x997   : > { %v6200_v46 = vadd.f32 %v13273_v15, %v6199_v10  ;;  %v6082_v45 = vmax.f32 %v13349_v42, 0.0  ;;  %v5258_v10 = vadd.f32 %v13193_v27, %v14544_v8 }
 0x998   : > { %v5914_v25 = vpop.f32.mrf.mxu2 }
 0x999   : > { %v6333_v39 = vmax.f32 %v6200_v46, 0.0  ;;  %v6101_v9 = vpack.c.bf16 %v6082_v45, %v6081_v3  ;;  %v5915_v12 = vadd.f32 %v13023_v29, %v5914_v25  ;;  %v14558_v3 = vld [vmem:[#allocation16_spill] sm:$0xff] }
 0x99b   : > { %6241 = vmatmul.bf16.gmra.mxu3 %v6101_v9  ;;  %v6361_v52 = vpack.c.bf16 %v6333_v39, %v6332_v11  ;;  %v5955_v61 = vadd.f32 %v5915_v12, %v12946_v1  ;;  %v13372_v1 = vpop.f32.mrf.mxu0 }
 0x99d   : > { %6465 = vmatmul.bf16.gmra.mxu0 %v6361_v52  ;;  %v13366_v46 = vadd.f32 %v5955_v61, %v5256_v58 }
 0x99e   : > { %v6202_v19 = vpop.f32.mrf.mxu3 }
 0x99f   : > { %v6203_v25 = vadd.f32 %v13273_v15, %v6202_v19  ;;  %v6083_v43 = vmax.f32 %v13366_v46, 0.0 }
 0x9a0   : > { %v5916_v53 = vpop.f32.mrf.mxu2 }
 0x9a1   : > { %v5917_v7 = vadd.f32 %v13023_v29, %v5916_v53  ;;  %v6334_v63 = vmax.f32 %v6203_v25, 0.0  ;;  %v9895_v53 = vld [vmem:[%s14433_s10 + $0xa8] sm:$0xff]  ;;  %v5261_v25 = vadd.f32 %v13212_v30, %v14544_v8 }
 0x9a2   : > { %7046 = vmatpush.bf16.msra.mxu2 %v9895_v53 }
 0x9a3   : > { %v5956_v45 = vadd.f32 %v5917_v7, %v14558_v3 }
 0x9a5   : > { %v13370_v11 = vadd.f32 %v5956_v45, %v5258_v10  ;;  %v14560_v10 = vld [vmem:[#allocation17_spill] sm:$0xff] }
 0x9a6   : > { %v6204_v39 = vpop.f32.mrf.mxu3 }
 0x9a7   : > { %14559 = vst [vmem:[#allocation3_spill] sm:$0xff] %v13370_v11  ;;  %v6205_v9 = vadd.f32 %v13273_v15, %v6204_v39  ;;  %v6084_v12 = vmax.f32 %v13370_v11, 0.0  ;;  %v13382_v39 = vpop.f32.mrf.mxu0 }
 0x9a8   : > { %v5919_v52 = vpop.f32.mrf.mxu2  ;;  %14561 = vst [vmem:[#allocation2_spill] sm:$0xff] %v13382_v39 }
 0x9a9   : > { %v6335_v27 = vmax.f32 %v6205_v9, 0.0  ;;  %v6102_v61 = vpack.c.bf16 %v6084_v12, %v6083_v43  ;;  %v5920_v19 = vadd.f32 %v13023_v29, %v5919_v52  ;;  %v5263_v43 = vadd.f32 %v13226_v57, %v14544_v8  ;;  %v14562_v52 = vld [vmem:[#allocation18_spill] sm:$0xff] }
 0x9ab   : > { %6246 = vmatmul.bf16.gmra.mxu3 %v6102_v61  ;;  %v6362_v58 = vpack.c.bf16 %v6335_v27, %v6334_v63  ;;  %v5957_v3 = vadd.f32 %v5920_v19, %v14560_v10 }
 0x9ad   : > { %6470 = vmatmul.bf16.gmra.mxu0 %v6362_v58  ;;  %v13389_v12 = vadd.f32 %v5957_v3, %v5261_v25 }
 0x9ae   : > { %v6207_v7 = vpop.f32.mrf.mxu3 }
 0x9af   : > { %v6208_v27 = vadd.f32 %v13273_v15, %v6207_v7  ;;  %v6085_v58 = vmax.f32 %v13389_v12, 0.0  ;;  %v13398_v57 = vpop.f32.mrf.mxu0  ;;  %v9882_v7 = vld [vmem:[%s14431_s8 + $0x80] sm:$0xff] }
 0x9b0   : > { %v5921_v45 = vpop.f32.mrf.mxu2  ;;  %6782 = vmatpush.bf16.msra.mxu1 %v9882_v7 }
 0x9b1   : > { %v5922_v9 = vadd.f32 %v13023_v29, %v5921_v45  ;;  %v6336_v45 = vmax.f32 %v6208_v27, 0.0  ;;  %v5266_v27 = vadd.f32 %v13240_v44, %v14544_v8 }
 0x9b3   : > { %v5958_v63 = vadd.f32 %v5922_v9, %v14562_v52 }
 0x9b5   : > { %v13393_v61 = vadd.f32 %v5958_v63, %v5263_v43  ;;  %v14564_v43 = vld [vmem:[#allocation19_spill] sm:$0xff] }
 0x9b6   : > { %v6209_v53 = vpop.f32.mrf.mxu3 }
 0x9b7   : > { %14563 = vst [vmem:[#allocation5_spill] sm:$0xff] %v13393_v61  ;;  %v6210_v19 = vadd.f32 %v13273_v15, %v6209_v53  ;;  %v6086_v30 = vmax.f32 %v13393_v61, 0.0 }
 0x9b8   : > { %v5924_v10 = vpop.f32.mrf.mxu2 }
 0x9b9   : > { %v6337_v11 = vmax.f32 %v6210_v19, 0.0  ;;  %v6103_v39 = vpack.c.bf16 %v6086_v30, %v6085_v58  ;;  %v5925_v3 = vadd.f32 %v13023_v29, %v5924_v10  ;;  %v5268_v19 = vadd.f32 %v13255_v38, %v14544_v8  ;;  %v13413_v30 = vpop.f32.mrf.mxu0  ;;  %v9894_v38 = vld [vmem:[%s14433_s10 + $0xa0] sm:$0xff] }
 0x9ba   : > { %7047 = vmatpush.bf16.msra.mxu2 %v9894_v38 }
 0x9bb   : > { %6251 = vmatmul.bf16.gmra.mxu3 %v6103_v39  ;;  %v6363_v25 = vpack.c.bf16 %v6337_v11, %v6336_v45  ;;  %v5959_v52 = vadd.f32 %v5925_v3, %v14564_v43  ;;  %v14566_v11 = vld [vmem:[#allocation6_spill] sm:$0xff] }
 0x9bd   : > { %6475 = vmatmul.bf16.gmra.mxu0 %v6363_v25  ;;  %v13410_v39 = vadd.f32 %v5959_v52, %v5266_v27 }
 0x9be   : > { %v6212_v9 = vpop.f32.mrf.mxu3 }
 0x9bf   : > { %14565 = vst [vmem:[#allocation4_spill] sm:$0xff] %v13410_v39  ;;  %v6213_v10 = vadd.f32 %v13273_v15, %v6212_v9  ;;  %v6087_v44 = vmax.f32 %v13410_v39, 0.0 }
 0x9c0   : > { %v5926_v63 = vpop.f32.mrf.mxu2 }
 0x9c1   : > { %v5927_v53 = vadd.f32 %v13023_v29, %v5926_v63  ;;  %v6338_v7 = vmax.f32 %v6213_v10, 0.0  ;;  %v13424_v9 = vpop.f32.mrf.mxu0 }
 0x9c3   : > { %v5960_v58 = vadd.f32 %v5927_v53, %v14566_v11 }
 0x9c5   : > { %v13416_v45 = vadd.f32 %v5960_v58, %v5268_v19 }
 0x9c6   : > { %v6214_v3 = vpop.f32.mrf.mxu3 }
 0x9c7   : > { %14567 = vst [vmem:[#allocation15_spill] sm:$0xff] %v13416_v45  ;;  %v6215_v25 = vadd.f32 %v13273_v15, %v6214_v3  ;;  %v6088_v29 = vmax.f32 %v13416_v45, 0.0  ;;  %v14572_v45 = vld [vmem:[#allocation21_spill] sm:$0xff] }
 0x9c9   : > { %v6339_v43 = vmax.f32 %v6215_v25, 0.0  ;;  %v6104_v8 = vpack.c.bf16 %v6088_v29, %v6087_v44  ;;  %v13428_v11 = vpop.f32.mrf.mxu0 }
 0x9ca   : > { %14568 = vst [vmem:[#allocation13_spill] sm:$0xff] %v13428_v11 }
 0x9cb   : > { %6256 = vmatmul.bf16.gmra.mxu3 %v6104_v8  ;;  %v6364_v52 = vpack.c.bf16 %v6339_v43, %v6338_v7 }
 0x9cd   : > { %6480 = vmatmul.bf16.gmra.mxu0 %v6364_v52  ;;  %v13437_v52 = vld [vmem:[%s14434_s11 + $0x1] ss:$0 sm:$0xff] }
 0x9ce   : > { %v6217_v63 = vpop.f32.mrf.mxu3 }
 0x9cf   : > { %v6218_v27 = vadd.f32 %v13273_v15, %v6217_v63  ;;  %v9893_v63 = vld [vmem:[%s14433_s10 + $0x98] sm:$0xff] }
 0x9d0   : > { %7048 = vmatpush.bf16.msra.mxu2 %v9893_v63 }
 0x9d1   : > { %v6340_v58 = vmax.f32 %v6218_v27, 0.0  ;;  %v13430_v44 = vpop.f32.mrf.mxu0 }
 0x9d2   : > { %14569 = vst [vmem:[#allocation14_spill] sm:$0xff] %v13430_v44 }
 0x9d6   : > { %v6219_v53 = vpop.f32.mrf.mxu3 }
 0x9d7   : > { %v6220_v19 = vadd.f32 %v13273_v15, %v6219_v53 }
 0x9d9   : > { %v6341_v10 = vmax.f32 %v6220_v19, 0.0 }
 0x9db   : > { %v6365_v3 = vpack.c.bf16 %v6341_v10, %v6340_v58 }
 0x9dd   : > { %6485 = vmatmul.bf16.gmra.mxu0 %v6365_v3 }
 0x9de   : > { %v6222_v25 = vpop.f32.mrf.mxu3 }
 0x9df   : > { %v6223_v29 = vadd.f32 %v13273_v15, %v6222_v25  ;;  %v14570_v25 = vld [vmem:[#allocation27_spill] sm:$0xff] }
 0x9e0   : > { %v5282_v44 = vadd.f32 %v14572_v45, %v14570_v25 }
 0x9e1   : > { %v6342_v8 = vmax.f32 %v6223_v29, 0.0  ;;  %v14571_v29 = vld [vmem:[#allocation20_spill] sm:$0xff] }
 0x9e6   : > { %v6224_v7 = vpop.f32.mrf.mxu3 }
 0x9e7   : > { %v6225_v43 = vadd.f32 %v13273_v15, %v6224_v7  ;;  %v5280_v7 = vadd.f32 %v14571_v29, %v14570_v25 }
 0x9e9   : > { %v6343_v38 = vmax.f32 %v6225_v43, 0.0 }
 0x9ea   : > { %v6451_v27 = vpop.f32.mrf.mxu0 }
 0x9eb   : > { %v6366_v53 = vpack.c.bf16 %v6343_v38, %v6342_v8  ;;  %v6452_v19 = vadd.f32 %v13437_v52, %v6451_v27 }
 0x9ed   : > { %6490 = vmatmul.bf16.gmra.mxu0 %v6366_v53  ;;  %v6531_v10 = vadd.f32 %v6452_v19, %v13045_v40 }
 0x9ee   : > { %v6227_v58 = vpop.f32.mrf.mxu3 }
 0x9ef   : > { %v13449_v11 = vadd.f32 %v6531_v10, %v5280_v7  ;;  %v6228_v8 = vadd.f32 %v13273_v15, %v6227_v58 }
 0x9f1   : > { %v6659_v53 = vmax.f32 %v13449_v11, 0.0  ;;  %v6344_v19 = vmax.f32 %v6228_v8, 0.0 }
 0x9f2   : > { %v6453_v3 = vpop.f32.mrf.mxu0 }
 0x9f3   : > { %v6454_v43 = vadd.f32 %v13437_v52, %v6453_v3 }
 0x9f5   : > { %v6532_v38 = vadd.f32 %v6454_v43, %v13050_v31  ;;  %v9905_v31 = vld [vmem:[%s14431_s8 + $0xf8] sm:$0xff]  ;;  %v14573_v43 = vld [vmem:[#allocation7_spill] sm:$0xff] }
 0x9f6   : > { %v6229_v63 = vpop.f32.mrf.mxu3  ;;  %7345 = vmatpush.bf16.msra.mxu3 %v9905_v31  ;;  %v5285_v8 = vadd.f32 %v14573_v43, %v14570_v25 }
 0x9f7   : > { %v13453_v27 = vadd.f32 %v6532_v38, %v5282_v44  ;;  %v6230_v40 = vadd.f32 %v13273_v15, %v6229_v63  ;;  %v5287_v63 = vadd.f32 %v13054_v50, %v14570_v25  ;;  %v9892_v50 = vld [vmem:[%s14433_s10 + $0x90] sm:$0xff] }
 0x9f8   : > { %7049 = vmatpush.bf16.msra.mxu2 %v9892_v50 }
 0x9f9   : > { %v6660_v29 = vmax.f32 %v13453_v27, 0.0  ;;  %v6345_v3 = vmax.f32 %v6230_v40, 0.0 }
 0x9fa   : > { %v6456_v39 = vpop.f32.mrf.mxu0 }
 0x9fb   : > { %v6691_v61 = vpack.c.bf16 %v6660_v29, %v6659_v53  ;;  %v6367_v45 = vpack.c.bf16 %v6345_v3, %v6344_v19  ;;  %v6457_v10 = vadd.f32 %v13437_v52, %v6456_v39 }
 0x9fd   : > { %6495 = vmatmul.bf16.gmra.mxu0 %v6367_v45  ;;  %6783 = vmatmul.bf16.vlgmr.msra.gmra.mxu1 %v6691_v61  ;;  %v6533_v44 = vadd.f32 %v6457_v10, %v13074_v28 }
 0x9fe   : > { %v6232_v58 = vpop.f32.mrf.mxu3 }
 0x9ff   : > { %v13468_v39 = vadd.f32 %v6533_v44, %v5285_v8  ;;  %v6233_v61 = vadd.f32 %v13273_v15, %v6232_v58 }
 0xa01   : > { %v6346_v29 = vmax.f32 %v6233_v61, 0.0  ;;  %v6661_v45 = vmax.f32 %v13468_v39, 0.0 }
 0xa02   : > { %v6458_v7 = vpop.f32.mrf.mxu0 }
 0xa03   : > { %v6459_v38 = vadd.f32 %v13437_v52, %v6458_v7 }
 0xa05   : > { %v6534_v40 = vadd.f32 %v6459_v38, %v13077_v18  ;;  %v14574_v38 = vld [vmem:[#allocation22_spill] sm:$0xff] }
 0xa06   : > { %v6234_v53 = vpop.f32.mrf.mxu3 }
 0xa07   : > { %v13472_v19 = vadd.f32 %v6534_v40, %v5287_v63  ;;  %v6235_v28 = vadd.f32 %v13273_v15, %v6234_v53  ;;  %v5290_v63 = vadd.f32 %v14574_v38, %v14570_v25  ;;  %v5292_v40 = vadd.f32 %v13083_v47, %v14570_v25 }
 0xa09   : > { %v6347_v3 = vmax.f32 %v6235_v28, 0.0  ;;  %v6662_v10 = vmax.f32 %v13472_v19, 0.0 }
 0xa0a   : > { %v6461_v31 = vpop.f32.mrf.mxu0 }
 0xa0b   : > { %v6368_v44 = vpack.c.bf16 %v6347_v3, %v6346_v29  ;;  %v6692_v58 = vpack.c.bf16 %v6662_v10, %v6661_v45  ;;  %v6462_v18 = vadd.f32 %v13437_v52, %v6461_v31 }
 0xa0d   : > { %6500 = vmatmul.bf16.gmra.mxu0 %v6368_v44  ;;  %6788 = vmatmul.bf16.gmra.mxu1 %v6692_v58  ;;  %v6535_v43 = vadd.f32 %v6462_v18, %v13103_v55 }
 0xa0e   : > { %v6237_v7 = vpop.f32.mrf.mxu3 }
 0xa0f   : > { %v13487_v53 = vadd.f32 %v6535_v43, %v5290_v63  ;;  %v6238_v28 = vadd.f32 %v13273_v15, %v6237_v7  ;;  %v5295_v63 = vadd.f32 %v13099_v23, %v14570_v25 }
 0xa11   : > { %v6348_v10 = vmax.f32 %v6238_v28, 0.0  ;;  %v6663_v31 = vmax.f32 %v13487_v53, 0.0 }
 0xa12   : > { %v6463_v8 = vpop.f32.mrf.mxu0 }
 0xa13   : > { %v6464_v61 = vadd.f32 %v13437_v52, %v6463_v8 }
 0xa15   : > { %v6536_v29 = vadd.f32 %v6464_v61, %v13106_v4  ;;  %v9904_v4 = vld [vmem:[%s14431_s8 + $0xf0] sm:$0xff] }
 0xa16   : > { %v6239_v3 = vpop.f32.mrf.mxu3  ;;  %7346 = vmatpush.bf16.msra.mxu3 %v9904_v4 }
 0xa17   : > { %v13491_v45 = vadd.f32 %v6536_v29, %v5292_v40  ;;  %v6240_v55 = vadd.f32 %v13273_v15, %v6239_v3  ;;  %v5297_v40 = vadd.f32 %v13110_v62, %v14570_v25  ;;  %v9891_v62 = vld [vmem:[%s14433_s10 + $0x88] sm:$0xff] }
 0xa18   : > { %7050 = vmatpush.bf16.msra.mxu2 %v9891_v62 }
 0xa19   : > { %v6349_v50 = vmax.f32 %v6240_v55, 0.0  ;;  %v6664_v44 = vmax.f32 %v13491_v45, 0.0 }
 0xa1a   : > { %v6466_v58 = vpop.f32.mrf.mxu0 }
 0xa1b   : > { %v6369_v18 = vpack.c.bf16 %v6349_v50, %v6348_v10  ;;  %v6693_v47 = vpack.c.bf16 %v6664_v44, %v6663_v31  ;;  %v6467_v43 = vadd.f32 %v13437_v52, %v6466_v58 }
 0xa1d   : > { %6505 = vmatmul.bf16.gmra.mxu0 %v6369_v18  ;;  %6793 = vmatmul.bf16.gmra.mxu1 %v6693_v47  ;;  %v6537_v8 = vadd.f32 %v6467_v43, %v13130_v36 }
 0xa1e   : > { %v6242_v7 = vpop.f32.mrf.mxu3 }
 0xa1f   : > { %v13506_v28 = vadd.f32 %v6537_v8, %v5295_v63  ;;  %v6243_v29 = vadd.f32 %v13273_v15, %v6242_v7  ;;  %v14575_v8 = vld [vmem:[#allocation9_spill] sm:$0xff] }
 0xa21   : > { %v6350_v50 = vmax.f32 %v6243_v29, 0.0  ;;  %v6665_v23 = vmax.f32 %v13506_v28, 0.0 }
 0xa22   : > { %v6468_v38 = vpop.f32.mrf.mxu0 }
 0xa23   : > { %v6469_v61 = vadd.f32 %v13437_v52, %v6468_v38  ;;  %v5300_v38 = vadd.f32 %v14575_v8, %v14570_v25  ;;  %v14577_v8 = vld [vmem:[#allocation11_spill] sm:$0xff] }
 0xa25   : > { %v6538_v3 = vadd.f32 %v6469_v61, %v13133_v59  ;;  %v14576_v61 = vld [vmem:[#allocation8_spill] sm:$0xff] }
 0xa26   : > { %v6244_v55 = vpop.f32.mrf.mxu3 }
 0xa27   : > { %v13510_v10 = vadd.f32 %v6538_v3, %v5297_v40  ;;  %v6245_v36 = vadd.f32 %v13273_v15, %v6244_v55  ;;  %v5302_v40 = vadd.f32 %v14576_v61, %v14570_v25  ;;  %v5307_v61 = vadd.f32 %v13166_v33, %v14570_v25 }
 0xa29   : > { %v6351_v31 = vmax.f32 %v6245_v36, 0.0  ;;  %v6666_v44 = vmax.f32 %v13510_v10, 0.0 }
 0xa2a   : > { %v6471_v58 = vpop.f32.mrf.mxu0 }
 0xa2b   : > { %v6370_v18 = vpack.c.bf16 %v6351_v31, %v6350_v50  ;;  %v6694_v47 = vpack.c.bf16 %v6666_v44, %v6665_v23  ;;  %v6472_v59 = vadd.f32 %v13437_v52, %v6471_v58 }
 0xa2d   : > { %6510 = vmatmul.bf16.gmra.mxu0 %v6370_v18  ;;  %6798 = vmatmul.bf16.gmra.mxu1 %v6694_v47  ;;  %v6539_v7 = vadd.f32 %v6472_v59, %v13157_v13 }
 0xa2e   : > { %v6247_v43 = vpop.f32.mrf.mxu3 }
 0xa2f   : > { %v13525_v29 = vadd.f32 %v6539_v7, %v5300_v38  ;;  %v6248_v3 = vadd.f32 %v13273_v15, %v6247_v43  ;;  %v5305_v38 = vadd.f32 %v14577_v8, %v14570_v25 }
 0xa31   : > { %v6352_v31 = vmax.f32 %v6248_v3, 0.0  ;;  %v6667_v44 = vmax.f32 %v13525_v29, 0.0 }
 0xa32   : > { %v6473_v4 = vpop.f32.mrf.mxu0 }
 0xa33   : > { %v6474_v63 = vadd.f32 %v13437_v52, %v6473_v4 }
 0xa35   : > { %v6540_v55 = vadd.f32 %v6474_v63, %v13160_v21  ;;  %v9903_v21 = vld [vmem:[%s14431_s8 + $0xe8] sm:$0xff] }
 0xa36   : > { %v6249_v36 = vpop.f32.mrf.mxu3  ;;  %7347 = vmatpush.bf16.msra.mxu3 %v9903_v21 }
 0xa37   : > { %v13529_v50 = vadd.f32 %v6540_v55, %v5302_v40  ;;  %v6250_v13 = vadd.f32 %v13273_v15, %v6249_v36 }
 0xa39   : > { %v6353_v23 = vmax.f32 %v6250_v13, 0.0  ;;  %v6668_v62 = vmax.f32 %v13529_v50, 0.0 }
 0xa3a   : > { %v6476_v58 = vpop.f32.mrf.mxu0 }
 0xa3b   : > { %v6371_v18 = vpack.c.bf16 %v6353_v23, %v6352_v31  ;;  %v6695_v47 = vpack.c.bf16 %v6668_v62, %v6667_v44  ;;  %v6477_v59 = vadd.f32 %v13437_v52, %v6476_v58  ;;  %v9890_v31 = vld [vmem:[%s14433_s10 + $0x80] sm:$0xff] }
 0xa3c   : > { %7051 = vmatpush.bf16.msra.mxu2 %v9890_v31 }
 0xa3d   : > { %6515 = vmatmul.bf16.gmra.mxu0 %v6371_v18  ;;  %6803 = vmatmul.bf16.gmra.mxu1 %v6695_v47  ;;  %v6541_v7 = vadd.f32 %v6477_v59, %v13180_v5 }
 0xa3e   : > { %v6252_v43 = vpop.f32.mrf.mxu3 }
 0xa3f   : > { %v13544_v40 = vadd.f32 %v6541_v7, %v5305_v38  ;;  %v6253_v3 = vadd.f32 %v13273_v15, %v6252_v43  ;;  %v14578_v7 = vld [vmem:[#allocation23_spill] sm:$0xff]  ;;  %v14579_v38 = vld [vmem:[#allocation24_spill] sm:$0xff] }
 0xa41   : > { %v6354_v23 = vmax.f32 %v6253_v3, 0.0  ;;  %v6669_v62 = vmax.f32 %v13544_v40, 0.0 }
 0xa42   : > { %v6478_v4 = vpop.f32.mrf.mxu0 }
 0xa43   : > { %v6479_v63 = vadd.f32 %v13437_v52, %v6478_v4  ;;  %v5310_v4 = vadd.f32 %v14578_v7, %v14570_v25 }
 0xa45   : > { %v6542_v55 = vadd.f32 %v6479_v63, %v13187_v14  ;;  %v5312_v63 = vadd.f32 %v14579_v38, %v14570_v25 }
 0xa46   : > { %v6254_v36 = vpop.f32.mrf.mxu3 }
 0xa47   : > { %v13548_v13 = vadd.f32 %v6542_v55, %v5307_v61  ;;  %v6255_v5 = vadd.f32 %v13273_v15, %v6254_v36 }
 0xa49   : > { %v6355_v44 = vmax.f32 %v6255_v5, 0.0  ;;  %v6670_v33 = vmax.f32 %v13548_v13, 0.0 }
 0xa4a   : > { %v6481_v58 = vpop.f32.mrf.mxu0 }
 0xa4b   : > { %v6372_v18 = vpack.c.bf16 %v6355_v44, %v6354_v23  ;;  %v6696_v47 = vpack.c.bf16 %v6670_v33, %v6669_v62  ;;  %v6482_v14 = vadd.f32 %v13437_v52, %v6481_v58 }
 0xa4d   : > { %6520 = vmatmul.bf16.gmra.mxu0 %v6372_v18  ;;  %6808 = vmatmul.bf16.gmra.mxu1 %v6696_v47  ;;  %v6543_v43 = vadd.f32 %v6482_v14, %v13207_v60 }
 0xa4e   : > { %v6257_v59 = vpop.f32.mrf.mxu3 }
 0xa4f   : > { %v13563_v61 = vadd.f32 %v6543_v43, %v5310_v4  ;;  %v6258_v3 = vadd.f32 %v13273_v15, %v6257_v59  ;;  %v5315_v59 = vadd.f32 %v13216_v56, %v14570_v25 }
 0xa51   : > { %v6356_v31 = vmax.f32 %v6258_v3, 0.0  ;;  %v6671_v44 = vmax.f32 %v13563_v61, 0.0 }
 0xa52   : > { %v6483_v21 = vpop.f32.mrf.mxu0 }
 0xa53   : > { %v6484_v8 = vadd.f32 %v13437_v52, %v6483_v21  ;;  %v5317_v21 = vadd.f32 %v13228_v54, %v14570_v25  ;;  %v14580_v54 = vld [vmem:[#allocation10_spill] sm:$0xff] }
 0xa55   : > { %v6544_v55 = vadd.f32 %v6484_v8, %v13210_v0  ;;  %v9902_v0 = vld [vmem:[%s14431_s8 + $0xe0] sm:$0xff] }
 0xa56   : > { %v6259_v36 = vpop.f32.mrf.mxu3  ;;  %7348 = vmatpush.bf16.msra.mxu3 %v9902_v0 }
 0xa57   : > { %v13567_v5 = vadd.f32 %v6544_v55, %v5312_v63  ;;  %v6260_v60 = vadd.f32 %v13273_v15, %v6259_v36 }
 0xa59   : > { %v6357_v23 = vmax.f32 %v6260_v60, 0.0  ;;  %v6672_v62 = vmax.f32 %v13567_v5, 0.0  ;;  %v5320_v60 = vadd.f32 %v14580_v54, %v14570_v25 }
 0xa5a   : > { %v6486_v33 = vpop.f32.mrf.mxu0 }
 0xa5b   : > { %v6373_v58 = vpack.c.bf16 %v6357_v23, %v6356_v31  ;;  %v6697_v18 = vpack.c.bf16 %v6672_v62, %v6671_v44  ;;  %v6487_v47 = vadd.f32 %v13437_v52, %v6486_v33  ;;  %v14582_v62 = vld [vmem:[#allocation25_spill] sm:$0xff] }
 0xa5d   : > { %6525 = vmatmul.bf16.gmra.mxu0 %v6373_v58  ;;  %6813 = vmatmul.bf16.gmra.mxu1 %v6697_v18  ;;  %v6545_v14 = vadd.f32 %v6487_v47, %v13232_v41 }
 0xa5f   : > { %v13582_v7 = vadd.f32 %v6545_v14, %v5315_v59  ;;  %v13607_v59 = vld [vmem:[%s14432_s9 + $0x2] ss:$0 sm:$0xff] }
 0xa61   : > { %v6673_v38 = vmax.f32 %v13582_v7, 0.0 }
 0xa62   : > { %v6488_v15 = vpop.f32.mrf.mxu0 }
 0xa63   : > { %v6489_v43 = vadd.f32 %v13437_v52, %v6488_v15 }
 0xa65   : > { %v6546_v4 = vadd.f32 %v6489_v43, %v13235_v20  ;;  %v14581_v20 = vld [vmem:[#allocation26_spill] sm:$0xff]  ;;  %v9901_v43 = vld [vmem:[%s14431_s8 + $0xd8] sm:$0xff] }
 0xa66   : > { %v5322_v23 = vadd.f32 %v14581_v20, %v14570_v25  ;;  %7349 = vmatpush.bf16.msra.mxu3 %v9901_v43 }
 0xa67   : > { %v13585_v8 = vadd.f32 %v6546_v4, %v5317_v21 }
 0xa69   : > { %v6674_v41 = vmax.f32 %v13585_v8, 0.0 }
 0xa6a   : > { %v6491_v63 = vpop.f32.mrf.mxu0 }
 0xa6b   : > { %v6698_v3 = vpack.c.bf16 %v6674_v41, %v6673_v38  ;;  %v6492_v55 = vadd.f32 %v13437_v52, %v6491_v63  ;;  %v14583_v63 = vld [vmem:[#allocation12_spill] sm:$0xff] }
 0xa6d   : > { %6818 = vmatmul.bf16.gmra.mxu1 %v6698_v3  ;;  %v6547_v56 = vadd.f32 %v6492_v55, %v13250_v34  ;;  %v5325_v3 = vadd.f32 %v14583_v63, %v14570_v25 }
 0xa6f   : > { %v13596_v44 = vadd.f32 %v6547_v56, %v5320_v60 }
 0xa71   : > { %v6675_v18 = vmax.f32 %v13596_v44, 0.0 }
 0xa72   : > { %v6493_v36 = vpop.f32.mrf.mxu0 }
 0xa73   : > { %v6494_v31 = vadd.f32 %v13437_v52, %v6493_v36  ;;  %v5327_v36 = vadd.f32 %v13287_v26, %v14570_v25  ;;  %v9913_v26 = vld [vmem:[%s14433_s10 + $0xf8] sm:$0xff] }
 0xa74   : > { %7614 = vmatpush.bf16.msrb.mxu0 %v9913_v26 }
 0xa75   : > { %v6548_v33 = vadd.f32 %v6494_v31, %v14582_v62 }
 0xa77   : > { %v13599_v58 = vadd.f32 %v6548_v33, %v5322_v23 }
 0xa79   : > { %v6676_v47 = vmax.f32 %v13599_v58, 0.0 }
 0xa7a   : > { %v6496_v34 = vpop.f32.mrf.mxu0  ;;  %v6784_v0 = vpop.f32.mrf.mxu1 }
 0xa7b   : > { %v6699_v14 = vpack.c.bf16 %v6676_v47, %v6675_v18  ;;  %v6497_v15 = vadd.f32 %v13437_v52, %v6496_v34  ;;  %v6785_v4 = vadd.f32 %v13607_v59, %v6784_v0 }
 0xa7d   : > { %6823 = vmatmul.bf16.gmra.mxu1 %v6699_v14  ;;  %v6549_v21 = vadd.f32 %v6497_v15, %v13278_v22  ;;  %v6928_v60 = vmax.f32 %v6785_v4, 0.0 }
 0xa7f   : > { %v13620_v54 = vadd.f32 %v6549_v21, %v5325_v3  ;;  %v5330_v21 = vadd.f32 %v13302_v32, %v14570_v25 }
 0xa81   : > { %v6677_v62 = vmax.f32 %v13620_v54, 0.0 }
 0xa82   : > { %v6498_v38 = vpop.f32.mrf.mxu0  ;;  %v6786_v41 = vpop.f32.mrf.mxu1 }
 0xa83   : > { %v6499_v55 = vadd.f32 %v13437_v52, %v6498_v38  ;;  %v6787_v56 = vadd.f32 %v13607_v59, %v6786_v41  ;;  %v5332_v41 = vadd.f32 %v13314_v35, %v14570_v25  ;;  %v9900_v35 = vld [vmem:[%s14431_s8 + $0xd0] sm:$0xff] }
 0xa84   : > { %7350 = vmatpush.bf16.msra.mxu3 %v9900_v35 }
 0xa85   : > { %v6550_v22 = vadd.f32 %v6499_v55, %v13282_v16  ;;  %v6929_v31 = vmax.f32 %v6787_v56, 0.0 }
 0xa87   : > { %v13623_v20 = vadd.f32 %v6550_v22, %v5327_v36  ;;  %v6960_v23 = vpack.c.bf16 %v6929_v31, %v6928_v60 }
 0xa89   : > { %7052 = vmatmul.bf16.vlgmr.msra.gmra.mxu2 %v6960_v23  ;;  %v6678_v33 = vmax.f32 %v13623_v20, 0.0 }
 0xa8a   : > { %v6501_v18 = vpop.f32.mrf.mxu0  ;;  %v6789_v47 = vpop.f32.mrf.mxu1 }
 0xa8b   : > { %v6700_v34 = vpack.c.bf16 %v6678_v33, %v6677_v62  ;;  %v6502_v0 = vadd.f32 %v13437_v52, %v6501_v18  ;;  %v6790_v14 = vadd.f32 %v13607_v59, %v6789_v47 }
 0xa8d   : > { %6828 = vmatmul.bf16.gmra.mxu1 %v6700_v34  ;;  %v6551_v16 = vadd.f32 %v6502_v0, %v13299_v17  ;;  %v6930_v3 = vmax.f32 %v6790_v14, 0.0  ;;  %v5335_v34 = vadd.f32 %v13331_v6, %v14570_v25 }
 0xa8f   : > { %v13639_v63 = vadd.f32 %v6551_v16, %v5330_v21  ;;  %v5337_v16 = vadd.f32 %v13341_v49, %v14570_v25  ;;  %v9912_v49 = vld [vmem:[%s14433_s10 + $0xf0] sm:$0xff] }
 0xa90   : > { %7615 = vmatpush.bf16.msrb.mxu0 %v9912_v49 }
 0xa91   : > { %v6679_v60 = vmax.f32 %v13639_v63, 0.0 }
 0xa92   : > { %v6503_v15 = vpop.f32.mrf.mxu0  ;;  %v6791_v43 = vpop.f32.mrf.mxu1 }
 0xa93   : > { %v6504_v4 = vadd.f32 %v13437_v52, %v6503_v15  ;;  %v6792_v38 = vadd.f32 %v13607_v59, %v6791_v43 }
 0xa95   : > { %v6552_v17 = vadd.f32 %v6504_v4, %v13305_v24  ;;  %v6931_v55 = vmax.f32 %v6792_v38, 0.0 }
 0xa97   : > { %v13642_v56 = vadd.f32 %v6552_v17, %v5332_v41  ;;  %v6961_v36 = vpack.c.bf16 %v6931_v55, %v6930_v3 }
 0xa99   : > { %7057 = vmatmul.bf16.gmra.mxu2 %v6961_v36  ;;  %v6680_v32 = vmax.f32 %v13642_v56, 0.0 }
 0xa9a   : > { %v6506_v22 = vpop.f32.mrf.mxu0  ;;  %v6794_v31 = vpop.f32.mrf.mxu1 }
 0xa9b   : > { %v6701_v23 = vpack.c.bf16 %v6680_v32, %v6679_v60  ;;  %v6507_v62 = vadd.f32 %v13437_v52, %v6506_v22  ;;  %v6795_v33 = vadd.f32 %v13607_v59, %v6794_v31  ;;  %v5340_v22 = vadd.f32 %v13355_v48, %v14570_v25 }
 0xa9d   : > { %6833 = vmatmul.bf16.gmra.mxu1 %v6701_v23  ;;  %v6553_v24 = vadd.f32 %v6507_v62, %v13322_v51  ;;  %v6932_v15 = vmax.f32 %v6795_v33, 0.0  ;;  %v5342_v62 = vadd.f32 %v13372_v1, %v14570_v25  ;;  %v9899_v1 = vld [vmem:[%s14431_s8 + $0xc8] sm:$0xff] }
 0xa9e   : > { %7351 = vmatpush.bf16.msra.mxu3 %v9899_v1 }
 0xa9f   : > { %v13658_v14 = vadd.f32 %v6553_v24, %v5335_v34 }
 0xaa1   : > { %v6681_v38 = vmax.f32 %v13658_v14, 0.0 }
 0xaa2   : > { %v6508_v18 = vpop.f32.mrf.mxu0  ;;  %v6796_v47 = vpop.f32.mrf.mxu1 }
 0xaa3   : > { %v6509_v0 = vadd.f32 %v13437_v52, %v6508_v18  ;;  %v6797_v26 = vadd.f32 %v13607_v59, %v6796_v47 }
 0xaa5   : > { %v6554_v51 = vadd.f32 %v6509_v0, %v13326_v37  ;;  %v6933_v43 = vmax.f32 %v6797_v26, 0.0 }
 0xaa7   : > { %v13661_v21 = vadd.f32 %v6554_v51, %v5337_v16  ;;  %v6962_v4 = vpack.c.bf16 %v6933_v43, %v6932_v15 }
 0xaa9   : > { %7062 = vmatmul.bf16.gmra.mxu2 %v6962_v4  ;;  %v6682_v6 = vmax.f32 %v13661_v21, 0.0 }
 0xaaa   : > { %v6511_v41 = vpop.f32.mrf.mxu0  ;;  %v6799_v3 = vpop.f32.mrf.mxu1 }
 0xaab   : > { %v6702_v17 = vpack.c.bf16 %v6682_v6, %v6681_v38  ;;  %v6512_v55 = vadd.f32 %v13437_v52, %v6511_v41  ;;  %v6800_v36 = vadd.f32 %v13607_v59, %v6799_v3  ;;  %v14584_v38 = vld [vmem:[#allocation2_spill] sm:$0xff] }
 0xaac   : > { %v5345_v6 = vadd.f32 %v14584_v38, %v14570_v25 }
 0xaad   : > { %6838 = vmatmul.bf16.gmra.mxu1 %v6702_v17  ;;  %v6555_v37 = vadd.f32 %v6512_v55, %v13345_v2  ;;  %v6934_v24 = vmax.f32 %v6800_v36, 0.0  ;;  %v5347_v17 = vadd.f32 %v13398_v57, %v14570_v25  ;;  %v9911_v57 = vld [vmem:[%s14433_s10 + $0xe8] sm:$0xff] }
 0xaae   : > { %7616 = vmatpush.bf16.msrb.mxu0 %v9911_v57  ;;  %v14589_v57 = vld [vmem:[#allocation14_spill] sm:$0xff] }
 0xaaf   : > { %v13677_v35 = vadd.f32 %v6555_v37, %v5340_v22  ;;  %v14585_v37 = vld [vmem:[#allocation3_spill] sm:$0xff] }
 0xab1   : > { %v6683_v34 = vmax.f32 %v13677_v35, 0.0 }
 0xab2   : > { %v6513_v60 = vpop.f32.mrf.mxu0  ;;  %v6801_v32 = vpop.f32.mrf.mxu1 }
 0xab3   : > { %v6514_v31 = vadd.f32 %v13437_v52, %v6513_v60  ;;  %v6802_v23 = vadd.f32 %v13607_v59, %v6801_v32 }
 0xab5   : > { %v6556_v2 = vadd.f32 %v6514_v31, %v13349_v42  ;;  %v6935_v33 = vmax.f32 %v6802_v23, 0.0 }
 0xab7   : > { %v13680_v18 = vadd.f32 %v6556_v2, %v5342_v62  ;;  %v6963_v47 = vpack.c.bf16 %v6935_v33, %v6934_v24 }
 0xab9   : > { %7067 = vmatmul.bf16.gmra.mxu2 %v6963_v47  ;;  %v6684_v48 = vmax.f32 %v13680_v18, 0.0 }
 0xaba   : > { %v6516_v0 = vpop.f32.mrf.mxu0  ;;  %v6804_v26 = vpop.f32.mrf.mxu1 }
 0xabb   : > { %v6703_v16 = vpack.c.bf16 %v6684_v48, %v6683_v34  ;;  %v6517_v15 = vadd.f32 %v13437_v52, %v6516_v0  ;;  %v6805_v51 = vadd.f32 %v13607_v59, %v6804_v26  ;;  %v5350_v0 = vadd.f32 %v13413_v30, %v14570_v25 }
 0xabd   : > { %6843 = vmatmul.bf16.gmra.mxu1 %v6703_v16  ;;  %v6557_v42 = vadd.f32 %v6517_v15, %v13366_v46  ;;  %v6936_v49 = vmax.f32 %v6805_v51, 0.0  ;;  %v5352_v15 = vadd.f32 %v13424_v9, %v14570_v25  ;;  %v14586_v51 = vld [vmem:[#allocation5_spill] sm:$0xff]  ;;  %v9898_v9 = vld [vmem:[%s14431_s8 + $0xc0] sm:$0xff] }
 0xabe   : > { %7352 = vmatpush.bf16.msra.mxu3 %v9898_v9 }
 0xabf   : > { %v13696_v55 = vadd.f32 %v6557_v42, %v5345_v6 }
 0xac1   : > { %v6685_v22 = vmax.f32 %v13696_v55, 0.0 }
 0xac2   : > { %v6518_v43 = vpop.f32.mrf.mxu0  ;;  %v6806_v4 = vpop.f32.mrf.mxu1 }
 0xac3   : > { %v6519_v41 = vadd.f32 %v13437_v52, %v6518_v43  ;;  %v6807_v3 = vadd.f32 %v13607_v59, %v6806_v4 }
 0xac5   : > { %v6558_v46 = vadd.f32 %v6519_v41, %v14585_v37  ;;  %v6937_v36 = vmax.f32 %v6807_v3, 0.0  ;;  %v9964_v37 = vld [vmem:[%s14435_s12 + $0x38] sm:$0xff] }
 0xac6   : > { %8417 = vmatpush.bf16.msrb.mxu3 %v9964_v37 }
 0xac7   : > { %v13699_v60 = vadd.f32 %v6558_v46, %v5347_v17  ;;  %v6964_v32 = vpack.c.bf16 %v6937_v36, %v6936_v49  ;;  %v14587_v46 = vld [vmem:[#allocation4_spill] sm:$0xff] }
 0xac9   : > { %7072 = vmatmul.bf16.gmra.mxu2 %v6964_v32  ;;  %v6686_v31 = vmax.f32 %v13699_v60, 0.0 }
 0xaca   : > { %v6521_v23 = vpop.f32.mrf.mxu0  ;;  %v6809_v62 = vpop.f32.mrf.mxu1 }
 0xacb   : > { %v6704_v24 = vpack.c.bf16 %v6686_v31, %v6685_v22  ;;  %v6522_v2 = vadd.f32 %v13437_v52, %v6521_v23  ;;  %v6810_v47 = vadd.f32 %v13607_v59, %v6809_v62  ;;  %v14588_v23 = vld [vmem:[#allocation13_spill] sm:$0xff] }
 0xacc   : > { %v5355_v62 = vadd.f32 %v14588_v23, %v14570_v25 }
 0xacd   : > { %6848 = vmatmul.bf16.gmra.mxu1 %v6704_v24  ;;  %v6559_v33 = vadd.f32 %v6522_v2, %v13389_v12  ;;  %v6938_v42 = vmax.f32 %v6810_v47, 0.0  ;;  %v9965_v47 = vld [vmem:[%s14435_s12 + $0x30] sm:$0xff] }
 0xace   : > { %8418 = vmatpush.bf16.msrb.mxu3 %v9965_v47 }
 0xacf   : > { %v13715_v1 = vadd.f32 %v6559_v33, %v5350_v0  ;;  %v5357_v33 = vadd.f32 %v14589_v57, %v14570_v25  ;;  %v14590_v0 = vld [vmem:[#allocation15_spill] sm:$0xff] }
 0xad1   : > { %v6687_v6 = vmax.f32 %v13715_v1, 0.0 }
 0xad2   : > { %v6523_v34 = vpop.f32.mrf.mxu0  ;;  %v6811_v48 = vpop.f32.mrf.mxu1 }
 0xad3   : > { %v6524_v26 = vadd.f32 %v13437_v52, %v6523_v34  ;;  %v6812_v16 = vadd.f32 %v13607_v59, %v6811_v48 }
 0xad5   : > { %v6560_v43 = vadd.f32 %v6524_v26, %v14586_v51  ;;  %v6939_v12 = vmax.f32 %v6812_v16, 0.0 }
 0xad7   : > { %v13718_v4 = vadd.f32 %v6560_v43, %v5352_v15  ;;  %v6965_v38 = vpack.c.bf16 %v6939_v12, %v6938_v42 }
 0xad9   : > { %7077 = vmatmul.bf16.gmra.mxu2 %v6965_v38  ;;  %v6688_v30 = vmax.f32 %v13718_v4, 0.0  ;;  %v9967_v38 = vld [vmem:[%s14435_s12 + $0x20] sm:$0xff] }
 0xada   : > { %v6526_v41 = vpop.f32.mrf.mxu0  ;;  %v6814_v3 = vpop.f32.mrf.mxu1 }
 0xadb   : > { %v6705_v17 = vpack.c.bf16 %v6688_v30, %v6687_v6  ;;  %v6527_v49 = vadd.f32 %v13437_v52, %v6526_v41  ;;  %v6815_v32 = vadd.f32 %v13607_v59, %v6814_v3  ;;  %v9968_v6 = vld [vmem:[%s14435_s12 + $0x18] sm:$0xff]  ;;  %v9910_v41 = vld [vmem:[%s14433_s10 + $0xe0] sm:$0xff] }
 0xadc   : > { %7617 = vmatpush.bf16.msrb.mxu0 %v9910_v41 }
 0xadd   : > { %6853 = vmatmul.bf16.gmra.mxu1 %v6705_v17  ;;  %v6561_v36 = vadd.f32 %v6527_v49, %v14587_v46  ;;  %v6940_v48 = vmax.f32 %v6815_v32, 0.0  ;;  %v9969_v49 = vld [vmem:[%s14435_s12 + $0x10] sm:$0xff] }
 0xadf   : > { %v13740_v34 = vadd.f32 %v6561_v36, %v5355_v62  ;;  %v9970_v36 = vld [vmem:[%s14435_s12 + $0x8] sm:$0xff] }
 0xae1   : > { %v6689_v25 = vmax.f32 %v13740_v34, 0.0 }
 0xae2   : > { %v6528_v22 = vpop.f32.mrf.mxu0  ;;  %v6816_v31 = vpop.f32.mrf.mxu1 }
 0xae3   : > { %v6529_v24 = vadd.f32 %v13437_v52, %v6528_v22  ;;  %v6817_v2 = vadd.f32 %v13607_v59, %v6816_v31  ;;  %v9966_v52 = vld [vmem:[%s14435_s12 + $0x28] sm:$0xff]  ;;  %v9971_v22 = vld [vmem:[%s14435_s12] sm:$0xff] }
 0xae4   : > { %8419 = vmatpush.bf16.msrb.mxu3 %v9966_v52 }
 0xae5   : > { %v6562_v26 = vadd.f32 %v6529_v24, %v14590_v0  ;;  %v6941_v16 = vmax.f32 %v6817_v2, 0.0 }
 0xae7   : > { %v13743_v15 = vadd.f32 %v6562_v26, %v5357_v33  ;;  %v6966_v42 = vpack.c.bf16 %v6941_v16, %v6940_v48  ;;  %v13775_v48 = vld [vmem:[%s14434_s11 + $0x2] ss:$0 sm:$0xff]  ;;  %v9909_v16 = vld [vmem:[%s14433_s10 + $0xd8] sm:$0xff] }
 0xae8   : > { %8420 = vmatpush.bf16.msrb.mxu3 %v9967_v38  ;;  %7618 = vmatpush.bf16.msrb.mxu0 %v9909_v16 }
 0xae9   : > { %7082 = vmatmul.bf16.gmra.mxu2 %v6966_v42  ;;  %v6690_v51 = vmax.f32 %v13743_v15, 0.0 }
 0xaea   : > { %v6819_v43 = vpop.f32.mrf.mxu1 }
 0xaeb   : > { %v6706_v12 = vpack.c.bf16 %v6690_v51, %v6689_v25  ;;  %v6820_v30 = vadd.f32 %v13607_v59, %v6819_v43 }
 0xaec   : > { %8421 = vmatpush.bf16.msrb.mxu3 %v9968_v6 }
 0xaed   : > { %6858 = vmatmul.bf16.gmra.mxu1 %v6706_v12  ;;  %v6942_v9 = vmax.f32 %v6820_v30, 0.0 }
 0xaf0   : > { %8422 = vmatpush.bf16.msrb.mxu3 %v9969_v49 }
 0xaf2   : > { %v6821_v3 = vpop.f32.mrf.mxu1 }
 0xaf3   : > { %v6822_v17 = vadd.f32 %v13607_v59, %v6821_v3 }
 0xaf4   : > { %8423 = vmatpush.bf16.msrb.mxu3 %v9970_v36 }
 0xaf5   : > { %v6943_v37 = vmax.f32 %v6822_v17, 0.0 }
 0xaf7   : > { %v6967_v46 = vpack.c.bf16 %v6943_v37, %v6942_v9 }
 0xaf8   : > { %8424 = vmatpush.bf16.msrb.mxu3 %v9971_v22 }
 0xaf9   : > { %7087 = vmatmul.bf16.gmra.mxu2 %v6967_v46  ;;  %v9921_v46 = vld [vmem:[%s14431_s8 + $0x138] sm:$0xff] }
 0xafa   : > { %v6824_v32 = vpop.f32.mrf.mxu1  ;;  %7915 = vmatpush.bf16.msrb.mxu1 %v9921_v46 }
 0xafb   : > { %v6825_v31 = vadd.f32 %v13607_v59, %v6824_v32 }
 0xafd   : > { %v6944_v24 = vmax.f32 %v6825_v31, 0.0 }
 0xb02   : > { %v6826_v23 = vpop.f32.mrf.mxu1 }
 0xb03   : > { %v6827_v62 = vadd.f32 %v13607_v59, %v6826_v23 }
 0xb05   : > { %v6945_v2 = vmax.f32 %v6827_v62, 0.0 }
 0xb07   : > { %v6968_v57 = vpack.c.bf16 %v6945_v2, %v6944_v24 }
 0xb09   : > { %7092 = vmatmul.bf16.gmra.mxu2 %v6968_v57 }
 0xb0a   : > { %v6829_v33 = vpop.f32.mrf.mxu1 }
 0xb0b   : > { %v6830_v0 = vadd.f32 %v13607_v59, %v6829_v33 }
 0xb0c   : > { %v7053_v47 = vpop.f32.mrf.mxu2 }
 0xb0d   : > { %v7054_v26 = vadd.f32 %v13775_v48, %v7053_v47  ;;  %v6946_v51 = vmax.f32 %v6830_v0, 0.0 }
 0xb0f   : > { %v13784_v43 = vadd.f32 %v7054_v26, %v13449_v11 }
 0xb11   : > { %v7229_v41 = vmax.f32 %v13784_v43, 0.0 }
 0xb12   : > { %v6831_v42 = vpop.f32.mrf.mxu1 }
 0xb13   : > { %v6832_v52 = vadd.f32 %v13607_v59, %v6831_v42  ;;  %v9908_v42 = vld [vmem:[%s14433_s10 + $0xd0] sm:$0xff] }
 0xb14   : > { %v7055_v25 = vpop.f32.mrf.mxu2  ;;  %7619 = vmatpush.bf16.msrb.mxu0 %v9908_v42 }
 0xb15   : > { %v6947_v12 = vmax.f32 %v6832_v52, 0.0  ;;  %v7056_v38 = vadd.f32 %v13775_v48, %v7055_v25 }
 0xb17   : > { %v13788_v6 = vadd.f32 %v7056_v38, %v13453_v27  ;;  %v6969_v30 = vpack.c.bf16 %v6947_v12, %v6946_v51 }
 0xb19   : > { %v7230_v3 = vmax.f32 %v13788_v6, 0.0  ;;  %7097 = vmatmul.bf16.gmra.mxu2 %v6969_v30 }
 0xb1a   : > { %v6834_v17 = vpop.f32.mrf.mxu1 }
 0xb1b   : > { %v7261_v49 = vpack.c.bf16 %v7230_v3, %v7229_v41  ;;  %v6835_v37 = vadd.f32 %v13607_v59, %v6834_v17 }
 0xb1c   : > { %v7058_v9 = vpop.f32.mrf.mxu2 }
 0xb1d   : > { %7353 = vmatmul.bf16.vlgmr.msra.gmra.mxu3 %v7261_v49  ;;  %v7059_v11 = vadd.f32 %v13775_v48, %v7058_v9  ;;  %v6948_v22 = vmax.f32 %v6835_v37, 0.0 }
 0xb1f   : > { %v13799_v31 = vadd.f32 %v7059_v11, %v13468_v39 }
 0xb21   : > { %v7231_v57 = vmax.f32 %v13799_v31, 0.0 }
 0xb22   : > { %v6836_v27 = vpop.f32.mrf.mxu1 }
 0xb23   : > { %v6837_v36 = vadd.f32 %v13607_v59, %v6836_v27  ;;  %v9920_v27 = vld [vmem:[%s14431_s8 + $0x130] sm:$0xff] }
 0xb24   : > { %v7060_v32 = vpop.f32.mrf.mxu2  ;;  %7916 = vmatpush.bf16.msrb.mxu1 %v9920_v27 }
 0xb25   : > { %v6949_v23 = vmax.f32 %v6837_v36, 0.0  ;;  %v7061_v62 = vadd.f32 %v13775_v48, %v7060_v32 }
 0xb27   : > { %v13803_v24 = vadd.f32 %v7061_v62, %v13472_v19  ;;  %v6970_v2 = vpack.c.bf16 %v6949_v23, %v6948_v22 }
 0xb29   : > { %v7232_v33 = vmax.f32 %v13803_v24, 0.0  ;;  %7102 = vmatmul.bf16.gmra.mxu2 %v6970_v2 }
 0xb2a   : > { %v6839_v47 = vpop.f32.mrf.mxu1 }
 0xb2b   : > { %v7262_v0 = vpack.c.bf16 %v7232_v33, %v7231_v57  ;;  %v6840_v16 = vadd.f32 %v13607_v59, %v6839_v47 }
 0xb2c   : > { %v7063_v26 = vpop.f32.mrf.mxu2 }
 0xb2d   : > { %7358 = vmatmul.bf16.gmra.mxu3 %v7262_v0  ;;  %v7064_v39 = vadd.f32 %v13775_v48, %v7063_v26  ;;  %v6950_v51 = vmax.f32 %v6840_v16, 0.0 }
 0xb2f   : > { %v13814_v12 = vadd.f32 %v7064_v39, %v13487_v53 }
 0xb31   : > { %v7233_v17 = vmax.f32 %v13814_v12, 0.0 }
 0xb32   : > { %v6841_v19 = vpop.f32.mrf.mxu1 }
 0xb33   : > { %v6842_v52 = vadd.f32 %v13607_v59, %v6841_v19  ;;  %v9907_v19 = vld [vmem:[%s14433_s10 + $0xc8] sm:$0xff] }
 0xb34   : > { %v7065_v25 = vpop.f32.mrf.mxu2  ;;  %7620 = vmatpush.bf16.msrb.mxu0 %v9907_v19 }
 0xb35   : > { %v6951_v38 = vmax.f32 %v6842_v52, 0.0  ;;  %v7066_v30 = vadd.f32 %v13775_v48, %v7065_v25 }
 0xb37   : > { %v13818_v41 = vadd.f32 %v7066_v30, %v13491_v45  ;;  %v6971_v3 = vpack.c.bf16 %v6951_v38, %v6950_v51 }
 0xb39   : > { %v7234_v49 = vmax.f32 %v13818_v41, 0.0  ;;  %7107 = vmatmul.bf16.gmra.mxu2 %v6971_v3 }
 0xb3a   : > { %v6844_v9 = vpop.f32.mrf.mxu1 }
 0xb3b   : > { %v7263_v37 = vpack.c.bf16 %v7234_v49, %v7233_v17  ;;  %v6845_v46 = vadd.f32 %v13607_v59, %v6844_v9 }
 0xb3c   : > { %v7068_v11 = vpop.f32.mrf.mxu2 }
 0xb3d   : > { %7363 = vmatmul.bf16.gmra.mxu3 %v7263_v37  ;;  %v7069_v53 = vadd.f32 %v13775_v48, %v7068_v11  ;;  %v6952_v22 = vmax.f32 %v6845_v46, 0.0 }
 0xb3f   : > { %v13829_v23 = vadd.f32 %v7069_v53, %v13506_v28 }
 0xb41   : > { %v7235_v47 = vmax.f32 %v13829_v23, 0.0 }
 0xb42   : > { %v6846_v45 = vpop.f32.mrf.mxu1 }
 0xb43   : > { %v6847_v36 = vadd.f32 %v13607_v59, %v6846_v45  ;;  %v9919_v45 = vld [vmem:[%s14431_s8 + $0x128] sm:$0xff] }
 0xb44   : > { %v7070_v32 = vpop.f32.mrf.mxu2  ;;  %7917 = vmatpush.bf16.msrb.mxu1 %v9919_v45 }
 0xb45   : > { %v6953_v62 = vmax.f32 %v6847_v36, 0.0  ;;  %v7071_v2 = vadd.f32 %v13775_v48, %v7070_v32 }
 0xb47   : > { %v13833_v57 = vadd.f32 %v7071_v2, %v13510_v10  ;;  %v6972_v33 = vpack.c.bf16 %v6953_v62, %v6952_v22 }
 0xb49   : > { %v7236_v0 = vmax.f32 %v13833_v57, 0.0  ;;  %7112 = vmatmul.bf16.gmra.mxu2 %v6972_v33 }
 0xb4a   : > { %v6849_v26 = vpop.f32.mrf.mxu1 }
 0xb4b   : > { %v7264_v16 = vpack.c.bf16 %v7236_v0, %v7235_v47  ;;  %v6850_v42 = vadd.f32 %v13607_v59, %v6849_v26 }
 0xb4c   : > { %v7073_v39 = vpop.f32.mrf.mxu2 }
 0xb4d   : > { %7368 = vmatmul.bf16.gmra.mxu3 %v7264_v16  ;;  %v7074_v28 = vadd.f32 %v13775_v48, %v7073_v39  ;;  %v6954_v51 = vmax.f32 %v6850_v42, 0.0 }
 0xb4f   : > { %v13844_v38 = vadd.f32 %v7074_v28, %v13525_v29 }
 0xb51   : > { %v7237_v9 = vmax.f32 %v13844_v38, 0.0 }
 0xb52   : > { %v6851_v10 = vpop.f32.mrf.mxu1 }
 0xb53   : > { %v6852_v52 = vadd.f32 %v13607_v59, %v6851_v10  ;;  %v9906_v10 = vld [vmem:[%s14433_s10 + $0xc0] sm:$0xff] }
 0xb54   : > { %v7075_v25 = vpop.f32.mrf.mxu2  ;;  %7621 = vmatpush.bf16.msrb.mxu0 %v9906_v10  ;;  %v13912_v10 = vld [vmem:[%s14432_s9 + $0x3] ss:$0 sm:$0xff] }
 0xb55   : > { %v6955_v30 = vmax.f32 %v6852_v52, 0.0  ;;  %v7076_v3 = vadd.f32 %v13775_v48, %v7075_v25 }
 0xb57   : > { %v13848_v17 = vadd.f32 %v7076_v3, %v13529_v50  ;;  %v6973_v49 = vpack.c.bf16 %v6955_v30, %v6954_v51 }
 0xb59   : > { %v7238_v37 = vmax.f32 %v13848_v17, 0.0  ;;  %7117 = vmatmul.bf16.gmra.mxu2 %v6973_v49 }
 0xb5a   : > { %v6854_v11 = vpop.f32.mrf.mxu1 }
 0xb5b   : > { %v7265_v46 = vpack.c.bf16 %v7238_v37, %v7237_v9  ;;  %v6855_v27 = vadd.f32 %v13607_v59, %v6854_v11 }
 0xb5c   : > { %v7078_v53 = vpop.f32.mrf.mxu2 }
 0xb5d   : > { %7373 = vmatmul.bf16.gmra.mxu3 %v7265_v46  ;;  %v7079_v29 = vadd.f32 %v13775_v48, %v7078_v53  ;;  %v6956_v22 = vmax.f32 %v6855_v27, 0.0 }
 0xb5f   : > { %v13859_v62 = vadd.f32 %v7079_v29, %v13544_v40 }
 0xb61   : > { %v7239_v26 = vmax.f32 %v13859_v62, 0.0 }
 0xb62   : > { %v6856_v50 = vpop.f32.mrf.mxu1 }
 0xb63   : > { %v6857_v36 = vadd.f32 %v13607_v59, %v6856_v50 }
 0xb64   : > { %v7080_v32 = vpop.f32.mrf.mxu2 }
 0xb65   : > { %v6957_v2 = vmax.f32 %v6857_v36, 0.0  ;;  %v7081_v33 = vadd.f32 %v13775_v48, %v7080_v32 }
 0xb67   : > { %v13863_v47 = vadd.f32 %v7081_v33, %v13548_v13  ;;  %v6974_v0 = vpack.c.bf16 %v6957_v2, %v6956_v22 }
 0xb69   : > { %v7240_v16 = vmax.f32 %v13863_v47, 0.0  ;;  %7122 = vmatmul.bf16.gmra.mxu2 %v6974_v0 }
 0xb6a   : > { %v6859_v39 = vpop.f32.mrf.mxu1 }
 0xb6b   : > { %v7266_v42 = vpack.c.bf16 %v7240_v16, %v7239_v26  ;;  %v6860_v19 = vadd.f32 %v13607_v59, %v6859_v39 }
 0xb6c   : > { %v7083_v28 = vpop.f32.mrf.mxu2 }
 0xb6d   : > { %7378 = vmatmul.bf16.gmra.mxu3 %v7266_v42  ;;  %v7084_v40 = vadd.f32 %v13775_v48, %v7083_v28  ;;  %v6958_v51 = vmax.f32 %v6860_v19, 0.0 }
 0xb6f   : > { %v13874_v30 = vadd.f32 %v7084_v40, %v13563_v61  ;;  %v9918_v61 = vld [vmem:[%s14431_s8 + $0x120] sm:$0xff] }
 0xb70   : > { %7918 = vmatpush.bf16.msrb.mxu1 %v9918_v61 }
 0xb71   : > { %v7241_v11 = vmax.f32 %v13874_v30, 0.0 }
 0xb72   : > { %v6861_v13 = vpop.f32.mrf.mxu1 }
 0xb73   : > { %v6862_v52 = vadd.f32 %v13607_v59, %v6861_v13 }
 0xb74   : > { %v7085_v25 = vpop.f32.mrf.mxu2 }
 0xb75   : > { %v6959_v3 = vmax.f32 %v6862_v52, 0.0  ;;  %v7086_v49 = vadd.f32 %v13775_v48, %v7085_v25 }
 0xb77   : > { %v13878_v9 = vadd.f32 %v7086_v49, %v13567_v5  ;;  %v6975_v37 = vpack.c.bf16 %v6959_v3, %v6958_v51 }
 0xb79   : > { %v7242_v46 = vmax.f32 %v13878_v9, 0.0  ;;  %7127 = vmatmul.bf16.gmra.mxu2 %v6975_v37 }
 0xb7b   : > { %v7267_v53 = vpack.c.bf16 %v7242_v46, %v7241_v11 }
 0xb7c   : > { %v7088_v59 = vpop.f32.mrf.mxu2 }
 0xb7d   : > { %7383 = vmatmul.bf16.gmra.mxu3 %v7267_v53  ;;  %v7089_v27 = vadd.f32 %v13775_v48, %v7088_v59 }
 0xb7f   : > { %v13887_v5 = vadd.f32 %v7089_v27, %v13582_v7 }
 0xb81   : > { %v7243_v36 = vmax.f32 %v13887_v5, 0.0 }
 0xb84   : > { %v7090_v29 = vpop.f32.mrf.mxu2 }
 0xb85   : > { %v7091_v45 = vadd.f32 %v13775_v48, %v7090_v29 }
 0xb87   : > { %v13891_v50 = vadd.f32 %v7091_v45, %v13585_v8 }
 0xb89   : > { %v7244_v32 = vmax.f32 %v13891_v50, 0.0 }
 0xb8b   : > { %v7268_v22 = vpack.c.bf16 %v7244_v32, %v7243_v36 }
 0xb8c   : > { %v7093_v2 = vpop.f32.mrf.mxu2 }
 0xb8d   : > { %7388 = vmatmul.bf16.gmra.mxu3 %v7268_v22  ;;  %v7094_v33 = vadd.f32 %v13775_v48, %v7093_v2 }
 0xb8f   : > { %v13897_v26 = vadd.f32 %v7094_v33, %v13596_v44  ;;  %v9917_v44 = vld [vmem:[%s14431_s8 + $0x118] sm:$0xff] }
 0xb90   : > { %7919 = vmatpush.bf16.msrb.mxu1 %v9917_v44 }
 0xb91   : > { %v7245_v8 = vmax.f32 %v13897_v26, 0.0 }
 0xb94   : > { %v7095_v0 = vpop.f32.mrf.mxu2 }
 0xb95   : > { %v7096_v7 = vadd.f32 %v13775_v48, %v7095_v0 }
 0xb97   : > { %v13901_v16 = vadd.f32 %v7096_v7, %v13599_v58 }
 0xb99   : > { %v7246_v39 = vmax.f32 %v13901_v16, 0.0 }
 0xb9b   : > { %v7269_v42 = vpack.c.bf16 %v7246_v39, %v7245_v8 }
 0xb9c   : > { %v7098_v28 = vpop.f32.mrf.mxu2 }
 0xb9d   : > { %7393 = vmatmul.bf16.gmra.mxu3 %v7269_v42  ;;  %v7099_v40 = vadd.f32 %v13775_v48, %v7098_v28 }
 0xb9f   : > { %v13915_v13 = vadd.f32 %v7099_v40, %v13620_v54  ;;  %v9929_v54 = vld [vmem:[%s14433_s10 + $0x138] sm:$0xff] }
 0xba0   : > { %v7354_v19 = vpop.f32.mrf.mxu3  ;;  %8184 = vmatpush.bf16.msrb.mxu2 %v9929_v54 }
 0xba1   : > { %v7355_v25 = vadd.f32 %v13912_v10, %v7354_v19  ;;  %v7247_v49 = vmax.f32 %v13915_v13, 0.0 }
 0xba3   : > { %v7498_v46 = vmax.f32 %v7355_v25, 0.0 }
 0xba4   : > { %v7100_v58 = vpop.f32.mrf.mxu2 }
 0xba5   : > { %v7101_v52 = vadd.f32 %v13775_v48, %v7100_v58 }
 0xba7   : > { %v13920_v51 = vadd.f32 %v7101_v52, %v13623_v20 }
 0xba8   : > { %v7356_v3 = vpop.f32.mrf.mxu3 }
 0xba9   : > { %v7248_v37 = vmax.f32 %v13920_v51, 0.0  ;;  %v7357_v11 = vadd.f32 %v13912_v10, %v7356_v3 }
 0xbab   : > { %v7499_v53 = vmax.f32 %v7357_v11, 0.0  ;;  %v7270_v59 = vpack.c.bf16 %v7248_v37, %v7247_v49 }
 0xbac   : > { %v7103_v27 = vpop.f32.mrf.mxu2 }
 0xbad   : > { %v7530_v61 = vpack.c.bf16 %v7499_v53, %v7498_v46  ;;  %7398 = vmatmul.bf16.gmra.mxu3 %v7270_v59  ;;  %v7104_v29 = vadd.f32 %v13775_v48, %v7103_v27 }
 0xbaf   : > { %7622 = vmatmul.bf16.vlgmr.msrb.gmra.mxu0 %v7530_v61  ;;  %v13930_v36 = vadd.f32 %v7104_v29, %v13639_v63 }
 0xbb0   : > { %v7359_v20 = vpop.f32.mrf.mxu3 }
 0xbb1   : > { %v7360_v22 = vadd.f32 %v13912_v10, %v7359_v20  ;;  %v7249_v0 = vmax.f32 %v13930_v36, 0.0 }
 0xbb3   : > { %v7500_v39 = vmax.f32 %v7360_v22, 0.0 }
 0xbb4   : > { %v7105_v45 = vpop.f32.mrf.mxu2 }
 0xbb5   : > { %v7106_v32 = vadd.f32 %v13775_v48, %v7105_v45 }
 0xbb7   : > { %v13935_v2 = vadd.f32 %v7106_v32, %v13642_v56  ;;  %v9916_v56 = vld [vmem:[%s14431_s8 + $0x110] sm:$0xff] }
 0xbb8   : > { %v7361_v33 = vpop.f32.mrf.mxu3  ;;  %7920 = vmatpush.bf16.msrb.mxu1 %v9916_v56 }
 0xbb9   : > { %v7250_v7 = vmax.f32 %v13935_v2, 0.0  ;;  %v7362_v8 = vadd.f32 %v13912_v10, %v7361_v33 }
 0xbbb   : > { %v7501_v42 = vmax.f32 %v7362_v8, 0.0  ;;  %v7271_v28 = vpack.c.bf16 %v7250_v7, %v7249_v0 }
 0xbbc   : > { %v7108_v19 = vpop.f32.mrf.mxu2 }
 0xbbd   : > { %7403 = vmatmul.bf16.gmra.mxu3 %v7271_v28  ;;  %v7531_v63 = vpack.c.bf16 %v7501_v42, %v7500_v39  ;;  %v7109_v44 = vadd.f32 %v13775_v48, %v7108_v19 }
 0xbbf   : > { %7627 = vmatmul.bf16.gmra.mxu0 %v7531_v63  ;;  %v13945_v52 = vadd.f32 %v7109_v44, %v13658_v14  ;;  %v9928_v14 = vld [vmem:[%s14433_s10 + $0x130] sm:$0xff] }
 0xbc0   : > { %v7364_v40 = vpop.f32.mrf.mxu3  ;;  %8185 = vmatpush.bf16.msrb.mxu2 %v9928_v14 }
 0xbc1   : > { %v7365_v3 = vadd.f32 %v13912_v10, %v7364_v40  ;;  %v7251_v11 = vmax.f32 %v13945_v52, 0.0 }
 0xbc3   : > { %v7502_v59 = vmax.f32 %v7365_v3, 0.0 }
 0xbc4   : > { %v7110_v58 = vpop.f32.mrf.mxu2 }
 0xbc5   : > { %v7111_v25 = vadd.f32 %v13775_v48, %v7110_v58 }
 0xbc7   : > { %v13950_v49 = vadd.f32 %v7111_v25, %v13661_v21 }
 0xbc8   : > { %v7366_v37 = vpop.f32.mrf.mxu3 }
 0xbc9   : > { %v7252_v46 = vmax.f32 %v13950_v49, 0.0  ;;  %v7367_v53 = vadd.f32 %v13912_v10, %v7366_v37 }
 0xbcb   : > { %v7503_v54 = vmax.f32 %v7367_v53, 0.0  ;;  %v7272_v27 = vpack.c.bf16 %v7252_v46, %v7251_v11 }
 0xbcc   : > { %v7113_v61 = vpop.f32.mrf.mxu2 }
 0xbcd   : > { %7408 = vmatmul.bf16.gmra.mxu3 %v7272_v27  ;;  %v7532_v20 = vpack.c.bf16 %v7503_v54, %v7502_v59  ;;  %v7114_v29 = vadd.f32 %v13775_v48, %v7113_v61 }
 0xbcf   : > { %7632 = vmatmul.bf16.gmra.mxu0 %v7532_v20  ;;  %v13960_v32 = vadd.f32 %v7114_v29, %v13677_v35 }
 0xbd0   : > { %v7369_v21 = vpop.f32.mrf.mxu3 }
 0xbd1   : > { %v7370_v33 = vadd.f32 %v13912_v10, %v7369_v21  ;;  %v7253_v8 = vmax.f32 %v13960_v32, 0.0 }
 0xbd3   : > { %v7504_v28 = vmax.f32 %v7370_v33, 0.0 }
 0xbd4   : > { %v7115_v45 = vpop.f32.mrf.mxu2 }
 0xbd5   : > { %v7116_v22 = vadd.f32 %v13775_v48, %v7115_v45 }
 0xbd7   : > { %v13965_v0 = vadd.f32 %v7116_v22, %v13680_v18  ;;  %v9915_v18 = vld [vmem:[%s14431_s8 + $0x108] sm:$0xff] }
 0xbd8   : > { %v7371_v7 = vpop.f32.mrf.mxu3  ;;  %7921 = vmatpush.bf16.msrb.mxu1 %v9915_v18 }
 0xbd9   : > { %v7254_v39 = vmax.f32 %v13965_v0, 0.0  ;;  %v7372_v42 = vadd.f32 %v13912_v10, %v7371_v7 }
 0xbdb   : > { %v7505_v19 = vmax.f32 %v7372_v42, 0.0  ;;  %v7273_v63 = vpack.c.bf16 %v7254_v39, %v7253_v8 }
 0xbdc   : > { %v7118_v40 = vpop.f32.mrf.mxu2 }
 0xbdd   : > { %7413 = vmatmul.bf16.gmra.mxu3 %v7273_v63  ;;  %v7533_v35 = vpack.c.bf16 %v7505_v19, %v7504_v28  ;;  %v7119_v56 = vadd.f32 %v13775_v48, %v7118_v40 }
 0xbdf   : > { %7637 = vmatmul.bf16.gmra.mxu0 %v7533_v35  ;;  %v13975_v25 = vadd.f32 %v7119_v56, %v13696_v55  ;;  %v9927_v55 = vld [vmem:[%s14433_s10 + $0x128] sm:$0xff] }
 0xbe0   : > { %v7374_v44 = vpop.f32.mrf.mxu3  ;;  %8186 = vmatpush.bf16.msrb.mxu2 %v9927_v55 }
 0xbe1   : > { %v7375_v37 = vadd.f32 %v13912_v10, %v7374_v44  ;;  %v7255_v53 = vmax.f32 %v13975_v25, 0.0 }
 0xbe3   : > { %v7506_v27 = vmax.f32 %v7375_v37, 0.0 }
 0xbe4   : > { %v7120_v58 = vpop.f32.mrf.mxu2 }
 0xbe5   : > { %v7121_v3 = vadd.f32 %v13775_v48, %v7120_v58 }
 0xbe7   : > { %v13980_v11 = vadd.f32 %v7121_v3, %v13699_v60 }
 0xbe8   : > { %v7376_v46 = vpop.f32.mrf.mxu3 }
 0xbe9   : > { %v7256_v59 = vmax.f32 %v13980_v11, 0.0  ;;  %v7377_v54 = vadd.f32 %v13912_v10, %v7376_v46 }
 0xbeb   : > { %v7507_v14 = vmax.f32 %v7377_v54, 0.0  ;;  %v7274_v61 = vpack.c.bf16 %v7256_v59, %v7255_v53 }
 0xbec   : > { %v7123_v20 = vpop.f32.mrf.mxu2 }
 0xbed   : > { %7418 = vmatmul.bf16.gmra.mxu3 %v7274_v61  ;;  %v7534_v21 = vpack.c.bf16 %v7507_v14, %v7506_v27  ;;  %v7124_v29 = vadd.f32 %v13775_v48, %v7123_v20 }
 0xbef   : > { %7642 = vmatmul.bf16.gmra.mxu0 %v7534_v21  ;;  %v13990_v22 = vadd.f32 %v7124_v29, %v13715_v1  ;;  %v9914_v1 = vld [vmem:[%s14431_s8 + $0x100] sm:$0xff] }
 0xbf0   : > { %v7379_v60 = vpop.f32.mrf.mxu3  ;;  %7922 = vmatpush.bf16.msrb.mxu1 %v9914_v1 }
 0xbf1   : > { %v7380_v7 = vadd.f32 %v13912_v10, %v7379_v60  ;;  %v7257_v42 = vmax.f32 %v13990_v22, 0.0 }
 0xbf3   : > { %v7508_v63 = vmax.f32 %v7380_v7, 0.0 }
 0xbf4   : > { %v7125_v45 = vpop.f32.mrf.mxu2 }
 0xbf5   : > { %v7126_v33 = vadd.f32 %v13775_v48, %v7125_v45 }
 0xbf7   : > { %v13995_v8 = vadd.f32 %v7126_v33, %v13718_v4 }
 0xbf8   : > { %v7381_v39 = vpop.f32.mrf.mxu3 }
 0xbf9   : > { %v7258_v28 = vmax.f32 %v13995_v8, 0.0  ;;  %v7382_v19 = vadd.f32 %v13912_v10, %v7381_v39 }
 0xbfb   : > { %v7509_v40 = vmax.f32 %v7382_v19, 0.0  ;;  %v7275_v35 = vpack.c.bf16 %v7258_v28, %v7257_v42 }
 0xbfc   : > { %v7128_v44 = vpop.f32.mrf.mxu2 }
 0xbfd   : > { %7423 = vmatmul.bf16.gmra.mxu3 %v7275_v35  ;;  %v7535_v56 = vpack.c.bf16 %v7509_v40, %v7508_v63  ;;  %v7129_v18 = vadd.f32 %v13775_v48, %v7128_v44  ;;  %v9925_v35 = vld [vmem:[%s14433_s10 + $0x118] sm:$0xff]  ;;  %v14028_v44 = vld [vmem:[%s14434_s11 + $0x3] ss:$0 sm:$0xff] }
 0xbff   : > { %7647 = vmatmul.bf16.gmra.mxu0 %v7535_v56  ;;  %v14005_v3 = vadd.f32 %v7129_v18, %v13740_v34  ;;  %v9926_v34 = vld [vmem:[%s14433_s10 + $0x120] sm:$0xff] }
 0xc00   : > { %v7384_v4 = vpop.f32.mrf.mxu3  ;;  %8187 = vmatpush.bf16.msrb.mxu2 %v9926_v34 }
 0xc01   : > { %v7385_v46 = vadd.f32 %v13912_v10, %v7384_v4  ;;  %v7259_v54 = vmax.f32 %v14005_v3, 0.0 }
 0xc03   : > { %v7510_v61 = vmax.f32 %v7385_v46, 0.0 }
 0xc04   : > { %v7130_v58 = vpop.f32.mrf.mxu2  ;;  %8188 = vmatpush.bf16.msrb.mxu2 %v9925_v35 }
 0xc05   : > { %v7131_v37 = vadd.f32 %v13775_v48, %v7130_v58 }
 0xc07   : > { %v14010_v53 = vadd.f32 %v7131_v37, %v13743_v15 }
 0xc08   : > { %v7386_v59 = vpop.f32.mrf.mxu3 }
 0xc09   : > { %v7260_v27 = vmax.f32 %v14010_v53, 0.0  ;;  %v7387_v14 = vadd.f32 %v13912_v10, %v7386_v59 }
 0xc0b   : > { %v7511_v55 = vmax.f32 %v7387_v14, 0.0  ;;  %v7276_v20 = vpack.c.bf16 %v7260_v27, %v7259_v54 }
 0xc0d   : > { %7428 = vmatmul.bf16.gmra.mxu3 %v7276_v20  ;;  %v7536_v48 = vpack.c.bf16 %v7511_v55, %v7510_v61 }
 0xc0f   : > { %7652 = vmatmul.bf16.gmra.mxu0 %v7536_v48 }
 0xc10   : > { %v7389_v15 = vpop.f32.mrf.mxu3 }
 0xc11   : > { %v7390_v21 = vadd.f32 %v13912_v10, %v7389_v15 }
 0xc13   : > { %v7512_v45 = vmax.f32 %v7390_v21, 0.0 }
 0xc18   : > { %v7391_v60 = vpop.f32.mrf.mxu3 }
 0xc19   : > { %v7392_v29 = vadd.f32 %v13912_v10, %v7391_v60 }
 0xc1b   : > { %v7513_v33 = vmax.f32 %v7392_v29, 0.0 }
 0xc1d   : > { %v7537_v7 = vpack.c.bf16 %v7513_v33, %v7512_v45 }
 0xc1f   : > { %7657 = vmatmul.bf16.gmra.mxu0 %v7537_v7 }
 0xc20   : > { %v7394_v39 = vpop.f32.mrf.mxu3 }
 0xc21   : > { %v7395_v42 = vadd.f32 %v13912_v10, %v7394_v39 }
 0xc23   : > { %v7514_v63 = vmax.f32 %v7395_v42, 0.0 }
 0xc28   : > { %v7396_v28 = vpop.f32.mrf.mxu3 }
 0xc29   : > { %v7397_v19 = vadd.f32 %v13912_v10, %v7396_v28 }
 0xc2b   : > { %v7515_v40 = vmax.f32 %v7397_v19, 0.0 }
 0xc2c   : > { %v7623_v1 = vpop.f32.mrf.mxu0 }
 0xc2d   : > { %v7538_v56 = vpack.c.bf16 %v7515_v40, %v7514_v63  ;;  %v7624_v18 = vadd.f32 %v14028_v44, %v7623_v1 }
 0xc2f   : > { %7662 = vmatmul.bf16.gmra.mxu0 %v7538_v56  ;;  %v14032_v37 = vadd.f32 %v7624_v18, %v13784_v43 }
 0xc30   : > { %v7399_v4 = vpop.f32.mrf.mxu3 }
 0xc31   : > { %v7400_v59 = vadd.f32 %v13912_v10, %v7399_v4  ;;  %v7799_v14 = vmax.f32 %v14032_v37, 0.0 }
 0xc33   : > { %v7516_v20 = vmax.f32 %v7400_v59, 0.0 }
 0xc34   : > { %v7625_v58 = vpop.f32.mrf.mxu0 }
 0xc35   : > { %v7626_v46 = vadd.f32 %v14028_v44, %v7625_v58 }
 0xc37   : > { %v14037_v54 = vadd.f32 %v7626_v46, %v13788_v6 }
 0xc38   : > { %v7401_v27 = vpop.f32.mrf.mxu3 }
 0xc39   : > { %v7800_v61 = vmax.f32 %v14037_v54, 0.0  ;;  %v7402_v55 = vadd.f32 %v13912_v10, %v7401_v27 }
 0xc3b   : > { %v7831_v34 = vpack.c.bf16 %v7800_v61, %v7799_v14  ;;  %v7517_v48 = vmax.f32 %v7402_v55, 0.0 }
 0xc3c   : > { %v7628_v15 = vpop.f32.mrf.mxu0 }
 0xc3d   : > { %7923 = vmatmul.bf16.vlgmr.msrb.gmra.mxu1 %v7831_v34  ;;  %v7539_v43 = vpack.c.bf16 %v7517_v48, %v7516_v20  ;;  %v7629_v60 = vadd.f32 %v14028_v44, %v7628_v15 }
 0xc3f   : > { %7667 = vmatmul.bf16.gmra.mxu0 %v7539_v43  ;;  %v14044_v6 = vadd.f32 %v7629_v60, %v13799_v31  ;;  %v9924_v31 = vld [vmem:[%s14433_s10 + $0x110] sm:$0xff] }
 0xc40   : > { %v7404_v21 = vpop.f32.mrf.mxu3  ;;  %8189 = vmatpush.bf16.msrb.mxu2 %v9924_v31 }
 0xc41   : > { %v7405_v33 = vadd.f32 %v13912_v10, %v7404_v21  ;;  %v7801_v42 = vmax.f32 %v14044_v6, 0.0 }
 0xc43   : > { %v7518_v63 = vmax.f32 %v7405_v33, 0.0 }
 0xc44   : > { %v7630_v29 = vpop.f32.mrf.mxu0 }
 0xc45   : > { %v7631_v45 = vadd.f32 %v14028_v44, %v7630_v29 }
 0xc47   : > { %v14049_v7 = vadd.f32 %v7631_v45, %v13803_v24 }
 0xc48   : > { %v7406_v39 = vpop.f32.mrf.mxu3 }
 0xc49   : > { %v7802_v28 = vmax.f32 %v14049_v7, 0.0  ;;  %v7407_v19 = vadd.f32 %v13912_v10, %v7406_v39 }
 0xc4b   : > { %v7519_v40 = vmax.f32 %v7407_v19, 0.0  ;;  %v7832_v35 = vpack.c.bf16 %v7802_v28, %v7801_v42 }
 0xc4c   : > { %v7633_v1 = vpop.f32.mrf.mxu0 }
 0xc4d   : > { %7928 = vmatmul.bf16.gmra.mxu1 %v7832_v35  ;;  %v7540_v56 = vpack.c.bf16 %v7519_v40, %v7518_v63  ;;  %v7634_v4 = vadd.f32 %v14028_v44, %v7633_v1 }
 0xc4f   : > { %7672 = vmatmul.bf16.gmra.mxu0 %v7540_v56  ;;  %v14059_v58 = vadd.f32 %v7634_v4, %v13814_v12 }
 0xc50   : > { %v7409_v24 = vpop.f32.mrf.mxu3 }
 0xc51   : > { %v7410_v59 = vadd.f32 %v13912_v10, %v7409_v24  ;;  %v7803_v61 = vmax.f32 %v14059_v58, 0.0 }
 0xc53   : > { %v7520_v34 = vmax.f32 %v7410_v59, 0.0 }
 0xc54   : > { %v7635_v18 = vpop.f32.mrf.mxu0 }
 0xc55   : > { %v7636_v46 = vadd.f32 %v14028_v44, %v7635_v18 }
 0xc57   : > { %v14064_v27 = vadd.f32 %v7636_v46, %v13818_v41 }
 0xc58   : > { %v7411_v14 = vpop.f32.mrf.mxu3 }
 0xc59   : > { %v7804_v55 = vmax.f32 %v14064_v27, 0.0  ;;  %v7412_v20 = vadd.f32 %v13912_v10, %v7411_v14 }
 0xc5b   : > { %v7521_v48 = vmax.f32 %v7412_v20, 0.0  ;;  %v7833_v15 = vpack.c.bf16 %v7804_v55, %v7803_v61 }
 0xc5c   : > { %v7638_v43 = vpop.f32.mrf.mxu0 }
 0xc5d   : > { %7933 = vmatmul.bf16.gmra.mxu1 %v7833_v15  ;;  %v7541_v12 = vpack.c.bf16 %v7521_v48, %v7520_v34  ;;  %v7639_v60 = vadd.f32 %v14028_v44, %v7638_v43 }
 0xc5f   : > { %7677 = vmatmul.bf16.gmra.mxu0 %v7541_v12  ;;  %v14071_v41 = vadd.f32 %v7639_v60, %v13829_v23  ;;  %v9923_v23 = vld [vmem:[%s14433_s10 + $0x108] sm:$0xff] }
 0xc60   : > { %v7414_v21 = vpop.f32.mrf.mxu3  ;;  %8190 = vmatpush.bf16.msrb.mxu2 %v9923_v23 }
 0xc61   : > { %v7415_v33 = vadd.f32 %v13912_v10, %v7414_v21  ;;  %v7805_v28 = vmax.f32 %v14071_v41, 0.0 }
 0xc63   : > { %v7522_v40 = vmax.f32 %v7415_v33, 0.0 }
 0xc64   : > { %v7640_v29 = vpop.f32.mrf.mxu0 }
 0xc65   : > { %v7641_v45 = vadd.f32 %v14028_v44, %v7640_v29 }
 0xc67   : > { %v14076_v39 = vadd.f32 %v7641_v45, %v13833_v57 }
 0xc68   : > { %v7416_v42 = vpop.f32.mrf.mxu3 }
 0xc69   : > { %v7806_v19 = vmax.f32 %v14076_v39, 0.0  ;;  %v7417_v63 = vadd.f32 %v13912_v10, %v7416_v42 }
 0xc6b   : > { %v7523_v35 = vmax.f32 %v7417_v63, 0.0  ;;  %v7834_v31 = vpack.c.bf16 %v7806_v19, %v7805_v28 }
 0xc6c   : > { %v7643_v1 = vpop.f32.mrf.mxu0 }
 0xc6d   : > { %7938 = vmatmul.bf16.gmra.mxu1 %v7834_v31  ;;  %v7542_v56 = vpack.c.bf16 %v7523_v35, %v7522_v40  ;;  %v7644_v24 = vadd.f32 %v14028_v44, %v7643_v1  ;;  %v9922_v35 = vld [vmem:[%s14433_s10 + $0x100] sm:$0xff] }
 0xc6e   : > { %8191 = vmatpush.bf16.msrb.mxu2 %v9922_v35 }
 0xc6f   : > { %7682 = vmatmul.bf16.gmra.mxu0 %v7542_v56  ;;  %v14086_v18 = vadd.f32 %v7644_v24, %v13844_v38 }
 0xc70   : > { %v7419_v57 = vpop.f32.mrf.mxu3 }
 0xc71   : > { %v7420_v59 = vadd.f32 %v13912_v10, %v7419_v57  ;;  %v7807_v55 = vmax.f32 %v14086_v18, 0.0 }
 0xc73   : > { %v7524_v48 = vmax.f32 %v7420_v59, 0.0 }
 0xc74   : > { %v7645_v4 = vpop.f32.mrf.mxu0 }
 0xc75   : > { %v7646_v46 = vadd.f32 %v14028_v44, %v7645_v4 }
 0xc77   : > { %v14091_v14 = vadd.f32 %v7646_v46, %v13848_v17 }
 0xc78   : > { %v7421_v61 = vpop.f32.mrf.mxu3 }
 0xc79   : > { %v7808_v20 = vmax.f32 %v14091_v14, 0.0  ;;  %v7422_v34 = vadd.f32 %v13912_v10, %v7421_v61 }
 0xc7b   : > { %v7525_v15 = vmax.f32 %v7422_v34, 0.0  ;;  %v7835_v43 = vpack.c.bf16 %v7808_v20, %v7807_v55 }
 0xc7c   : > { %v7648_v12 = vpop.f32.mrf.mxu0 }
 0xc7d   : > { %7943 = vmatmul.bf16.gmra.mxu1 %v7835_v43  ;;  %v7543_v38 = vpack.c.bf16 %v7525_v15, %v7524_v48  ;;  %v7649_v60 = vadd.f32 %v14028_v44, %v7648_v12 }
 0xc7f   : > { %7687 = vmatmul.bf16.gmra.mxu0 %v7543_v38  ;;  %v14098_v17 = vadd.f32 %v7649_v60, %v13859_v62 }
 0xc80   : > { %v7424_v21 = vpop.f32.mrf.mxu3 }
 0xc81   : > { %v7425_v33 = vadd.f32 %v13912_v10, %v7424_v21  ;;  %v7809_v19 = vmax.f32 %v14098_v17, 0.0 }
 0xc83   : > { %v7526_v62 = vmax.f32 %v7425_v33, 0.0 }
 0xc84   : > { %v7650_v29 = vpop.f32.mrf.mxu0 }
 0xc85   : > { %v7651_v45 = vadd.f32 %v14028_v44, %v7650_v29 }
 0xc87   : > { %v14103_v42 = vadd.f32 %v7651_v45, %v13863_v47 }
 0xc88   : > { %v7426_v28 = vpop.f32.mrf.mxu3 }
 0xc89   : > { %v7810_v63 = vmax.f32 %v14103_v42, 0.0  ;;  %v7427_v40 = vadd.f32 %v13912_v10, %v7426_v28 }
 0xc8b   : > { %v7527_v31 = vmax.f32 %v7427_v40, 0.0  ;;  %v7836_v23 = vpack.c.bf16 %v7810_v63, %v7809_v19 }
 0xc8c   : > { %v7653_v1 = vpop.f32.mrf.mxu0 }
 0xc8d   : > { %7948 = vmatmul.bf16.gmra.mxu1 %v7836_v23  ;;  %v7544_v56 = vpack.c.bf16 %v7527_v31, %v7526_v62  ;;  %v7654_v57 = vadd.f32 %v14028_v44, %v7653_v1 }
 0xc8f   : > { %7692 = vmatmul.bf16.gmra.mxu0 %v7544_v56  ;;  %v14113_v4 = vadd.f32 %v7654_v57, %v13874_v30 }
 0xc90   : > { %v7429_v47 = vpop.f32.mrf.mxu3 }
 0xc91   : > { %v7430_v59 = vadd.f32 %v13912_v10, %v7429_v47  ;;  %v7811_v20 = vmax.f32 %v14113_v4, 0.0  ;;  %v14146_v47 = vld [vmem:[%s14432_s9 + $0x4] ss:$0 sm:$0xff] }
 0xc93   : > { %v7528_v15 = vmax.f32 %v7430_v59, 0.0 }
 0xc94   : > { %v7655_v24 = vpop.f32.mrf.mxu0 }
 0xc95   : > { %v7656_v46 = vadd.f32 %v14028_v44, %v7655_v24 }
 0xc97   : > { %v14118_v61 = vadd.f32 %v7656_v46, %v13878_v9 }
 0xc98   : > { %v7431_v55 = vpop.f32.mrf.mxu3 }
 0xc99   : > { %v7812_v34 = vmax.f32 %v14118_v61, 0.0  ;;  %v7432_v48 = vadd.f32 %v13912_v10, %v7431_v55 }
 0xc9b   : > { %v7529_v43 = vmax.f32 %v7432_v48, 0.0  ;;  %v7837_v12 = vpack.c.bf16 %v7812_v34, %v7811_v20 }
 0xc9c   : > { %v7658_v38 = vpop.f32.mrf.mxu0 }
 0xc9d   : > { %7953 = vmatmul.bf16.gmra.mxu1 %v7837_v12  ;;  %v7545_v30 = vpack.c.bf16 %v7529_v43, %v7528_v15  ;;  %v7659_v21 = vadd.f32 %v14028_v44, %v7658_v38 }
 0xc9f   : > { %7697 = vmatmul.bf16.gmra.mxu0 %v7545_v30  ;;  %v14125_v9 = vadd.f32 %v7659_v21, %v13887_v5 }
 0xca1   : > { %v7813_v10 = vmax.f32 %v14125_v9, 0.0 }
 0xca4   : > { %v7660_v60 = vpop.f32.mrf.mxu0 }
 0xca5   : > { %v7661_v29 = vadd.f32 %v14028_v44, %v7660_v60 }
 0xca7   : > { %v14129_v45 = vadd.f32 %v7661_v29, %v13891_v50 }
 0xca9   : > { %v7814_v33 = vmax.f32 %v14129_v45, 0.0 }
 0xcab   : > { %v7838_v28 = vpack.c.bf16 %v7814_v33, %v7813_v10 }
 0xcac   : > { %v7663_v19 = vpop.f32.mrf.mxu0 }
 0xcad   : > { %7958 = vmatmul.bf16.gmra.mxu1 %v7838_v28  ;;  %v7664_v63 = vadd.f32 %v14028_v44, %v7663_v19 }
 0xcaf   : > { %v14135_v35 = vadd.f32 %v7664_v63, %v13897_v26 }
 0xcb1   : > { %v7815_v50 = vmax.f32 %v14135_v35, 0.0 }
 0xcb4   : > { %v7665_v40 = vpop.f32.mrf.mxu0 }
 0xcb5   : > { %v7666_v5 = vadd.f32 %v14028_v44, %v7665_v40 }
 0xcb7   : > { %v14139_v62 = vadd.f32 %v7666_v5, %v13901_v16 }
 0xcb9   : > { %v7816_v31 = vmax.f32 %v14139_v62, 0.0 }
 0xcba   : > { %v7924_v23 = vpop.f32.mrf.mxu1 }
 0xcbb   : > { %v7839_v1 = vpack.c.bf16 %v7816_v31, %v7815_v50  ;;  %v7925_v26 = vadd.f32 %v14146_v47, %v7924_v23 }
 0xcbc   : > { %v7668_v56 = vpop.f32.mrf.mxu0 }
 0xcbd   : > { %7963 = vmatmul.bf16.gmra.mxu1 %v7839_v1  ;;  %v7669_v57 = vadd.f32 %v14028_v44, %v7668_v56  ;;  %v8068_v59 = vmax.f32 %v7925_v26, 0.0 }
 0xcbf   : > { %v14152_v55 = vadd.f32 %v7669_v57, %v13915_v13 }
 0xcc1   : > { %v7817_v43 = vmax.f32 %v14152_v55, 0.0 }
 0xcc2   : > { %v7926_v24 = vpop.f32.mrf.mxu1 }
 0xcc3   : > { %v7927_v16 = vadd.f32 %v14146_v47, %v7926_v24 }
 0xcc4   : > { %v7670_v46 = vpop.f32.mrf.mxu0 }
 0xcc5   : > { %v8069_v20 = vmax.f32 %v7927_v16, 0.0  ;;  %v7671_v34 = vadd.f32 %v14028_v44, %v7670_v46 }
 0xcc7   : > { %v8100_v48 = vpack.c.bf16 %v8069_v20, %v8068_v59  ;;  %v14156_v15 = vadd.f32 %v7671_v34, %v13920_v51 }
 0xcc9   : > { %v7818_v12 = vmax.f32 %v14156_v15, 0.0  ;;  %8192 = vmatmul.bf16.vlgmr.msrb.gmra.mxu2 %v8100_v48 }
 0xcca   : > { %v7929_v38 = vpop.f32.mrf.mxu1 }
 0xccb   : > { %v7840_v30 = vpack.c.bf16 %v7818_v12, %v7817_v43  ;;  %v7930_v60 = vadd.f32 %v14146_v47, %v7929_v38 }
 0xccc   : > { %v7673_v21 = vpop.f32.mrf.mxu0 }
 0xccd   : > { %7968 = vmatmul.bf16.gmra.mxu1 %v7840_v30  ;;  %v7674_v13 = vadd.f32 %v14028_v44, %v7673_v21  ;;  %v8070_v28 = vmax.f32 %v7930_v60, 0.0 }
 0xccf   : > { %v14164_v51 = vadd.f32 %v7674_v13, %v13930_v36 }
 0xcd1   : > { %v7819_v50 = vmax.f32 %v14164_v51, 0.0 }
 0xcd2   : > { %v7931_v29 = vpop.f32.mrf.mxu1 }
 0xcd3   : > { %v7932_v10 = vadd.f32 %v14146_v47, %v7931_v29 }
 0xcd4   : > { %v7675_v33 = vpop.f32.mrf.mxu0 }
 0xcd5   : > { %v8071_v19 = vmax.f32 %v7932_v10, 0.0  ;;  %v7676_v63 = vadd.f32 %v14028_v44, %v7675_v33 }
 0xcd7   : > { %v14168_v40 = vadd.f32 %v7676_v63, %v13935_v2  ;;  %v8101_v5 = vpack.c.bf16 %v8071_v19, %v8070_v28 }
 0xcd9   : > { %v7820_v31 = vmax.f32 %v14168_v40, 0.0  ;;  %8197 = vmatmul.bf16.gmra.mxu2 %v8101_v5 }
 0xcda   : > { %v7934_v23 = vpop.f32.mrf.mxu1 }
 0xcdb   : > { %v7841_v1 = vpack.c.bf16 %v7820_v31, %v7819_v50  ;;  %v7935_v26 = vadd.f32 %v14146_v47, %v7934_v23 }
 0xcdc   : > { %v7678_v56 = vpop.f32.mrf.mxu0 }
 0xcdd   : > { %7973 = vmatmul.bf16.gmra.mxu1 %v7841_v1  ;;  %v7679_v36 = vadd.f32 %v14028_v44, %v7678_v56  ;;  %v8072_v2 = vmax.f32 %v7935_v26, 0.0 }
 0xcdf   : > { %v14176_v46 = vadd.f32 %v7679_v36, %v13945_v52 }
 0xce1   : > { %v7821_v43 = vmax.f32 %v14176_v46, 0.0 }
 0xce2   : > { %v7936_v57 = vpop.f32.mrf.mxu1 }
 0xce3   : > { %v7937_v24 = vadd.f32 %v14146_v47, %v7936_v57 }
 0xce4   : > { %v7680_v16 = vpop.f32.mrf.mxu0 }
 0xce5   : > { %v8073_v59 = vmax.f32 %v7937_v24, 0.0  ;;  %v7681_v20 = vadd.f32 %v14028_v44, %v7680_v16 }
 0xce7   : > { %v14180_v34 = vadd.f32 %v7681_v20, %v13950_v49  ;;  %v8102_v48 = vpack.c.bf16 %v8073_v59, %v8072_v2 }
 0xce9   : > { %v7822_v12 = vmax.f32 %v14180_v34, 0.0  ;;  %8202 = vmatmul.bf16.gmra.mxu2 %v8102_v48 }
 0xcea   : > { %v7939_v38 = vpop.f32.mrf.mxu1 }
 0xceb   : > { %v7842_v30 = vpack.c.bf16 %v7822_v12, %v7821_v43  ;;  %v7940_v60 = vadd.f32 %v14146_v47, %v7939_v38 }
 0xcec   : > { %v7683_v21 = vpop.f32.mrf.mxu0 }
 0xced   : > { %7978 = vmatmul.bf16.gmra.mxu1 %v7842_v30  ;;  %v7684_v52 = vadd.f32 %v14028_v44, %v7683_v21  ;;  %v8074_v49 = vmax.f32 %v7940_v60, 0.0 }
 0xcef   : > { %v14188_v33 = vadd.f32 %v7684_v52, %v13960_v32 }
 0xcf1   : > { %v7823_v50 = vmax.f32 %v14188_v33, 0.0 }
 0xcf2   : > { %v7941_v13 = vpop.f32.mrf.mxu1 }
 0xcf3   : > { %v7942_v29 = vadd.f32 %v14146_v47, %v7941_v13 }
 0xcf4   : > { %v7685_v10 = vpop.f32.mrf.mxu0 }
 0xcf5   : > { %v8075_v28 = vmax.f32 %v7942_v29, 0.0  ;;  %v7686_v19 = vadd.f32 %v14028_v44, %v7685_v10 }
 0xcf7   : > { %v14192_v63 = vadd.f32 %v7686_v19, %v13965_v0  ;;  %v8103_v5 = vpack.c.bf16 %v8075_v28, %v8074_v49 }
 0xcf9   : > { %v7824_v31 = vmax.f32 %v14192_v63, 0.0  ;;  %8207 = vmatmul.bf16.gmra.mxu2 %v8103_v5 }
 0xcfa   : > { %v7944_v23 = vpop.f32.mrf.mxu1 }
 0xcfb   : > { %v7843_v1 = vpack.c.bf16 %v7824_v31, %v7823_v50  ;;  %v7945_v26 = vadd.f32 %v14146_v47, %v7944_v23 }
 0xcfc   : > { %v7688_v56 = vpop.f32.mrf.mxu0 }
 0xcfd   : > { %7983 = vmatmul.bf16.gmra.mxu1 %v7843_v1  ;;  %v7689_v32 = vadd.f32 %v14028_v44, %v7688_v56  ;;  %v8076_v0 = vmax.f32 %v7945_v26, 0.0 }
 0xcff   : > { %v14200_v16 = vadd.f32 %v7689_v32, %v13975_v25 }
 0xd01   : > { %v7825_v43 = vmax.f32 %v14200_v16, 0.0 }
 0xd02   : > { %v7946_v36 = vpop.f32.mrf.mxu1 }
 0xd03   : > { %v7947_v57 = vadd.f32 %v14146_v47, %v7946_v36 }
 0xd04   : > { %v7690_v24 = vpop.f32.mrf.mxu0 }
 0xd05   : > { %v8077_v2 = vmax.f32 %v7947_v57, 0.0  ;;  %v7691_v59 = vadd.f32 %v14028_v44, %v7690_v24 }
 0xd07   : > { %v8104_v20 = vpack.c.bf16 %v8077_v2, %v8076_v0  ;;  %v14204_v48 = vadd.f32 %v7691_v59, %v13980_v11 }
 0xd09   : > { %v7826_v12 = vmax.f32 %v14204_v48, 0.0  ;;  %8212 = vmatmul.bf16.gmra.mxu2 %v8104_v20 }
 0xd0a   : > { %v7949_v38 = vpop.f32.mrf.mxu1 }
 0xd0b   : > { %v7844_v30 = vpack.c.bf16 %v7826_v12, %v7825_v43  ;;  %v7950_v60 = vadd.f32 %v14146_v47, %v7949_v38 }
 0xd0c   : > { %v7693_v21 = vpop.f32.mrf.mxu0 }
 0xd0d   : > { %7988 = vmatmul.bf16.gmra.mxu1 %v7844_v30  ;;  %v7694_v25 = vadd.f32 %v14028_v44, %v7693_v21  ;;  %v8078_v10 = vmax.f32 %v7950_v60, 0.0 }
 0xd0f   : > { %v14212_v11 = vadd.f32 %v7694_v25, %v13990_v22 }
 0xd11   : > { %v7827_v50 = vmax.f32 %v14212_v11, 0.0 }
 0xd12   : > { %v7951_v52 = vpop.f32.mrf.mxu1 }
 0xd13   : > { %v7952_v13 = vadd.f32 %v14146_v47, %v7951_v52 }
 0xd14   : > { %v7695_v29 = vpop.f32.mrf.mxu0 }
 0xd15   : > { %v8079_v49 = vmax.f32 %v7952_v13, 0.0  ;;  %v7696_v28 = vadd.f32 %v14028_v44, %v7695_v29 }
 0xd17   : > { %v8105_v19 = vpack.c.bf16 %v8079_v49, %v8078_v10  ;;  %v14216_v5 = vadd.f32 %v7696_v28, %v13995_v8 }
 0xd19   : > { %v7828_v31 = vmax.f32 %v14216_v5, 0.0  ;;  %8217 = vmatmul.bf16.gmra.mxu2 %v8105_v19 }
 0xd1a   : > { %v7954_v23 = vpop.f32.mrf.mxu1 }
 0xd1b   : > { %v7845_v1 = vpack.c.bf16 %v7828_v31, %v7827_v50  ;;  %v7955_v26 = vadd.f32 %v14146_v47, %v7954_v23  ;;  %v14239_v23 = vld [vmem:[%s14434_s11 + $0x4] ss:$0 sm:$0xff] }
 0xd1c   : > { %v7698_v56 = vpop.f32.mrf.mxu0 }
 0xd1d   : > { %7993 = vmatmul.bf16.gmra.mxu1 %v7845_v1  ;;  %v7699_v22 = vadd.f32 %v14028_v44, %v7698_v56  ;;  %v8080_v24 = vmax.f32 %v7955_v26, 0.0 }
 0xd1f   : > { %v14224_v8 = vadd.f32 %v7699_v22, %v14005_v3 }
 0xd21   : > { %v7829_v43 = vmax.f32 %v14224_v8, 0.0 }
 0xd22   : > { %v7956_v32 = vpop.f32.mrf.mxu1 }
 0xd23   : > { %v7957_v36 = vadd.f32 %v14146_v47, %v7956_v32 }
 0xd24   : > { %v7700_v57 = vpop.f32.mrf.mxu0 }
 0xd25   : > { %v8081_v0 = vmax.f32 %v7957_v36, 0.0  ;;  %v7701_v2 = vadd.f32 %v14028_v44, %v7700_v57 }
 0xd27   : > { %v8106_v59 = vpack.c.bf16 %v8081_v0, %v8080_v24  ;;  %v14228_v20 = vadd.f32 %v7701_v2, %v14010_v53 }
 0xd29   : > { %v7830_v12 = vmax.f32 %v14228_v20, 0.0  ;;  %8222 = vmatmul.bf16.gmra.mxu2 %v8106_v59 }
 0xd2a   : > { %v7959_v38 = vpop.f32.mrf.mxu1 }
 0xd2b   : > { %v7846_v30 = vpack.c.bf16 %v7830_v12, %v7829_v43  ;;  %v7960_v21 = vadd.f32 %v14146_v47, %v7959_v38 }
 0xd2d   : > { %7998 = vmatmul.bf16.gmra.mxu1 %v7846_v30  ;;  %v8082_v25 = vmax.f32 %v7960_v21, 0.0 }
 0xd32   : > { %v7961_v60 = vpop.f32.mrf.mxu1 }
 0xd33   : > { %v7962_v3 = vadd.f32 %v14146_v47, %v7961_v60 }
 0xd35   : > { %v8083_v52 = vmax.f32 %v7962_v3, 0.0 }
 0xd37   : > { %v8107_v44 = vpack.c.bf16 %v8083_v52, %v8082_v25 }
 0xd39   : > { %8227 = vmatmul.bf16.gmra.mxu2 %v8107_v44 }
 0xd3a   : > { %v7964_v13 = vpop.f32.mrf.mxu1 }
 0xd3b   : > { %v7965_v53 = vadd.f32 %v14146_v47, %v7964_v13 }
 0xd3d   : > { %v8084_v49 = vmax.f32 %v7965_v53, 0.0 }
 0xd42   : > { %v7966_v29 = vpop.f32.mrf.mxu1 }
 0xd43   : > { %v7967_v10 = vadd.f32 %v14146_v47, %v7966_v29 }
 0xd45   : > { %v8085_v28 = vmax.f32 %v7967_v10, 0.0 }
 0xd47   : > { %v8108_v19 = vpack.c.bf16 %v8085_v28, %v8084_v49 }
 0xd49   : > { %8232 = vmatmul.bf16.gmra.mxu2 %v8108_v19 }
 0xd4a   : > { %v7969_v50 = vpop.f32.mrf.mxu1 }
 0xd4b   : > { %v7970_v1 = vadd.f32 %v14146_v47, %v7969_v50 }
 0xd4c   : > { %v8193_v31 = vpop.f32.mrf.mxu2 }
 0xd4d   : > { %v8194_v56 = vadd.f32 %v14239_v23, %v8193_v31  ;;  %v8086_v36 = vmax.f32 %v7970_v1, 0.0 }
 0xd4f   : > { %v8273_v57 = vadd.f32 %v8194_v56, %v14032_v37 }
 0xd51   : > { %v8369_v43 = vmax.f32 %v8273_v57, 0.0 }
 0xd52   : > { %v7971_v26 = vpop.f32.mrf.mxu1 }
 0xd53   : > { %v7972_v22 = vadd.f32 %v14146_v47, %v7971_v26 }
 0xd54   : > { %v8195_v32 = vpop.f32.mrf.mxu2 }
 0xd55   : > { %v8087_v24 = vmax.f32 %v7972_v22, 0.0  ;;  %v8196_v0 = vadd.f32 %v14239_v23, %v8195_v32 }
 0xd57   : > { %v8109_v2 = vpack.c.bf16 %v8087_v24, %v8086_v36  ;;  %v8274_v59 = vadd.f32 %v8196_v0, %v14037_v54 }
 0xd59   : > { %v8370_v12 = vmax.f32 %v8274_v59, 0.0  ;;  %8237 = vmatmul.bf16.gmra.mxu2 %v8109_v2 }
 0xd5a   : > { %v7974_v38 = vpop.f32.mrf.mxu1 }
 0xd5b   : > { %v8401_v30 = vpack.c.bf16 %v8370_v12, %v8369_v43  ;;  %v7975_v60 = vadd.f32 %v14146_v47, %v7974_v38 }
 0xd5c   : > { %v8198_v21 = vpop.f32.mrf.mxu2 }
 0xd5d   : > { %8425 = vmatmul.bf16.vlgmr.msrb.gmra.mxu3 %v8401_v30  ;;  %v8199_v3 = vadd.f32 %v14239_v23, %v8198_v21  ;;  %v8088_v44 = vmax.f32 %v7975_v60, 0.0 }
 0xd5f   : > { %v8275_v13 = vadd.f32 %v8199_v3, %v14044_v6 }
 0xd61   : > { %v8371_v49 = vmax.f32 %v8275_v13, 0.0 }
 0xd62   : > { %v7976_v25 = vpop.f32.mrf.mxu1 }
 0xd63   : > { %v7977_v37 = vadd.f32 %v14146_v47, %v7976_v25 }
 0xd64   : > { %v8200_v52 = vpop.f32.mrf.mxu2 }
 0xd65   : > { %v8089_v53 = vmax.f32 %v7977_v37, 0.0  ;;  %v8201_v54 = vadd.f32 %v14239_v23, %v8200_v52 }
 0xd67   : > { %v8110_v29 = vpack.c.bf16 %v8089_v53, %v8088_v44  ;;  %v8276_v10 = vadd.f32 %v8201_v54, %v14049_v7 }
 0xd69   : > { %v8372_v28 = vmax.f32 %v8276_v10, 0.0  ;;  %8242 = vmatmul.bf16.gmra.mxu2 %v8110_v29 }
 0xd6a   : > { %v7979_v19 = vpop.f32.mrf.mxu1 }
 0xd6b   : > { %v8402_v50 = vpack.c.bf16 %v8372_v28, %v8371_v49  ;;  %v7980_v1 = vadd.f32 %v14146_v47, %v7979_v19 }
 0xd6c   : > { %v8203_v31 = vpop.f32.mrf.mxu2 }
 0xd6d   : > { %8430 = vmatmul.bf16.gmra.mxu3 %v8402_v50  ;;  %v8204_v56 = vadd.f32 %v14239_v23, %v8203_v31  ;;  %v8090_v32 = vmax.f32 %v7980_v1, 0.0 }
 0xd6f   : > { %v8277_v36 = vadd.f32 %v8204_v56, %v14059_v58 }
 0xd71   : > { %v8373_v2 = vmax.f32 %v8277_v36, 0.0 }
 0xd72   : > { %v7981_v26 = vpop.f32.mrf.mxu1 }
 0xd73   : > { %v7982_v6 = vadd.f32 %v14146_v47, %v7981_v26 }
 0xd74   : > { %v8205_v22 = vpop.f32.mrf.mxu2 }
 0xd75   : > { %v8091_v57 = vmax.f32 %v7982_v6, 0.0  ;;  %v8206_v7 = vadd.f32 %v14239_v23, %v8205_v22 }
 0xd77   : > { %v8111_v24 = vpack.c.bf16 %v8091_v57, %v8090_v32  ;;  %v8278_v0 = vadd.f32 %v8206_v7, %v14064_v27 }
 0xd79   : > { %v8374_v59 = vmax.f32 %v8278_v0, 0.0  ;;  %8247 = vmatmul.bf16.gmra.mxu2 %v8111_v24 }
 0xd7a   : > { %v7984_v43 = vpop.f32.mrf.mxu1 }
 0xd7b   : > { %v8403_v12 = vpack.c.bf16 %v8374_v59, %v8373_v2  ;;  %v7985_v30 = vadd.f32 %v14146_v47, %v7984_v43 }
 0xd7c   : > { %v8208_v38 = vpop.f32.mrf.mxu2 }
 0xd7d   : > { %8435 = vmatmul.bf16.gmra.mxu3 %v8403_v12  ;;  %v8209_v21 = vadd.f32 %v14239_v23, %v8208_v38  ;;  %v8092_v25 = vmax.f32 %v7985_v30, 0.0 }
 0xd7f   : > { %v8279_v37 = vadd.f32 %v8209_v21, %v14071_v41 }
 0xd81   : > { %v8375_v53 = vmax.f32 %v8279_v37, 0.0 }
 0xd82   : > { %v7986_v60 = vpop.f32.mrf.mxu1 }
 0xd83   : > { %v7987_v58 = vadd.f32 %v14146_v47, %v7986_v60 }
 0xd84   : > { %v8210_v3 = vpop.f32.mrf.mxu2 }
 0xd85   : > { %v8093_v52 = vmax.f32 %v7987_v58, 0.0  ;;  %v8211_v27 = vadd.f32 %v14239_v23, %v8210_v3 }
 0xd87   : > { %v8112_v44 = vpack.c.bf16 %v8093_v52, %v8092_v25  ;;  %v8280_v13 = vadd.f32 %v8211_v27, %v14076_v39 }
 0xd89   : > { %v8376_v54 = vmax.f32 %v8280_v13, 0.0  ;;  %8252 = vmatmul.bf16.gmra.mxu2 %v8112_v44 }
 0xd8a   : > { %v7989_v29 = vpop.f32.mrf.mxu1 }
 0xd8b   : > { %v8404_v10 = vpack.c.bf16 %v8376_v54, %v8375_v53  ;;  %v7990_v28 = vadd.f32 %v14146_v47, %v7989_v29 }
 0xd8c   : > { %v8213_v49 = vpop.f32.mrf.mxu2 }
 0xd8d   : > { %8440 = vmatmul.bf16.gmra.mxu3 %v8404_v10  ;;  %v8214_v19 = vadd.f32 %v14239_v23, %v8213_v49  ;;  %v8094_v1 = vmax.f32 %v7990_v28, 0.0 }
 0xd8f   : > { %v8281_v56 = vadd.f32 %v8214_v19, %v14086_v18 }
 0xd91   : > { %v8377_v32 = vmax.f32 %v8281_v56, 0.0 }
 0xd92   : > { %v7991_v50 = vpop.f32.mrf.mxu1 }
 0xd93   : > { %v7992_v41 = vadd.f32 %v14146_v47, %v7991_v50 }
 0xd94   : > { %v8215_v31 = vpop.f32.mrf.mxu2 }
 0xd95   : > { %v8095_v26 = vmax.f32 %v7992_v41, 0.0  ;;  %v8216_v39 = vadd.f32 %v14239_v23, %v8215_v31 }
 0xd97   : > { %v8113_v6 = vpack.c.bf16 %v8095_v26, %v8094_v1  ;;  %v8282_v22 = vadd.f32 %v8216_v39, %v14091_v14 }
 0xd99   : > { %v8378_v36 = vmax.f32 %v8282_v22, 0.0  ;;  %8257 = vmatmul.bf16.gmra.mxu2 %v8113_v6 }
 0xd9a   : > { %v7994_v57 = vpop.f32.mrf.mxu1 }
 0xd9b   : > { %v8405_v7 = vpack.c.bf16 %v8378_v36, %v8377_v32  ;;  %v7995_v0 = vadd.f32 %v14146_v47, %v7994_v57 }
 0xd9c   : > { %v8218_v24 = vpop.f32.mrf.mxu2 }
 0xd9d   : > { %8445 = vmatmul.bf16.gmra.mxu3 %v8405_v7  ;;  %v8219_v2 = vadd.f32 %v14239_v23, %v8218_v24  ;;  %v8096_v12 = vmax.f32 %v7995_v0, 0.0 }
 0xd9f   : > { %v8283_v38 = vadd.f32 %v8219_v2, %v14098_v17 }
 0xda1   : > { %v8379_v58 = vmax.f32 %v8283_v38, 0.0 }
 0xda2   : > { %v7996_v59 = vpop.f32.mrf.mxu1 }
 0xda3   : > { %v7997_v18 = vadd.f32 %v14146_v47, %v7996_v59 }
 0xda4   : > { %v8220_v43 = vpop.f32.mrf.mxu2 }
 0xda5   : > { %v8097_v30 = vmax.f32 %v7997_v18, 0.0  ;;  %v8221_v14 = vadd.f32 %v14239_v23, %v8220_v43  ;;  %v14295_v43 = vld [vmem:[%s14436_s13] ss:$0 sm:$0xff] }
 0xda7   : > { %v8114_v21 = vpack.c.bf16 %v8097_v30, %v8096_v12  ;;  %v8284_v60 = vadd.f32 %v8221_v14, %v14103_v42 }
 0xda9   : > { %v8380_v3 = vmax.f32 %v8284_v60, 0.0  ;;  %8262 = vmatmul.bf16.gmra.mxu2 %v8114_v21 }
 0xdaa   : > { %v7999_v25 = vpop.f32.mrf.mxu1 }
 0xdab   : > { %v8406_v37 = vpack.c.bf16 %v8380_v3, %v8379_v58  ;;  %v8000_v27 = vadd.f32 %v14146_v47, %v7999_v25 }
 0xdac   : > { %v8223_v52 = vpop.f32.mrf.mxu2 }
 0xdad   : > { %8450 = vmatmul.bf16.gmra.mxu3 %v8406_v37  ;;  %v8224_v44 = vadd.f32 %v14239_v23, %v8223_v52  ;;  %v8098_v54 = vmax.f32 %v8000_v27, 0.0 }
 0xdaf   : > { %v8285_v29 = vadd.f32 %v8224_v44, %v14113_v4 }
 0xdb1   : > { %v8381_v19 = vmax.f32 %v8285_v29, 0.0 }
 0xdb2   : > { %v8001_v13 = vpop.f32.mrf.mxu1 }
 0xdb3   : > { %v8002_v17 = vadd.f32 %v14146_v47, %v8001_v13 }
 0xdb4   : > { %v8225_v53 = vpop.f32.mrf.mxu2 }
 0xdb5   : > { %v8099_v10 = vmax.f32 %v8002_v17, 0.0  ;;  %v8226_v42 = vadd.f32 %v14239_v23, %v8225_v53 }
 0xdb7   : > { %v8115_v49 = vpack.c.bf16 %v8099_v10, %v8098_v54  ;;  %v8286_v28 = vadd.f32 %v8226_v42, %v14118_v61 }
 0xdb9   : > { %v8382_v50 = vmax.f32 %v8286_v28, 0.0  ;;  %8267 = vmatmul.bf16.gmra.mxu2 %v8115_v49 }
 0xdbb   : > { %v8407_v41 = vpack.c.bf16 %v8382_v50, %v8381_v19 }
 0xdbc   : > { %v8228_v31 = vpop.f32.mrf.mxu2 }
 0xdbd   : > { %8455 = vmatmul.bf16.gmra.mxu3 %v8407_v41  ;;  %v8229_v1 = vadd.f32 %v14239_v23, %v8228_v31 }
 0xdbf   : > { %v8287_v47 = vadd.f32 %v8229_v1, %v14125_v9 }
 0xdc1   : > { %v8383_v39 = vmax.f32 %v8287_v47, 0.0 }
 0xdc4   : > { %v8230_v56 = vpop.f32.mrf.mxu2 }
 0xdc5   : > { %v8231_v26 = vadd.f32 %v14239_v23, %v8230_v56 }
 0xdc7   : > { %v8288_v4 = vadd.f32 %v8231_v26, %v14129_v45 }
 0xdc9   : > { %v8384_v6 = vmax.f32 %v8288_v4, 0.0 }
 0xdcb   : > { %v8408_v22 = vpack.c.bf16 %v8384_v6, %v8383_v39 }
 0xdcc   : > { %v8233_v32 = vpop.f32.mrf.mxu2 }
 0xdcd   : > { %8460 = vmatmul.bf16.gmra.mxu3 %v8408_v22  ;;  %v8234_v61 = vadd.f32 %v14239_v23, %v8233_v32 }
 0xdcf   : > { %v8289_v57 = vadd.f32 %v8234_v61, %v14135_v35 }
 0xdd1   : > { %v8385_v9 = vmax.f32 %v8289_v57, 0.0 }
 0xdd4   : > { %v8235_v36 = vpop.f32.mrf.mxu2 }
 0xdd5   : > { %v8236_v7 = vadd.f32 %v14239_v23, %v8235_v36 }
 0xdd7   : > { %v8290_v24 = vadd.f32 %v8236_v7, %v14139_v62 }
 0xdd9   : > { %v8386_v0 = vmax.f32 %v8290_v24, 0.0 }
 0xddb   : > { %v8409_v2 = vpack.c.bf16 %v8386_v0, %v8385_v9 }
 0xddc   : > { %v8238_v45 = vpop.f32.mrf.mxu2 }
 0xddd   : > { %8465 = vmatmul.bf16.gmra.mxu3 %v8409_v2  ;;  %v8239_v18 = vadd.f32 %v14239_v23, %v8238_v45 }
 0xddf   : > { %v8291_v12 = vadd.f32 %v8239_v18, %v14152_v55 }
 0xde0   : > { %v8426_v59 = vpop.f32.mrf.mxu3 }
 0xde1   : > { %v8427_v35 = vadd.f32 %v14295_v43, %v8426_v59  ;;  %v8387_v21 = vmax.f32 %v8291_v12, 0.0 }
 0xde3   : > { %8506 = vst.msk [vmem:[%s12312_s16 + $0x100] sm:$0xff] %vm4561_vm1, %v8427_v35 }
 0xde4   : > { %v8240_v62 = vpop.f32.mrf.mxu2 }
 0xde5   : > { %v8241_v38 = vadd.f32 %v14239_v23, %v8240_v62 }
 0xde7   : > { %v8292_v30 = vadd.f32 %v8241_v38, %v14156_v15 }
 0xde8   : > { %v8428_v14 = vpop.f32.mrf.mxu3 }
 0xde9   : > { %v8388_v60 = vmax.f32 %v8292_v30, 0.0  ;;  %v8429_v58 = vadd.f32 %v14295_v43, %v8428_v14 }
 0xdeb   : > { %8507 = vst.msk [vmem:[%s12312_s16 + $0x108] sm:$0xff] %vm4561_vm1, %v8429_v58  ;;  %v8410_v3 = vpack.c.bf16 %v8388_v60, %v8387_v21 }
 0xdec   : > { %v8243_v25 = vpop.f32.mrf.mxu2 }
 0xded   : > { %8470 = vmatmul.bf16.gmra.mxu3 %v8410_v3  ;;  %v8244_v52 = vadd.f32 %v14239_v23, %v8243_v25 }
 0xdef   : > { %v8293_v27 = vadd.f32 %v8244_v52, %v14164_v51 }
 0xdf0   : > { %v8431_v37 = vpop.f32.mrf.mxu3 }
 0xdf1   : > { %v8432_v55 = vadd.f32 %v14295_v43, %v8431_v37  ;;  %v8389_v53 = vmax.f32 %v8293_v27, 0.0 }
 0xdf3   : > { %8508 = vst.msk [vmem:[%s12312_s16 + $0x110] sm:$0xff] %vm4561_vm1, %v8432_v55 }
 0xdf4   : > { %v8245_v15 = vpop.f32.mrf.mxu2 }
 0xdf5   : > { %v8246_v44 = vadd.f32 %v14239_v23, %v8245_v15 }
 0xdf7   : > { %v8294_v13 = vadd.f32 %v8246_v44, %v14168_v40 }
 0xdf8   : > { %v8433_v17 = vpop.f32.mrf.mxu3 }
 0xdf9   : > { %v8390_v54 = vmax.f32 %v8294_v13, 0.0  ;;  %v8434_v29 = vadd.f32 %v14295_v43, %v8433_v17 }
 0xdfb   : > { %8509 = vst.msk [vmem:[%s12312_s16 + $0x118] sm:$0xff] %vm4561_vm1, %v8434_v29  ;;  %v8411_v10 = vpack.c.bf16 %v8390_v54, %v8389_v53 }
 0xdfc   : > { %v8248_v42 = vpop.f32.mrf.mxu2 }
 0xdfd   : > { %8475 = vmatmul.bf16.gmra.mxu3 %v8411_v10  ;;  %v8249_v28 = vadd.f32 %v14239_v23, %v8248_v42 }
 0xdff   : > { %v8295_v19 = vadd.f32 %v8249_v28, %v14176_v46 }
 0xe00   : > { %v8436_v49 = vpop.f32.mrf.mxu3 }
 0xe01   : > { %v8437_v51 = vadd.f32 %v14295_v43, %v8436_v49  ;;  %v8391_v1 = vmax.f32 %v8295_v19, 0.0 }
 0xe03   : > { %8510 = vst.msk [vmem:[%s12312_s16 + $0x120] sm:$0xff] %vm4561_vm1, %v8437_v51 }
 0xe04   : > { %v8250_v40 = vpop.f32.mrf.mxu2 }
 0xe05   : > { %v8251_v50 = vadd.f32 %v14239_v23, %v8250_v40 }
 0xe07   : > { %v8296_v41 = vadd.f32 %v8251_v50, %v14180_v34 }
 0xe08   : > { %v8438_v31 = vpop.f32.mrf.mxu3 }
 0xe09   : > { %v8392_v56 = vmax.f32 %v8296_v41, 0.0  ;;  %v8439_v47 = vadd.f32 %v14295_v43, %v8438_v31 }
 0xe0b   : > { %8511 = vst.msk [vmem:[%s12312_s16 + $0x128] sm:$0xff] %vm4561_vm1, %v8439_v47  ;;  %v8412_v26 = vpack.c.bf16 %v8392_v56, %v8391_v1 }
 0xe0c   : > { %v8253_v4 = vpop.f32.mrf.mxu2 }
 0xe0d   : > { %8480 = vmatmul.bf16.gmra.mxu3 %v8412_v26  ;;  %v8254_v6 = vadd.f32 %v14239_v23, %v8253_v4 }
 0xe0f   : > { %v8297_v22 = vadd.f32 %v8254_v6, %v14188_v33 }
 0xe10   : > { %v8441_v39 = vpop.f32.mrf.mxu3 }
 0xe11   : > { %v8442_v46 = vadd.f32 %v14295_v43, %v8441_v39  ;;  %v8393_v57 = vmax.f32 %v8297_v22, 0.0 }
 0xe13   : > { %8512 = vst.msk [vmem:[%s12312_s16 + $0x130] sm:$0xff] %vm4561_vm1, %v8442_v46 }
 0xe14   : > { %v8255_v34 = vpop.f32.mrf.mxu2 }
 0xe15   : > { %v8256_v32 = vadd.f32 %v14239_v23, %v8255_v34 }
 0xe17   : > { %v8298_v61 = vadd.f32 %v8256_v32, %v14192_v63 }
 0xe18   : > { %v8443_v36 = vpop.f32.mrf.mxu3 }
 0xe19   : > { %v8394_v7 = vmax.f32 %v8298_v61, 0.0  ;;  %v8444_v24 = vadd.f32 %v14295_v43, %v8443_v36 }
 0xe1b   : > { %8513 = vst.msk [vmem:[%s12312_s16 + $0x138] sm:$0xff] %vm4561_vm1, %v8444_v24  ;;  %v8413_v9 = vpack.c.bf16 %v8394_v7, %v8393_v57 }
 0xe1c   : > { %v8258_v0 = vpop.f32.mrf.mxu2 }
 0xe1d   : > { %8485 = vmatmul.bf16.gmra.mxu3 %v8413_v9  ;;  %v8259_v45 = vadd.f32 %v14239_v23, %v8258_v0 }
 0xe1f   : > { %v8299_v59 = vadd.f32 %v8259_v45, %v14200_v16 }
 0xe20   : > { %v8446_v2 = vpop.f32.mrf.mxu3 }
 0xe21   : > { %v8447_v33 = vadd.f32 %v14295_v43, %v8446_v2  ;;  %v8395_v12 = vmax.f32 %v8299_v59, 0.0 }
 0xe23   : > { %8514 = vst.msk [vmem:[%s12312_s16 + $0x140] sm:$0xff] %vm4561_vm1, %v8447_v33 }
 0xe24   : > { %v8260_v63 = vpop.f32.mrf.mxu2 }
 0xe25   : > { %v8261_v18 = vadd.f32 %v14239_v23, %v8260_v63 }
 0xe27   : > { %v8300_v35 = vadd.f32 %v8261_v18, %v14204_v48 }
 0xe28   : > { %v8448_v62 = vpop.f32.mrf.mxu3 }
 0xe29   : > { %v8396_v38 = vmax.f32 %v8300_v35, 0.0  ;;  %v8449_v30 = vadd.f32 %v14295_v43, %v8448_v62 }
 0xe2b   : > { %8515 = vst.msk [vmem:[%s12312_s16 + $0x148] sm:$0xff] %vm4561_vm1, %v8449_v30  ;;  %v8414_v14 = vpack.c.bf16 %v8396_v38, %v8395_v12 }
 0xe2c   : > { %v8263_v21 = vpop.f32.mrf.mxu2 }
 0xe2d   : > { %8490 = vmatmul.bf16.gmra.mxu3 %v8414_v14  ;;  %v8264_v58 = vadd.f32 %v14239_v23, %v8263_v21 }
 0xe2f   : > { %v8301_v3 = vadd.f32 %v8264_v58, %v14212_v11 }
 0xe30   : > { %v8451_v60 = vpop.f32.mrf.mxu3 }
 0xe31   : > { %v8452_v16 = vadd.f32 %v14295_v43, %v8451_v60  ;;  %v8397_v55 = vmax.f32 %v8301_v3, 0.0 }
 0xe33   : > { %8516 = vst.msk [vmem:[%s12312_s16 + $0x150] sm:$0xff] %vm4561_vm1, %v8452_v16 }
 0xe34   : > { %v8265_v48 = vpop.f32.mrf.mxu2 }
 0xe35   : > { %v8266_v25 = vadd.f32 %v14239_v23, %v8265_v48 }
 0xe37   : > { %v8302_v37 = vadd.f32 %v8266_v25, %v14216_v5 }
 0xe38   : > { %v8453_v52 = vpop.f32.mrf.mxu3 }
 0xe39   : > { %v8398_v15 = vmax.f32 %v8302_v37, 0.0  ;;  %v8454_v27 = vadd.f32 %v14295_v43, %v8453_v52 }
 0xe3b   : > { %8517 = vst.msk [vmem:[%s12312_s16 + $0x158] sm:$0xff] %vm4561_vm1, %v8454_v27  ;;  %v8415_v44 = vpack.c.bf16 %v8398_v15, %v8397_v55 }
 0xe3c   : > { %v8268_v13 = vpop.f32.mrf.mxu2 }
 0xe3d   : > { %8495 = vmatmul.bf16.gmra.mxu3 %v8415_v44  ;;  %v8269_v53 = vadd.f32 %v14239_v23, %v8268_v13 }
 0xe3f   : > { %v8303_v54 = vadd.f32 %v8269_v53, %v14224_v8 }
 0xe40   : > { %v8456_v17 = vpop.f32.mrf.mxu3 }
 0xe41   : > { %v8457_v11 = vadd.f32 %v14295_v43, %v8456_v17  ;;  %v8399_v49 = vmax.f32 %v8303_v54, 0.0 }
 0xe43   : > { %8518 = vst.msk [vmem:[%s12312_s16 + $0x160] sm:$0xff] %vm4561_vm1, %v8457_v11 }
 0xe44   : > { %v8270_v5 = vpop.f32.mrf.mxu2 }
 0xe45   : > { %v8271_v29 = vadd.f32 %v14239_v23, %v8270_v5 }
 0xe47   : > { %v8304_v10 = vadd.f32 %v8271_v29, %v14228_v20 }
 0xe48   : > { %v8458_v42 = vpop.f32.mrf.mxu3 }
 0xe49   : > { %v8400_v28 = vmax.f32 %v8304_v10, 0.0  ;;  %v8459_v51 = vadd.f32 %v14295_v43, %v8458_v42 }
 0xe4b   : > { %8519 = vst.msk [vmem:[%s12312_s16 + $0x168] sm:$0xff] %vm4561_vm1, %v8459_v51  ;;  %v8416_v40 = vpack.c.bf16 %v8400_v28, %v8399_v49 }
 0xe4d   : > { %8500 = vmatmul.bf16.gmra.mxu3 %v8416_v40 }
 0xe50   : > { %v8461_v19 = vpop.f32.mrf.mxu3 }
 0xe51   : > { %v8462_v50 = vadd.f32 %v14295_v43, %v8461_v19 }
 0xe53   : > { %8520 = vst.msk [vmem:[%s12312_s16 + $0x170] sm:$0xff] %vm4561_vm1, %v8462_v50 }
 0xe58   : > { %v8463_v8 = vpop.f32.mrf.mxu3 }
 0xe59   : > { %v8464_v20 = vadd.f32 %v14295_v43, %v8463_v8 }
 0xe5b   : > { %8521 = vst.msk [vmem:[%s12312_s16 + $0x178] sm:$0xff] %vm4561_vm1, %v8464_v20 }
 0xe60   : > { %v8466_v23 = vpop.f32.mrf.mxu3 }
 0xe61   : > { %v8467_v41 = vadd.f32 %v14295_v43, %v8466_v23 }
 0xe63   : > { %8522 = vst.msk [vmem:[%s12312_s16 + $0x180] sm:$0xff] %vm4561_vm1, %v8467_v41 }
 0xe68   : > { %v8468_v31 = vpop.f32.mrf.mxu3 }
 0xe69   : > { %v8469_v1 = vadd.f32 %v14295_v43, %v8468_v31 }
 0xe6b   : > { %8523 = vst.msk [vmem:[%s12312_s16 + $0x188] sm:$0xff] %vm4561_vm1, %v8469_v1 }
 0xe70   : > { %v8471_v56 = vpop.f32.mrf.mxu3 }
 0xe71   : > { %v8472_v47 = vadd.f32 %v14295_v43, %v8471_v56 }
 0xe73   : > { %8524 = vst.msk [vmem:[%s12312_s16 + $0x190] sm:$0xff] %vm4561_vm1, %v8472_v47 }
 0xe78   : > { %v8473_v26 = vpop.f32.mrf.mxu3 }
 0xe79   : > { %v8474_v4 = vadd.f32 %v14295_v43, %v8473_v26 }
 0xe7b   : > { %8525 = vst.msk [vmem:[%s12312_s16 + $0x198] sm:$0xff] %vm4561_vm1, %v8474_v4 }
 0xe80   : > { %v8476_v39 = vpop.f32.mrf.mxu3 }
 0xe81   : > { %v8477_v6 = vadd.f32 %v14295_v43, %v8476_v39 }
 0xe83   : > { %8526 = vst.msk [vmem:[%s12312_s16 + $0x1a0] sm:$0xff] %vm4561_vm1, %v8477_v6 }
 0xe88   : > { %v8478_v46 = vpop.f32.mrf.mxu3 }
 0xe89   : > { %v8479_v34 = vadd.f32 %v14295_v43, %v8478_v46 }
 0xe8b   : > { %8527 = vst.msk [vmem:[%s12312_s16 + $0x1a8] sm:$0xff] %vm4561_vm1, %v8479_v34 }
 0xe90   : > { %v8481_v22 = vpop.f32.mrf.mxu3 }
 0xe91   : > { %v8482_v32 = vadd.f32 %v14295_v43, %v8481_v22 }
 0xe93   : > { %8528 = vst.msk [vmem:[%s12312_s16 + $0x1b0] sm:$0xff] %vm4561_vm1, %v8482_v32 }
 0xe98   : > { %v8483_v61 = vpop.f32.mrf.mxu3 }
 0xe99   : > { %v8484_v36 = vadd.f32 %v14295_v43, %v8483_v61 }
 0xe9b   : > { %8529 = vst.msk [vmem:[%s12312_s16 + $0x1b8] sm:$0xff] %vm4561_vm1, %v8484_v36 }
 0xea0   : > { %v8486_v57 = vpop.f32.mrf.mxu3 }
 0xea1   : > { %v8487_v7 = vadd.f32 %v14295_v43, %v8486_v57 }
 0xea3   : > { %8530 = vst.msk [vmem:[%s12312_s16 + $0x1c0] sm:$0xff] %vm4561_vm1, %v8487_v7 }
 0xea8   : > { %v8488_v24 = vpop.f32.mrf.mxu3 }
 0xea9   : > { %v8489_v9 = vadd.f32 %v14295_v43, %v8488_v24 }
 0xeab   : > { %8531 = vst.msk [vmem:[%s12312_s16 + $0x1c8] sm:$0xff] %vm4561_vm1, %v8489_v9 }
 0xeb0   : > { %v8491_v0 = vpop.f32.mrf.mxu3 }
 0xeb1   : > { %v8492_v2 = vadd.f32 %v14295_v43, %v8491_v0 }
 0xeb3   : > { %8532 = vst.msk [vmem:[%s12312_s16 + $0x1d0] sm:$0xff] %vm4561_vm1, %v8492_v2 }
 0xeb8   : > { %v8493_v45 = vpop.f32.mrf.mxu3 }
 0xeb9   : > { %v8494_v33 = vadd.f32 %v14295_v43, %v8493_v45 }
 0xebb   : > { %8533 = vst.msk [vmem:[%s12312_s16 + $0x1d8] sm:$0xff] %vm4561_vm1, %v8494_v33 }
 0xec0   : > { %v8496_v63 = vpop.f32.mrf.mxu3 }
 0xec1   : > { %v8497_v59 = vadd.f32 %v14295_v43, %v8496_v63 }
 0xec3   : > { %8534 = vst.msk [vmem:[%s12312_s16 + $0x1e0] sm:$0xff] %vm4561_vm1, %v8497_v59 }
 0xec8   : > { %v8498_v18 = vpop.f32.mrf.mxu3 }
 0xec9   : > { %v8499_v35 = vadd.f32 %v14295_v43, %v8498_v18 }
 0xecb   : > { %8535 = vst.msk [vmem:[%s12312_s16 + $0x1e8] sm:$0xff] %vm4561_vm1, %v8499_v35 }
 0xed0   : > { %v8501_v62 = vpop.f32.mrf.mxu3 }
 0xed1   : > { %v8502_v12 = vadd.f32 %v14295_v43, %v8501_v62 }
 0xed3   : > { %8536 = vst.msk [vmem:[%s12312_s16 + $0x1f0] sm:$0xff] %vm4561_vm1, %v8502_v12 }
 0xed8   : > { %v8503_v38 = vpop.f32.mrf.mxu3 }
 0xed9   : > { %v8504_v30 = vadd.f32 %v14295_v43, %v8503_v38 }
 0xedb   : > { %8537 = vst.msk [vmem:[%s12312_s16 + $0x1f8] sm:$0xff] %vm4561_vm1, %v8504_v30 }
 0xedc PF: > { %s24_s29 = sadd.s32 1, %s9979_s29  }
 0xedd   : > { %p21_p4 = scmp.ge.s32.totalorder %s24_s29, 4  }
 0xedf   :  { %23 = sbr.rel (!%p21_p4) target bundleno = 1 (0x1), region = 128 }

</bundles_post_ra>
